<compile_context>
chip_gen: v7x
topology: tpu7x:2x2x1
jax: 0.10.0
libtpu: 0.0.40
codegen_flags: <defaults>
</compile_context>

<pallas_src>
import jax
import jax.numpy as jnp
from jax.experimental import pallas as pl
from jax.experimental.pallas import tpu as pltpu

EPS = 1e-5
LANE = 128


# --------------------------------------------------------------------------
# Kernel
# --------------------------------------------------------------------------
def _make_mlp_kernel(sub_rows: int):
    """Fused 4-layer MLP over one (tb, F) activation tile.

    Weights/biases are whole-array blocks with a constant index_map, so they
    stay VMEM-resident across the batch grid.  BN is already folded into the
    (w, b) pairs; Dropout is the identity (inference mode)."""

    def kernel(x_ref, w1, b1, w2, b2, w3, b3, w4, b4, o_ref):
        def block(xs):
            # MXU dots: bf16 operands, f32 accumulation.  Bias add / ReLU stay
            # in f32 (v5e has no bf16 VPU).
            h = jnp.dot(xs.astype(jnp.bfloat16), w1[...],
                        preferred_element_type=jnp.float32) + b1[...]
            h = jnp.maximum(h, 0.0)
            h = jnp.dot(h.astype(jnp.bfloat16), w2[...],
                        preferred_element_type=jnp.float32) + b2[...]
            h = jnp.maximum(h, 0.0)
            h = jnp.dot(h.astype(jnp.bfloat16), w3[...],
                        preferred_element_type=jnp.float32) + b3[...]
            h = jnp.maximum(h, 0.0)
            return jnp.dot(h.astype(jnp.bfloat16), w4[...],
                           preferred_element_type=jnp.float32) + b4[...]

        tb = x_ref.shape[0]
        n_sub = tb // sub_rows
        if n_sub <= 1:
            # Tile already small enough: single pass, no inner loop.
            o_ref[...] = block(x_ref[...]).astype(o_ref.dtype)
        else:
            # Sub-slab the batch tile to bound live vreg ranges at large tb.
            def body(i, carry):
                r0 = pl.multiple_of(i * sub_rows, sub_rows)
                xs = x_ref[pl.ds(r0, sub_rows), :]
                o_ref[pl.ds(r0, sub_rows), :] = block(xs).astype(o_ref.dtype)
                return carry

            jax.lax.fori_loop(0, n_sub, body, 0, unroll=True)

    return kernel


# --------------------------------------------------------------------------
# Parameter folding (do this ONCE, outside the per-call hot path)
# --------------------------------------------------------------------------
def fold_and_pack_params(raw_params):
    """Fold BN into the linears (in f32), cast weights to bf16, pad the final
    layer to a lane-dense (multiple-of-128) output width.  Returns the 8
    folded arrays and the padded output width."""
    (w1, b1, g1, be1, m1, v1,
     w2, b2, g2, be2, m2, v2,
     w3, b3, g3, be3, m3, v3,
     w4, b4) = raw_params

    def fold(w, b, gamma, beta, mean, var):
        scale = gamma * jax.lax.rsqrt(var + EPS)          # (1, H), f32
        w_eff = (w * scale).astype(jnp.bfloat16)          # bf16 for the MXU
        b_eff = (b - mean) * scale + beta                 # f32 elementwise
        return w_eff, b_eff

    w1e, b1e = fold(w1, b1, g1, be1, m1, v1)
    w2e, b2e = fold(w2, b2, g2, be2, m2, v2)
    w3e, b3e = fold(w3, b3, g3, be3, m3, v3)

    out_dim = w4.shape[1]
    padded_out = out_dim + ((-out_dim) % LANE)            # e.g. 10 -> 128
    w4p = jnp.zeros((w4.shape[0], padded_out), jnp.float32).at[:, :out_dim].set(w4)
    b4p = jnp.zeros((1, padded_out), jnp.float32).at[:, :out_dim].set(b4)
    w4p = w4p.astype(jnp.bfloat16)

    # NOTE(perf, v6e/v7x): at production widths make hidden_dim a multiple of
    # 256 (2x256x256 MXU) and consider padding the layer-1 contraction
    # (K = input_dim) toward 128+ once the kernel is compute-bound.
    return [w1e, b1e, w2e, b2e, w3e, b3e, w4p, b4p], padded_out


# --------------------------------------------------------------------------
# Tiling helpers
# --------------------------------------------------------------------------
def _pick_batch_tile(B, block_b, sub_rows):
    tb = min(block_b, B)
    # Snap down to a divisor of B (avoids wasted compute on a ragged last step).
    if B % tb != 0 and tb > sub_rows:
        cand = (tb // sub_rows) * sub_rows
        while cand >= sub_rows and B % cand != 0:
            cand -= sub_rows
        if cand >= sub_rows:
            tb = cand
    # Keep the batch grid >= 2 steps so v7x's two TensorCores both get work.
    if tb == B and B % 2 == 0 and (B // 2) % 16 == 0:
        tb = B // 2
    return tb


def _vmem_limit_bytes(tb, feat, padded_out, folded_params, x_itemsize, out_itemsize):
    act_in = 2 * tb * feat * x_itemsize                 # double-buffered x tiles
    act_out = 2 * tb * padded_out * out_itemsize        # double-buffered out tiles
    weights = 2 * sum(int(a.size) * a.dtype.itemsize for a in folded_params)
    est = act_in + act_out + weights + (4 << 20)        # + compiler temporaries
    # Floor at the 32 MiB scoped default; stay well under v7x's 64 MiB physical.
    return int(min(max(est, 32 << 20), 48 << 20))


# --------------------------------------------------------------------------
# Forward wrapper
# --------------------------------------------------------------------------
def mlp_classifier_forward(x, folded_params, *, block_b=512, sub_rows=128,
                           out_dtype=jnp.bfloat16, single_buffer_weights=True):
    """x: [B, input_dim] (bf16 preferred straight from the producer; f32 also
    accepted).  folded_params: the 8 arrays from fold_and_pack_params (fold
    ONCE, not per forward).

    Returns the lane-dense padded logits slab [B, padded_out] in `out_dtype`;
    slice [:, :out_dim] lazily / fuse it into the downstream consumer.
    Wrap repeated calls in jax.jit."""
    w1, b1, w2, b2, w3, b3, w4, b4 = folded_params
    B, F = x.shape
    padded_out = w4.shape[1]

    tb = _pick_batch_tile(B, block_b, sub_rows)
    sub = sub_rows if (tb > sub_rows and tb % sub_rows == 0) else tb
    grid = (pl.cdiv(B, tb),)

    row_map = lambda i: (i, 0)       # batch-tiled activations / outputs
    fixed_map = lambda i: (0, 0)     # weights stay VMEM-resident across grid

    vmem_limit = _vmem_limit_bytes(tb, F, padded_out, folded_params,
                                   x.dtype.itemsize,
                                   jnp.dtype(out_dtype).itemsize)

    def build_specs(pipeline_mode):
        def wspec(shape):
            if pipeline_mode is None:
                return pl.BlockSpec(shape, fixed_map)
            return pl.BlockSpec(shape, fixed_map, pipeline_mode=pipeline_mode)
        return [pl.BlockSpec((tb, F), row_map)] + \
               [wspec(p.shape) for p in folded_params]

    def run(pipeline_mode):
        return pl.pallas_call(
            _make_mlp_kernel(sub),
            out_shape=jax.ShapeDtypeStruct((B, padded_out), out_dtype),
            grid=grid,
            in_specs=build_specs(pipeline_mode),
            out_specs=pl.BlockSpec((tb, padded_out), row_map),
            compiler_params=pltpu.CompilerParams(
                dimension_semantics=("parallel",),
                vmem_limit_bytes=vmem_limit),
        )(x, w1, b1, w2, b2, w3, b3, w4, b4)

    if single_buffer_weights and hasattr(pl, "Buffered"):
        try:
            # Constant-index weight blocks never change across the grid, so a
            # second pipeline buffer is pure VMEM waste.  Required headroom when
            # scaling hidden_dim on v7x (64 MiB VMEM); at very large hidden
            # widths also add a K/N "arbitrary" grid axis to stream weight tiles
            # instead of keeping whole layers resident.
            return run(pl.Buffered(1))
        except Exception:
            pass  # JAX version without top-level pipeline_mode support
    return run(None)


# --------------------------------------------------------------------------
# Synthetic parameters & references
# --------------------------------------------------------------------------
def init_params(key, input_dim, hidden_dim, output_dim):
    """Deterministic synthetic parameters (shapes match the nn.Module)."""
    ks = jax.random.split(key, 26)

    def linear(kw, kb, fan_in, fan_out):
        bound = 1.0 / jnp.sqrt(fan_in)
        w = jax.random.uniform(kw, (fan_in, fan_out), jnp.float32, -bound, bound)
        b = jax.random.uniform(kb, (1, fan_out), jnp.float32, -bound, bound)
        return w, b

    def bn(kg, kb, km, kv, dim):
        gamma = 1.0 + 0.1 * jax.random.normal(kg, (1, dim), jnp.float32)
        beta = 0.1 * jax.random.normal(kb, (1, dim), jnp.float32)
        rmean = 0.1 * jax.random.normal(km, (1, dim), jnp.float32)
        rvar = 1.0 + 0.1 * jax.random.uniform(kv, (1, dim), jnp.float32)
        return gamma, beta, rmean, rvar

    w1, b1 = linear(ks[0], ks[1], input_dim, hidden_dim)
    g1, be1, m1, v1 = bn(ks[2], ks[3], ks[4], ks[5], hidden_dim)
    w2, b2 = linear(ks[6], ks[7], hidden_dim, hidden_dim)
    g2, be2, m2, v2 = bn(ks[8], ks[9], ks[10], ks[11], hidden_dim)
    w3, b3 = linear(ks[12], ks[13], hidden_dim, hidden_dim)
    g3, be3, m3, v3 = bn(ks[14], ks[15], ks[16], ks[17], hidden_dim)
    w4, b4 = linear(ks[18], ks[19], hidden_dim, output_dim)

    return [w1, b1, g1, be1, m1, v1,
            w2, b2, g2, be2, m2, v2,
            w3, b3, g3, be3, m3, v3,
            w4, b4]


def mlp_reference_f32(x, p):
    """Plain-JAX f32 reference of the module's eval-mode forward."""
    (w1, b1, g1, be1, m1, v1,
     w2, b2, g2, be2, m2, v2,
     w3, b3, g3, be3, m3, v3,
     w4, b4) = p
    h = x @ w1 + b1
    h = jnp.maximum(g1 * (h - m1) / jnp.sqrt(v1 + EPS) + be1, 0.0)
    h = h @ w2 + b2
    h = jnp.maximum(g2 * (h - m2) / jnp.sqrt(v2 + EPS) + be2, 0.0)
    h = h @ w3 + b3
    h = jnp.maximum(g3 * (h - m3) / jnp.sqrt(v3 + EPS) + be3, 0.0)
    return h @ w4 + b4


def mlp_reference_folded(x, folded, out_dim):
    """Plain-JAX reference with the same bf16/f32 numerics as the kernel."""
    w1, b1, w2, b2, w3, b3, w4, b4 = folded
    h = jnp.maximum(jnp.dot(x.astype(jnp.bfloat16), w1,
                            preferred_element_type=jnp.float32) + b1, 0.0)
    h = jnp.maximum(jnp.dot(h.astype(jnp.bfloat16), w2,
                            preferred_element_type=jnp.float32) + b2, 0.0)
    h = jnp.maximum(jnp.dot(h.astype(jnp.bfloat16), w3,
                            preferred_element_type=jnp.float32) + b3, 0.0)
    out = jnp.dot(h.astype(jnp.bfloat16), w4,
                  preferred_element_type=jnp.float32) + b4
    return out[:, :out_dim]


# --------------------------------------------------------------------------
# Demo / self-test
# --------------------------------------------------------------------------
if __name__ == "__main__":
    # Small shapes consistent with the module.  B=1024 with block_b=512
    # exercises a 2-step "parallel" batch grid (v7x megacore) and the 128-row
    # sub-slab loop inside the kernel.  hidden=256 is 256-aligned for the
    # v6e/v7x MXU (module default is 512).
    B, INPUT_DIM, HIDDEN_DIM, OUTPUT_DIM = 1024, 64, 256, 10

    key = jax.random.PRNGKey(0)
    kx, kp = jax.random.split(key)
    # In production the input pipeline should hand the kernel bf16 directly
    # (halves the x HBM->VMEM DMA); here the "producer" is this one-time cast.
    x = jax.random.normal(kx, (B, INPUT_DIM), jnp.float32).astype(jnp.bfloat16)

    raw_params = init_params(kp, INPUT_DIM, HIDDEN_DIM, OUTPUT_DIM)
    # Fold BN into the linears ONCE (hoisted out of the per-call hot path).
    folded, padded_out = fold_and_pack_params(raw_params)

    out_padded = mlp_classifier_forward(x, folded, block_b=512, sub_rows=128)
    out_padded = jax.block_until_ready(out_padded)
    assert out_padded.shape == (B, padded_out)

    # Lane-dense padded slab -> real logits (lazy slice; fuse downstream in prod).
    logits = out_padded[:, :OUTPUT_DIM].astype(jnp.float32)

    # Check vs a plain-JAX reference with the same folded bf16/f32 numerics
    # (only MXU accumulation order and the bf16 output rounding differ).
    ref_exact = mlp_reference_folded(x, folded, OUTPUT_DIM)
    assert jnp.allclose(logits, ref_exact, atol=2e-2, rtol=2e-2), \
        "mismatch vs folded reference"

    # Semantics sanity check vs the module's f32 eval-mode math (bf16 rounding
    # of weights/activations only).
    ref_f32 = mlp_reference_f32(x.astype(jnp.float32), raw_params)
    assert jnp.allclose(logits, ref_f32, atol=5e-2, rtol=5e-2), \
        "mismatch vs f32 reference"

    # TODO(synk): training-mode stochastic Dropout and batch-statistics
    # BatchNorm are intentionally not modeled (inference semantics only).
    print("KERNEL_OK")
</pallas_src>

<mosaic_0001>
module attributes {stable_mosaic.version = 11 : i64} {
  func.func @kernel(%arg0: i32, %arg1: memref<512x64xbf16, #tpu.memory_space<vmem>>, %arg2: memref<64x256xbf16, #tpu.memory_space<vmem>>, %arg3: memref<1x256xf32, #tpu.memory_space<vmem>>, %arg4: memref<256x256xbf16, #tpu.memory_space<vmem>>, %arg5: memref<1x256xf32, #tpu.memory_space<vmem>>, %arg6: memref<256x256xbf16, #tpu.memory_space<vmem>>, %arg7: memref<1x256xf32, #tpu.memory_space<vmem>>, %arg8: memref<256x128xbf16, #tpu.memory_space<vmem>>, %arg9: memref<1x128xf32, #tpu.memory_space<vmem>>, %arg10: memref<512x128xbf16, #tpu.memory_space<vmem>>) attributes {dimension_semantics = [#tpu.dimension_semantics<parallel>], iteration_bounds = array<i64: 2>, scalar_prefetch = 0 : i64, scratch_operands = 0 : i64, tpu.core_type = #tpu.core_type<tc>, window_params = [{transform_indices = @transform_0, window_bounds = array<i64: 512, 64>}, {pipeline_mode = #tpu.pipeline_mode<synchronous>, transform_indices = @transform_1, window_bounds = array<i64: 64, 256>}, {pipeline_mode = #tpu.pipeline_mode<synchronous>, transform_indices = @transform_2, window_bounds = array<i64: 1, 256>}, {pipeline_mode = #tpu.pipeline_mode<synchronous>, transform_indices = @transform_3, window_bounds = array<i64: 256, 256>}, {pipeline_mode = #tpu.pipeline_mode<synchronous>, transform_indices = @transform_4, window_bounds = array<i64: 1, 256>}, {pipeline_mode = #tpu.pipeline_mode<synchronous>, transform_indices = @transform_5, window_bounds = array<i64: 256, 256>}, {pipeline_mode = #tpu.pipeline_mode<synchronous>, transform_indices = @transform_6, window_bounds = array<i64: 1, 256>}, {pipeline_mode = #tpu.pipeline_mode<synchronous>, transform_indices = @transform_7, window_bounds = array<i64: 256, 128>}, {pipeline_mode = #tpu.pipeline_mode<synchronous>, transform_indices = @transform_8, window_bounds = array<i64: 1, 128>}, {transform_indices = @transform_9, window_bounds = array<i64: 512, 128>}]} {
    %c0_i32 = arith.constant 0 : i32
    %c128_i32 = arith.constant 128 : i32
    %0 = arith.muli %c0_i32, %c128_i32 : i32
    %1 = tpu.assume_multiple %0, 128 : i32
    %2 = arith.index_cast %1 : i32 to index
    %c0 = arith.constant 0 : index
    %3 = vector.load %arg1[%2, %c0] : memref<512x64xbf16, #tpu.memory_space<vmem>>, vector<128x64xbf16>
    %c0_0 = arith.constant 0 : index
    %c0_1 = arith.constant 0 : index
    %4 = vector.load %arg2[%c0_0, %c0_1] : memref<64x256xbf16, #tpu.memory_space<vmem>>, vector<64x256xbf16>
    %cst = arith.constant dense<0.000000e+00> : vector<128x256xf32>
    %5 = tpu.matmul %3, %4, %cst {dimension_numbers = #tpu.dot_dimension_numbers<[1], [0], [0], [1], [0, 0, 1, 1], [], []>} : vector<128x64xbf16>, vector<64x256xbf16>, vector<128x256xf32> -> vector<128x256xf32>
    %c0_2 = arith.constant 0 : index
    %c0_3 = arith.constant 0 : index
    %6 = vector.load %arg3[%c0_2, %c0_3] : memref<1x256xf32, #tpu.memory_space<vmem>>, vector<1x256xf32>
    %7 = vector.broadcast %6 : vector<1x256xf32> to vector<128x256xf32>
    %8 = arith.addf %5, %7 : vector<128x256xf32>
    %cst_4 = arith.constant 0.000000e+00 : f32
    %9 = vector.broadcast %cst_4 : f32 to vector<128x256xf32>
    %10 = arith.maximumf %8, %9 : vector<128x256xf32>
    %11 = arith.truncf %10 : vector<128x256xf32> to vector<128x256xbf16>
    %c0_5 = arith.constant 0 : index
    %c0_6 = arith.constant 0 : index
    %12 = vector.load %arg4[%c0_5, %c0_6] : memref<256x256xbf16, #tpu.memory_space<vmem>>, vector<256x256xbf16>
    %cst_7 = arith.constant dense<0.000000e+00> : vector<128x256xf32>
    %13 = tpu.matmul %11, %12, %cst_7 {dimension_numbers = #tpu.dot_dimension_numbers<[1], [0], [0], [1], [0, 0, 1, 1], [], []>} : vector<128x256xbf16>, vector<256x256xbf16>, vector<128x256xf32> -> vector<128x256xf32>
    %c0_8 = arith.constant 0 : index
    %c0_9 = arith.constant 0 : index
    %14 = vector.load %arg5[%c0_8, %c0_9] : memref<1x256xf32, #tpu.memory_space<vmem>>, vector<1x256xf32>
    %15 = vector.broadcast %14 : vector<1x256xf32> to vector<128x256xf32>
    %16 = arith.addf %13, %15 : vector<128x256xf32>
    %cst_10 = arith.constant 0.000000e+00 : f32
    %17 = vector.broadcast %cst_10 : f32 to vector<128x256xf32>
    %18 = arith.maximumf %16, %17 : vector<128x256xf32>
    %19 = arith.truncf %18 : vector<128x256xf32> to vector<128x256xbf16>
    %c0_11 = arith.constant 0 : index
    %c0_12 = arith.constant 0 : index
    %20 = vector.load %arg6[%c0_11, %c0_12] : memref<256x256xbf16, #tpu.memory_space<vmem>>, vector<256x256xbf16>
    %cst_13 = arith.constant dense<0.000000e+00> : vector<128x256xf32>
    %21 = tpu.matmul %19, %20, %cst_13 {dimension_numbers = #tpu.dot_dimension_numbers<[1], [0], [0], [1], [0, 0, 1, 1], [], []>} : vector<128x256xbf16>, vector<256x256xbf16>, vector<128x256xf32> -> vector<128x256xf32>
    %c0_14 = arith.constant 0 : index
    %c0_15 = arith.constant 0 : index
    %22 = vector.load %arg7[%c0_14, %c0_15] : memref<1x256xf32, #tpu.memory_space<vmem>>, vector<1x256xf32>
    %23 = vector.broadcast %22 : vector<1x256xf32> to vector<128x256xf32>
    %24 = arith.addf %21, %23 : vector<128x256xf32>
    %cst_16 = arith.constant 0.000000e+00 : f32
    %25 = vector.broadcast %cst_16 : f32 to vector<128x256xf32>
    %26 = arith.maximumf %24, %25 : vector<128x256xf32>
    %27 = arith.truncf %26 : vector<128x256xf32> to vector<128x256xbf16>
    %c0_17 = arith.constant 0 : index
    %c0_18 = arith.constant 0 : index
    %28 = vector.load %arg8[%c0_17, %c0_18] : memref<256x128xbf16, #tpu.memory_space<vmem>>, vector<256x128xbf16>
    %cst_19 = arith.constant dense<0.000000e+00> : vector<128x128xf32>
    %29 = tpu.matmul %27, %28, %cst_19 {dimension_numbers = #tpu.dot_dimension_numbers<[1], [0], [0], [1], [0, 0, 1, 1], [], []>} : vector<128x256xbf16>, vector<256x128xbf16>, vector<128x128xf32> -> vector<128x128xf32>
    %c0_20 = arith.constant 0 : index
    %c0_21 = arith.constant 0 : index
    %30 = vector.load %arg9[%c0_20, %c0_21] : memref<1x128xf32, #tpu.memory_space<vmem>>, vector<1x128xf32>
    %31 = vector.broadcast %30 : vector<1x128xf32> to vector<128x128xf32>
    %32 = arith.addf %29, %31 : vector<128x128xf32>
    %33 = arith.truncf %32 : vector<128x128xf32> to vector<128x128xbf16>
    %34 = arith.index_cast %1 : i32 to index
    %c0_22 = arith.constant 0 : index
    %35 = vector.load %arg10[%34, %c0_22] : memref<512x128xbf16, #tpu.memory_space<vmem>>, vector<128x128xbf16>
    tpu.vector_store %arg10[%34, %c0_22], %33 {strides = array<i32>} : memref<512x128xbf16, #tpu.memory_space<vmem>>, vector<128x128xbf16>,
    %c1_i32 = arith.constant 1 : i32
    %c128_i32_23 = arith.constant 128 : i32
    %36 = arith.muli %c1_i32, %c128_i32_23 : i32
    %37 = tpu.assume_multiple %36, 128 : i32
    %38 = arith.index_cast %37 : i32 to index
    %c0_24 = arith.constant 0 : index
    %39 = vector.load %arg1[%38, %c0_24] : memref<512x64xbf16, #tpu.memory_space<vmem>>, vector<128x64xbf16>
    %c0_25 = arith.constant 0 : index
    %c0_26 = arith.constant 0 : index
    %40 = vector.load %arg2[%c0_25, %c0_26] : memref<64x256xbf16, #tpu.memory_space<vmem>>, vector<64x256xbf16>
    %cst_27 = arith.constant dense<0.000000e+00> : vector<128x256xf32>
    %41 = tpu.matmul %39, %40, %cst_27 {dimension_numbers = #tpu.dot_dimension_numbers<[1], [0], [0], [1], [0, 0, 1, 1], [], []>} : vector<128x64xbf16>, vector<64x256xbf16>, vector<128x256xf32> -> vector<128x256xf32>
    %c0_28 = arith.constant 0 : index
    %c0_29 = arith.constant 0 : index
    %42 = vector.load %arg3[%c0_28, %c0_29] : memref<1x256xf32, #tpu.memory_space<vmem>>, vector<1x256xf32>
    %43 = vector.broadcast %42 : vector<1x256xf32> to vector<128x256xf32>
    %44 = arith.addf %41, %43 : vector<128x256xf32>
    %cst_30 = arith.constant 0.000000e+00 : f32
    %45 = vector.broadcast %cst_30 : f32 to vector<128x256xf32>
    %46 = arith.maximumf %44, %45 : vector<128x256xf32>
    %47 = arith.truncf %46 : vector<128x256xf32> to vector<128x256xbf16>
    %c0_31 = arith.constant 0 : index
    %c0_32 = arith.constant 0 : index
    %48 = vector.load %arg4[%c0_31, %c0_32] : memref<256x256xbf16, #tpu.memory_space<vmem>>, vector<256x256xbf16>
    %cst_33 = arith.constant dense<0.000000e+00> : vector<128x256xf32>
    %49 = tpu.matmul %47, %48, %cst_33 {dimension_numbers = #tpu.dot_dimension_numbers<[1], [0], [0], [1], [0, 0, 1, 1], [], []>} : vector<128x256xbf16>, vector<256x256xbf16>, vector<128x256xf32> -> vector<128x256xf32>
    %c0_34 = arith.constant 0 : index
    %c0_35 = arith.constant 0 : index
    %50 = vector.load %arg5[%c0_34, %c0_35] : memref<1x256xf32, #tpu.memory_space<vmem>>, vector<1x256xf32>
    %51 = vector.broadcast %50 : vector<1x256xf32> to vector<128x256xf32>
    %52 = arith.addf %49, %51 : vector<128x256xf32>
    %cst_36 = arith.constant 0.000000e+00 : f32
    %53 = vector.broadcast %cst_36 : f32 to vector<128x256xf32>
    %54 = arith.maximumf %52, %53 : vector<128x256xf32>
    %55 = arith.truncf %54 : vector<128x256xf32> to vector<128x256xbf16>
    %c0_37 = arith.constant 0 : index
    %c0_38 = arith.constant 0 : index
    %56 = vector.load %arg6[%c0_37, %c0_38] : memref<256x256xbf16, #tpu.memory_space<vmem>>, vector<256x256xbf16>
    %cst_39 = arith.constant dense<0.000000e+00> : vector<128x256xf32>
    %57 = tpu.matmul %55, %56, %cst_39 {dimension_numbers = #tpu.dot_dimension_numbers<[1], [0], [0], [1], [0, 0, 1, 1], [], []>} : vector<128x256xbf16>, vector<256x256xbf16>, vector<128x256xf32> -> vector<128x256xf32>
    %c0_40 = arith.constant 0 : index
    %c0_41 = arith.constant 0 : index
    %58 = vector.load %arg7[%c0_40, %c0_41] : memref<1x256xf32, #tpu.memory_space<vmem>>, vector<1x256xf32>
    %59 = vector.broadcast %58 : vector<1x256xf32> to vector<128x256xf32>
    %60 = arith.addf %57, %59 : vector<128x256xf32>
    %cst_42 = arith.constant 0.000000e+00 : f32
    %61 = vector.broadcast %cst_42 : f32 to vector<128x256xf32>
    %62 = arith.maximumf %60, %61 : vector<128x256xf32>
    %63 = arith.truncf %62 : vector<128x256xf32> to vector<128x256xbf16>
    %c0_43 = arith.constant 0 : index
    %c0_44 = arith.constant 0 : index
    %64 = vector.load %arg8[%c0_43, %c0_44] : memref<256x128xbf16, #tpu.memory_space<vmem>>, vector<256x128xbf16>
    %cst_45 = arith.constant dense<0.000000e+00> : vector<128x128xf32>
    %65 = tpu.matmul %63, %64, %cst_45 {dimension_numbers = #tpu.dot_dimension_numbers<[1], [0], [0], [1], [0, 0, 1, 1], [], []>} : vector<128x256xbf16>, vector<256x128xbf16>, vector<128x128xf32> -> vector<128x128xf32>
    %c0_46 = arith.constant 0 : index
    %c0_47 = arith.constant 0 : index
    %66 = vector.load %arg9[%c0_46, %c0_47] : memref<1x128xf32, #tpu.memory_space<vmem>>, vector<1x128xf32>
    %67 = vector.broadcast %66 : vector<1x128xf32> to vector<128x128xf32>
    %68 = arith.addf %65, %67 : vector<128x128xf32>
    %69 = arith.truncf %68 : vector<128x128xf32> to vector<128x128xbf16>
    %70 = arith.index_cast %37 : i32 to index
    %c0_48 = arith.constant 0 : index
    %71 = vector.load %arg10[%70, %c0_48] : memref<512x128xbf16, #tpu.memory_space<vmem>>, vector<128x128xbf16>
    tpu.vector_store %arg10[%70, %c0_48], %69 {strides = array<i32>} : memref<512x128xbf16, #tpu.memory_space<vmem>>, vector<128x128xbf16>,
    %c2_i32 = arith.constant 2 : i32
    %c128_i32_49 = arith.constant 128 : i32
    %72 = arith.muli %c2_i32, %c128_i32_49 : i32
    %73 = tpu.assume_multiple %72, 128 : i32
    %74 = arith.index_cast %73 : i32 to index
    %c0_50 = arith.constant 0 : index
    %75 = vector.load %arg1[%74, %c0_50] : memref<512x64xbf16, #tpu.memory_space<vmem>>, vector<128x64xbf16>
    %c0_51 = arith.constant 0 : index
    %c0_52 = arith.constant 0 : index
    %76 = vector.load %arg2[%c0_51, %c0_52] : memref<64x256xbf16, #tpu.memory_space<vmem>>, vector<64x256xbf16>
    %cst_53 = arith.constant dense<0.000000e+00> : vector<128x256xf32>
    %77 = tpu.matmul %75, %76, %cst_53 {dimension_numbers = #tpu.dot_dimension_numbers<[1], [0], [0], [1], [0, 0, 1, 1], [], []>} : vector<128x64xbf16>, vector<64x256xbf16>, vector<128x256xf32> -> vector<128x256xf32>
    %c0_54 = arith.constant 0 : index
    %c0_55 = arith.constant 0 : index
    %78 = vector.load %arg3[%c0_54, %c0_55] : memref<1x256xf32, #tpu.memory_space<vmem>>, vector<1x256xf32>
    %79 = vector.broadcast %78 : vector<1x256xf32> to vector<128x256xf32>
    %80 = arith.addf %77, %79 : vector<128x256xf32>
    %cst_56 = arith.constant 0.000000e+00 : f32
    %81 = vector.broadcast %cst_56 : f32 to vector<128x256xf32>
    %82 = arith.maximumf %80, %81 : vector<128x256xf32>
    %83 = arith.truncf %82 : vector<128x256xf32> to vector<128x256xbf16>
    %c0_57 = arith.constant 0 : index
    %c0_58 = arith.constant 0 : index
    %84 = vector.load %arg4[%c0_57, %c0_58] : memref<256x256xbf16, #tpu.memory_space<vmem>>, vector<256x256xbf16>
    %cst_59 = arith.constant dense<0.000000e+00> : vector<128x256xf32>
    %85 = tpu.matmul %83, %84, %cst_59 {dimension_numbers = #tpu.dot_dimension_numbers<[1], [0], [0], [1], [0, 0, 1, 1], [], []>} : vector<128x256xbf16>, vector<256x256xbf16>, vector<128x256xf32> -> vector<128x256xf32>
    %c0_60 = arith.constant 0 : index
    %c0_61 = arith.constant 0 : index
    %86 = vector.load %arg5[%c0_60, %c0_61] : memref<1x256xf32, #tpu.memory_space<vmem>>, vector<1x256xf32>
    %87 = vector.broadcast %86 : vector<1x256xf32> to vector<128x256xf32>
    %88 = arith.addf %85, %87 : vector<128x256xf32>
    %cst_62 = arith.constant 0.000000e+00 : f32
    %89 = vector.broadcast %cst_62 : f32 to vector<128x256xf32>
    %90 = arith.maximumf %88, %89 : vector<128x256xf32>
    %91 = arith.truncf %90 : vector<128x256xf32> to vector<128x256xbf16>
    %c0_63 = arith.constant 0 : index
    %c0_64 = arith.constant 0 : index
    %92 = vector.load %arg6[%c0_63, %c0_64] : memref<256x256xbf16, #tpu.memory_space<vmem>>, vector<256x256xbf16>
    %cst_65 = arith.constant dense<0.000000e+00> : vector<128x256xf32>
    %93 = tpu.matmul %91, %92, %cst_65 {dimension_numbers = #tpu.dot_dimension_numbers<[1], [0], [0], [1], [0, 0, 1, 1], [], []>} : vector<128x256xbf16>, vector<256x256xbf16>, vector<128x256xf32> -> vector<128x256xf32>
    %c0_66 = arith.constant 0 : index
    %c0_67 = arith.constant 0 : index
    %94 = vector.load %arg7[%c0_66, %c0_67] : memref<1x256xf32, #tpu.memory_space<vmem>>, vector<1x256xf32>
    %95 = vector.broadcast %94 : vector<1x256xf32> to vector<128x256xf32>
    %96 = arith.addf %93, %95 : vector<128x256xf32>
    %cst_68 = arith.constant 0.000000e+00 : f32
    %97 = vector.broadcast %cst_68 : f32 to vector<128x256xf32>
    %98 = arith.maximumf %96, %97 : vector<128x256xf32>
    %99 = arith.truncf %98 : vector<128x256xf32> to vector<128x256xbf16>
    %c0_69 = arith.constant 0 : index
    %c0_70 = arith.constant 0 : index
    %100 = vector.load %arg8[%c0_69, %c0_70] : memref<256x128xbf16, #tpu.memory_space<vmem>>, vector<256x128xbf16>
    %cst_71 = arith.constant dense<0.000000e+00> : vector<128x128xf32>
    %101 = tpu.matmul %99, %100, %cst_71 {dimension_numbers = #tpu.dot_dimension_numbers<[1], [0], [0], [1], [0, 0, 1, 1], [], []>} : vector<128x256xbf16>, vector<256x128xbf16>, vector<128x128xf32> -> vector<128x128xf32>
    %c0_72 = arith.constant 0 : index
    %c0_73 = arith.constant 0 : index
    %102 = vector.load %arg9[%c0_72, %c0_73] : memref<1x128xf32, #tpu.memory_space<vmem>>, vector<1x128xf32>
    %103 = vector.broadcast %102 : vector<1x128xf32> to vector<128x128xf32>
    %104 = arith.addf %101, %103 : vector<128x128xf32>
    %105 = arith.truncf %104 : vector<128x128xf32> to vector<128x128xbf16>
    %106 = arith.index_cast %73 : i32 to index
    %c0_74 = arith.constant 0 : index
    %107 = vector.load %arg10[%106, %c0_74] : memref<512x128xbf16, #tpu.memory_space<vmem>>, vector<128x128xbf16>
    tpu.vector_store %arg10[%106, %c0_74], %105 {strides = array<i32>} : memref<512x128xbf16, #tpu.memory_space<vmem>>, vector<128x128xbf16>,
    %c3_i32 = arith.constant 3 : i32
    %c128_i32_75 = arith.constant 128 : i32
    %108 = arith.muli %c3_i32, %c128_i32_75 : i32
    %109 = tpu.assume_multiple %108, 128 : i32
    %110 = arith.index_cast %109 : i32 to index
    %c0_76 = arith.constant 0 : index
    %111 = vector.load %arg1[%110, %c0_76] : memref<512x64xbf16, #tpu.memory_space<vmem>>, vector<128x64xbf16>
    %c0_77 = arith.constant 0 : index
    %c0_78 = arith.constant 0 : index
    %112 = vector.load %arg2[%c0_77, %c0_78] : memref<64x256xbf16, #tpu.memory_space<vmem>>, vector<64x256xbf16>
    %cst_79 = arith.constant dense<0.000000e+00> : vector<128x256xf32>
    %113 = tpu.matmul %111, %112, %cst_79 {dimension_numbers = #tpu.dot_dimension_numbers<[1], [0], [0], [1], [0, 0, 1, 1], [], []>} : vector<128x64xbf16>, vector<64x256xbf16>, vector<128x256xf32> -> vector<128x256xf32>
    %c0_80 = arith.constant 0 : index
    %c0_81 = arith.constant 0 : index
    %114 = vector.load %arg3[%c0_80, %c0_81] : memref<1x256xf32, #tpu.memory_space<vmem>>, vector<1x256xf32>
    %115 = vector.broadcast %114 : vector<1x256xf32> to vector<128x256xf32>
    %116 = arith.addf %113, %115 : vector<128x256xf32>
    %cst_82 = arith.constant 0.000000e+00 : f32
    %117 = vector.broadcast %cst_82 : f32 to vector<128x256xf32>
    %118 = arith.maximumf %116, %117 : vector<128x256xf32>
    %119 = arith.truncf %118 : vector<128x256xf32> to vector<128x256xbf16>
    %c0_83 = arith.constant 0 : index
    %c0_84 = arith.constant 0 : index
    %120 = vector.load %arg4[%c0_83, %c0_84] : memref<256x256xbf16, #tpu.memory_space<vmem>>, vector<256x256xbf16>
    %cst_85 = arith.constant dense<0.000000e+00> : vector<128x256xf32>
    %121 = tpu.matmul %119, %120, %cst_85 {dimension_numbers = #tpu.dot_dimension_numbers<[1], [0], [0], [1], [0, 0, 1, 1], [], []>} : vector<128x256xbf16>, vector<256x256xbf16>, vector<128x256xf32> -> vector<128x256xf32>
    %c0_86 = arith.constant 0 : index
    %c0_87 = arith.constant 0 : index
    %122 = vector.load %arg5[%c0_86, %c0_87] : memref<1x256xf32, #tpu.memory_space<vmem>>, vector<1x256xf32>
    %123 = vector.broadcast %122 : vector<1x256xf32> to vector<128x256xf32>
    %124 = arith.addf %121, %123 : vector<128x256xf32>
    %cst_88 = arith.constant 0.000000e+00 : f32
    %125 = vector.broadcast %cst_88 : f32 to vector<128x256xf32>
    %126 = arith.maximumf %124, %125 : vector<128x256xf32>
    %127 = arith.truncf %126 : vector<128x256xf32> to vector<128x256xbf16>
    %c0_89 = arith.constant 0 : index
    %c0_90 = arith.constant 0 : index
    %128 = vector.load %arg6[%c0_89, %c0_90] : memref<256x256xbf16, #tpu.memory_space<vmem>>, vector<256x256xbf16>
    %cst_91 = arith.constant dense<0.000000e+00> : vector<128x256xf32>
    %129 = tpu.matmul %127, %128, %cst_91 {dimension_numbers = #tpu.dot_dimension_numbers<[1], [0], [0], [1], [0, 0, 1, 1], [], []>} : vector<128x256xbf16>, vector<256x256xbf16>, vector<128x256xf32> -> vector<128x256xf32>
    %c0_92 = arith.constant 0 : index
    %c0_93 = arith.constant 0 : index
    %130 = vector.load %arg7[%c0_92, %c0_93] : memref<1x256xf32, #tpu.memory_space<vmem>>, vector<1x256xf32>
    %131 = vector.broadcast %130 : vector<1x256xf32> to vector<128x256xf32>
    %132 = arith.addf %129, %131 : vector<128x256xf32>
    %cst_94 = arith.constant 0.000000e+00 : f32
    %133 = vector.broadcast %cst_94 : f32 to vector<128x256xf32>
    %134 = arith.maximumf %132, %133 : vector<128x256xf32>
    %135 = arith.truncf %134 : vector<128x256xf32> to vector<128x256xbf16>
    %c0_95 = arith.constant 0 : index
    %c0_96 = arith.constant 0 : index
    %136 = vector.load %arg8[%c0_95, %c0_96] : memref<256x128xbf16, #tpu.memory_space<vmem>>, vector<256x128xbf16>
    %cst_97 = arith.constant dense<0.000000e+00> : vector<128x128xf32>
    %137 = tpu.matmul %135, %136, %cst_97 {dimension_numbers = #tpu.dot_dimension_numbers<[1], [0], [0], [1], [0, 0, 1, 1], [], []>} : vector<128x256xbf16>, vector<256x128xbf16>, vector<128x128xf32> -> vector<128x128xf32>
    %c0_98 = arith.constant 0 : index
    %c0_99 = arith.constant 0 : index
    %138 = vector.load %arg9[%c0_98, %c0_99] : memref<1x128xf32, #tpu.memory_space<vmem>>, vector<1x128xf32>
    %139 = vector.broadcast %138 : vector<1x128xf32> to vector<128x128xf32>
    %140 = arith.addf %137, %139 : vector<128x128xf32>
    %141 = arith.truncf %140 : vector<128x128xf32> to vector<128x128xbf16>
    %142 = arith.index_cast %109 : i32 to index
    %c0_100 = arith.constant 0 : index
    %143 = vector.load %arg10[%142, %c0_100] : memref<512x128xbf16, #tpu.memory_space<vmem>>, vector<128x128xbf16>
    tpu.vector_store %arg10[%142, %c0_100], %141 {strides = array<i32>} : memref<512x128xbf16, #tpu.memory_space<vmem>>, vector<128x128xbf16>,
    %c4_i32 = arith.constant 4 : i32
    return
  }
  func.func @transform_0(%arg0: i32) -> (i32, i32) {
    %c0_i32 = arith.constant 0 : i32
    %c0_i32_0 = arith.constant 0 : i32
    return %arg0, %c0_i32 : i32, i32
  }
  func.func @transform_1(%arg0: i32) -> (i32, i32) {
    %c0_i32 = arith.constant 0 : i32
    %c0_i32_0 = arith.constant 0 : i32
    %c0_i32_1 = arith.constant 0 : i32
    return %c0_i32, %c0_i32_0 : i32, i32
  }
  func.func @transform_2(%arg0: i32) -> (i32, i32) {
    %c0_i32 = arith.constant 0 : i32
    %c0_i32_0 = arith.constant 0 : i32
    %c0_i32_1 = arith.constant 0 : i32
    return %c0_i32, %c0_i32_0 : i32, i32
  }
  func.func @transform_3(%arg0: i32) -> (i32, i32) {
    %c0_i32 = arith.constant 0 : i32
    %c0_i32_0 = arith.constant 0 : i32
    %c0_i32_1 = arith.constant 0 : i32
    return %c0_i32, %c0_i32_0 : i32, i32
  }
  func.func @transform_4(%arg0: i32) -> (i32, i32) {
    %c0_i32 = arith.constant 0 : i32
    %c0_i32_0 = arith.constant 0 : i32
    %c0_i32_1 = arith.constant 0 : i32
    return %c0_i32, %c0_i32_0 : i32, i32
  }
  func.func @transform_5(%arg0: i32) -> (i32, i32) {
    %c0_i32 = arith.constant 0 : i32
    %c0_i32_0 = arith.constant 0 : i32
    %c0_i32_1 = arith.constant 0 : i32
    return %c0_i32, %c0_i32_0 : i32, i32
  }
  func.func @transform_6(%arg0: i32) -> (i32, i32) {
    %c0_i32 = arith.constant 0 : i32
    %c0_i32_0 = arith.constant 0 : i32
    %c0_i32_1 = arith.constant 0 : i32
    return %c0_i32, %c0_i32_0 : i32, i32
  }
  func.func @transform_7(%arg0: i32) -> (i32, i32) {
    %c0_i32 = arith.constant 0 : i32
    %c0_i32_0 = arith.constant 0 : i32
    %c0_i32_1 = arith.constant 0 : i32
    return %c0_i32, %c0_i32_0 : i32, i32
  }
  func.func @transform_8(%arg0: i32) -> (i32, i32) {
    %c0_i32 = arith.constant 0 : i32
    %c0_i32_0 = arith.constant 0 : i32
    %c0_i32_1 = arith.constant 0 : i32
    return %c0_i32, %c0_i32_0 : i32, i32
  }
  func.func @transform_9(%arg0: i32) -> (i32, i32) {
    %c0_i32 = arith.constant 0 : i32
    %c0_i32_0 = arith.constant 0 : i32
    return %arg0, %c0_i32 : i32, i32
  }
}

module attributes {stable_mosaic.version = 11 : i64} {
  func.func @kernel(%arg0: i32, %arg1: memref<512x64xbf16, #tpu.memory_space<vmem>>, %arg2: memref<64x256xbf16, #tpu.memory_space<vmem>>, %arg3: memref<1x256xf32, #tpu.memory_space<vmem>>, %arg4: memref<256x256xbf16, #tpu.memory_space<vmem>>, %arg5: memref<1x256xf32, #tpu.memory_space<vmem>>, %arg6: memref<256x256xbf16, #tpu.memory_space<vmem>>, %arg7: memref<1x256xf32, #tpu.memory_space<vmem>>, %arg8: memref<256x128xbf16, #tpu.memory_space<vmem>>, %arg9: memref<1x128xf32, #tpu.memory_space<vmem>>, %arg10: memref<512x128xbf16, #tpu.memory_space<vmem>>) attributes {dimension_semantics = [#tpu.dimension_semantics<parallel>], iteration_bounds = array<i64: 2>, scalar_prefetch = 0 : i64, scratch_operands = 0 : i64, tpu.core_type = #tpu.core_type<tc>, window_params = [{transform_indices = @transform_0, window_bounds = array<i64: 512, 64>}, {pipeline_mode = #tpu.pipeline_mode<synchronous>, transform_indices = @transform_1, window_bounds = array<i64: 64, 256>}, {pipeline_mode = #tpu.pipeline_mode<synchronous>, transform_indices = @transform_2, window_bounds = array<i64: 1, 256>}, {pipeline_mode = #tpu.pipeline_mode<synchronous>, transform_indices = @transform_3, window_bounds = array<i64: 256, 256>}, {pipeline_mode = #tpu.pipeline_mode<synchronous>, transform_indices = @transform_4, window_bounds = array<i64: 1, 256>}, {pipeline_mode = #tpu.pipeline_mode<synchronous>, transform_indices = @transform_5, window_bounds = array<i64: 256, 256>}, {pipeline_mode = #tpu.pipeline_mode<synchronous>, transform_indices = @transform_6, window_bounds = array<i64: 1, 256>}, {pipeline_mode = #tpu.pipeline_mode<synchronous>, transform_indices = @transform_7, window_bounds = array<i64: 256, 128>}, {pipeline_mode = #tpu.pipeline_mode<synchronous>, transform_indices = @transform_8, window_bounds = array<i64: 1, 128>}, {transform_indices = @transform_9, window_bounds = array<i64: 512, 128>}]} {
    %c0_i32 = arith.constant 0 : i32
    %c128_i32 = arith.constant 128 : i32
    %0 = arith.muli %c0_i32, %c128_i32 : i32
    %1 = tpu.assume_multiple %0, 128 : i32
    %2 = arith.index_cast %1 : i32 to index
    %c0 = arith.constant 0 : index
    %3 = vector.load %arg1[%2, %c0] : memref<512x64xbf16, #tpu.memory_space<vmem>>, vector<128x64xbf16>
    %c0_0 = arith.constant 0 : index
    %c0_1 = arith.constant 0 : index
    %4 = vector.load %arg2[%c0_0, %c0_1] : memref<64x256xbf16, #tpu.memory_space<vmem>>, vector<64x256xbf16>
    %cst = arith.constant dense<0.000000e+00> : vector<128x256xf32>
    %5 = tpu.matmul %3, %4, %cst {dimension_numbers = #tpu.dot_dimension_numbers<[1], [0], [0], [1], [0, 0, 1, 1], [], []>} : vector<128x64xbf16>, vector<64x256xbf16>, vector<128x256xf32> -> vector<128x256xf32>
    %c0_2 = arith.constant 0 : index
    %c0_3 = arith.constant 0 : index
    %6 = vector.load %arg3[%c0_2, %c0_3] : memref<1x256xf32, #tpu.memory_space<vmem>>, vector<1x256xf32>
    %7 = vector.broadcast %6 : vector<1x256xf32> to vector<128x256xf32>
    %8 = arith.addf %5, %7 : vector<128x256xf32>
    %cst_4 = arith.constant 0.000000e+00 : f32
    %9 = vector.broadcast %cst_4 : f32 to vector<128x256xf32>
    %10 = arith.maximumf %8, %9 : vector<128x256xf32>
    %11 = arith.truncf %10 : vector<128x256xf32> to vector<128x256xbf16>
    %c0_5 = arith.constant 0 : index
    %c0_6 = arith.constant 0 : index
    %12 = vector.load %arg4[%c0_5, %c0_6] : memref<256x256xbf16, #tpu.memory_space<vmem>>, vector<256x256xbf16>
    %cst_7 = arith.constant dense<0.000000e+00> : vector<128x256xf32>
    %13 = tpu.matmul %11, %12, %cst_7 {dimension_numbers = #tpu.dot_dimension_numbers<[1], [0], [0], [1], [0, 0, 1, 1], [], []>} : vector<128x256xbf16>, vector<256x256xbf16>, vector<128x256xf32> -> vector<128x256xf32>
    %c0_8 = arith.constant 0 : index
    %c0_9 = arith.constant 0 : index
    %14 = vector.load %arg5[%c0_8, %c0_9] : memref<1x256xf32, #tpu.memory_space<vmem>>, vector<1x256xf32>
    %15 = vector.broadcast %14 : vector<1x256xf32> to vector<128x256xf32>
    %16 = arith.addf %13, %15 : vector<128x256xf32>
    %cst_10 = arith.constant 0.000000e+00 : f32
    %17 = vector.broadcast %cst_10 : f32 to vector<128x256xf32>
    %18 = arith.maximumf %16, %17 : vector<128x256xf32>
    %19 = arith.truncf %18 : vector<128x256xf32> to vector<128x256xbf16>
    %c0_11 = arith.constant 0 : index
    %c0_12 = arith.constant 0 : index
    %20 = vector.load %arg6[%c0_11, %c0_12] : memref<256x256xbf16, #tpu.memory_space<vmem>>, vector<256x256xbf16>
    %cst_13 = arith.constant dense<0.000000e+00> : vector<128x256xf32>
    %21 = tpu.matmul %19, %20, %cst_13 {dimension_numbers = #tpu.dot_dimension_numbers<[1], [0], [0], [1], [0, 0, 1, 1], [], []>} : vector<128x256xbf16>, vector<256x256xbf16>, vector<128x256xf32> -> vector<128x256xf32>
    %c0_14 = arith.constant 0 : index
    %c0_15 = arith.constant 0 : index
    %22 = vector.load %arg7[%c0_14, %c0_15] : memref<1x256xf32, #tpu.memory_space<vmem>>, vector<1x256xf32>
    %23 = vector.broadcast %22 : vector<1x256xf32> to vector<128x256xf32>
    %24 = arith.addf %21, %23 : vector<128x256xf32>
    %cst_16 = arith.constant 0.000000e+00 : f32
    %25 = vector.broadcast %cst_16 : f32 to vector<128x256xf32>
    %26 = arith.maximumf %24, %25 : vector<128x256xf32>
    %27 = arith.truncf %26 : vector<128x256xf32> to vector<128x256xbf16>
    %c0_17 = arith.constant 0 : index
    %c0_18 = arith.constant 0 : index
    %28 = vector.load %arg8[%c0_17, %c0_18] : memref<256x128xbf16, #tpu.memory_space<vmem>>, vector<256x128xbf16>
    %cst_19 = arith.constant dense<0.000000e+00> : vector<128x128xf32>
    %29 = tpu.matmul %27, %28, %cst_19 {dimension_numbers = #tpu.dot_dimension_numbers<[1], [0], [0], [1], [0, 0, 1, 1], [], []>} : vector<128x256xbf16>, vector<256x128xbf16>, vector<128x128xf32> -> vector<128x128xf32>
    %c0_20 = arith.constant 0 : index
    %c0_21 = arith.constant 0 : index
    %30 = vector.load %arg9[%c0_20, %c0_21] : memref<1x128xf32, #tpu.memory_space<vmem>>, vector<1x128xf32>
    %31 = vector.broadcast %30 : vector<1x128xf32> to vector<128x128xf32>
    %32 = arith.addf %29, %31 : vector<128x128xf32>
    %33 = arith.truncf %32 : vector<128x128xf32> to vector<128x128xbf16>
    %34 = arith.index_cast %1 : i32 to index
    %c0_22 = arith.constant 0 : index
    %35 = vector.load %arg10[%34, %c0_22] : memref<512x128xbf16, #tpu.memory_space<vmem>>, vector<128x128xbf16>
    tpu.vector_store %arg10[%34, %c0_22], %33 {strides = array<i32>} : memref<512x128xbf16, #tpu.memory_space<vmem>>, vector<128x128xbf16>,
    %c1_i32 = arith.constant 1 : i32
    %c128_i32_23 = arith.constant 128 : i32
    %36 = arith.muli %c1_i32, %c128_i32_23 : i32
    %37 = tpu.assume_multiple %36, 128 : i32
    %38 = arith.index_cast %37 : i32 to index
    %c0_24 = arith.constant 0 : index
    %39 = vector.load %arg1[%38, %c0_24] : memref<512x64xbf16, #tpu.memory_space<vmem>>, vector<128x64xbf16>
    %c0_25 = arith.constant 0 : index
    %c0_26 = arith.constant 0 : index
    %40 = vector.load %arg2[%c0_25, %c0_26] : memref<64x256xbf16, #tpu.memory_space<vmem>>, vector<64x256xbf16>
    %cst_27 = arith.constant dense<0.000000e+00> : vector<128x256xf32>
    %41 = tpu.matmul %39, %40, %cst_27 {dimension_numbers = #tpu.dot_dimension_numbers<[1], [0], [0], [1], [0, 0, 1, 1], [], []>} : vector<128x64xbf16>, vector<64x256xbf16>, vector<128x256xf32> -> vector<128x256xf32>
    %c0_28 = arith.constant 0 : index
    %c0_29 = arith.constant 0 : index
    %42 = vector.load %arg3[%c0_28, %c0_29] : memref<1x256xf32, #tpu.memory_space<vmem>>, vector<1x256xf32>
    %43 = vector.broadcast %42 : vector<1x256xf32> to vector<128x256xf32>
    %44 = arith.addf %41, %43 : vector<128x256xf32>
    %cst_30 = arith.constant 0.000000e+00 : f32
    %45 = vector.broadcast %cst_30 : f32 to vector<128x256xf32>
    %46 = arith.maximumf %44, %45 : vector<128x256xf32>
    %47 = arith.truncf %46 : vector<128x256xf32> to vector<128x256xbf16>
    %c0_31 = arith.constant 0 : index
    %c0_32 = arith.constant 0 : index
    %48 = vector.load %arg4[%c0_31, %c0_32] : memref<256x256xbf16, #tpu.memory_space<vmem>>, vector<256x256xbf16>
    %cst_33 = arith.constant dense<0.000000e+00> : vector<128x256xf32>
    %49 = tpu.matmul %47, %48, %cst_33 {dimension_numbers = #tpu.dot_dimension_numbers<[1], [0], [0], [1], [0, 0, 1, 1], [], []>} : vector<128x256xbf16>, vector<256x256xbf16>, vector<128x256xf32> -> vector<128x256xf32>
    %c0_34 = arith.constant 0 : index
    %c0_35 = arith.constant 0 : index
    %50 = vector.load %arg5[%c0_34, %c0_35] : memref<1x256xf32, #tpu.memory_space<vmem>>, vector<1x256xf32>
    %51 = vector.broadcast %50 : vector<1x256xf32> to vector<128x256xf32>
    %52 = arith.addf %49, %51 : vector<128x256xf32>
    %cst_36 = arith.constant 0.000000e+00 : f32
    %53 = vector.broadcast %cst_36 : f32 to vector<128x256xf32>
    %54 = arith.maximumf %52, %53 : vector<128x256xf32>
    %55 = arith.truncf %54 : vector<128x256xf32> to vector<128x256xbf16>
    %c0_37 = arith.constant 0 : index
    %c0_38 = arith.constant 0 : index
    %56 = vector.load %arg6[%c0_37, %c0_38] : memref<256x256xbf16, #tpu.memory_space<vmem>>, vector<256x256xbf16>
    %cst_39 = arith.constant dense<0.000000e+00> : vector<128x256xf32>
    %57 = tpu.matmul %55, %56, %cst_39 {dimension_numbers = #tpu.dot_dimension_numbers<[1], [0], [0], [1], [0, 0, 1, 1], [], []>} : vector<128x256xbf16>, vector<256x256xbf16>, vector<128x256xf32> -> vector<128x256xf32>
    %c0_40 = arith.constant 0 : index
    %c0_41 = arith.constant 0 : index
    %58 = vector.load %arg7[%c0_40, %c0_41] : memref<1x256xf32, #tpu.memory_space<vmem>>, vector<1x256xf32>
    %59 = vector.broadcast %58 : vector<1x256xf32> to vector<128x256xf32>
    %60 = arith.addf %57, %59 : vector<128x256xf32>
    %cst_42 = arith.constant 0.000000e+00 : f32
    %61 = vector.broadcast %cst_42 : f32 to vector<128x256xf32>
    %62 = arith.maximumf %60, %61 : vector<128x256xf32>
    %63 = arith.truncf %62 : vector<128x256xf32> to vector<128x256xbf16>
    %c0_43 = arith.constant 0 : index
    %c0_44 = arith.constant 0 : index
    %64 = vector.load %arg8[%c0_43, %c0_44] : memref<256x128xbf16, #tpu.memory_space<vmem>>, vector<256x128xbf16>
    %cst_45 = arith.constant dense<0.000000e+00> : vector<128x128xf32>
    %65 = tpu.matmul %63, %64, %cst_45 {dimension_numbers = #tpu.dot_dimension_numbers<[1], [0], [0], [1], [0, 0, 1, 1], [], []>} : vector<128x256xbf16>, vector<256x128xbf16>, vector<128x128xf32> -> vector<128x128xf32>
    %c0_46 = arith.constant 0 : index
    %c0_47 = arith.constant 0 : index
    %66 = vector.load %arg9[%c0_46, %c0_47] : memref<1x128xf32, #tpu.memory_space<vmem>>, vector<1x128xf32>
    %67 = vector.broadcast %66 : vector<1x128xf32> to vector<128x128xf32>
    %68 = arith.addf %65, %67 : vector<128x128xf32>
    %69 = arith.truncf %68 : vector<128x128xf32> to vector<128x128xbf16>
    %70 = arith.index_cast %37 : i32 to index
    %c0_48 = arith.constant 0 : index
    %71 = vector.load %arg10[%70, %c0_48] : memref<512x128xbf16, #tpu.memory_space<vmem>>, vector<128x128xbf16>
    tpu.vector_store %arg10[%70, %c0_48], %69 {strides = array<i32>} : memref<512x128xbf16, #tpu.memory_space<vmem>>, vector<128x128xbf16>,
    %c2_i32 = arith.constant 2 : i32
    %c128_i32_49 = arith.constant 128 : i32
    %72 = arith.muli %c2_i32, %c128_i32_49 : i32
    %73 = tpu.assume_multiple %72, 128 : i32
    %74 = arith.index_cast %73 : i32 to index
    %c0_50 = arith.constant 0 : index
    %75 = vector.load %arg1[%74, %c0_50] : memref<512x64xbf16, #tpu.memory_space<vmem>>, vector<128x64xbf16>
    %c0_51 = arith.constant 0 : index
    %c0_52 = arith.constant 0 : index
    %76 = vector.load %arg2[%c0_51, %c0_52] : memref<64x256xbf16, #tpu.memory_space<vmem>>, vector<64x256xbf16>
    %cst_53 = arith.constant dense<0.000000e+00> : vector<128x256xf32>
    %77 = tpu.matmul %75, %76, %cst_53 {dimension_numbers = #tpu.dot_dimension_numbers<[1], [0], [0], [1], [0, 0, 1, 1], [], []>} : vector<128x64xbf16>, vector<64x256xbf16>, vector<128x256xf32> -> vector<128x256xf32>
    %c0_54 = arith.constant 0 : index
    %c0_55 = arith.constant 0 : index
    %78 = vector.load %arg3[%c0_54, %c0_55] : memref<1x256xf32, #tpu.memory_space<vmem>>, vector<1x256xf32>
    %79 = vector.broadcast %78 : vector<1x256xf32> to vector<128x256xf32>
    %80 = arith.addf %77, %79 : vector<128x256xf32>
    %cst_56 = arith.constant 0.000000e+00 : f32
    %81 = vector.broadcast %cst_56 : f32 to vector<128x256xf32>
    %82 = arith.maximumf %80, %81 : vector<128x256xf32>
    %83 = arith.truncf %82 : vector<128x256xf32> to vector<128x256xbf16>
    %c0_57 = arith.constant 0 : index
    %c0_58 = arith.constant 0 : index
    %84 = vector.load %arg4[%c0_57, %c0_58] : memref<256x256xbf16, #tpu.memory_space<vmem>>, vector<256x256xbf16>
    %cst_59 = arith.constant dense<0.000000e+00> : vector<128x256xf32>
    %85 = tpu.matmul %83, %84, %cst_59 {dimension_numbers = #tpu.dot_dimension_numbers<[1], [0], [0], [1], [0, 0, 1, 1], [], []>} : vector<128x256xbf16>, vector<256x256xbf16>, vector<128x256xf32> -> vector<128x256xf32>
    %c0_60 = arith.constant 0 : index
    %c0_61 = arith.constant 0 : index
    %86 = vector.load %arg5[%c0_60, %c0_61] : memref<1x256xf32, #tpu.memory_space<vmem>>, vector<1x256xf32>
    %87 = vector.broadcast %86 : vector<1x256xf32> to vector<128x256xf32>
    %88 = arith.addf %85, %87 : vector<128x256xf32>
    %cst_62 = arith.constant 0.000000e+00 : f32
    %89 = vector.broadcast %cst_62 : f32 to vector<128x256xf32>
    %90 = arith.maximumf %88, %89 : vector<128x256xf32>
    %91 = arith.truncf %90 : vector<128x256xf32> to vector<128x256xbf16>
    %c0_63 = arith.constant 0 : index
    %c0_64 = arith.constant 0 : index
    %92 = vector.load %arg6[%c0_63, %c0_64] : memref<256x256xbf16, #tpu.memory_space<vmem>>, vector<256x256xbf16>
    %cst_65 = arith.constant dense<0.000000e+00> : vector<128x256xf32>
    %93 = tpu.matmul %91, %92, %cst_65 {dimension_numbers = #tpu.dot_dimension_numbers<[1], [0], [0], [1], [0, 0, 1, 1], [], []>} : vector<128x256xbf16>, vector<256x256xbf16>, vector<128x256xf32> -> vector<128x256xf32>
    %c0_66 = arith.constant 0 : index
    %c0_67 = arith.constant 0 : index
    %94 = vector.load %arg7[%c0_66, %c0_67] : memref<1x256xf32, #tpu.memory_space<vmem>>, vector<1x256xf32>
    %95 = vector.broadcast %94 : vector<1x256xf32> to vector<128x256xf32>
    %96 = arith.addf %93, %95 : vector<128x256xf32>
    %cst_68 = arith.constant 0.000000e+00 : f32
    %97 = vector.broadcast %cst_68 : f32 to vector<128x256xf32>
    %98 = arith.maximumf %96, %97 : vector<128x256xf32>
    %99 = arith.truncf %98 : vector<128x256xf32> to vector<128x256xbf16>
    %c0_69 = arith.constant 0 : index
    %c0_70 = arith.constant 0 : index
    %100 = vector.load %arg8[%c0_69, %c0_70] : memref<256x128xbf16, #tpu.memory_space<vmem>>, vector<256x128xbf16>
    %cst_71 = arith.constant dense<0.000000e+00> : vector<128x128xf32>
    %101 = tpu.matmul %99, %100, %cst_71 {dimension_numbers = #tpu.dot_dimension_numbers<[1], [0], [0], [1], [0, 0, 1, 1], [], []>} : vector<128x256xbf16>, vector<256x128xbf16>, vector<128x128xf32> -> vector<128x128xf32>
    %c0_72 = arith.constant 0 : index
    %c0_73 = arith.constant 0 : index
    %102 = vector.load %arg9[%c0_72, %c0_73] : memref<1x128xf32, #tpu.memory_space<vmem>>, vector<1x128xf32>
    %103 = vector.broadcast %102 : vector<1x128xf32> to vector<128x128xf32>
    %104 = arith.addf %101, %103 : vector<128x128xf32>
    %105 = arith.truncf %104 : vector<128x128xf32> to vector<128x128xbf16>
    %106 = arith.index_cast %73 : i32 to index
    %c0_74 = arith.constant 0 : index
    %107 = vector.load %arg10[%106, %c0_74] : memref<512x128xbf16, #tpu.memory_space<vmem>>, vector<128x128xbf16>
    tpu.vector_store %arg10[%106, %c0_74], %105 {strides = array<i32>} : memref<512x128xbf16, #tpu.memory_space<vmem>>, vector<128x128xbf16>,
    %c3_i32 = arith.constant 3 : i32
    %c128_i32_75 = arith.constant 128 : i32
    %108 = arith.muli %c3_i32, %c128_i32_75 : i32
    %109 = tpu.assume_multiple %108, 128 : i32
    %110 = arith.index_cast %109 : i32 to index
    %c0_76 = arith.constant 0 : index
    %111 = vector.load %arg1[%110, %c0_76] : memref<512x64xbf16, #tpu.memory_space<vmem>>, vector<128x64xbf16>
    %c0_77 = arith.constant 0 : index
    %c0_78 = arith.constant 0 : index
    %112 = vector.load %arg2[%c0_77, %c0_78] : memref<64x256xbf16, #tpu.memory_space<vmem>>, vector<64x256xbf16>
    %cst_79 = arith.constant dense<0.000000e+00> : vector<128x256xf32>
    %113 = tpu.matmul %111, %112, %cst_79 {dimension_numbers = #tpu.dot_dimension_numbers<[1], [0], [0], [1], [0, 0, 1, 1], [], []>} : vector<128x64xbf16>, vector<64x256xbf16>, vector<128x256xf32> -> vector<128x256xf32>
    %c0_80 = arith.constant 0 : index
    %c0_81 = arith.constant 0 : index
    %114 = vector.load %arg3[%c0_80, %c0_81] : memref<1x256xf32, #tpu.memory_space<vmem>>, vector<1x256xf32>
    %115 = vector.broadcast %114 : vector<1x256xf32> to vector<128x256xf32>
    %116 = arith.addf %113, %115 : vector<128x256xf32>
    %cst_82 = arith.constant 0.000000e+00 : f32
    %117 = vector.broadcast %cst_82 : f32 to vector<128x256xf32>
    %118 = arith.maximumf %116, %117 : vector<128x256xf32>
    %119 = arith.truncf %118 : vector<128x256xf32> to vector<128x256xbf16>
    %c0_83 = arith.constant 0 : index
    %c0_84 = arith.constant 0 : index
    %120 = vector.load %arg4[%c0_83, %c0_84] : memref<256x256xbf16, #tpu.memory_space<vmem>>, vector<256x256xbf16>
    %cst_85 = arith.constant dense<0.000000e+00> : vector<128x256xf32>
    %121 = tpu.matmul %119, %120, %cst_85 {dimension_numbers = #tpu.dot_dimension_numbers<[1], [0], [0], [1], [0, 0, 1, 1], [], []>} : vector<128x256xbf16>, vector<256x256xbf16>, vector<128x256xf32> -> vector<128x256xf32>
    %c0_86 = arith.constant 0 : index
    %c0_87 = arith.constant 0 : index
    %122 = vector.load %arg5[%c0_86, %c0_87] : memref<1x256xf32, #tpu.memory_space<vmem>>, vector<1x256xf32>
    %123 = vector.broadcast %122 : vector<1x256xf32> to vector<128x256xf32>
    %124 = arith.addf %121, %123 : vector<128x256xf32>
    %cst_88 = arith.constant 0.000000e+00 : f32
    %125 = vector.broadcast %cst_88 : f32 to vector<128x256xf32>
    %126 = arith.maximumf %124, %125 : vector<128x256xf32>
    %127 = arith.truncf %126 : vector<128x256xf32> to vector<128x256xbf16>
    %c0_89 = arith.constant 0 : index
    %c0_90 = arith.constant 0 : index
    %128 = vector.load %arg6[%c0_89, %c0_90] : memref<256x256xbf16, #tpu.memory_space<vmem>>, vector<256x256xbf16>
    %cst_91 = arith.constant dense<0.000000e+00> : vector<128x256xf32>
    %129 = tpu.matmul %127, %128, %cst_91 {dimension_numbers = #tpu.dot_dimension_numbers<[1], [0], [0], [1], [0, 0, 1, 1], [], []>} : vector<128x256xbf16>, vector<256x256xbf16>, vector<128x256xf32> -> vector<128x256xf32>
    %c0_92 = arith.constant 0 : index
    %c0_93 = arith.constant 0 : index
    %130 = vector.load %arg7[%c0_92, %c0_93] : memref<1x256xf32, #tpu.memory_space<vmem>>, vector<1x256xf32>
    %131 = vector.broadcast %130 : vector<1x256xf32> to vector<128x256xf32>
    %132 = arith.addf %129, %131 : vector<128x256xf32>
    %cst_94 = arith.constant 0.000000e+00 : f32
    %133 = vector.broadcast %cst_94 : f32 to vector<128x256xf32>
    %134 = arith.maximumf %132, %133 : vector<128x256xf32>
    %135 = arith.truncf %134 : vector<128x256xf32> to vector<128x256xbf16>
    %c0_95 = arith.constant 0 : index
    %c0_96 = arith.constant 0 : index
    %136 = vector.load %arg8[%c0_95, %c0_96] : memref<256x128xbf16, #tpu.memory_space<vmem>>, vector<256x128xbf16>
    %cst_97 = arith.constant dense<0.000000e+00> : vector<128x128xf32>
    %137 = tpu.matmul %135, %136, %cst_97 {dimension_numbers = #tpu.dot_dimension_numbers<[1], [0], [0], [1], [0, 0, 1, 1], [], []>} : vector<128x256xbf16>, vector<256x128xbf16>, vector<128x128xf32> -> vector<128x128xf32>
    %c0_98 = arith.constant 0 : index
    %c0_99 = arith.constant 0 : index
    %138 = vector.load %arg9[%c0_98, %c0_99] : memref<1x128xf32, #tpu.memory_space<vmem>>, vector<1x128xf32>
    %139 = vector.broadcast %138 : vector<1x128xf32> to vector<128x128xf32>
    %140 = arith.addf %137, %139 : vector<128x128xf32>
    %141 = arith.truncf %140 : vector<128x128xf32> to vector<128x128xbf16>
    %142 = arith.index_cast %109 : i32 to index
    %c0_100 = arith.constant 0 : index
    %143 = vector.load %arg10[%142, %c0_100] : memref<512x128xbf16, #tpu.memory_space<vmem>>, vector<128x128xbf16>
    tpu.vector_store %arg10[%142, %c0_100], %141 {strides = array<i32>} : memref<512x128xbf16, #tpu.memory_space<vmem>>, vector<128x128xbf16>,
    %c4_i32 = arith.constant 4 : i32
    return
  }
  func.func @transform_0(%arg0: i32) -> (i32, i32) {
    %c0_i32 = arith.constant 0 : i32
    %c0_i32_0 = arith.constant 0 : i32
    return %arg0, %c0_i32 : i32, i32
  }
  func.func @transform_1(%arg0: i32) -> (i32, i32) {
    %c0_i32 = arith.constant 0 : i32
    %c0_i32_0 = arith.constant 0 : i32
    %c0_i32_1 = arith.constant 0 : i32
    return %c0_i32, %c0_i32_0 : i32, i32
  }
  func.func @transform_2(%arg0: i32) -> (i32, i32) {
    %c0_i32 = arith.constant 0 : i32
    %c0_i32_0 = arith.constant 0 : i32
    %c0_i32_1 = arith.constant 0 : i32
    return %c0_i32, %c0_i32_0 : i32, i32
  }
  func.func @transform_3(%arg0: i32) -> (i32, i32) {
    %c0_i32 = arith.constant 0 : i32
    %c0_i32_0 = arith.constant 0 : i32
    %c0_i32_1 = arith.constant 0 : i32
    return %c0_i32, %c0_i32_0 : i32, i32
  }
  func.func @transform_4(%arg0: i32) -> (i32, i32) {
    %c0_i32 = arith.constant 0 : i32
    %c0_i32_0 = arith.constant 0 : i32
    %c0_i32_1 = arith.constant 0 : i32
    return %c0_i32, %c0_i32_0 : i32, i32
  }
  func.func @transform_5(%arg0: i32) -> (i32, i32) {
    %c0_i32 = arith.constant 0 : i32
    %c0_i32_0 = arith.constant 0 : i32
    %c0_i32_1 = arith.constant 0 : i32
    return %c0_i32, %c0_i32_0 : i32, i32
  }
  func.func @transform_6(%arg0: i32) -> (i32, i32) {
    %c0_i32 = arith.constant 0 : i32
    %c0_i32_0 = arith.constant 0 : i32
    %c0_i32_1 = arith.constant 0 : i32
    return %c0_i32, %c0_i32_0 : i32, i32
  }
  func.func @transform_7(%arg0: i32) -> (i32, i32) {
    %c0_i32 = arith.constant 0 : i32
    %c0_i32_0 = arith.constant 0 : i32
    %c0_i32_1 = arith.constant 0 : i32
    return %c0_i32, %c0_i32_0 : i32, i32
  }
  func.func @transform_8(%arg0: i32) -> (i32, i32) {
    %c0_i32 = arith.constant 0 : i32
    %c0_i32_0 = arith.constant 0 : i32
    %c0_i32_1 = arith.constant 0 : i32
    return %c0_i32, %c0_i32_0 : i32, i32
  }
  func.func @transform_9(%arg0: i32) -> (i32, i32) {
    %c0_i32 = arith.constant 0 : i32
    %c0_i32_0 = arith.constant 0 : i32
    return %arg0, %c0_i32 : i32, i32
  }
}

</mosaic_0001>

<bundles_post_ra>
// kernel: tpu_custom_call.1
= control target key start
LH: loop header
LB: loop body
LE: loop exit
PB: predicated region body
PF: predicated region fallthrough
CT: control target
= control target key end

     0   :  { %14 = vsyncpa [#allocation3], 0  ;;  %s9510_s0 = inlined_call_operand.vmem [shape: bf16[1024,64], index: 0, kind: input, shape index: {}]   ;;  %s9511_s1 = inlined_call_operand.vmem [shape: bf16[64,256], index: 1, kind: input, shape index: {}]   ;;  %s9512_s2 = inlined_call_operand.vmem [shape: f32[1,256], index: 2, kind: input, shape index: {}]   ;;  %s9513_s3 = inlined_call_operand.vmem [shape: bf16[256,256], index: 3, kind: input, shape index: {}]   ;;  %s9514_s4 = inlined_call_operand.vmem [shape: f32[1,256], index: 4, kind: input, shape index: {}]   ;;  %s9515_s5 = inlined_call_operand.vmem [shape: bf16[256,256], index: 5, kind: input, shape index: {}]   ;;  %s9516_s6 = inlined_call_operand.vmem [shape: f32[1,256], index: 6, kind: input, shape index: {}]   ;;  %s9517_s7 = inlined_call_operand.vmem [shape: bf16[256,128], index: 7, kind: input, shape index: {}]   ;;  %s9518_s8 = inlined_call_operand.vmem [shape: f32[1,128], index: 8, kind: input, shape index: {}]   ;;  %s9519_s9 = inlined_call_operand.hbm [shape: bf16[1024,128], index: 9, kind: output, shape index: {}]  }
   0x1   :  { %16 = vsyncpa [#allocation3 + $0x1], 0  ;;  %s7595_s30 = smov 0   ;;  %s7597_s10 = smov 0  }
   0x2   :  { %s7599_s11 = smov 0   ;;  %s7601_s12 = smov 0  }
   0x3 LB: > { %s7616_s13 = sadd.s32 4294967295, %s7539_s12   ;;  %s5790_s14 = sadd.s32 4294967294, %s7539_s12   ;;  %s7539_s12 = sphi %s7601_s12, %s9527_s12   ;;  %s7535_s11 = sphi %s7599_s11, %s9526_s11   ;;  %s7531_s10 = sphi %s7597_s10, %s9525_s10   ;;  %s7527_s30 = sphi %s7595_s30, %s9524_s30  }
   0x4   : > { %s7620_s15 = sadd.s32 1, %s7539_s12   ;;  %s223_s16 = sadd.s32 1, %s7535_s11 }
   0x5   : > { %s220_s17 = ssub.s32 %s7539_s12, %s7620_s15  ;;  %p233_p0 = scmp.ne.s32.totalorder %s7535_s11, %s7531_s10 }
   0x6   : > { %p221_p1 = scmp.eq.s32.totalorder %s220_s17, 0  ;;  %p234_p2 = scmp.eq.s32.totalorder %s7616_s13, 1 }
   0x7   : > { %p239_p3 = scmp.ne.s32.totalorder %s7531_s10, %s7527_s30  ;;  %p240_p4 = scmp.eq.s32.totalorder %s5790_s14, 1 }
   0x8   : > { %s7631_s18 = scalar_select %p221_p1, %s7535_s11, %s223_s16  }
   0x9   : > { %p7633_p5 = por %p234_p2, %p233_p0  ;;  %p7637_p6 = por %p240_p4, %p239_p3 }
   0xa   : > { %9520 = sst [smem:[#allocation5_spill]] %s7631_s18  ;;  %p5793_p7 = scmp.ge.s32.totalorder %s7539_s12, 1 }
   0xb   : > { %p291_p8 = scmp.lt.s32.totalorder %s7539_s12, 3 }
   0xd   : > { %p292_p9 = pnand %p5793_p7, %p291_p8 }
   0xe   : > { %v6952_v0 = vld [vmem:[%s9511_s1 + $0x4] ss:$8 sps:$4 sm:$0xff] (!%p292_p9)   ;;  %s5795_s23 = sshll.u32 (!%p292_p9), %s7616_s13, 6  ;;  %v6954_v1 = vld [vmem:[%s9511_s1] ss:$8 sps:$4 sm:$0xff] (!%p292_p9)   ;;  %v7541_v2 = vmov (!%p292_p9), 0  }
   0xf   : > { %295 = sbr.rel (%p292_p9) target bundleno = 2513 (0x9d1), region = 56  ;;  %508 = vmatprep.mubr.bf16.mxu0 (!%p292_p9), %v7541_v2  ;;  %p328_p10 = scmp.lt.s32.totalorder (!%p292_p9), %s5795_s23, 127  ;;  %476 = vmatprep.subr.bf16.mxu0 (!%p292_p9), %v6952_v0  ;;  %v6955_v3 = vld [vmem:[%s9511_s1 + $0x14] ss:$8 sps:$4 sm:$0xff] (!%p292_p9)   ;;  %v6957_v4 = vld [vmem:[%s9511_s1 + $0x10] ss:$8 sps:$4 sm:$0xff] (!%p292_p9)  }
  0x10   : > { %477 = vmatpush1.bf16.msra.mxu0 (!%p292_p9), %v6954_v1  ;;  %v6958_v5 = vld [vmem:[%s9511_s1 + $0x24] ss:$8 sps:$4 sm:$0xff] (!%p292_p9)   ;;  %v6974_v7 = vld [vmem:[%s9513_s3] ss:$8 sps:$4 sm:$0xff] (!%p292_p9)   ;;  %v6961_v9 = vld [vmem:[%s9511_s1 + $0x34] ss:$8 sps:$4 sm:$0xff] (!%p292_p9)  }
  0x11   : > { %478 = vmatprep.subr.bf16.mxu0 (!%p292_p9), %v6955_v3  ;;  %v6972_v6 = vld [vmem:[%s9513_s3 + $0x4] ss:$8 sps:$4 sm:$0xff] (!%p292_p9)   ;;  %v6960_v8 = vld [vmem:[%s9511_s1 + $0x20] ss:$8 sps:$4 sm:$0xff] (!%p292_p9)   ;;  %v6963_v10 = vld [vmem:[%s9511_s1 + $0x30] ss:$8 sps:$4 sm:$0xff] (!%p292_p9)  }
  0x12   : > { %841 = vmatprep.subr.bf16.mxu1 (!%p292_p9), %v6972_v6  ;;  %vm451_vm0 = vcmask (!%p292_p9), 523264   ;;  %v6975_v12 = vld [vmem:[%s9513_s3 + $0x14] ss:$8 sps:$4 sm:$0xff] (!%p292_p9)   ;;  %v6977_v13 = vld [vmem:[%s9513_s3 + $0x10] ss:$8 sps:$4 sm:$0xff] (!%p292_p9)   ;;  %s324_s16 = sand.u32 (!%p292_p9), 1, %s7531_s10  }
  0x13   : > { %842 = vmatpush1.bf16.msra.mxu1 (!%p292_p9), %v6974_v7  ;;  %v6978_v14 = vld [vmem:[%s9513_s3 + $0x24] ss:$8 sps:$4 sm:$0xff] (!%p292_p9)   ;;  %v6980_v15 = vld [vmem:[%s9513_s3 + $0x20] ss:$8 sps:$4 sm:$0xff] (!%p292_p9)   ;;  %v6981_v16 = vld [vmem:[%s9513_s3 + $0x34] ss:$8 sps:$4 sm:$0xff] (!%p292_p9)  }
  0x14   : > { %479 = vmatpush1.bf16.msra.mxu0 (!%p292_p9), %v6957_v4  ;;  %843 = vmatprep.subr.bf16.mxu1 (!%p292_p9), %v6975_v12  ;;  %v6983_v18 = vld [vmem:[%s9513_s3 + $0x30] ss:$8 sps:$4 sm:$0xff] (!%p292_p9)   ;;  %v6984_v19 = vld [vmem:[%s9513_s3 + $0x44] ss:$8 sps:$4 sm:$0xff] (!%p292_p9)   ;;  %v6986_v20 = vld [vmem:[%s9513_s3 + $0x40] ss:$8 sps:$4 sm:$0xff] (!%p292_p9)  }
  0x15   : > { %480 = vmatprep.subr.bf16.mxu0 (!%p292_p9), %v6958_v5  ;;  %v6987_v21 = vld [vmem:[%s9513_s3 + $0x54] ss:$8 sps:$4 sm:$0xff] (!%p292_p9)   ;;  %v6989_v23 = vld [vmem:[%s9513_s3 + $0x50] ss:$8 sps:$4 sm:$0xff] (!%p292_p9)   ;;  %v6990_v24 = vld [vmem:[%s9513_s3 + $0x64] ss:$8 sps:$4 sm:$0xff] (!%p292_p9)  }
  0x16   : > { %s9529_s23 = smov (!%p328_p10, %s5795_s23), 127  ;;  %v6992_v25 = vld [vmem:[%s9513_s3 + $0x60] ss:$8 sps:$4 sm:$0xff]   ;;  %v6993_v26 = vld [vmem:[%s9513_s3 + $0x74] ss:$8 sps:$4 sm:$0xff]   ;;  %s5794_s18 = sshll.u32 %s324_s16, 8 }
  0x17   : > { %s5796_s17 = sshll.u32 %s9529_s23, 2  ;;  %844 = vmatpush1.bf16.msra.mxu1 %v6977_v13  ;;  %v6995_v28 = vld [vmem:[%s9513_s3 + $0x70] ss:$8 sps:$4 sm:$0xff]   ;;  %v6996_v29 = vld [vmem:[%s9513_s3 + $0x84] ss:$8 sps:$4 sm:$0xff]   ;;  %s8358_s22 = scalar_lea.vmem [#allocation2], %s5794_s18 }
  0x18   : > { %s7663_s24 = scalar_lea.vmem %s9510_s0, %s5796_s17  ;;  %481 = vmatpush1.bf16.msra.mxu0 %v6960_v8  ;;  %845 = vmatprep.subr.bf16.mxu1 %v6978_v14  ;;  %v6998_v30 = vld [vmem:[%s9513_s3 + $0x80] ss:$8 sps:$4 sm:$0xff]   ;;  %v6999_v31 = vld [vmem:[%s9513_s3 + $0x94] ss:$8 sps:$4 sm:$0xff]   ;;  %v7001_v33 = vld [vmem:[%s9513_s3 + $0x90] ss:$8 sps:$4 sm:$0xff]  }
  0x19   : > { %482 = vmatprep.subr.bf16.mxu0 %v6961_v9  ;;  %v6964_v11 = vld [vmem:[%s7663_s24] sm:$0xff]   ;;  %v6965_v17 = vld [vmem:[%s7663_s24 + $0x8] sm:$0xff]   ;;  %v6966_v22 = vld [vmem:[%s7663_s24 + $0x10] sm:$0xff]   ;;  %s6446_s21 = sshll.u32 %s7616_s13, 12  ;;  %s5728_s18 = sshll.u32 %s8358_s22, 4  ;;  %s9464_s18 = int_to_ptr.vmem [resolvable:$true] %s5728_s18 }
  0x1a   : > { %v6967_v27 = vld [vmem:[%s7663_s24 + $0x18] sm:$0xff]   ;;  %v6968_v32 = vld [vmem:[%s7663_s24 + $0x20] sm:$0xff]   ;;  %v6969_v37 = vld [vmem:[%s7663_s24 + $0x28] sm:$0xff]   ;;  %s9462_s27 = scalar_lea.hbm %s9519_s9, %s6446_s21  ;;  %s9469_s28 = scalar_lea.sflag [#allocation3], %s324_s16 }
  0x1b   : > { %846 = vmatpush1.bf16.msra.mxu1 %v6980_v15  ;;  %v7002_v34 = vld [vmem:[%s9513_s3 + $0xa4] ss:$8 sps:$4 sm:$0xff]   ;;  %v7004_v35 = vld [vmem:[%s9513_s3 + $0xa0] ss:$8 sps:$4 sm:$0xff]   ;;  %v7005_v36 = vld [vmem:[%s9513_s3 + $0xb4] ss:$8 sps:$4 sm:$0xff]  }
  0x1c   : > { %483 = vmatpush1.bf16.msra.mxu0 %v6963_v10  ;;  %847 = vmatprep.subr.bf16.mxu1 %v6981_v16  ;;  %v7007_v38 = vld [vmem:[%s9513_s3 + $0xb0] ss:$8 sps:$4 sm:$0xff]   ;;  %v7008_v39 = vld [vmem:[%s9513_s3 + $0xc4] ss:$8 sps:$4 sm:$0xff]   ;;  %v7010_v40 = vld [vmem:[%s9513_s3 + $0xc0] ss:$8 sps:$4 sm:$0xff]  }
  0x1d   : > { %v7011_v41 = vld [vmem:[%s9513_s3 + $0xd4] ss:$8 sps:$4 sm:$0xff]   ;;  %v7013_v44 = vld [vmem:[%s9513_s3 + $0xd0] ss:$8 sps:$4 sm:$0xff]   ;;  %v7014_v45 = vld [vmem:[%s9513_s3 + $0xe4] ss:$8 sps:$4 sm:$0xff]  }
  0x1e   : > { %v6970_v42 = vld [vmem:[%s7663_s24 + $0x30] sm:$0xff]   ;;  %v6971_v43 = vld [vmem:[%s7663_s24 + $0x38] sm:$0xff]   ;;  %v7016_v46 = vld [vmem:[%s9513_s3 + $0xe0] ss:$8 sps:$4 sm:$0xff]   ;;  %s7477_s13 = scalar_lea.vmem %s9464_s18, 4096  ;;  %s7542_s29 = smov [#allocation2]  }
  0x1f   : > { %5813 = vmatmul.mubr.msk.bf16.vlgmr.msra.gmra.mrb[0].mxu0 %vm451_vm0, %v6964_v11  ;;  %848 = vmatpush1.bf16.msra.mxu1 %v6983_v18  ;;  %v7017_v47 = vld [vmem:[%s9513_s3 + $0xf4] ss:$8 sps:$4 sm:$0xff]   ;;  %v7019_v48 = vld [vmem:[%s9513_s3 + $0xf0] ss:$8 sps:$4 sm:$0xff]   ;;  %v7020_v49 = vld [vmem:[%s9515_s5] ss:$8 sps:$4 sm:$0xff]   ;;  %v361_v11 = vlaneseq  ;;  %p7478_p11 = scmp.ne.s32.totalorder %s9464_s18, %s7477_s13 }
  0x20   : > { %518 = vmatprep.mubr.bf16.mxu0 %v7541_v2  ;;  %849 = vmatprep.subr.bf16.mxu1 %v6984_v19  ;;  %v7022_v50 = vld [vmem:[%s9515_s5 + $0x4] ss:$8 sps:$4 sm:$0xff]   ;;  %v7025_v51 = vld [vmem:[%s9515_s5 + $0x14] ss:$8 sps:$4 sm:$0xff]   ;;  %v7023_v52 = vld [vmem:[%s9515_s5 + $0x10] ss:$8 sps:$4 sm:$0xff]  }
  0x21   : > { %1206 = vmatprep.subr.bf16.mxu0 %v7022_v50  ;;  %v7028_v53 = vld [vmem:[%s9515_s5 + $0x24] ss:$8 sps:$4 sm:$0xff]   ;;  %v7026_v54 = vld [vmem:[%s9515_s5 + $0x20] ss:$8 sps:$4 sm:$0xff]   ;;  %v7031_v55 = vld [vmem:[%s9515_s5 + $0x34] ss:$8 sps:$4 sm:$0xff]   ;;  %p7479_p12 = pnand %p7478_p11, %p7633_p5 }
  0x22   : > { %1207 = vmatpush1.bf16.msra.mxu0 %v7020_v49  ;;  %v7029_v56 = vld [vmem:[%s9515_s5 + $0x30] ss:$8 sps:$4 sm:$0xff]   ;;  %v7034_v57 = vld [vmem:[%s9515_s5 + $0x44] ss:$8 sps:$4 sm:$0xff]   ;;  %v7032_v58 = vld [vmem:[%s9515_s5 + $0x40] ss:$8 sps:$4 sm:$0xff]  }
  0x23   : > { %850 = vmatpush1.bf16.msra.mxu1 %v6986_v20  ;;  %1208 = vmatprep.subr.bf16.mxu0 %v7025_v51  ;;  %v7037_v59 = vld [vmem:[%s9515_s5 + $0x54] ss:$8 sps:$4 sm:$0xff]   ;;  %v7035_v60 = vld [vmem:[%s9515_s5 + $0x50] ss:$8 sps:$4 sm:$0xff]   ;;  %v7040_v61 = vld [vmem:[%s9515_s5 + $0x64] ss:$8 sps:$4 sm:$0xff]   ;;  %p7480_p13 = pneg %p7479_p12 }
  0x24   : > { %851 = vmatprep.subr.bf16.mxu1 %v6987_v21  ;;  %v7038_v62 = vld [vmem:[%s9515_s5 + $0x60] ss:$8 sps:$4 sm:$0xff]   ;;  %v7043_v63 = vld [vmem:[%s9515_s5 + $0x74] ss:$8 sps:$4 sm:$0xff]   ;;  %v7041_v0 = vld [vmem:[%s9515_s5 + $0x70] ss:$8 sps:$4 sm:$0xff]  }
  0x25   : > { %v7046_v1 = vld [vmem:[%s9515_s5 + $0x84] ss:$8 sps:$4 sm:$0xff]   ;;  %v7044_v3 = vld [vmem:[%s9515_s5 + $0x80] ss:$8 sps:$4 sm:$0xff]   ;;  %v7049_v4 = vld [vmem:[%s9515_s5 + $0x94] ss:$8 sps:$4 sm:$0xff]  }
  0x26   : > { %1209 = vmatpush1.bf16.msra.mxu0 %v7023_v52  ;;  %v7047_v5 = vld [vmem:[%s9515_s5 + $0x90] ss:$8 sps:$4 sm:$0xff]   ;;  %v7052_v6 = vld [vmem:[%s9515_s5 + $0xa4] ss:$8 sps:$4 sm:$0xff]   ;;  %v7050_v7 = vld [vmem:[%s9515_s5 + $0xa0] ss:$8 sps:$4 sm:$0xff]  }
  0x27   : > { %5814 = vmatmul.mubr.msk.bf16.gmra.mrb[4].mxu0 %vm451_vm0, %v6965_v17  ;;  %852 = vmatpush1.bf16.msra.mxu1 %v6989_v23  ;;  %v7055_v8 = vld [vmem:[%s9515_s5 + $0xb4] ss:$8 sps:$4 sm:$0xff]   ;;  %v7053_v9 = vld [vmem:[%s9515_s5 + $0xb0] ss:$8 sps:$4 sm:$0xff]   ;;  %v7058_v10 = vld [vmem:[%s9515_s5 + $0xc4] ss:$8 sps:$4 sm:$0xff]  }
  0x28   : > { %528 = vmatprep.mubr.bf16.mxu0 %v7541_v2  ;;  %853 = vmatprep.subr.bf16.mxu1 %v6990_v24  ;;  %v7056_v12 = vld [vmem:[%s9515_s5 + $0xc0] ss:$8 sps:$4 sm:$0xff]   ;;  %v7061_v13 = vld [vmem:[%s9515_s5 + $0xd4] ss:$8 sps:$4 sm:$0xff]   ;;  %v362_v14 = vshrl.u32 %v361_v11, 7  ;;  %s7481_s23 = sshll.u32 %s7542_s29, 4  ;;  %s7482_s23 = int_to_ptr.vmem [resolvable:$false] %s7481_s23 }
  0x29   : > { %1210 = vmatprep.subr.bf16.mxu0 %v7028_v53  ;;  %v7059_v15 = vld [vmem:[%s9515_s5 + $0xd0] ss:$8 sps:$4 sm:$0xff]   ;;  %v359_v17 = vld [vmem:[%s9512_s2] sm:$0x3]  ;;  %p7484_p0 = scmp.lt.s32.totalorder %s9464_s18, %s7482_s23 }
  0x2a   : > { %1211 = vmatpush1.bf16.msra.mxu0 %v7026_v54  ;;  %v7877_v16 = vsub.s32 0, %v362_v14  ;;  %v7882_v18 = vsub.s32 1, %v362_v14 }
  0x2b   : > { %854 = vmatpush1.bf16.msra.mxu1 %v6992_v25  ;;  %1212 = vmatprep.subr.bf16.mxu0 %v7031_v55 }
  0x2c   : > { %855 = vmatprep.subr.bf16.mxu1 %v6993_v26  ;;  %v7885_v19 = vrot.slane %v359_v17, %v7877_v16  ;;  %v7888_v20 = vrot.slane %v359_v17, %v7882_v18 }
  0x2e   : > { %1213 = vmatpush1.bf16.msra.mxu0 %v7029_v56 }
  0x2f   : > { %5815 = vmatmul.mubr.msk.bf16.gmra.mrb[8].mxu0 %vm451_vm0, %v6966_v22  ;;  %856 = vmatpush1.bf16.msra.mxu1 %v6995_v28 }
  0x30   : > { %538 = vmatprep.mubr.bf16.mxu0 %v7541_v2  ;;  %857 = vmatprep.subr.bf16.mxu1 %v6996_v29 }
  0x31   : > { %1214 = vmatprep.subr.bf16.mxu0 %v7034_v57 }
  0x32   : > { %1215 = vmatpush1.bf16.msra.mxu0 %v7032_v58 }
  0x33   : > { %858 = vmatpush1.bf16.msra.mxu1 %v6998_v30  ;;  %1216 = vmatprep.subr.bf16.mxu0 %v7037_v59 }
  0x34   : > { %859 = vmatprep.subr.bf16.mxu1 %v6999_v31 }
  0x36   : > { %1217 = vmatpush1.bf16.msra.mxu0 %v7035_v60 }
  0x37   : > { %5816 = vmatmul.mubr.msk.bf16.gmra.mrb[12].mxu0 %vm451_vm0, %v6967_v27  ;;  %860 = vmatpush1.bf16.msra.mxu1 %v7001_v33 }
  0x38   : > { %548 = vmatprep.mubr.bf16.mxu0 %v7541_v2  ;;  %861 = vmatprep.subr.bf16.mxu1 %v7002_v34 }
  0x39   : > { %1218 = vmatprep.subr.bf16.mxu0 %v7040_v61 }
  0x3a   : > { %1219 = vmatpush1.bf16.msra.mxu0 %v7038_v62 }
  0x3b   : > { %862 = vmatpush1.bf16.msra.mxu1 %v7004_v35  ;;  %1220 = vmatprep.subr.bf16.mxu0 %v7043_v63 }
  0x3c   : > { %863 = vmatprep.subr.bf16.mxu1 %v7005_v36 }
  0x3e   : > { %1221 = vmatpush1.bf16.msra.mxu0 %v7041_v0 }
  0x3f   : > { %5817 = vmatmul.mubr.msk.bf16.gmra.mrb[16].mxu0 %vm451_vm0, %v6968_v32  ;;  %864 = vmatpush1.bf16.msra.mxu1 %v7007_v38 }
  0x40   : > { %558 = vmatprep.mubr.bf16.mxu0 %v7541_v2  ;;  %865 = vmatprep.subr.bf16.mxu1 %v7008_v39 }
  0x41   : > { %1222 = vmatprep.subr.bf16.mxu0 %v7046_v1 }
  0x42   : > { %1223 = vmatpush1.bf16.msra.mxu0 %v7044_v3 }
  0x43   : > { %866 = vmatpush1.bf16.msra.mxu1 %v7010_v40  ;;  %1224 = vmatprep.subr.bf16.mxu0 %v7049_v4 }
  0x44   : > { %867 = vmatprep.subr.bf16.mxu1 %v7011_v41 }
  0x46   : > { %1225 = vmatpush1.bf16.msra.mxu0 %v7047_v5 }
  0x47   : > { %5818 = vmatmul.mubr.msk.bf16.gmra.mrb[20].mxu0 %vm451_vm0, %v6969_v37  ;;  %868 = vmatpush1.bf16.msra.mxu1 %v7013_v44 }
  0x48   : > { %568 = vmatprep.mubr.bf16.mxu0 %v7541_v2  ;;  %869 = vmatprep.subr.bf16.mxu1 %v7014_v45 }
  0x49   : > { %1226 = vmatprep.subr.bf16.mxu0 %v7052_v6 }
  0x4a   : > { %1227 = vmatpush1.bf16.msra.mxu0 %v7050_v7 }
  0x4b   : > { %870 = vmatpush1.bf16.msra.mxu1 %v7016_v46  ;;  %1228 = vmatprep.subr.bf16.mxu0 %v7055_v8 }
  0x4c   : > { %871 = vmatprep.subr.bf16.mxu1 %v7017_v47 }
  0x4e   : > { %1229 = vmatpush1.bf16.msra.mxu0 %v7053_v9 }
  0x4f   : > { %5819 = vmatmul.mubr.msk.bf16.gmra.mrb[24].mxu0 %vm451_vm0, %v6970_v42  ;;  %872 = vmatpush1.bf16.msra.mxu1 %v7019_v48 }
  0x50   : > { %578 = vmatprep.mubr.bf16.mxu0 %v7541_v2  ;;  %1230 = vmatprep.subr.bf16.mxu0 %v7058_v10 }
  0x52   : > { %1231 = vmatpush1.bf16.msra.mxu0 %v7056_v12 }
  0x53   : > { %1232 = vmatprep.subr.bf16.mxu0 %v7061_v13 }
  0x56   : > { %1233 = vmatpush1.bf16.msra.mxu0 %v7059_v15 }
  0x57   : > { %5820 = vmatmul.mubr.msk.bf16.gmra.mrb[28].mxu0 %vm451_vm0, %v6971_v43 }
  0xf2   : > { %v510_v21 = vpop.f32.mrb[0].mxu0 }
  0xf3   : > { %v511_v22 = vadd.f32 %v510_v21, %v7885_v19  ;;  %v512_v23 = vpop.f32.mrb[1].mxu0 }
  0xf4   : > { %v514_v24 = vpop.f32.mrb[2].mxu0  ;;  %v513_v25 = vadd.f32 %v512_v23, %v7888_v20 }
  0xf5   : > { %v515_v26 = vadd.f32 %v514_v24, %v7885_v19  ;;  %v516_v27 = vpop.f32.mrb[3].mxu0  ;;  %v589_v29 = vmax.f32 %v511_v22, 0.0 }
  0xf6   : > { %v517_v28 = vadd.f32 %v516_v27, %v7888_v20  ;;  %v590_v31 = vmax.f32 %v513_v25, 0.0 }
  0xf7   : > { %v591_v30 = vmax.f32 %v515_v26, 0.0 }
  0xf8   : > { %v592_v32 = vmax.f32 %v517_v28, 0.0 }
  0xf9   : > { %v621_v33 = vpack.c.bf16 %v591_v30, %v589_v29 }
  0xfa   : > { %v520_v34 = vpop.f32.mrb[4].mxu0  ;;  %v622_v35 = vpack.c.bf16 %v592_v32, %v590_v31 }
  0xfb   : > { %v521_v36 = vadd.f32 %v520_v34, %v7885_v19  ;;  %v522_v37 = vpop.f32.mrb[5].mxu0 }
  0xfc   : > { %v523_v38 = vadd.f32 %v522_v37, %v7888_v20  ;;  %v524_v39 = vpop.f32.mrb[6].mxu0  ;;  %873 = vmatprep.mubr.bf16.mxu1 %v622_v35 }
  0xfd   : > { %v525_v40 = vadd.f32 %v524_v39, %v7885_v19  ;;  %v526_v41 = vpop.f32.mrb[7].mxu0  ;;  %874 = vmatmul.mubr.bf16.vlgmr.msra.gmra.mrb[0].mxu1 %v621_v33  ;;  %v593_v43 = vmax.f32 %v521_v36, 0.0 }
  0xfe   : > { %v527_v42 = vadd.f32 %v526_v41, %v7888_v20  ;;  %v594_v45 = vmax.f32 %v523_v38, 0.0 }
  0xff   : > { %v595_v44 = vmax.f32 %v525_v40, 0.0 }
 0x100   : > { %v596_v46 = vmax.f32 %v527_v42, 0.0 }
 0x101   : > { %v623_v47 = vpack.c.bf16 %v595_v44, %v593_v43 }
 0x102   : > { %v530_v48 = vpop.f32.mrb[8].mxu0  ;;  %v624_v49 = vpack.c.bf16 %v596_v46, %v594_v45 }
 0x103   : > { %v531_v50 = vadd.f32 %v530_v48, %v7885_v19  ;;  %v532_v51 = vpop.f32.mrb[9].mxu0 }
 0x104   : > { %v533_v52 = vadd.f32 %v532_v51, %v7888_v20  ;;  %v534_v53 = vpop.f32.mrb[10].mxu0  ;;  %883 = vmatprep.mubr.bf16.mxu1 %v624_v49 }
 0x105   : > { %v535_v54 = vadd.f32 %v534_v53, %v7885_v19  ;;  %v536_v55 = vpop.f32.mrb[11].mxu0  ;;  %884 = vmatmul.mubr.bf16.gmra.mrb[4].mxu1 %v623_v47  ;;  %v597_v57 = vmax.f32 %v531_v50, 0.0 }
 0x106   : > { %v537_v56 = vadd.f32 %v536_v55, %v7888_v20  ;;  %v598_v59 = vmax.f32 %v533_v52, 0.0 }
 0x107   : > { %v599_v58 = vmax.f32 %v535_v54, 0.0 }
 0x108   : > { %v600_v60 = vmax.f32 %v537_v56, 0.0 }
 0x109   : > { %v625_v61 = vpack.c.bf16 %v599_v58, %v597_v57 }
 0x10a   : > { %v540_v62 = vpop.f32.mrb[12].mxu0  ;;  %v626_v63 = vpack.c.bf16 %v600_v60, %v598_v59 }
 0x10b   : > { %v541_v0 = vadd.f32 %v540_v62, %v7885_v19  ;;  %v542_v1 = vpop.f32.mrb[13].mxu0 }
 0x10c   : > { %v543_v3 = vadd.f32 %v542_v1, %v7888_v20  ;;  %v544_v4 = vpop.f32.mrb[14].mxu0  ;;  %893 = vmatprep.mubr.bf16.mxu1 %v626_v63 }
 0x10d   : > { %v545_v5 = vadd.f32 %v544_v4, %v7885_v19  ;;  %v546_v6 = vpop.f32.mrb[15].mxu0  ;;  %894 = vmatmul.mubr.bf16.gmra.mrb[8].mxu1 %v625_v61  ;;  %v601_v8 = vmax.f32 %v541_v0, 0.0 }
 0x10e   : > { %v547_v7 = vadd.f32 %v546_v6, %v7888_v20  ;;  %v602_v10 = vmax.f32 %v543_v3, 0.0 }
 0x10f   : > { %v603_v9 = vmax.f32 %v545_v5, 0.0 }
 0x110   : > { %v604_v11 = vmax.f32 %v547_v7, 0.0 }
 0x111   : > { %v627_v12 = vpack.c.bf16 %v603_v9, %v601_v8 }
 0x112   : > { %v628_v13 = vpack.c.bf16 %v604_v11, %v602_v10  ;;  %v550_v14 = vpop.f32.mrb[16].mxu0  ;;  %v7064_v11 = vld [vmem:[%s9515_s5 + $0xe4] ss:$8 sps:$4 sm:$0xff]  }
 0x113   : > { %v551_v15 = vadd.f32 %v550_v14, %v7885_v19  ;;  %v552_v17 = vpop.f32.mrb[17].mxu0  ;;  %1234 = vmatprep.subr.bf16.mxu0 %v7064_v11  ;;  %v669_v14 = vld [vmem:[%s9514_s4] sm:$0x3]  ;;  %v7068_v11 = vld [vmem:[%s9511_s1 + $0x30] ss:$8 sps:$4 sm:$0xff]  }
 0x114   : > { %v553_v21 = vadd.f32 %v552_v17, %v7888_v20  ;;  %v554_v22 = vpop.f32.mrb[18].mxu0  ;;  %903 = vmatprep.mubr.bf16.mxu1 %v628_v13  ;;  %v7471_v13 = vld [vmem:[%s9511_s1 + $0x4] ss:$8 sps:$4 sm:$0xff]   ;;  %v7944_v17 = vrot.slane %v669_v14, %v7882_v18 }
 0x115   : > { %v555_v23 = vadd.f32 %v554_v22, %v7885_v19  ;;  %v556_v24 = vpop.f32.mrb[19].mxu0  ;;  %904 = vmatmul.mubr.bf16.gmra.mrb[12].mxu1 %v627_v12  ;;  %v605_v26 = vmax.f32 %v551_v15, 0.0  ;;  %v7065_v12 = vld [vmem:[%s9515_s5 + $0xf0] ss:$8 sps:$4 sm:$0xff]   ;;  %v7941_v15 = vrot.slane %v669_v14, %v7877_v16  ;;  %v7090_v14 = vld [vmem:[%s9517_s7 + $0x28] sm:$0xff]  }
 0x116   : > { %v557_v25 = vadd.f32 %v556_v24, %v7888_v20  ;;  %v606_v28 = vmax.f32 %v553_v21, 0.0 }
 0x117   : > { %v607_v27 = vmax.f32 %v555_v23, 0.0 }
 0x118   : > { %v608_v29 = vmax.f32 %v557_v25, 0.0 }
 0x119   : > { %v629_v30 = vpack.c.bf16 %v607_v27, %v605_v26 }
 0x11a   : > { %v630_v31 = vpack.c.bf16 %v608_v29, %v606_v28  ;;  %v560_v32 = vpop.f32.mrb[20].mxu0  ;;  %v7079_v28 = vld [vmem:[%s9517_s7 + $0x40] sm:$0xff]  }
 0x11b   : > { %v561_v33 = vadd.f32 %v560_v32, %v7885_v19  ;;  %v562_v34 = vpop.f32.mrb[21].mxu0  ;;  %v7080_v29 = vld [vmem:[%s9517_s7] sm:$0xff]   ;;  %6638 = vmatprep.subr.bf16.mxu1 %v7079_v28 }
 0x11c   : > { %v563_v35 = vadd.f32 %v562_v34, %v7888_v20  ;;  %v564_v36 = vpop.f32.mrb[22].mxu0  ;;  %913 = vmatprep.mubr.bf16.mxu1 %v630_v31  ;;  %6639 = vmatpush3.bf16.msra.mxu1 %v7080_v29  ;;  %v7092_v29 = vld [vmem:[%s9517_s7 + $0x30] sm:$0xff]  }
 0x11d   : > { %v565_v37 = vadd.f32 %v564_v36, %v7885_v19  ;;  %v566_v38 = vpop.f32.mrb[23].mxu0  ;;  %914 = vmatmul.mubr.bf16.gmra.mrb[16].mxu1 %v629_v30  ;;  %v609_v40 = vmax.f32 %v561_v33, 0.0  ;;  %v7081_v30 = vld [vmem:[%s9517_s7 + $0x48] sm:$0xff]  }
 0x11e   : > { %v567_v39 = vadd.f32 %v566_v38, %v7888_v20  ;;  %v610_v42 = vmax.f32 %v563_v35, 0.0  ;;  %v7082_v36 = vld [vmem:[%s9517_s7 + $0x8] sm:$0xff]   ;;  %6640 = vmatprep.subr.bf16.mxu1 %v7081_v30  ;;  %v7083_v38 = vld [vmem:[%s9517_s7 + $0x50] sm:$0xff]  }
 0x11f   : > { %v611_v41 = vmax.f32 %v565_v37, 0.0 }
 0x120   : > { %v612_v43 = vmax.f32 %v567_v39, 0.0  ;;  %6641 = vmatpush3.bf16.msra.mxu1 %v7082_v36 }
 0x121   : > { %v631_v44 = vpack.c.bf16 %v611_v41, %v609_v40  ;;  %6642 = vmatprep.subr.bf16.mxu1 %v7083_v38 }
 0x122   : > { %v632_v45 = vpack.c.bf16 %v612_v43, %v610_v42  ;;  %v570_v46 = vpop.f32.mrb[24].mxu0 }
 0x123   : > { %v571_v47 = vadd.f32 %v570_v46, %v7885_v19  ;;  %v572_v48 = vpop.f32.mrb[25].mxu0 }
 0x124   : > { %v573_v49 = vadd.f32 %v572_v48, %v7888_v20  ;;  %v574_v50 = vpop.f32.mrb[26].mxu0  ;;  %923 = vmatprep.mubr.bf16.mxu1 %v632_v45  ;;  %v7084_v45 = vld [vmem:[%s9517_s7 + $0x10] sm:$0xff]   ;;  %v7085_v48 = vld [vmem:[%s9517_s7 + $0x58] sm:$0xff]  }
 0x125   : > { %v575_v51 = vadd.f32 %v574_v50, %v7885_v19  ;;  %v576_v52 = vpop.f32.mrb[27].mxu0  ;;  %924 = vmatmul.mubr.bf16.gmra.mrb[20].mxu1 %v631_v44  ;;  %v613_v54 = vmax.f32 %v571_v47, 0.0  ;;  %v7472_v50 = vld [vmem:[%s9511_s1] ss:$8 sps:$4 sm:$0xff]  }
 0x126   : > { %v577_v53 = vadd.f32 %v576_v52, %v7888_v20  ;;  %v614_v56 = vmax.f32 %v573_v49, 0.0  ;;  %6643 = vmatpush3.bf16.msra.mxu1 %v7084_v45 }
 0x127   : > { %v615_v55 = vmax.f32 %v575_v51, 0.0  ;;  %6644 = vmatprep.subr.bf16.mxu1 %v7085_v48 }
 0x128   : > { %v616_v57 = vmax.f32 %v577_v53, 0.0  ;;  %v7473_v53 = vld [vmem:[%s9511_s1 + $0x14] ss:$8 sps:$4 sm:$0xff]  }
 0x129   : > { %v633_v58 = vpack.c.bf16 %v615_v55, %v613_v54 }
 0x12a   : > { %v634_v59 = vpack.c.bf16 %v616_v57, %v614_v56  ;;  %v580_v60 = vpop.f32.mrb[28].mxu0  ;;  %v7086_v56 = vld [vmem:[%s9517_s7 + $0x18] sm:$0xff]  }
 0x12b   : > { %v581_v61 = vadd.f32 %v580_v60, %v7885_v19  ;;  %v582_v62 = vpop.f32.mrb[29].mxu0  ;;  %6645 = vmatpush3.bf16.msra.mxu1 %v7086_v56 }
 0x12c   : > { %v583_v63 = vadd.f32 %v582_v62, %v7888_v20  ;;  %v584_v0 = vpop.f32.mrb[30].mxu0  ;;  %933 = vmatprep.mubr.bf16.mxu1 %v634_v59 }
 0x12d   : > { %v585_v1 = vadd.f32 %v584_v0, %v7885_v19  ;;  %v586_v3 = vpop.f32.mrb[31].mxu0  ;;  %934 = vmatmul.mubr.bf16.gmra.mrb[24].mxu1 %v633_v58  ;;  %v617_v5 = vmax.f32 %v581_v61, 0.0  ;;  %v7062_v19 = vld [vmem:[%s9515_s5 + $0xe0] ss:$8 sps:$4 sm:$0xff]   ;;  %v7474_v61 = vld [vmem:[%s9511_s1 + $0x10] ss:$8 sps:$4 sm:$0xff]  }
 0x12e   : > { %v587_v4 = vadd.f32 %v586_v3, %v7888_v20  ;;  %v618_v7 = vmax.f32 %v583_v63, 0.0  ;;  %1235 = vmatpush1.bf16.msra.mxu0 %v7062_v19  ;;  %v7067_v20 = vld [vmem:[%s9515_s5 + $0xf4] ss:$8 sps:$4 sm:$0xff]   ;;  %v7087_v58 = vld [vmem:[%s9517_s7 + $0x60] sm:$0xff]  }
 0x12f   : > { %v619_v6 = vmax.f32 %v585_v1, 0.0  ;;  %1236 = vmatprep.subr.bf16.mxu0 %v7067_v20  ;;  %v7475_v0 = vld [vmem:[%s9511_s1 + $0x24] ss:$8 sps:$4 sm:$0xff]   ;;  %v7070_v1 = vld [vmem:[%s9511_s1 + $0x34] ss:$8 sps:$4 sm:$0xff]   ;;  %6646 = vmatprep.subr.bf16.mxu1 %v7087_v58 }
 0x130   : > { %v620_v8 = vmax.f32 %v587_v4, 0.0 }
 0x131   : > { %v635_v9 = vpack.c.bf16 %v619_v6, %v617_v5  ;;  %v7088_v5 = vld [vmem:[%s9517_s7 + $0x20] sm:$0xff]  }
 0x132   : > { %v636_v10 = vpack.c.bf16 %v620_v8, %v618_v7  ;;  %1237 = vmatpush1.bf16.msra.mxu0 %v7065_v12  ;;  %v7089_v8 = vld [vmem:[%s9517_s7 + $0x68] sm:$0xff]   ;;  %6647 = vmatpush3.bf16.msra.mxu1 %v7088_v5 }
 0x133   : > { %1820 = vmatprep.subr.bf16.mxu0 %v7471_v13  ;;  %6648 = vmatprep.subr.bf16.mxu1 %v7089_v8 }
 0x134   : > { %943 = vmatprep.mubr.bf16.mxu1 %v636_v10  ;;  %v7476_v10 = vld [vmem:[%s9511_s1 + $0x20] ss:$8 sps:$4 sm:$0xff]  }
 0x135   : > { %944 = vmatmul.mubr.bf16.gmra.mrb[28].mxu1 %v635_v9 }
 0x136   : > { %6649 = vmatpush3.bf16.msra.mxu1 %v7090_v14 }
 0x1d0   : > { %v875_v21 = vpop.f32.mrb[0].mxu1 }
 0x1d1   : > { %v876_v22 = vadd.f32 %v875_v21, %v7941_v15  ;;  %v877_v23 = vpop.f32.mrb[1].mxu1 }
 0x1d2   : > { %v878_v24 = vadd.f32 %v877_v23, %v7944_v17  ;;  %v879_v25 = vpop.f32.mrb[2].mxu1 }
 0x1d3   : > { %v880_v26 = vadd.f32 %v879_v25, %v7941_v15  ;;  %v881_v27 = vpop.f32.mrb[3].mxu1  ;;  %v954_v32 = vmax.f32 %v876_v22, 0.0  ;;  %v7091_v22 = vld [vmem:[%s9517_s7 + $0x70] sm:$0xff]  }
 0x1d4   : > { %v882_v31 = vadd.f32 %v881_v27, %v7944_v17  ;;  %v955_v34 = vmax.f32 %v878_v24, 0.0  ;;  %6650 = vmatprep.subr.bf16.mxu1 %v7091_v22 }
 0x1d5   : > { %v956_v33 = vmax.f32 %v880_v26, 0.0  ;;  %6651 = vmatpush3.bf16.msra.mxu1 %v7092_v29 }
 0x1d6   : > { %v957_v35 = vmax.f32 %v882_v31, 0.0 }
 0x1d7   : > { %v986_v37 = vpack.c.bf16 %v956_v33, %v954_v32 }
 0x1d8   : > { %v987_v39 = vpack.c.bf16 %v957_v35, %v955_v34  ;;  %v885_v40 = vpop.f32.mrb[4].mxu1 }
 0x1d9   : > { %v886_v41 = vadd.f32 %v885_v40, %v7941_v15  ;;  %v887_v42 = vpop.f32.mrb[5].mxu1 }
 0x1da   : > { %v888_v43 = vadd.f32 %v887_v42, %v7944_v17  ;;  %v889_v44 = vpop.f32.mrb[6].mxu1  ;;  %1238 = vmatprep.mubr.bf16.mxu0 %v987_v39 }
 0x1db   : > { %v890_v46 = vadd.f32 %v889_v44, %v7941_v15  ;;  %v891_v47 = vpop.f32.mrb[7].mxu1  ;;  %1239 = vmatmul.mubr.bf16.vlgmr.msra.gmra.mrb[32].mxu0 %v986_v37  ;;  %v958_v51 = vmax.f32 %v886_v41, 0.0 }
 0x1dc   : > { %v892_v49 = vadd.f32 %v891_v47, %v7944_v17  ;;  %1821 = vmatpush1.bf16.msra.mxu0 %v7472_v50  ;;  %v959_v54 = vmax.f32 %v888_v43, 0.0 }
 0x1dd   : > { %v960_v52 = vmax.f32 %v890_v46, 0.0  ;;  %1822 = vmatprep.subr.bf16.mxu0 %v7473_v53 }
 0x1de   : > { %v961_v55 = vmax.f32 %v892_v49, 0.0 }
 0x1df   : > { %v988_v57 = vpack.c.bf16 %v960_v52, %v958_v51 }
 0x1e0   : > { %v989_v59 = vpack.c.bf16 %v961_v55, %v959_v54  ;;  %v895_v60 = vpop.f32.mrb[8].mxu1  ;;  %1823 = vmatpush1.bf16.msra.mxu0 %v7474_v61 }
 0x1e1   : > { %v896_v62 = vadd.f32 %v895_v60, %v7941_v15  ;;  %v897_v63 = vpop.f32.mrb[9].mxu1  ;;  %1824 = vmatprep.subr.bf16.mxu0 %v7475_v0 }
 0x1e2   : > { %v898_v3 = vadd.f32 %v897_v63, %v7944_v17  ;;  %v899_v4 = vpop.f32.mrb[10].mxu1  ;;  %1248 = vmatprep.mubr.bf16.mxu0 %v989_v59 }
 0x1e3   : > { %v900_v6 = vadd.f32 %v899_v4, %v7941_v15  ;;  %v901_v7 = vpop.f32.mrb[11].mxu1  ;;  %1249 = vmatmul.mubr.bf16.gmra.mrb[36].mxu0 %v988_v57  ;;  %v962_v19 = vmax.f32 %v896_v62, 0.0 }
 0x1e4   : > { %v902_v9 = vadd.f32 %v901_v7, %v7944_v17  ;;  %1825 = vmatpush1.bf16.msra.mxu0 %v7476_v10  ;;  %v963_v12 = vmax.f32 %v898_v3, 0.0 }
 0x1e5   : > { %v964_v20 = vmax.f32 %v900_v6, 0.0  ;;  %1826 = vmatprep.subr.bf16.mxu0 %v7070_v1 }
 0x1e6   : > { %v965_v13 = vmax.f32 %v902_v9, 0.0 }
 0x1e7   : > { %v990_v21 = vpack.c.bf16 %v964_v20, %v962_v19 }
 0x1e8   : > { %v991_v23 = vpack.c.bf16 %v965_v13, %v963_v12  ;;  %v905_v24 = vpop.f32.mrb[12].mxu1  ;;  %1827 = vmatpush1.bf16.msra.mxu0 %v7068_v11 }
 0x1e9   : > { %v906_v25 = vadd.f32 %v905_v24, %v7941_v15  ;;  %v907_v26 = vpop.f32.mrb[13].mxu1 }
 0x1ea   : > { %v908_v27 = vadd.f32 %v907_v26, %v7944_v17  ;;  %v909_v28 = vpop.f32.mrb[14].mxu1  ;;  %1258 = vmatprep.mubr.bf16.mxu0 %v991_v23 }
 0x1eb   : > { %v910_v30 = vadd.f32 %v909_v28, %v7941_v15  ;;  %v911_v31 = vpop.f32.mrb[15].mxu1  ;;  %1259 = vmatmul.mubr.bf16.gmra.mrb[40].mxu0 %v990_v21  ;;  %v966_v33 = vmax.f32 %v906_v25, 0.0 }
 0x1ec   : > { %v912_v32 = vadd.f32 %v911_v31, %v7944_v17  ;;  %v967_v35 = vmax.f32 %v908_v27, 0.0 }
 0x1ed   : > { %v968_v34 = vmax.f32 %v910_v30, 0.0 }
 0x1ee   : > { %v969_v36 = vmax.f32 %v912_v32, 0.0 }
 0x1ef   : > { %v992_v37 = vpack.c.bf16 %v968_v34, %v966_v33 }
 0x1f0   : > { %v993_v38 = vpack.c.bf16 %v969_v36, %v967_v35  ;;  %v915_v39 = vpop.f32.mrb[16].mxu1  ;;  %v7071_v36 = vld [vmem:[%s7663_s24 + $0x40] sm:$0xff]  }
 0x1f1   : > { %v916_v40 = vadd.f32 %v915_v39, %v7941_v15  ;;  %v917_v41 = vpop.f32.mrb[17].mxu1  ;;  %v7094_v39 = vld [vmem:[%s9517_s7 + $0x38] sm:$0xff]  }
 0x1f2   : > { %v918_v42 = vadd.f32 %v917_v41, %v7944_v17  ;;  %v919_v43 = vpop.f32.mrb[18].mxu1  ;;  %1268 = vmatprep.mubr.bf16.mxu0 %v993_v38  ;;  %v7093_v38 = vld [vmem:[%s9517_s7 + $0x78] sm:$0xff]   ;;  %v7097_v41 = vld [vmem:[%s9513_s3 + $0x4] ss:$8 sps:$4 sm:$0xff]  }
 0x1f3   : > { %v920_v44 = vadd.f32 %v919_v43, %v7941_v15  ;;  %v921_v45 = vpop.f32.mrb[19].mxu1  ;;  %1269 = vmatmul.mubr.bf16.gmra.mrb[44].mxu0 %v992_v37  ;;  %v970_v47 = vmax.f32 %v916_v40, 0.0  ;;  %v7074_v37 = vld [vmem:[%s7663_s24 + $0x58] sm:$0xff]   ;;  %6652 = vmatprep.subr.bf16.mxu1 %v7093_v38  ;;  %v7075_v40 = vld [vmem:[%s7663_s24 + $0x60] sm:$0xff]   ;;  %v7077_v43 = vld [vmem:[%s7663_s24 + $0x70] sm:$0xff]  }
 0x1f4   : > { %v922_v46 = vadd.f32 %v921_v45, %v7944_v17  ;;  %v971_v49 = vmax.f32 %v918_v42, 0.0  ;;  %6653 = vmatpush3.bf16.msra.mxu1 %v7094_v39  ;;  %v7076_v42 = vld [vmem:[%s7663_s24 + $0x68] sm:$0xff]   ;;  %v1034_v45 = vld [vmem:[%s9516_s6] sm:$0x3] }
 0x1f5   : > { %v972_v48 = vmax.f32 %v920_v44, 0.0  ;;  %2185 = vmatprep.subr.bf16.mxu1 %v7097_v41  ;;  %v7078_v44 = vld [vmem:[%s7663_s24 + $0x78] sm:$0xff]   ;;  %v7107_v38 = vld [vmem:[%s9513_s3 + $0x40] ss:$8 sps:$4 sm:$0xff]  }
 0x1f6   : > { %v973_v50 = vmax.f32 %v922_v46, 0.0  ;;  %v8078_v46 = vrot.slane %v1034_v45, %v7877_v16  ;;  %v7112_v41 = vld [vmem:[%s9513_s3 + $0x54] ss:$8 sps:$4 sm:$0xff]  }
 0x1f7   : > { %v994_v51 = vpack.c.bf16 %v972_v48, %v970_v47  ;;  %v8081_v47 = vrot.slane %v1034_v45, %v7882_v18 }
 0x1f8   : > { %v995_v52 = vpack.c.bf16 %v973_v50, %v971_v49  ;;  %v925_v53 = vpop.f32.mrb[20].mxu1 }
 0x1f9   : > { %v926_v54 = vadd.f32 %v925_v53, %v7941_v15  ;;  %v927_v55 = vpop.f32.mrb[21].mxu1 }
 0x1fa   : > { %v928_v56 = vadd.f32 %v927_v55, %v7944_v17  ;;  %v929_v57 = vpop.f32.mrb[22].mxu1  ;;  %1278 = vmatprep.mubr.bf16.mxu0 %v995_v52 }
 0x1fb   : > { %v930_v58 = vadd.f32 %v929_v57, %v7941_v15  ;;  %v931_v59 = vpop.f32.mrb[23].mxu1  ;;  %1279 = vmatmul.mubr.bf16.gmra.mrb[48].mxu0 %v994_v51  ;;  %v974_v61 = vmax.f32 %v926_v54, 0.0 }
 0x1fc   : > { %v932_v60 = vadd.f32 %v931_v59, %v7944_v17  ;;  %v975_v63 = vmax.f32 %v928_v56, 0.0 }
 0x1fd   : > { %v976_v62 = vmax.f32 %v930_v58, 0.0 }
 0x1fe   : > { %v977_v0 = vmax.f32 %v932_v60, 0.0 }
 0x1ff   : > { %v996_v1 = vpack.c.bf16 %v976_v62, %v974_v61 }
 0x200   : > { %v997_v3 = vpack.c.bf16 %v977_v0, %v975_v63  ;;  %v935_v4 = vpop.f32.mrb[24].mxu1  ;;  %v7095_v63 = vld [vmem:[%s9513_s3] ss:$8 sps:$4 sm:$0xff]  }
 0x201   : > { %v936_v5 = vadd.f32 %v935_v4, %v7941_v15  ;;  %v937_v6 = vpop.f32.mrb[25].mxu1 }
 0x202   : > { %v938_v7 = vadd.f32 %v937_v6, %v7944_v17  ;;  %v939_v8 = vpop.f32.mrb[26].mxu1  ;;  %1288 = vmatprep.mubr.bf16.mxu0 %v997_v3  ;;  %v7100_v3 = vld [vmem:[%s9513_s3 + $0x14] ss:$8 sps:$4 sm:$0xff]  }
 0x203   : > { %v940_v9 = vadd.f32 %v939_v8, %v7941_v15  ;;  %v941_v10 = vpop.f32.mrb[27].mxu1  ;;  %1289 = vmatmul.mubr.bf16.gmra.mrb[52].mxu0 %v996_v1  ;;  %v978_v19 = vmax.f32 %v936_v5, 0.0 }
 0x204   : > { %v942_v11 = vadd.f32 %v941_v10, %v7944_v17  ;;  %v979_v12 = vmax.f32 %v938_v7, 0.0 }
 0x205   : > { %v980_v20 = vmax.f32 %v940_v9, 0.0  ;;  %v7098_v9 = vld [vmem:[%s9513_s3 + $0x10] ss:$8 sps:$4 sm:$0xff]  }
 0x206   : > { %v981_v13 = vmax.f32 %v942_v11, 0.0 }
 0x207   : > { %v998_v14 = vpack.c.bf16 %v980_v20, %v978_v19  ;;  %v7103_v19 = vld [vmem:[%s9513_s3 + $0x24] ss:$8 sps:$4 sm:$0xff]  }
 0x208   : > { %v999_v21 = vpack.c.bf16 %v981_v13, %v979_v12  ;;  %v945_v22 = vpop.f32.mrb[28].mxu1 }
 0x209   : > { %v946_v23 = vadd.f32 %v945_v22, %v7941_v15  ;;  %v947_v24 = vpop.f32.mrb[29].mxu1  ;;  %v7101_v22 = vld [vmem:[%s9513_s3 + $0x20] ss:$8 sps:$4 sm:$0xff]  }
 0x20a   : > { %v948_v25 = vadd.f32 %v947_v24, %v7944_v17  ;;  %v949_v26 = vpop.f32.mrb[30].mxu1  ;;  %1298 = vmatprep.mubr.bf16.mxu0 %v999_v21 }
 0x20b   : > { %v950_v27 = vadd.f32 %v949_v26, %v7941_v15  ;;  %v951_v28 = vpop.f32.mrb[31].mxu1  ;;  %1299 = vmatmul.mubr.bf16.gmra.mrb[56].mxu0 %v998_v14  ;;  %v982_v30 = vmax.f32 %v946_v23, 0.0  ;;  %v7072_v15 = vld [vmem:[%s7663_s24 + $0x48] sm:$0xff]  }
 0x20c   : > { %v952_v29 = vadd.f32 %v951_v28, %v7944_v17  ;;  %v983_v32 = vmax.f32 %v948_v25, 0.0  ;;  %v7073_v17 = vld [vmem:[%s7663_s24 + $0x50] sm:$0xff]  }
 0x20d   : > { %v984_v31 = vmax.f32 %v950_v27, 0.0  ;;  %v7106_v25 = vld [vmem:[%s9513_s3 + $0x34] ss:$8 sps:$4 sm:$0xff]  }
 0x20e   : > { %v985_v33 = vmax.f32 %v952_v29, 0.0 }
 0x20f   : > { %v1000_v34 = vpack.c.bf16 %v984_v31, %v982_v30  ;;  %v7104_v31 = vld [vmem:[%s9513_s3 + $0x30] ss:$8 sps:$4 sm:$0xff]  }
 0x210   : > { %v1001_v35 = vpack.c.bf16 %v985_v33, %v983_v32 }
 0x212   : > { %1308 = vmatprep.mubr.bf16.mxu0 %v1001_v35 }
 0x213   : > { %1309 = vmatmul.mubr.bf16.gmra.mrb[60].mxu0 %v1000_v34  ;;  %v7109_v34 = vld [vmem:[%s9513_s3 + $0x44] ss:$8 sps:$4 sm:$0xff]  }
 0x214   : > { %1852 = vmatprep.mubr.bf16.mxu0 %v7541_v2 }
 0x21b   : > { %5950 = vmatmul.mubr.msk.bf16.vlgmr.msra.gmra.mrb[64].mxu0 %vm451_vm0, %v7071_v36 }
 0x21c   : > { %1862 = vmatprep.mubr.bf16.mxu0 %v7541_v2 }
 0x223   : > { %5951 = vmatmul.mubr.msk.bf16.gmra.mrb[68].mxu0 %vm451_vm0, %v7072_v15 }
 0x224   : > { %1872 = vmatprep.mubr.bf16.mxu0 %v7541_v2 }
 0x22b   : > { %5952 = vmatmul.mubr.msk.bf16.gmra.mrb[72].mxu0 %vm451_vm0, %v7073_v17 }
 0x22c   : > { %1882 = vmatprep.mubr.bf16.mxu0 %v7541_v2 }
 0x233   : > { %5953 = vmatmul.mubr.msk.bf16.gmra.mrb[76].mxu0 %vm451_vm0, %v7074_v37 }
 0x234   : > { %1892 = vmatprep.mubr.bf16.mxu0 %v7541_v2 }
 0x23b   : > { %5954 = vmatmul.mubr.msk.bf16.gmra.mrb[80].mxu0 %vm451_vm0, %v7075_v40 }
 0x23c   : > { %1902 = vmatprep.mubr.bf16.mxu0 %v7541_v2 }
 0x243   : > { %5955 = vmatmul.mubr.msk.bf16.gmra.mrb[84].mxu0 %vm451_vm0, %v7076_v42 }
 0x244   : > { %1912 = vmatprep.mubr.bf16.mxu0 %v7541_v2 }
 0x24b   : > { %5956 = vmatmul.mubr.msk.bf16.gmra.mrb[88].mxu0 %vm451_vm0, %v7077_v43 }
 0x24c   : > { %1922 = vmatprep.mubr.bf16.mxu0 %v7541_v2 }
 0x253   : > { %5957 = vmatmul.mubr.msk.bf16.gmra.mrb[92].mxu0 %vm451_vm0, %v7078_v44 }
 0x2ae   : > { %v1240_v48 = vpop.f32.mrb[32].mxu0 }
 0x2af   : > { %v1241_v49 = vadd.f32 %v1240_v48, %v8078_v46  ;;  %v1242_v50 = vpop.f32.mrb[33].mxu0 }
 0x2b0   : > { %v1243_v51 = vadd.f32 %v1242_v50, %v8081_v47  ;;  %v1244_v52 = vpop.f32.mrb[34].mxu0 }
 0x2b1   : > { %v1245_v53 = vadd.f32 %v1244_v52, %v8078_v46  ;;  %v1246_v54 = vpop.f32.mrb[35].mxu0  ;;  %v1319_v56 = vmax.f32 %v1241_v49, 0.0  ;;  %v7110_v49 = vld [vmem:[%s9513_s3 + $0x50] ss:$8 sps:$4 sm:$0xff]   ;;  %v7115_v52 = vld [vmem:[%s9513_s3 + $0x64] ss:$8 sps:$4 sm:$0xff]  }
 0x2b2   : > { %v1247_v55 = vadd.f32 %v1246_v54, %v8081_v47  ;;  %v1320_v58 = vmax.f32 %v1243_v51, 0.0 }
 0x2b3   : > { %v1321_v57 = vmax.f32 %v1245_v53, 0.0 }
 0x2b4   : > { %v1322_v59 = vmax.f32 %v1247_v55, 0.0 }
 0x2b5   : > { %v1351_v60 = vpack.c.bf16 %v1321_v57, %v1319_v56 }
 0x2b6   : > { %v1352_v61 = vpack.c.bf16 %v1322_v59, %v1320_v58  ;;  %v1250_v62 = vpop.f32.mrb[36].mxu0  ;;  %v7113_v58 = vld [vmem:[%s9513_s3 + $0x60] ss:$8 sps:$4 sm:$0xff]  }
 0x2b7   : > { %v1251_v0 = vadd.f32 %v1250_v62, %v8078_v46  ;;  %v1252_v1 = vpop.f32.mrb[37].mxu0 }
 0x2b8   : > { %v1253_v4 = vadd.f32 %v1252_v1, %v8081_v47  ;;  %v1254_v5 = vpop.f32.mrb[38].mxu0  ;;  %1534 = vmatprep.mubr.bf16.mxu1 %v1352_v61  ;;  %v7118_v61 = vld [vmem:[%s9513_s3 + $0x74] ss:$8 sps:$4 sm:$0xff]  }
 0x2b9   : > { %v1255_v6 = vadd.f32 %v1254_v5, %v8078_v46  ;;  %v1256_v7 = vpop.f32.mrb[39].mxu0  ;;  %1535 = vmatmul.mubr.bf16.vlgmr.msra.gmra.mrb[32].mxu1 %v1351_v60  ;;  %v1323_v10 = vmax.f32 %v1251_v0, 0.0 }
 0x2ba   : > { %v1257_v8 = vadd.f32 %v1256_v7, %v8081_v47  ;;  %2186 = vmatpush1.bf16.msra.mxu1 %v7095_v63  ;;  %v1324_v20 = vmax.f32 %v1253_v4, 0.0  ;;  %v7116_v4 = vld [vmem:[%s9513_s3 + $0x70] ss:$8 sps:$4 sm:$0xff]   ;;  %v7121_v7 = vld [vmem:[%s9513_s3 + $0x84] ss:$8 sps:$4 sm:$0xff]  }
 0x2bb   : > { %v1325_v11 = vmax.f32 %v1255_v6, 0.0  ;;  %2187 = vmatprep.subr.bf16.mxu1 %v7100_v3 }
 0x2bc   : > { %v1326_v12 = vmax.f32 %v1257_v8, 0.0 }
 0x2bd   : > { %v1353_v13 = vpack.c.bf16 %v1325_v11, %v1323_v10 }
 0x2be   : > { %v1354_v14 = vpack.c.bf16 %v1326_v12, %v1324_v20  ;;  %2188 = vmatpush1.bf16.msra.mxu1 %v7098_v9  ;;  %v1260_v21 = vpop.f32.mrb[40].mxu0  ;;  %v7119_v20 = vld [vmem:[%s9513_s3 + $0x80] ss:$8 sps:$4 sm:$0xff]  }
 0x2bf   : > { %v1261_v23 = vadd.f32 %v1260_v21, %v8078_v46  ;;  %v1262_v24 = vpop.f32.mrb[41].mxu0  ;;  %2189 = vmatprep.subr.bf16.mxu1 %v7103_v19 }
 0x2c0   : > { %v1263_v26 = vadd.f32 %v1262_v24, %v8081_v47  ;;  %v1264_v27 = vpop.f32.mrb[42].mxu0  ;;  %1542 = vmatprep.mubr.bf16.mxu1 %v1354_v14  ;;  %v7124_v14 = vld [vmem:[%s9513_s3 + $0x94] ss:$8 sps:$4 sm:$0xff]  }
 0x2c1   : > { %v1265_v28 = vadd.f32 %v1264_v27, %v8078_v46  ;;  %v1266_v29 = vpop.f32.mrb[43].mxu0  ;;  %1543 = vmatmul.mubr.bf16.gmra.mrb[36].mxu1 %v1353_v13  ;;  %v1327_v32 = vmax.f32 %v1261_v23, 0.0 }
 0x2c2   : > { %v1267_v30 = vadd.f32 %v1266_v29, %v8081_v47  ;;  %2190 = vmatpush1.bf16.msra.mxu1 %v7101_v22  ;;  %v1328_v35 = vmax.f32 %v1263_v26, 0.0  ;;  %v7122_v26 = vld [vmem:[%s9513_s3 + $0x90] ss:$8 sps:$4 sm:$0xff]   ;;  %v7127_v29 = vld [vmem:[%s9513_s3 + $0xa4] ss:$8 sps:$4 sm:$0xff]  }
 0x2c3   : > { %v1329_v33 = vmax.f32 %v1265_v28, 0.0  ;;  %2191 = vmatprep.subr.bf16.mxu1 %v7106_v25 }
 0x2c4   : > { %v1330_v36 = vmax.f32 %v1267_v30, 0.0 }
 0x2c5   : > { %v1355_v15 = vpack.c.bf16 %v1329_v33, %v1327_v32 }
 0x2c6   : > { %v1356_v17 = vpack.c.bf16 %v1330_v36, %v1328_v35  ;;  %2192 = vmatpush1.bf16.msra.mxu1 %v7104_v31  ;;  %v1270_v37 = vpop.f32.mrb[44].mxu0  ;;  %v7125_v35 = vld [vmem:[%s9513_s3 + $0xa0] ss:$8 sps:$4 sm:$0xff]  }
 0x2c7   : > { %v1271_v39 = vadd.f32 %v1270_v37, %v8078_v46  ;;  %v1272_v40 = vpop.f32.mrb[45].mxu0  ;;  %2193 = vmatprep.subr.bf16.mxu1 %v7109_v34 }
 0x2c8   : > { %v1273_v42 = vadd.f32 %v1272_v40, %v8081_v47  ;;  %v1274_v43 = vpop.f32.mrb[46].mxu0  ;;  %1550 = vmatprep.mubr.bf16.mxu1 %v1356_v17  ;;  %v7130_v17 = vld [vmem:[%s9513_s3 + $0xb4] ss:$8 sps:$4 sm:$0xff]  }
 0x2c9   : > { %v1275_v44 = vadd.f32 %v1274_v43, %v8078_v46  ;;  %v1276_v45 = vpop.f32.mrb[47].mxu0  ;;  %1551 = vmatmul.mubr.bf16.gmra.mrb[40].mxu1 %v1355_v15  ;;  %v1331_v50 = vmax.f32 %v1271_v39, 0.0 }
 0x2ca   : > { %v1277_v48 = vadd.f32 %v1276_v45, %v8081_v47  ;;  %2194 = vmatpush1.bf16.msra.mxu1 %v7107_v38  ;;  %v1332_v53 = vmax.f32 %v1273_v42, 0.0  ;;  %v7128_v42 = vld [vmem:[%s9513_s3 + $0xb0] ss:$8 sps:$4 sm:$0xff]   ;;  %v7133_v45 = vld [vmem:[%s9513_s3 + $0xc4] ss:$8 sps:$4 sm:$0xff]  }
 0x2cb   : > { %v1333_v51 = vmax.f32 %v1275_v44, 0.0  ;;  %2195 = vmatprep.subr.bf16.mxu1 %v7112_v41 }
 0x2cc   : > { %v1334_v54 = vmax.f32 %v1277_v48, 0.0 }
 0x2cd   : > { %v1357_v55 = vpack.c.bf16 %v1333_v51, %v1331_v50 }
 0x2ce   : > { %v1358_v56 = vpack.c.bf16 %v1334_v54, %v1332_v53  ;;  %2196 = vmatpush1.bf16.msra.mxu1 %v7110_v49  ;;  %v1280_v57 = vpop.f32.mrb[48].mxu0  ;;  %v7131_v53 = vld [vmem:[%s9513_s3 + $0xc0] ss:$8 sps:$4 sm:$0xff]  }
 0x2cf   : > { %v1281_v59 = vadd.f32 %v1280_v57, %v8078_v46  ;;  %v1282_v60 = vpop.f32.mrb[49].mxu0  ;;  %2197 = vmatprep.subr.bf16.mxu1 %v7115_v52 }
 0x2d0   : > { %v1283_v62 = vadd.f32 %v1282_v60, %v8081_v47  ;;  %v1284_v63 = vpop.f32.mrb[50].mxu0  ;;  %1558 = vmatprep.mubr.bf16.mxu1 %v1358_v56  ;;  %v7136_v56 = vld [vmem:[%s9513_s3 + $0xd4] ss:$8 sps:$4 sm:$0xff]  }
 0x2d1   : > { %v1285_v0 = vadd.f32 %v1284_v63, %v8078_v46  ;;  %v1286_v1 = vpop.f32.mrb[51].mxu0  ;;  %1559 = vmatmul.mubr.bf16.gmra.mrb[44].mxu1 %v1357_v55  ;;  %v1335_v5 = vmax.f32 %v1281_v59, 0.0  ;;  %v1704_v59 = vld [vmem:[%s9512_s2] sm:$0x3]  ;;  %v7134_v63 = vld [vmem:[%s9513_s3 + $0xd0] ss:$8 sps:$4 sm:$0xff]  }
 0x2d2   : > { %v1287_v3 = vadd.f32 %v1286_v1, %v8081_v47  ;;  %2198 = vmatpush1.bf16.msra.mxu1 %v7113_v58  ;;  %v1336_v8 = vmax.f32 %v1283_v62, 0.0 }
 0x2d3   : > { %v1337_v6 = vmax.f32 %v1285_v0, 0.0  ;;  %2199 = vmatprep.subr.bf16.mxu1 %v7118_v61 }
 0x2d4   : > { %v1338_v9 = vmax.f32 %v1287_v3, 0.0  ;;  %v8200_v3 = vrot.slane %v1704_v59, %v7877_v16 }
 0x2d5   : > { %v1359_v10 = vpack.c.bf16 %v1337_v6, %v1335_v5  ;;  %v8206_v6 = vrot.slane %v1704_v59, %v7882_v18 }
 0x2d6   : > { %v1360_v11 = vpack.c.bf16 %v1338_v9, %v1336_v8  ;;  %2200 = vmatpush1.bf16.msra.mxu1 %v7116_v4  ;;  %v1290_v19 = vpop.f32.mrb[52].mxu0  ;;  %v7139_v4 = vld [vmem:[%s9513_s3 + $0xe4] ss:$8 sps:$4 sm:$0xff]   ;;  %v7137_v9 = vld [vmem:[%s9513_s3 + $0xe0] ss:$8 sps:$4 sm:$0xff]  }
 0x2d7   : > { %v1291_v12 = vadd.f32 %v1290_v19, %v8078_v46  ;;  %v1292_v13 = vpop.f32.mrb[53].mxu0  ;;  %2201 = vmatprep.subr.bf16.mxu1 %v7121_v7  ;;  %v7142_v19 = vld [vmem:[%s9513_s3 + $0xf4] ss:$8 sps:$4 sm:$0xff]  }
 0x2d8   : > { %v1293_v21 = vadd.f32 %v1292_v13, %v8081_v47  ;;  %v1294_v22 = vpop.f32.mrb[54].mxu0  ;;  %1566 = vmatprep.mubr.bf16.mxu1 %v1360_v11 }
 0x2d9   : > { %v1295_v23 = vadd.f32 %v1294_v22, %v8078_v46  ;;  %v1296_v24 = vpop.f32.mrb[55].mxu0  ;;  %1567 = vmatmul.mubr.bf16.gmra.mrb[48].mxu1 %v1359_v10  ;;  %v1339_v27 = vmax.f32 %v1291_v12, 0.0  ;;  %v7140_v22 = vld [vmem:[%s9513_s3 + $0xf0] ss:$8 sps:$4 sm:$0xff]  }
 0x2da   : > { %v1297_v25 = vadd.f32 %v1296_v24, %v8081_v47  ;;  %2202 = vmatpush1.bf16.msra.mxu1 %v7119_v20  ;;  %v1340_v30 = vmax.f32 %v1293_v21, 0.0 }
 0x2db   : > { %v1341_v28 = vmax.f32 %v1295_v23, 0.0  ;;  %2203 = vmatprep.subr.bf16.mxu1 %v7124_v14 }
 0x2dc   : > { %v1342_v31 = vmax.f32 %v1297_v25, 0.0 }
 0x2dd   : > { %v1361_v32 = vpack.c.bf16 %v1341_v28, %v1339_v27 }
 0x2de   : > { %v1362_v33 = vpack.c.bf16 %v1342_v31, %v1340_v30  ;;  %2204 = vmatpush1.bf16.msra.mxu1 %v7122_v26  ;;  %v1300_v34 = vpop.f32.mrb[56].mxu0 }
 0x2df   : > { %v1301_v36 = vadd.f32 %v1300_v34, %v8078_v46  ;;  %v1302_v15 = vpop.f32.mrb[57].mxu0  ;;  %2205 = vmatprep.subr.bf16.mxu1 %v7127_v29 }
 0x2e0   : > { %v1303_v37 = vadd.f32 %v1302_v15, %v8081_v47  ;;  %v1304_v38 = vpop.f32.mrb[58].mxu0  ;;  %1574 = vmatprep.mubr.bf16.mxu1 %v1362_v33 }
 0x2e1   : > { %v1305_v39 = vadd.f32 %v1304_v38, %v8078_v46  ;;  %v1306_v40 = vpop.f32.mrb[59].mxu0  ;;  %1575 = vmatmul.mubr.bf16.gmra.mrb[52].mxu1 %v1361_v32  ;;  %v1343_v43 = vmax.f32 %v1301_v36, 0.0 }
 0x2e2   : > { %v1307_v41 = vadd.f32 %v1306_v40, %v8081_v47  ;;  %2206 = vmatpush1.bf16.msra.mxu1 %v7125_v35  ;;  %v1344_v48 = vmax.f32 %v1303_v37, 0.0 }
 0x2e3   : > { %v1345_v44 = vmax.f32 %v1305_v39, 0.0  ;;  %2207 = vmatprep.subr.bf16.mxu1 %v7130_v17 }
 0x2e4   : > { %v1346_v49 = vmax.f32 %v1307_v41, 0.0 }
 0x2e5   : > { %v1363_v50 = vpack.c.bf16 %v1345_v44, %v1343_v43 }
 0x2e6   : > { %v1364_v51 = vpack.c.bf16 %v1346_v49, %v1344_v48  ;;  %2208 = vmatpush1.bf16.msra.mxu1 %v7128_v42  ;;  %v1310_v52 = vpop.f32.mrb[60].mxu0 }
 0x2e7   : > { %v1311_v54 = vadd.f32 %v1310_v52, %v8078_v46  ;;  %v1312_v55 = vpop.f32.mrb[61].mxu0  ;;  %2209 = vmatprep.subr.bf16.mxu1 %v7133_v45 }
 0x2e8   : > { %v1313_v57 = vadd.f32 %v1312_v55, %v8081_v47  ;;  %v1314_v58 = vpop.f32.mrb[62].mxu0  ;;  %1582 = vmatprep.mubr.bf16.mxu1 %v1364_v51 }
 0x2e9   : > { %v1315_v60 = vadd.f32 %v1314_v58, %v8078_v46  ;;  %v1316_v61 = vpop.f32.mrb[63].mxu0  ;;  %1583 = vmatmul.mubr.bf16.gmra.mrb[56].mxu1 %v1363_v50  ;;  %v1347_v0 = vmax.f32 %v1311_v54, 0.0 }
 0x2ea   : > { %v1317_v62 = vadd.f32 %v1316_v61, %v8081_v47  ;;  %2210 = vmatpush1.bf16.msra.mxu1 %v7131_v53  ;;  %v1348_v46 = vmax.f32 %v1313_v57, 0.0 }
 0x2eb   : > { %v1349_v1 = vmax.f32 %v1315_v60, 0.0  ;;  %2211 = vmatprep.subr.bf16.mxu1 %v7136_v56 }
 0x2ec   : > { %v1350_v5 = vmax.f32 %v1317_v62, 0.0 }
 0x2ed   : > { %v1365_v47 = vpack.c.bf16 %v1349_v1, %v1347_v0 }
 0x2ee   : > { %v1366_v7 = vpack.c.bf16 %v1350_v5, %v1348_v46  ;;  %2212 = vmatpush1.bf16.msra.mxu1 %v7134_v63  ;;  %v1854_v8 = vpop.f32.mrb[64].mxu0 }
 0x2ef   : > { %v1855_v10 = vadd.f32 %v1854_v8, %v8200_v3  ;;  %v1856_v11 = vpop.f32.mrb[65].mxu0  ;;  %2213 = vmatprep.subr.bf16.mxu1 %v7139_v4 }
 0x2f0   : > { %v1857_v20 = vadd.f32 %v1856_v11, %v8206_v6  ;;  %1590 = vmatprep.mubr.bf16.mxu1 %v1366_v7  ;;  %v1858_v12 = vpop.f32.mrb[66].mxu0 }
 0x2f1   : > { %v1859_v13 = vadd.f32 %v1858_v12, %v8200_v3  ;;  %1591 = vmatmul.mubr.bf16.gmra.mrb[60].mxu1 %v1365_v47  ;;  %v1860_v14 = vpop.f32.mrb[67].mxu0  ;;  %v1933_v23 = vmax.f32 %v1855_v10, 0.0 }
 0x2f2   : > { %v1861_v21 = vadd.f32 %v1860_v14, %v8206_v6  ;;  %2214 = vmatpush1.bf16.msra.mxu1 %v7137_v9  ;;  %v1934_v25 = vmax.f32 %v1857_v20, 0.0 }
 0x2f3   : > { %v1935_v24 = vmax.f32 %v1859_v13, 0.0  ;;  %2215 = vmatprep.subr.bf16.mxu1 %v7142_v19 }
 0x2f4   : > { %v1936_v26 = vmax.f32 %v1861_v21, 0.0 }
 0x2f5   : > { %v1965_v27 = vpack.c.bf16 %v1935_v24, %v1933_v23 }
 0x2f6   : > { %v1966_v28 = vpack.c.bf16 %v1936_v26, %v1934_v25  ;;  %2216 = vmatpush1.bf16.msra.mxu1 %v7140_v22  ;;  %v1864_v29 = vpop.f32.mrb[68].mxu0  ;;  %v7145_v25 = vld [vmem:[%s9515_s5 + $0x4] ss:$8 sps:$4 sm:$0xff]  }
 0x2f7   : > { %v1865_v30 = vadd.f32 %v1864_v29, %v8200_v3  ;;  %v1866_v31 = vpop.f32.mrb[69].mxu0  ;;  %2550 = vmatprep.subr.bf16.mxu0 %v7145_v25  ;;  %v7172_v25 = vld [vmem:[%s9515_s5 + $0x94] ss:$8 sps:$4 sm:$0xff]  }
 0x2f8   : > { %v1867_v32 = vadd.f32 %v1866_v31, %v8206_v6  ;;  %v1868_v33 = vpop.f32.mrb[70].mxu0  ;;  %2217 = vmatprep.mubr.bf16.mxu1 %v1966_v28  ;;  %v7143_v28 = vld [vmem:[%s9515_s5] ss:$8 sps:$4 sm:$0xff]  }
 0x2f9   : > { %v1869_v34 = vadd.f32 %v1868_v33, %v8200_v3  ;;  %v1870_v35 = vpop.f32.mrb[71].mxu0  ;;  %2218 = vmatmul.mubr.bf16.vlgmr.msra.gmra.mrb[64].mxu1 %v1965_v27  ;;  %v1937_v15 = vmax.f32 %v1865_v30, 0.0  ;;  %2551 = vmatpush1.bf16.msra.mxu0 %v7143_v28  ;;  %v7173_v28 = vld [vmem:[%s9515_s5 + $0xa0] ss:$8 sps:$4 sm:$0xff]  }
 0x2fa   : > { %v1871_v36 = vadd.f32 %v1870_v35, %v8206_v6  ;;  %v1938_v37 = vmax.f32 %v1867_v32, 0.0  ;;  %v7148_v35 = vld [vmem:[%s9515_s5 + $0x14] ss:$8 sps:$4 sm:$0xff]  }
 0x2fb   : > { %v1939_v17 = vmax.f32 %v1869_v34, 0.0  ;;  %2552 = vmatprep.subr.bf16.mxu0 %v7148_v35  ;;  %v7187_v35 = vld [vmem:[%s9515_s5 + $0xe4] ss:$8 sps:$4 sm:$0xff]  }
 0x2fc   : > { %v1940_v38 = vmax.f32 %v1871_v36, 0.0 }
 0x2fd   : > { %v1967_v39 = vpack.c.bf16 %v1939_v17, %v1937_v15  ;;  %v7146_v15 = vld [vmem:[%s9515_s5 + $0x10] ss:$8 sps:$4 sm:$0xff]  }
 0x2fe   : > { %v1968_v40 = vpack.c.bf16 %v1940_v38, %v1938_v37  ;;  %v1874_v41 = vpop.f32.mrb[72].mxu0  ;;  %2553 = vmatpush1.bf16.msra.mxu0 %v7146_v15  ;;  %v7190_v15 = vld [vmem:[%s9515_s5 + $0xf4] ss:$8 sps:$4 sm:$0xff]  }
 0x2ff   : > { %v1875_v42 = vadd.f32 %v1874_v41, %v8200_v3  ;;  %v1876_v43 = vpop.f32.mrb[73].mxu0  ;;  %v7151_v41 = vld [vmem:[%s9515_s5 + $0x24] ss:$8 sps:$4 sm:$0xff]  }
 0x300   : > { %v1877_v44 = vadd.f32 %v1876_v43, %v8206_v6  ;;  %v1878_v45 = vpop.f32.mrb[74].mxu0  ;;  %2227 = vmatprep.mubr.bf16.mxu1 %v1968_v40  ;;  %2554 = vmatprep.subr.bf16.mxu0 %v7151_v41 }
 0x301   : > { %v1879_v48 = vadd.f32 %v1878_v45, %v8200_v3  ;;  %v1880_v49 = vpop.f32.mrb[75].mxu0  ;;  %2228 = vmatmul.mubr.bf16.gmra.mrb[68].mxu1 %v1967_v39  ;;  %v1941_v51 = vmax.f32 %v1875_v42, 0.0 }
 0x302   : > { %v1881_v50 = vadd.f32 %v1880_v49, %v8206_v6  ;;  %v1942_v53 = vmax.f32 %v1877_v44, 0.0  ;;  %v7149_v44 = vld [vmem:[%s9515_s5 + $0x20] ss:$8 sps:$4 sm:$0xff]  }
 0x303   : > { %v1943_v52 = vmax.f32 %v1879_v48, 0.0  ;;  %2555 = vmatpush1.bf16.msra.mxu0 %v7149_v44 }
 0x304   : > { %v1944_v54 = vmax.f32 %v1881_v50, 0.0 }
 0x305   : > { %v1969_v55 = vpack.c.bf16 %v1943_v52, %v1941_v51 }
 0x306   : > { %v1970_v56 = vpack.c.bf16 %v1944_v54, %v1942_v53  ;;  %v1884_v57 = vpop.f32.mrb[76].mxu0  ;;  %v7154_v53 = vld [vmem:[%s9515_s5 + $0x34] ss:$8 sps:$4 sm:$0xff]  }
 0x307   : > { %v1885_v58 = vadd.f32 %v1884_v57, %v8200_v3  ;;  %v1886_v59 = vpop.f32.mrb[77].mxu0  ;;  %2556 = vmatprep.subr.bf16.mxu0 %v7154_v53 }
 0x308   : > { %v1887_v60 = vadd.f32 %v1886_v59, %v8206_v6  ;;  %v1888_v61 = vpop.f32.mrb[78].mxu0  ;;  %2237 = vmatprep.mubr.bf16.mxu1 %v1970_v56 }
 0x309   : > { %v1889_v62 = vadd.f32 %v1888_v61, %v8200_v3  ;;  %v1890_v63 = vpop.f32.mrb[79].mxu0  ;;  %2238 = vmatmul.mubr.bf16.gmra.mrb[72].mxu1 %v1969_v55  ;;  %v1945_v1 = vmax.f32 %v1885_v58, 0.0  ;;  %v7152_v55 = vld [vmem:[%s9515_s5 + $0x30] ss:$8 sps:$4 sm:$0xff]   ;;  %v7157_v61 = vld [vmem:[%s9515_s5 + $0x44] ss:$8 sps:$4 sm:$0xff]  }
 0x30a   : > { %v1891_v0 = vadd.f32 %v1890_v63, %v8206_v6  ;;  %v1946_v46 = vmax.f32 %v1887_v60, 0.0  ;;  %2557 = vmatpush1.bf16.msra.mxu0 %v7152_v55 }
 0x30b   : > { %v1947_v4 = vmax.f32 %v1889_v62, 0.0  ;;  %2558 = vmatprep.subr.bf16.mxu0 %v7157_v61 }
 0x30c   : > { %v1948_v5 = vmax.f32 %v1891_v0, 0.0  ;;  %v7155_v0 = vld [vmem:[%s9515_s5 + $0x40] ss:$8 sps:$4 sm:$0xff]  }
 0x30d   : > { %v1971_v47 = vpack.c.bf16 %v1947_v4, %v1945_v1 }
 0x30e   : > { %v1972_v7 = vpack.c.bf16 %v1948_v5, %v1946_v46  ;;  %v1894_v8 = vpop.f32.mrb[80].mxu0  ;;  %2559 = vmatpush1.bf16.msra.mxu0 %v7155_v0 }
 0x30f   : > { %v1895_v9 = vadd.f32 %v1894_v8, %v8200_v3  ;;  %v1896_v10 = vpop.f32.mrb[81].mxu0  ;;  %v7160_v8 = vld [vmem:[%s9515_s5 + $0x54] ss:$8 sps:$4 sm:$0xff]  }
 0x310   : > { %v1897_v11 = vadd.f32 %v1896_v10, %v8206_v6  ;;  %v1898_v19 = vpop.f32.mrb[82].mxu0  ;;  %2247 = vmatprep.mubr.bf16.mxu1 %v1972_v7  ;;  %v7158_v10 = vld [vmem:[%s9515_s5 + $0x50] ss:$8 sps:$4 sm:$0xff]   ;;  %2560 = vmatprep.subr.bf16.mxu0 %v7160_v8 }
 0x311   : > { %v1899_v20 = vadd.f32 %v1898_v19, %v8200_v3  ;;  %v1900_v12 = vpop.f32.mrb[83].mxu0  ;;  %2248 = vmatmul.mubr.bf16.gmra.mrb[76].mxu1 %v1971_v47  ;;  %v1949_v14 = vmax.f32 %v1895_v9, 0.0 }
 0x312   : > { %v1901_v13 = vadd.f32 %v1900_v12, %v8206_v6  ;;  %v1950_v22 = vmax.f32 %v1897_v11, 0.0  ;;  %2561 = vmatpush1.bf16.msra.mxu0 %v7158_v10 }
 0x313   : > { %v1951_v21 = vmax.f32 %v1899_v20, 0.0 }
 0x314   : > { %v1952_v23 = vmax.f32 %v1901_v13, 0.0 }
 0x315   : > { %v1973_v24 = vpack.c.bf16 %v1951_v21, %v1949_v14  ;;  %v7166_v21 = vld [vmem:[%s9515_s5 + $0x74] ss:$8 sps:$4 sm:$0xff]  }
 0x316   : > { %v1974_v26 = vpack.c.bf16 %v1952_v23, %v1950_v22  ;;  %v1904_v27 = vpop.f32.mrb[84].mxu0  ;;  %v7164_v22 = vld [vmem:[%s9515_s5 + $0x70] ss:$8 sps:$4 sm:$0xff]   ;;  %v7169_v23 = vld [vmem:[%s9515_s5 + $0x84] ss:$8 sps:$4 sm:$0xff]  }
 0x317   : > { %v1905_v29 = vadd.f32 %v1904_v27, %v8200_v3  ;;  %v1906_v30 = vpop.f32.mrb[85].mxu0  ;;  %v7175_v27 = vld [vmem:[%s9515_s5 + $0xa4] ss:$8 sps:$4 sm:$0xff]  }
 0x318   : > { %v1907_v31 = vadd.f32 %v1906_v30, %v8206_v6  ;;  %v1908_v32 = vpop.f32.mrb[86].mxu0  ;;  %2257 = vmatprep.mubr.bf16.mxu1 %v1974_v26  ;;  %v7170_v26 = vld [vmem:[%s9515_s5 + $0x90] ss:$8 sps:$4 sm:$0xff]  }
 0x319   : > { %v1909_v33 = vadd.f32 %v1908_v32, %v8200_v3  ;;  %v1910_v34 = vpop.f32.mrb[87].mxu0  ;;  %2258 = vmatmul.mubr.bf16.gmra.mrb[80].mxu1 %v1973_v24  ;;  %v1953_v17 = vmax.f32 %v1905_v29, 0.0  ;;  %v7167_v24 = vld [vmem:[%s9515_s5 + $0x80] ss:$8 sps:$4 sm:$0xff]   ;;  %v7178_v29 = vld [vmem:[%s9515_s5 + $0xb4] ss:$8 sps:$4 sm:$0xff]  }
 0x31a   : > { %v1911_v36 = vadd.f32 %v1910_v34, %v8206_v6  ;;  %v1954_v38 = vmax.f32 %v1907_v31, 0.0  ;;  %v7176_v30 = vld [vmem:[%s9515_s5 + $0xb0] ss:$8 sps:$4 sm:$0xff]   ;;  %v7181_v31 = vld [vmem:[%s9515_s5 + $0xc4] ss:$8 sps:$4 sm:$0xff]  }
 0x31b   : > { %v1955_v37 = vmax.f32 %v1909_v33, 0.0  ;;  %v7179_v32 = vld [vmem:[%s9515_s5 + $0xc0] ss:$8 sps:$4 sm:$0xff]   ;;  %v7184_v33 = vld [vmem:[%s9515_s5 + $0xd4] ss:$8 sps:$4 sm:$0xff]  }
 0x31c   : > { %v1956_v39 = vmax.f32 %v1911_v36, 0.0  ;;  %v7182_v34 = vld [vmem:[%s9515_s5 + $0xd0] ss:$8 sps:$4 sm:$0xff]   ;;  %v7185_v36 = vld [vmem:[%s9515_s5 + $0xe0] ss:$8 sps:$4 sm:$0xff]  }
 0x31d   : > { %v1975_v40 = vpack.c.bf16 %v1955_v37, %v1953_v17  ;;  %v7188_v17 = vld [vmem:[%s9515_s5 + $0xf0] ss:$8 sps:$4 sm:$0xff]   ;;  %v7193_v37 = vld [vmem:[%s9511_s1 + $0x4] ss:$8 sps:$4 sm:$0xff]  }
 0x31e   : > { %v1976_v42 = vpack.c.bf16 %v1956_v39, %v1954_v38  ;;  %v1914_v43 = vpop.f32.mrb[88].mxu0 }
 0x31f   : > { %v1915_v45 = vadd.f32 %v1914_v43, %v8200_v3  ;;  %v1916_v48 = vpop.f32.mrb[89].mxu0 }
 0x320   : > { %v1917_v49 = vadd.f32 %v1916_v48, %v8206_v6  ;;  %v1918_v50 = vpop.f32.mrb[90].mxu0  ;;  %2267 = vmatprep.mubr.bf16.mxu1 %v1976_v42  ;;  %v8352_v42 = vld [vmem:[%s9518_s8] ss:$0 sm:$0xff] }
 0x321   : > { %v1919_v51 = vadd.f32 %v1918_v50, %v8200_v3  ;;  %v1920_v52 = vpop.f32.mrb[91].mxu0  ;;  %2268 = vmatmul.mubr.bf16.gmra.mrb[84].mxu1 %v1975_v40  ;;  %v1957_v56 = vmax.f32 %v1915_v45, 0.0 }
 0x322   : > { %v1921_v54 = vadd.f32 %v1920_v52, %v8206_v6  ;;  %v1958_v58 = vmax.f32 %v1917_v49, 0.0 }
 0x323   : > { %v1959_v57 = vmax.f32 %v1919_v51, 0.0 }
 0x324   : > { %v1960_v59 = vmax.f32 %v1921_v54, 0.0 }
 0x325   : > { %v1977_v60 = vpack.c.bf16 %v1959_v57, %v1957_v56 }
 0x326   : > { %v1978_v62 = vpack.c.bf16 %v1960_v59, %v1958_v58  ;;  %v1924_v63 = vpop.f32.mrb[92].mxu0 }
 0x327   : > { %v1925_v1 = vadd.f32 %v1924_v63, %v8200_v3  ;;  %v1926_v4 = vpop.f32.mrb[93].mxu0 }
 0x328   : > { %v1927_v46 = vadd.f32 %v1926_v4, %v8206_v6  ;;  %v1928_v5 = vpop.f32.mrb[94].mxu0  ;;  %2277 = vmatprep.mubr.bf16.mxu1 %v1978_v62 }
 0x329   : > { %v1929_v47 = vadd.f32 %v1928_v5, %v8200_v3  ;;  %v1930_v7 = vpop.f32.mrb[95].mxu0  ;;  %2278 = vmatmul.mubr.bf16.gmra.mrb[88].mxu1 %v1977_v60  ;;  %v1961_v11 = vmax.f32 %v1925_v1, 0.0  ;;  %v7163_v3 = vld [vmem:[%s9515_s5 + $0x64] ss:$8 sps:$4 sm:$0xff]  }
 0x32a   : > { %v1931_v9 = vadd.f32 %v1930_v7, %v8206_v6  ;;  %v1962_v20 = vmax.f32 %v1927_v46, 0.0  ;;  %v7161_v6 = vld [vmem:[%s9515_s5 + $0x60] ss:$8 sps:$4 sm:$0xff]   ;;  %2562 = vmatprep.subr.bf16.mxu0 %v7163_v3 }
 0x32b   : > { %v1963_v19 = vmax.f32 %v1929_v47, 0.0  ;;  %2563 = vmatpush1.bf16.msra.mxu0 %v7161_v6 }
 0x32c   : > { %v1964_v12 = vmax.f32 %v1931_v9, 0.0  ;;  %2564 = vmatprep.subr.bf16.mxu0 %v7166_v21 }
 0x32d   : > { %v1979_v13 = vpack.c.bf16 %v1963_v19, %v1961_v11 }
 0x32e   : > { %v1980_v14 = vpack.c.bf16 %v1964_v12, %v1962_v20 }
 0x32f   : > { %2565 = vmatpush1.bf16.msra.mxu0 %v7164_v22 }
 0x330   : > { %2287 = vmatprep.mubr.bf16.mxu1 %v1980_v14  ;;  %2566 = vmatprep.subr.bf16.mxu0 %v7169_v23 }
 0x331   : > { %2288 = vmatmul.mubr.bf16.gmra.mrb[92].mxu1 %v1979_v13 }
 0x333   : > { %2567 = vmatpush1.bf16.msra.mxu0 %v7167_v24 }
 0x334   : > { %2568 = vmatprep.subr.bf16.mxu0 %v7172_v25 }
 0x337   : > { %2569 = vmatpush1.bf16.msra.mxu0 %v7170_v26 }
 0x338   : > { %2570 = vmatprep.subr.bf16.mxu0 %v7175_v27 }
 0x33b   : > { %2571 = vmatpush1.bf16.msra.mxu0 %v7173_v28 }
 0x33c   : > { %2572 = vmatprep.subr.bf16.mxu0 %v7178_v29 }
 0x33f   : > { %2573 = vmatpush1.bf16.msra.mxu0 %v7176_v30 }
 0x340   : > { %2574 = vmatprep.subr.bf16.mxu0 %v7181_v31 }
 0x343   : > { %2575 = vmatpush1.bf16.msra.mxu0 %v7179_v32 }
 0x344   : > { %2576 = vmatprep.subr.bf16.mxu0 %v7184_v33 }
 0x347   : > { %2577 = vmatpush1.bf16.msra.mxu0 %v7182_v34 }
 0x348   : > { %2578 = vmatprep.subr.bf16.mxu0 %v7187_v35 }
 0x34b   : > { %2579 = vmatpush1.bf16.msra.mxu0 %v7185_v36 }
 0x34c   : > { %2580 = vmatprep.subr.bf16.mxu0 %v7190_v15 }
 0x34f   : > { %2581 = vmatpush1.bf16.msra.mxu0 %v7188_v17 }
 0x350   : > { %3165 = vmatprep.subr.bf16.mxu0 %v7193_v37 }
 0x38c   : > { %v6654_v38 = vpop.f32.mrb[32].mxu1 }
 0x38d   : > { %v6655_v39 = vpop.f32.mrb[33].mxu1 }
 0x38e   : > { %v6656_v40 = vadd.f32 %v6655_v39, %v6654_v38  ;;  %v6657_v41 = vpop.f32.mrb[34].mxu1 }
 0x38f   : > { %v6658_v43 = vpop.f32.mrb[35].mxu1 }
 0x390   : > { %v6659_v44 = vadd.f32 %v6658_v43, %v6657_v41  ;;  %v1537_v45 = vadd.f32 %v6656_v40, %v8352_v42 }
 0x392   : > { %v1540_v48 = vadd.f32 %v6659_v44, %v8352_v42 }
 0x394   : > { %v6450_v49 = vpack.c.bf16 %v1540_v48, %v1537_v45  ;;  %v6660_v50 = vpop.f32.mrb[36].mxu1  ;;  %v2013_v48 = vld [vmem:[%s9514_s4] sm:$0x3] }
 0x395   : > { %v6661_v51 = vpop.f32.mrb[37].mxu1 }
 0x396   : > { %6451 = vst [vmem:[%s8358_s22] sm:$0xff] %v6450_v49   ;;  %v6662_v52 = vadd.f32 %v6661_v51, %v6660_v50  ;;  %v6663_v53 = vpop.f32.mrb[38].mxu1  ;;  %v8383_v51 = vrot.slane %v2013_v48, %v7877_v16 }
 0x397   : > { %v6664_v54 = vpop.f32.mrb[39].mxu1 }
 0x398   : > { %v6665_v55 = vadd.f32 %v6664_v54, %v6663_v53  ;;  %v1545_v56 = vadd.f32 %v6662_v52, %v8352_v42  ;;  %v8388_v54 = vrot.slane %v2013_v48, %v7882_v18  ;;  %v7200_v48 = vld [vmem:[%s9511_s1 + $0x30] ss:$8 sps:$4 sm:$0xff]  }
 0x39a   : > { %v1548_v57 = vadd.f32 %v6665_v55, %v8352_v42 }
 0x39c   : > { %v6455_v58 = vpack.c.bf16 %v1548_v57, %v1545_v56  ;;  %v6666_v59 = vpop.f32.mrb[40].mxu1 }
 0x39d   : > { %v6667_v60 = vpop.f32.mrb[41].mxu1 }
 0x39e   : > { %6607 = vst [vmem:[%s8358_s22 + $0x8] sm:$0xff] %v6455_v58   ;;  %v6668_v61 = vadd.f32 %v6667_v60, %v6666_v59  ;;  %v6669_v62 = vpop.f32.mrb[42].mxu1 }
 0x39f   : > { %v6670_v63 = vpop.f32.mrb[43].mxu1 }
 0x3a0   : > { %v6671_v0 = vadd.f32 %v6670_v63, %v6669_v62  ;;  %v1553_v1 = vadd.f32 %v6668_v61, %v8352_v42  ;;  %v7211_v63 = vld [vmem:[%s9517_s7 + $0x40] sm:$0xff]  }
 0x3a1   : > { %6702 = vmatprep.subr.bf16.mxu1 %v7211_v63 }
 0x3a2   : > { %v1556_v4 = vadd.f32 %v6671_v0, %v8352_v42  ;;  %v7213_v0 = vld [vmem:[%s9517_s7 + $0x48] sm:$0xff]  }
 0x3a4   : > { %v6460_v46 = vpack.c.bf16 %v1556_v4, %v1553_v1  ;;  %v6672_v5 = vpop.f32.mrb[44].mxu1 }
 0x3a5   : > { %v6673_v47 = vpop.f32.mrb[45].mxu1 }
 0x3a6   : > { %6608 = vst [vmem:[%s8358_s22 + $0x10] sm:$0xff] %v6460_v46   ;;  %v6674_v7 = vadd.f32 %v6673_v47, %v6672_v5  ;;  %v6675_v8 = vpop.f32.mrb[46].mxu1 }
 0x3a7   : > { %v6676_v9 = vpop.f32.mrb[47].mxu1 }
 0x3a8   : > { %v6677_v10 = vadd.f32 %v6676_v9, %v6675_v8  ;;  %v1561_v11 = vadd.f32 %v6674_v7, %v8352_v42  ;;  %v7214_v7 = vld [vmem:[%s9517_s7 + $0x8] sm:$0xff]   ;;  %v7215_v9 = vld [vmem:[%s9517_s7 + $0x50] sm:$0xff]  }
 0x3aa   : > { %v1564_v19 = vadd.f32 %v6677_v10, %v8352_v42 }
 0x3ac   : > { %v6465_v20 = vpack.c.bf16 %v1564_v19, %v1561_v11  ;;  %v6678_v12 = vpop.f32.mrb[48].mxu1  ;;  %v7191_v19 = vld [vmem:[%s9511_s1] ss:$8 sps:$4 sm:$0xff]  }
 0x3ad   : > { %v6679_v13 = vpop.f32.mrb[49].mxu1 }
 0x3ae   : > { %6609 = vst [vmem:[%s8358_s22 + $0x18] sm:$0xff] %v6465_v20   ;;  %v6680_v3 = vadd.f32 %v6679_v13, %v6678_v12  ;;  %v6681_v14 = vpop.f32.mrb[50].mxu1  ;;  %v7196_v13 = vld [vmem:[%s9511_s1 + $0x14] ss:$8 sps:$4 sm:$0xff]  }
 0x3af   : > { %v6682_v6 = vpop.f32.mrb[51].mxu1 }
 0x3b0   : > { %v6683_v21 = vadd.f32 %v6682_v6, %v6681_v14  ;;  %v1569_v22 = vadd.f32 %v6680_v3, %v8352_v42  ;;  %v7216_v6 = vld [vmem:[%s9517_s7 + $0x10] sm:$0xff]  }
 0x3b2   : > { %v1572_v23 = vadd.f32 %v6683_v21, %v8352_v42 }
 0x3b4   : > { %v6470_v24 = vpack.c.bf16 %v1572_v23, %v1569_v22  ;;  %v6684_v25 = vpop.f32.mrb[52].mxu1  ;;  %v7217_v23 = vld [vmem:[%s9517_s7 + $0x58] sm:$0xff]  }
 0x3b5   : > { %v6685_v26 = vpop.f32.mrb[53].mxu1 }
 0x3b6   : > { %6610 = vst [vmem:[%s8358_s22 + $0x20] sm:$0xff] %v6470_v24   ;;  %v6686_v27 = vadd.f32 %v6685_v26, %v6684_v25  ;;  %v6687_v28 = vpop.f32.mrb[54].mxu1  ;;  %v7194_v25 = vld [vmem:[%s9511_s1 + $0x10] ss:$8 sps:$4 sm:$0xff]  }
 0x3b7   : > { %v6688_v29 = vpop.f32.mrb[55].mxu1 }
 0x3b8   : > { %v6689_v30 = vadd.f32 %v6688_v29, %v6687_v28  ;;  %v1577_v31 = vadd.f32 %v6686_v27, %v8352_v42  ;;  %v7199_v28 = vld [vmem:[%s9511_s1 + $0x24] ss:$8 sps:$4 sm:$0xff]  }
 0x3ba   : > { %v1580_v32 = vadd.f32 %v6689_v30, %v8352_v42 }
 0x3bc   : > { %v6475_v33 = vpack.c.bf16 %v1580_v32, %v1577_v31  ;;  %v6690_v34 = vpop.f32.mrb[56].mxu1  ;;  %v7218_v31 = vld [vmem:[%s9517_s7 + $0x18] sm:$0xff]  }
 0x3bd   : > { %v6691_v35 = vpop.f32.mrb[57].mxu1 }
 0x3be   : > { %6611 = vst [vmem:[%s8358_s22 + $0x28] sm:$0xff] %v6475_v33   ;;  %v6692_v36 = vadd.f32 %v6691_v35, %v6690_v34  ;;  %v6693_v15 = vpop.f32.mrb[58].mxu1  ;;  %v7219_v33 = vld [vmem:[%s9517_s7 + $0x60] sm:$0xff]  }
 0x3bf   : > { %v6694_v17 = vpop.f32.mrb[59].mxu1 }
 0x3c0   : > { %v6695_v37 = vadd.f32 %v6694_v17, %v6693_v15  ;;  %v1585_v38 = vadd.f32 %v6692_v36, %v8352_v42  ;;  %v7197_v36 = vld [vmem:[%s9511_s1 + $0x20] ss:$8 sps:$4 sm:$0xff]  }
 0x3c2   : > { %v1588_v39 = vadd.f32 %v6695_v37, %v8352_v42  ;;  %v7202_v37 = vld [vmem:[%s9511_s1 + $0x34] ss:$8 sps:$4 sm:$0xff]  }
 0x3c4   : > { %v6480_v40 = vpack.c.bf16 %v1588_v39, %v1585_v38  ;;  %v6696_v41 = vpop.f32.mrb[60].mxu1 }
 0x3c5   : > { %v6697_v43 = vpop.f32.mrb[61].mxu1 }
 0x3c6   : > { %6612 = vst [vmem:[%s8358_s22 + $0x30] sm:$0xff] %v6480_v40   ;;  %v6698_v44 = vadd.f32 %v6697_v43, %v6696_v41  ;;  %v6699_v45 = vpop.f32.mrb[62].mxu1  ;;  %v7220_v40 = vld [vmem:[%s9517_s7 + $0x20] sm:$0xff]  }
 0x3c7   : > { %v6700_v49 = vpop.f32.mrb[63].mxu1 }
 0x3c8   : > { %v6701_v50 = vadd.f32 %v6700_v49, %v6699_v45  ;;  %v1593_v52 = vadd.f32 %v6698_v44, %v8352_v42  ;;  %v7221_v44 = vld [vmem:[%s9517_s7 + $0x68] sm:$0xff]  }
 0x3ca   : > { %v1596_v53 = vadd.f32 %v6701_v50, %v8352_v42  ;;  %v7212_v42 = vld [vmem:[%s9517_s7] sm:$0xff]  }
 0x3cb   : > { %6703 = vmatpush3.bf16.msra.mxu1 %v7212_v42  ;;  %v7224_v42 = vld [vmem:[%s9517_s7 + $0x30] sm:$0xff]  }
 0x3cc   : > { %v6485_v55 = vpack.c.bf16 %v1596_v53, %v1593_v52  ;;  %v2219_v56 = vpop.f32.mrb[64].mxu1  ;;  %6704 = vmatprep.subr.bf16.mxu1 %v7213_v0 }
 0x3cd   : > { %v2220_v57 = vadd.f32 %v2219_v56, %v8383_v51  ;;  %v2221_v58 = vpop.f32.mrb[65].mxu1 }
 0x3ce   : > { %6613 = vst [vmem:[%s8358_s22 + $0x38] sm:$0xff] %v6485_v55   ;;  %v2222_v59 = vadd.f32 %v2221_v58, %v8388_v54  ;;  %v2223_v60 = vpop.f32.mrb[66].mxu1  ;;  %v7222_v55 = vld [vmem:[%s9517_s7 + $0x28] sm:$0xff]  }
 0x3cf   : > { %v2224_v61 = vadd.f32 %v2223_v60, %v8383_v51  ;;  %v2225_v62 = vpop.f32.mrb[67].mxu1  ;;  %v2298_v4 = vmax.f32 %v2220_v57, 0.0  ;;  %6705 = vmatpush3.bf16.msra.mxu1 %v7214_v7  ;;  %v7223_v57 = vld [vmem:[%s9517_s7 + $0x70] sm:$0xff]  }
 0x3d0   : > { %v2226_v1 = vadd.f32 %v2225_v62, %v8388_v54  ;;  %v2299_v5 = vmax.f32 %v2222_v59, 0.0  ;;  %6706 = vmatprep.subr.bf16.mxu1 %v7215_v9 }
 0x3d1   : > { %v2300_v46 = vmax.f32 %v2224_v61, 0.0 }
 0x3d2   : > { %v2301_v47 = vmax.f32 %v2226_v1, 0.0 }
 0x3d3   : > { %v2330_v8 = vpack.c.bf16 %v2300_v46, %v2298_v4  ;;  %6707 = vmatpush3.bf16.msra.mxu1 %v7216_v6 }
 0x3d4   : > { %v2331_v10 = vpack.c.bf16 %v2301_v47, %v2299_v5  ;;  %v2229_v11 = vpop.f32.mrb[68].mxu1  ;;  %6708 = vmatprep.subr.bf16.mxu1 %v7217_v23 }
 0x3d5   : > { %v2230_v20 = vadd.f32 %v2229_v11, %v8383_v51  ;;  %v2231_v12 = vpop.f32.mrb[69].mxu1 }
 0x3d6   : > { %v2232_v3 = vadd.f32 %v2231_v12, %v8388_v54  ;;  %v2233_v14 = vpop.f32.mrb[70].mxu1  ;;  %2582 = vmatprep.mubr.bf16.mxu0 %v2331_v10 }
 0x3d7   : > { %v2234_v21 = vadd.f32 %v2233_v14, %v8383_v51  ;;  %v2235_v22 = vpop.f32.mrb[71].mxu1  ;;  %2583 = vmatmul.mubr.bf16.vlgmr.msra.gmra.mrb[96].mxu0 %v2330_v8  ;;  %v2302_v26 = vmax.f32 %v2230_v20, 0.0  ;;  %6709 = vmatpush3.bf16.msra.mxu1 %v7218_v31 }
 0x3d8   : > { %v2236_v24 = vadd.f32 %v2235_v22, %v8388_v54  ;;  %3166 = vmatpush1.bf16.msra.mxu0 %v7191_v19  ;;  %v2303_v29 = vmax.f32 %v2232_v3, 0.0  ;;  %6710 = vmatprep.subr.bf16.mxu1 %v7219_v33 }
 0x3d9   : > { %v2304_v27 = vmax.f32 %v2234_v21, 0.0  ;;  %3167 = vmatprep.subr.bf16.mxu0 %v7196_v13 }
 0x3da   : > { %v2305_v30 = vmax.f32 %v2236_v24, 0.0 }
 0x3db   : > { %v2332_v32 = vpack.c.bf16 %v2304_v27, %v2302_v26  ;;  %6711 = vmatpush3.bf16.msra.mxu1 %v7220_v40 }
 0x3dc   : > { %v2333_v34 = vpack.c.bf16 %v2305_v30, %v2303_v29  ;;  %v2239_v35 = vpop.f32.mrb[72].mxu1  ;;  %3168 = vmatpush1.bf16.msra.mxu0 %v7194_v25  ;;  %6712 = vmatprep.subr.bf16.mxu1 %v7221_v44 }
 0x3dd   : > { %v2240_v15 = vadd.f32 %v2239_v35, %v8383_v51  ;;  %v2241_v17 = vpop.f32.mrb[73].mxu1  ;;  %3169 = vmatprep.subr.bf16.mxu0 %v7199_v28 }
 0x3de   : > { %v2242_v38 = vadd.f32 %v2241_v17, %v8388_v54  ;;  %v2243_v39 = vpop.f32.mrb[74].mxu1  ;;  %2592 = vmatprep.mubr.bf16.mxu0 %v2333_v34 }
 0x3df   : > { %v2244_v41 = vadd.f32 %v2243_v39, %v8383_v51  ;;  %v2245_v43 = vpop.f32.mrb[75].mxu1  ;;  %2593 = vmatmul.mubr.bf16.gmra.mrb[100].mxu0 %v2332_v32  ;;  %v2306_v49 = vmax.f32 %v2240_v15, 0.0  ;;  %6713 = vmatpush3.bf16.msra.mxu1 %v7222_v55 }
 0x3e0   : > { %v2246_v45 = vadd.f32 %v2245_v43, %v8388_v54  ;;  %3170 = vmatpush1.bf16.msra.mxu0 %v7197_v36  ;;  %v2307_v52 = vmax.f32 %v2242_v38, 0.0  ;;  %6714 = vmatprep.subr.bf16.mxu1 %v7223_v57 }
 0x3e1   : > { %v2308_v50 = vmax.f32 %v2244_v41, 0.0  ;;  %3171 = vmatprep.subr.bf16.mxu0 %v7202_v37 }
 0x3e2   : > { %v2309_v53 = vmax.f32 %v2246_v45, 0.0 }
 0x3e3   : > { %v2334_v56 = vpack.c.bf16 %v2308_v50, %v2306_v49  ;;  %6715 = vmatpush3.bf16.msra.mxu1 %v7224_v42 }
 0x3e4   : > { %v2335_v58 = vpack.c.bf16 %v2309_v53, %v2307_v52  ;;  %v2249_v59 = vpop.f32.mrb[76].mxu1  ;;  %3172 = vmatpush1.bf16.msra.mxu0 %v7200_v48 }
 0x3e5   : > { %v2250_v60 = vadd.f32 %v2249_v59, %v8383_v51  ;;  %v2251_v61 = vpop.f32.mrb[77].mxu1 }
 0x3e6   : > { %v2252_v62 = vadd.f32 %v2251_v61, %v8388_v54  ;;  %v2253_v63 = vpop.f32.mrb[78].mxu1  ;;  %2602 = vmatprep.mubr.bf16.mxu0 %v2335_v58 }
 0x3e7   : > { %v2254_v0 = vadd.f32 %v2253_v63, %v8383_v51  ;;  %v2255_v1 = vpop.f32.mrb[79].mxu1  ;;  %2603 = vmatmul.mubr.bf16.gmra.mrb[104].mxu0 %v2334_v56  ;;  %v2310_v46 = vmax.f32 %v2250_v60, 0.0 }
 0x3e8   : > { %v2256_v4 = vadd.f32 %v2255_v1, %v8388_v54  ;;  %v2311_v47 = vmax.f32 %v2252_v62, 0.0 }
 0x3e9   : > { %v2312_v5 = vmax.f32 %v2254_v0, 0.0 }
 0x3ea   : > { %v2313_v7 = vmax.f32 %v2256_v4, 0.0 }
 0x3eb   : > { %v2336_v8 = vpack.c.bf16 %v2312_v5, %v2310_v46 }
 0x3ec   : > { %v2337_v9 = vpack.c.bf16 %v2313_v7, %v2311_v47  ;;  %v2259_v10 = vpop.f32.mrb[80].mxu1  ;;  %v7203_v7 = vld [vmem:[%s7663_s24 + $0x80] sm:$0xff]  }
 0x3ed   : > { %v2260_v11 = vadd.f32 %v2259_v10, %v8383_v51  ;;  %v2261_v19 = vpop.f32.mrb[81].mxu1  ;;  %v7226_v10 = vld [vmem:[%s9517_s7 + $0x38] sm:$0xff]  }
 0x3ee   : > { %v2262_v20 = vadd.f32 %v2261_v19, %v8388_v54  ;;  %v2263_v12 = vpop.f32.mrb[82].mxu1  ;;  %2612 = vmatprep.mubr.bf16.mxu0 %v2337_v9  ;;  %v7225_v9 = vld [vmem:[%s9517_s7 + $0x78] sm:$0xff]   ;;  %v7229_v19 = vld [vmem:[%s9513_s3 + $0x4] ss:$8 sps:$4 sm:$0xff]  }
 0x3ef   : > { %v2264_v13 = vadd.f32 %v2263_v12, %v8383_v51  ;;  %v2265_v3 = vpop.f32.mrb[83].mxu1  ;;  %2613 = vmatmul.mubr.bf16.gmra.mrb[108].mxu0 %v2336_v8  ;;  %v2314_v6 = vmax.f32 %v2260_v11, 0.0  ;;  %v7206_v8 = vld [vmem:[%s7663_s24 + $0x98] sm:$0xff]   ;;  %6716 = vmatprep.subr.bf16.mxu1 %v7225_v9  ;;  %v7207_v11 = vld [vmem:[%s7663_s24 + $0xa0] sm:$0xff]   ;;  %v7209_v12 = vld [vmem:[%s7663_s24 + $0xb0] sm:$0xff]  }
 0x3f0   : > { %v2266_v14 = vadd.f32 %v2265_v3, %v8388_v54  ;;  %v2315_v22 = vmax.f32 %v2262_v20, 0.0  ;;  %6717 = vmatpush3.bf16.msra.mxu1 %v7226_v10  ;;  %v7208_v20 = vld [vmem:[%s7663_s24 + $0xa8] sm:$0xff]   ;;  %v2378_v3 = vld [vmem:[%s9516_s6] sm:$0x3] }
 0x3f1   : > { %v2316_v21 = vmax.f32 %v2264_v13, 0.0  ;;  %3530 = vmatprep.subr.bf16.mxu1 %v7229_v19  ;;  %v7210_v13 = vld [vmem:[%s7663_s24 + $0xb8] sm:$0xff]   ;;  %v7239_v9 = vld [vmem:[%s9513_s3 + $0x40] ss:$8 sps:$4 sm:$0xff]  }
 0x3f2   : > { %v2317_v23 = vmax.f32 %v2266_v14, 0.0  ;;  %v8523_v14 = vrot.slane %v2378_v3, %v7877_v16  ;;  %v7244_v19 = vld [vmem:[%s9513_s3 + $0x54] ss:$8 sps:$4 sm:$0xff]  }
 0x3f3   : > { %v2338_v24 = vpack.c.bf16 %v2316_v21, %v2314_v6  ;;  %v8526_v6 = vrot.slane %v2378_v3, %v7882_v18 }
 0x3f4   : > { %v2339_v25 = vpack.c.bf16 %v2317_v23, %v2315_v22  ;;  %v2269_v26 = vpop.f32.mrb[84].mxu1 }
 0x3f5   : > { %v2270_v27 = vadd.f32 %v2269_v26, %v8383_v51  ;;  %v2271_v28 = vpop.f32.mrb[85].mxu1 }
 0x3f6   : > { %v2272_v29 = vadd.f32 %v2271_v28, %v8388_v54  ;;  %v2273_v30 = vpop.f32.mrb[86].mxu1  ;;  %2622 = vmatprep.mubr.bf16.mxu0 %v2339_v25 }
 0x3f7   : > { %v2274_v31 = vadd.f32 %v2273_v30, %v8383_v51  ;;  %v2275_v32 = vpop.f32.mrb[87].mxu1  ;;  %2623 = vmatmul.mubr.bf16.gmra.mrb[112].mxu0 %v2338_v24  ;;  %v2318_v34 = vmax.f32 %v2270_v27, 0.0 }
 0x3f8   : > { %v2276_v33 = vadd.f32 %v2275_v32, %v8388_v54  ;;  %v2319_v36 = vmax.f32 %v2272_v29, 0.0 }
 0x3f9   : > { %v2320_v35 = vmax.f32 %v2274_v31, 0.0 }
 0x3fa   : > { %v2321_v15 = vmax.f32 %v2276_v33, 0.0 }
 0x3fb   : > { %v2340_v17 = vpack.c.bf16 %v2320_v35, %v2318_v34 }
 0x3fc   : > { %v2341_v37 = vpack.c.bf16 %v2321_v15, %v2319_v36  ;;  %v2279_v38 = vpop.f32.mrb[88].mxu1  ;;  %v7227_v36 = vld [vmem:[%s9513_s3] ss:$8 sps:$4 sm:$0xff]  }
 0x3fd   : > { %v2280_v39 = vadd.f32 %v2279_v38, %v8383_v51  ;;  %v2281_v40 = vpop.f32.mrb[89].mxu1 }
 0x3fe   : > { %v2282_v41 = vadd.f32 %v2281_v40, %v8388_v54  ;;  %v2283_v43 = vpop.f32.mrb[90].mxu1  ;;  %2632 = vmatprep.mubr.bf16.mxu0 %v2341_v37  ;;  %v7232_v37 = vld [vmem:[%s9513_s3 + $0x14] ss:$8 sps:$4 sm:$0xff]  }
 0x3ff   : > { %v2284_v44 = vadd.f32 %v2283_v43, %v8383_v51  ;;  %v2285_v45 = vpop.f32.mrb[91].mxu1  ;;  %2633 = vmatmul.mubr.bf16.gmra.mrb[116].mxu0 %v2340_v17  ;;  %v2322_v49 = vmax.f32 %v2280_v39, 0.0 }
 0x400   : > { %v2286_v48 = vadd.f32 %v2285_v45, %v8388_v54  ;;  %v2323_v52 = vmax.f32 %v2282_v41, 0.0 }
 0x401   : > { %v2324_v50 = vmax.f32 %v2284_v44, 0.0  ;;  %v7230_v44 = vld [vmem:[%s9513_s3 + $0x10] ss:$8 sps:$4 sm:$0xff]  }
 0x402   : > { %v2325_v53 = vmax.f32 %v2286_v48, 0.0 }
 0x403   : > { %v2342_v55 = vpack.c.bf16 %v2324_v50, %v2322_v49  ;;  %v7235_v49 = vld [vmem:[%s9513_s3 + $0x24] ss:$8 sps:$4 sm:$0xff]  }
 0x404   : > { %v2343_v56 = vpack.c.bf16 %v2325_v53, %v2323_v52  ;;  %v2289_v57 = vpop.f32.mrb[92].mxu1 }
 0x405   : > { %v2290_v58 = vadd.f32 %v2289_v57, %v8383_v51  ;;  %v2291_v59 = vpop.f32.mrb[93].mxu1  ;;  %v7233_v57 = vld [vmem:[%s9513_s3 + $0x20] ss:$8 sps:$4 sm:$0xff]  }
 0x406   : > { %v2292_v60 = vadd.f32 %v2291_v59, %v8388_v54  ;;  %v2293_v61 = vpop.f32.mrb[94].mxu1  ;;  %2642 = vmatprep.mubr.bf16.mxu0 %v2343_v56 }
 0x407   : > { %v2294_v62 = vadd.f32 %v2293_v61, %v8383_v51  ;;  %v2295_v63 = vpop.f32.mrb[95].mxu1  ;;  %2643 = vmatmul.mubr.bf16.gmra.mrb[120].mxu0 %v2342_v55  ;;  %v2326_v0 = vmax.f32 %v2290_v58, 0.0  ;;  %v7204_v51 = vld [vmem:[%s7663_s24 + $0x88] sm:$0xff]  }
 0x408   : > { %v2296_v42 = vadd.f32 %v2295_v63, %v8388_v54  ;;  %v2327_v4 = vmax.f32 %v2292_v60, 0.0  ;;  %v7205_v54 = vld [vmem:[%s7663_s24 + $0x90] sm:$0xff]  }
 0x409   : > { %v2328_v1 = vmax.f32 %v2294_v62, 0.0  ;;  %v7238_v60 = vld [vmem:[%s9513_s3 + $0x34] ss:$8 sps:$4 sm:$0xff]  }
 0x40a   : > { %v2329_v46 = vmax.f32 %v2296_v42, 0.0 }
 0x40b   : > { %v2344_v5 = vpack.c.bf16 %v2328_v1, %v2326_v0  ;;  %v7236_v1 = vld [vmem:[%s9513_s3 + $0x30] ss:$8 sps:$4 sm:$0xff]  }
 0x40c   : > { %v2345_v47 = vpack.c.bf16 %v2329_v46, %v2327_v4 }
 0x40e   : > { %2652 = vmatprep.mubr.bf16.mxu0 %v2345_v47 }
 0x40f   : > { %2653 = vmatmul.mubr.bf16.gmra.mrb[124].mxu0 %v2344_v5  ;;  %v7241_v5 = vld [vmem:[%s9513_s3 + $0x44] ss:$8 sps:$4 sm:$0xff]  }
 0x410   : > { %3197 = vmatprep.mubr.bf16.mxu0 %v7541_v2 }
 0x417   : > { %6103 = vmatmul.mubr.msk.bf16.vlgmr.msra.gmra.mrb[128].mxu0 %vm451_vm0, %v7203_v7 }
 0x418   : > { %3207 = vmatprep.mubr.bf16.mxu0 %v7541_v2 }
 0x41f   : > { %6104 = vmatmul.mubr.msk.bf16.gmra.mrb[132].mxu0 %vm451_vm0, %v7204_v51 }
 0x420   : > { %3217 = vmatprep.mubr.bf16.mxu0 %v7541_v2 }
 0x427   : > { %6105 = vmatmul.mubr.msk.bf16.gmra.mrb[136].mxu0 %vm451_vm0, %v7205_v54 }
 0x428   : > { %3227 = vmatprep.mubr.bf16.mxu0 %v7541_v2 }
 0x42f   : > { %6106 = vmatmul.mubr.msk.bf16.gmra.mrb[140].mxu0 %vm451_vm0, %v7206_v8 }
 0x430   : > { %3237 = vmatprep.mubr.bf16.mxu0 %v7541_v2 }
 0x437   : > { %6107 = vmatmul.mubr.msk.bf16.gmra.mrb[144].mxu0 %vm451_vm0, %v7207_v11 }
 0x438   : > { %3247 = vmatprep.mubr.bf16.mxu0 %v7541_v2 }
 0x43f   : > { %6108 = vmatmul.mubr.msk.bf16.gmra.mrb[148].mxu0 %vm451_vm0, %v7208_v20 }
 0x440   : > { %3257 = vmatprep.mubr.bf16.mxu0 %v7541_v2 }
 0x447   : > { %6109 = vmatmul.mubr.msk.bf16.gmra.mrb[152].mxu0 %vm451_vm0, %v7209_v12 }
 0x448   : > { %3267 = vmatprep.mubr.bf16.mxu0 %v7541_v2 }
 0x44f   : > { %6110 = vmatmul.mubr.msk.bf16.gmra.mrb[156].mxu0 %vm451_vm0, %v7210_v13 }
 0x4aa   : > { %v2584_v21 = vpop.f32.mrb[96].mxu0 }
 0x4ab   : > { %v2585_v22 = vadd.f32 %v2584_v21, %v8523_v14  ;;  %v2586_v23 = vpop.f32.mrb[97].mxu0 }
 0x4ac   : > { %v2587_v24 = vadd.f32 %v2586_v23, %v8526_v6  ;;  %v2588_v25 = vpop.f32.mrb[98].mxu0 }
 0x4ad   : > { %v2589_v26 = vadd.f32 %v2588_v25, %v8523_v14  ;;  %v2590_v27 = vpop.f32.mrb[99].mxu0  ;;  %v2663_v29 = vmax.f32 %v2585_v22, 0.0  ;;  %v7242_v22 = vld [vmem:[%s9513_s3 + $0x50] ss:$8 sps:$4 sm:$0xff]   ;;  %v7247_v25 = vld [vmem:[%s9513_s3 + $0x64] ss:$8 sps:$4 sm:$0xff]  }
 0x4ae   : > { %v2591_v28 = vadd.f32 %v2590_v27, %v8526_v6  ;;  %v2664_v31 = vmax.f32 %v2587_v24, 0.0 }
 0x4af   : > { %v2665_v30 = vmax.f32 %v2589_v26, 0.0 }
 0x4b0   : > { %v2666_v32 = vmax.f32 %v2591_v28, 0.0 }
 0x4b1   : > { %v2695_v33 = vpack.c.bf16 %v2665_v30, %v2663_v29 }
 0x4b2   : > { %v2696_v34 = vpack.c.bf16 %v2666_v32, %v2664_v31  ;;  %v2594_v35 = vpop.f32.mrb[100].mxu0  ;;  %v7245_v31 = vld [vmem:[%s9513_s3 + $0x60] ss:$8 sps:$4 sm:$0xff]  }
 0x4b3   : > { %v2595_v15 = vadd.f32 %v2594_v35, %v8523_v14  ;;  %v2596_v17 = vpop.f32.mrb[101].mxu0 }
 0x4b4   : > { %v2597_v38 = vadd.f32 %v2596_v17, %v8526_v6  ;;  %v2598_v39 = vpop.f32.mrb[102].mxu0  ;;  %2878 = vmatprep.mubr.bf16.mxu1 %v2696_v34  ;;  %v7250_v34 = vld [vmem:[%s9513_s3 + $0x74] ss:$8 sps:$4 sm:$0xff]  }
 0x4b5   : > { %v2599_v40 = vadd.f32 %v2598_v39, %v8523_v14  ;;  %v2600_v41 = vpop.f32.mrb[103].mxu0  ;;  %2879 = vmatmul.mubr.bf16.vlgmr.msra.gmra.mrb[96].mxu1 %v2695_v33  ;;  %v2667_v45 = vmax.f32 %v2595_v15, 0.0 }
 0x4b6   : > { %v2601_v43 = vadd.f32 %v2600_v41, %v8526_v6  ;;  %3531 = vmatpush1.bf16.msra.mxu1 %v7227_v36  ;;  %v2668_v50 = vmax.f32 %v2597_v38, 0.0  ;;  %v7248_v38 = vld [vmem:[%s9513_s3 + $0x70] ss:$8 sps:$4 sm:$0xff]   ;;  %v7253_v41 = vld [vmem:[%s9513_s3 + $0x84] ss:$8 sps:$4 sm:$0xff]  }
 0x4b7   : > { %v2669_v48 = vmax.f32 %v2599_v40, 0.0  ;;  %3532 = vmatprep.subr.bf16.mxu1 %v7232_v37 }
 0x4b8   : > { %v2670_v52 = vmax.f32 %v2601_v43, 0.0 }
 0x4b9   : > { %v2697_v53 = vpack.c.bf16 %v2669_v48, %v2667_v45 }
 0x4ba   : > { %v2698_v55 = vpack.c.bf16 %v2670_v52, %v2668_v50  ;;  %3533 = vmatpush1.bf16.msra.mxu1 %v7230_v44  ;;  %v2604_v56 = vpop.f32.mrb[104].mxu0  ;;  %v7251_v50 = vld [vmem:[%s9513_s3 + $0x80] ss:$8 sps:$4 sm:$0xff]  }
 0x4bb   : > { %v2605_v58 = vadd.f32 %v2604_v56, %v8523_v14  ;;  %v2606_v59 = vpop.f32.mrb[105].mxu0  ;;  %3534 = vmatprep.subr.bf16.mxu1 %v7235_v49 }
 0x4bc   : > { %v2607_v61 = vadd.f32 %v2606_v59, %v8526_v6  ;;  %v2608_v62 = vpop.f32.mrb[106].mxu0  ;;  %2886 = vmatprep.mubr.bf16.mxu1 %v2698_v55  ;;  %v7256_v55 = vld [vmem:[%s9513_s3 + $0x94] ss:$8 sps:$4 sm:$0xff]  }
 0x4bd   : > { %v2609_v63 = vadd.f32 %v2608_v62, %v8523_v14  ;;  %v2610_v42 = vpop.f32.mrb[107].mxu0  ;;  %2887 = vmatmul.mubr.bf16.gmra.mrb[100].mxu1 %v2697_v53  ;;  %v2671_v4 = vmax.f32 %v2605_v58, 0.0 }
 0x4be   : > { %v2611_v0 = vadd.f32 %v2610_v42, %v8526_v6  ;;  %3535 = vmatpush1.bf16.msra.mxu1 %v7233_v57  ;;  %v2672_v47 = vmax.f32 %v2607_v61, 0.0  ;;  %v7254_v61 = vld [vmem:[%s9513_s3 + $0x90] ss:$8 sps:$4 sm:$0xff]   ;;  %v7259_v42 = vld [vmem:[%s9513_s3 + $0xa4] ss:$8 sps:$4 sm:$0xff]  }
 0x4bf   : > { %v2673_v46 = vmax.f32 %v2609_v63, 0.0  ;;  %3536 = vmatprep.subr.bf16.mxu1 %v7238_v60 }
 0x4c0   : > { %v2674_v7 = vmax.f32 %v2611_v0, 0.0 }
 0x4c1   : > { %v2699_v51 = vpack.c.bf16 %v2673_v46, %v2671_v4 }
 0x4c2   : > { %v2700_v54 = vpack.c.bf16 %v2674_v7, %v2672_v47  ;;  %3537 = vmatpush1.bf16.msra.mxu1 %v7236_v1  ;;  %v2614_v8 = vpop.f32.mrb[108].mxu0  ;;  %v7257_v47 = vld [vmem:[%s9513_s3 + $0xa0] ss:$8 sps:$4 sm:$0xff]  }
 0x4c3   : > { %v2615_v10 = vadd.f32 %v2614_v8, %v8523_v14  ;;  %v2616_v11 = vpop.f32.mrb[109].mxu0  ;;  %3538 = vmatprep.subr.bf16.mxu1 %v7241_v5 }
 0x4c4   : > { %v2617_v20 = vadd.f32 %v2616_v11, %v8526_v6  ;;  %v2618_v12 = vpop.f32.mrb[110].mxu0  ;;  %2894 = vmatprep.mubr.bf16.mxu1 %v2700_v54  ;;  %v7262_v54 = vld [vmem:[%s9513_s3 + $0xb4] ss:$8 sps:$4 sm:$0xff]  }
 0x4c5   : > { %v2619_v13 = vadd.f32 %v2618_v12, %v8523_v14  ;;  %v2620_v3 = vpop.f32.mrb[111].mxu0  ;;  %2895 = vmatmul.mubr.bf16.gmra.mrb[104].mxu1 %v2699_v51  ;;  %v2675_v23 = vmax.f32 %v2615_v10, 0.0 }
 0x4c6   : > { %v2621_v21 = vadd.f32 %v2620_v3, %v8526_v6  ;;  %3539 = vmatpush1.bf16.msra.mxu1 %v7239_v9  ;;  %v2676_v26 = vmax.f32 %v2617_v20, 0.0  ;;  %v7260_v20 = vld [vmem:[%s9513_s3 + $0xb0] ss:$8 sps:$4 sm:$0xff]   ;;  %v7265_v3 = vld [vmem:[%s9513_s3 + $0xc4] ss:$8 sps:$4 sm:$0xff]  }
 0x4c7   : > { %v2677_v24 = vmax.f32 %v2619_v13, 0.0  ;;  %3540 = vmatprep.subr.bf16.mxu1 %v7244_v19 }
 0x4c8   : > { %v2678_v27 = vmax.f32 %v2621_v21, 0.0 }
 0x4c9   : > { %v2701_v28 = vpack.c.bf16 %v2677_v24, %v2675_v23 }
 0x4ca   : > { %v2702_v29 = vpack.c.bf16 %v2678_v27, %v2676_v26  ;;  %3541 = vmatpush1.bf16.msra.mxu1 %v7242_v22  ;;  %v2624_v30 = vpop.f32.mrb[112].mxu0  ;;  %v7263_v26 = vld [vmem:[%s9513_s3 + $0xc0] ss:$8 sps:$4 sm:$0xff]  }
 0x4cb   : > { %v2625_v32 = vadd.f32 %v2624_v30, %v8523_v14  ;;  %v2626_v33 = vpop.f32.mrb[113].mxu0  ;;  %3542 = vmatprep.subr.bf16.mxu1 %v7247_v25 }
 0x4cc   : > { %v2627_v35 = vadd.f32 %v2626_v33, %v8526_v6  ;;  %v2628_v36 = vpop.f32.mrb[114].mxu0  ;;  %2902 = vmatprep.mubr.bf16.mxu1 %v2702_v29  ;;  %v7268_v29 = vld [vmem:[%s9513_s3 + $0xd4] ss:$8 sps:$4 sm:$0xff]  }
 0x4cd   : > { %v2629_v15 = vadd.f32 %v2628_v36, %v8523_v14  ;;  %v2630_v17 = vpop.f32.mrb[115].mxu0  ;;  %2903 = vmatmul.mubr.bf16.gmra.mrb[108].mxu1 %v2701_v28  ;;  %v2679_v39 = vmax.f32 %v2625_v32, 0.0  ;;  %v3049_v32 = vld [vmem:[%s9512_s2] sm:$0x3]  ;;  %v7266_v36 = vld [vmem:[%s9513_s3 + $0xd0] ss:$8 sps:$4 sm:$0xff]  }
 0x4ce   : > { %v2631_v37 = vadd.f32 %v2630_v17, %v8526_v6  ;;  %3543 = vmatpush1.bf16.msra.mxu1 %v7245_v31  ;;  %v2680_v43 = vmax.f32 %v2627_v35, 0.0 }
 0x4cf   : > { %v2681_v40 = vmax.f32 %v2629_v15, 0.0  ;;  %3544 = vmatprep.subr.bf16.mxu1 %v7250_v34 }
 0x4d0   : > { %v2682_v44 = vmax.f32 %v2631_v37, 0.0  ;;  %v8645_v37 = vrot.slane %v3049_v32, %v7877_v16 }
 0x4d1   : > { %v2703_v45 = vpack.c.bf16 %v2681_v40, %v2679_v39  ;;  %v8651_v40 = vrot.slane %v3049_v32, %v7882_v18 }
 0x4d2   : > { %v2704_v48 = vpack.c.bf16 %v2682_v44, %v2680_v43  ;;  %3545 = vmatpush1.bf16.msra.mxu1 %v7248_v38  ;;  %v2634_v49 = vpop.f32.mrb[116].mxu0  ;;  %v7271_v38 = vld [vmem:[%s9513_s3 + $0xe4] ss:$8 sps:$4 sm:$0xff]   ;;  %v7269_v44 = vld [vmem:[%s9513_s3 + $0xe0] ss:$8 sps:$4 sm:$0xff]  }
 0x4d3   : > { %v2635_v52 = vadd.f32 %v2634_v49, %v8523_v14  ;;  %v2636_v53 = vpop.f32.mrb[117].mxu0  ;;  %3546 = vmatprep.subr.bf16.mxu1 %v7253_v41  ;;  %v7274_v49 = vld [vmem:[%s9513_s3 + $0xf4] ss:$8 sps:$4 sm:$0xff]  }
 0x4d4   : > { %v2637_v56 = vadd.f32 %v2636_v53, %v8526_v6  ;;  %v2638_v57 = vpop.f32.mrb[118].mxu0  ;;  %2910 = vmatprep.mubr.bf16.mxu1 %v2704_v48 }
 0x4d5   : > { %v2639_v58 = vadd.f32 %v2638_v57, %v8523_v14  ;;  %v2640_v59 = vpop.f32.mrb[119].mxu0  ;;  %2911 = vmatmul.mubr.bf16.gmra.mrb[112].mxu1 %v2703_v45  ;;  %v2683_v62 = vmax.f32 %v2635_v52, 0.0  ;;  %v7272_v57 = vld [vmem:[%s9513_s3 + $0xf0] ss:$8 sps:$4 sm:$0xff]  }
 0x4d6   : > { %v2641_v60 = vadd.f32 %v2640_v59, %v8526_v6  ;;  %3547 = vmatpush1.bf16.msra.mxu1 %v7251_v50  ;;  %v2684_v0 = vmax.f32 %v2637_v56, 0.0 }
 0x4d7   : > { %v2685_v63 = vmax.f32 %v2639_v58, 0.0  ;;  %3548 = vmatprep.subr.bf16.mxu1 %v7256_v55 }
 0x4d8   : > { %v2686_v1 = vmax.f32 %v2641_v60, 0.0 }
 0x4d9   : > { %v2705_v4 = vpack.c.bf16 %v2685_v63, %v2683_v62 }
 0x4da   : > { %v2706_v46 = vpack.c.bf16 %v2686_v1, %v2684_v0  ;;  %3549 = vmatpush1.bf16.msra.mxu1 %v7254_v61  ;;  %v2644_v5 = vpop.f32.mrb[120].mxu0 }
 0x4db   : > { %v2645_v7 = vadd.f32 %v2644_v5, %v8523_v14  ;;  %v2646_v51 = vpop.f32.mrb[121].mxu0  ;;  %3550 = vmatprep.subr.bf16.mxu1 %v7259_v42 }
 0x4dc   : > { %v2647_v8 = vadd.f32 %v2646_v51, %v8526_v6  ;;  %v2648_v9 = vpop.f32.mrb[122].mxu0  ;;  %2918 = vmatprep.mubr.bf16.mxu1 %v2706_v46 }
 0x4dd   : > { %v2649_v10 = vadd.f32 %v2648_v9, %v8523_v14  ;;  %v2650_v11 = vpop.f32.mrb[123].mxu0  ;;  %2919 = vmatmul.mubr.bf16.gmra.mrb[116].mxu1 %v2705_v4  ;;  %v2687_v12 = vmax.f32 %v2645_v7, 0.0 }
 0x4de   : > { %v2651_v19 = vadd.f32 %v2650_v11, %v8526_v6  ;;  %3551 = vmatpush1.bf16.msra.mxu1 %v7257_v47  ;;  %v2688_v21 = vmax.f32 %v2647_v8, 0.0 }
 0x4df   : > { %v2689_v13 = vmax.f32 %v2649_v10, 0.0  ;;  %3552 = vmatprep.subr.bf16.mxu1 %v7262_v54 }
 0x4e0   : > { %v2690_v22 = vmax.f32 %v2651_v19, 0.0 }
 0x4e1   : > { %v2707_v23 = vpack.c.bf16 %v2689_v13, %v2687_v12 }
 0x4e2   : > { %v2708_v24 = vpack.c.bf16 %v2690_v22, %v2688_v21  ;;  %3553 = vmatpush1.bf16.msra.mxu1 %v7260_v20  ;;  %v2654_v25 = vpop.f32.mrb[124].mxu0 }
 0x4e3   : > { %v2655_v27 = vadd.f32 %v2654_v25, %v8523_v14  ;;  %v2656_v28 = vpop.f32.mrb[125].mxu0  ;;  %3554 = vmatprep.subr.bf16.mxu1 %v7265_v3 }
 0x4e4   : > { %v2657_v30 = vadd.f32 %v2656_v28, %v8526_v6  ;;  %v2658_v31 = vpop.f32.mrb[126].mxu0  ;;  %2926 = vmatprep.mubr.bf16.mxu1 %v2708_v24 }
 0x4e5   : > { %v2659_v33 = vadd.f32 %v2658_v31, %v8523_v14  ;;  %v2660_v34 = vpop.f32.mrb[127].mxu0  ;;  %2927 = vmatmul.mubr.bf16.gmra.mrb[120].mxu1 %v2707_v23  ;;  %v2691_v15 = vmax.f32 %v2655_v27, 0.0 }
 0x4e6   : > { %v2661_v35 = vadd.f32 %v2660_v34, %v8526_v6  ;;  %3555 = vmatpush1.bf16.msra.mxu1 %v7263_v26  ;;  %v2692_v14 = vmax.f32 %v2657_v30, 0.0 }
 0x4e7   : > { %v2693_v17 = vmax.f32 %v2659_v33, 0.0  ;;  %3556 = vmatprep.subr.bf16.mxu1 %v7268_v29 }
 0x4e8   : > { %v2694_v39 = vmax.f32 %v2661_v35, 0.0 }
 0x4e9   : > { %v2709_v6 = vpack.c.bf16 %v2693_v17, %v2691_v15 }
 0x4ea   : > { %v2710_v41 = vpack.c.bf16 %v2694_v39, %v2692_v14  ;;  %3557 = vmatpush1.bf16.msra.mxu1 %v7266_v36  ;;  %v3199_v43 = vpop.f32.mrb[128].mxu0 }
 0x4eb   : > { %v3200_v45 = vadd.f32 %v3199_v43, %v8645_v37  ;;  %v3201_v48 = vpop.f32.mrb[129].mxu0  ;;  %3558 = vmatprep.subr.bf16.mxu1 %v7271_v38 }
 0x4ec   : > { %v3202_v50 = vadd.f32 %v3201_v48, %v8651_v40  ;;  %2934 = vmatprep.mubr.bf16.mxu1 %v2710_v41  ;;  %v3203_v52 = vpop.f32.mrb[130].mxu0 }
 0x4ed   : > { %v3204_v53 = vadd.f32 %v3203_v52, %v8645_v37  ;;  %2935 = vmatmul.mubr.bf16.gmra.mrb[124].mxu1 %v2709_v6  ;;  %v3205_v55 = vpop.f32.mrb[131].mxu0  ;;  %v3278_v58 = vmax.f32 %v3200_v45, 0.0 }
 0x4ee   : > { %v3206_v56 = vadd.f32 %v3205_v55, %v8651_v40  ;;  %3559 = vmatpush1.bf16.msra.mxu1 %v7269_v44  ;;  %v3279_v60 = vmax.f32 %v3202_v50, 0.0 }
 0x4ef   : > { %v3280_v59 = vmax.f32 %v3204_v53, 0.0  ;;  %3560 = vmatprep.subr.bf16.mxu1 %v7274_v49 }
 0x4f0   : > { %v3281_v61 = vmax.f32 %v3206_v56, 0.0 }
 0x4f1   : > { %v3310_v62 = vpack.c.bf16 %v3280_v59, %v3278_v58 }
 0x4f2   : > { %v3311_v63 = vpack.c.bf16 %v3281_v61, %v3279_v60  ;;  %3561 = vmatpush1.bf16.msra.mxu1 %v7272_v57  ;;  %v3209_v42 = vpop.f32.mrb[132].mxu0  ;;  %v7277_v60 = vld [vmem:[%s9515_s5 + $0x4] ss:$8 sps:$4 sm:$0xff]  }
 0x4f3   : > { %v3210_v0 = vadd.f32 %v3209_v42, %v8645_v37  ;;  %v3211_v1 = vpop.f32.mrb[133].mxu0  ;;  %3895 = vmatprep.subr.bf16.mxu0 %v7277_v60  ;;  %v7304_v60 = vld [vmem:[%s9515_s5 + $0x94] ss:$8 sps:$4 sm:$0xff]  }
 0x4f4   : > { %v3212_v4 = vadd.f32 %v3211_v1, %v8651_v40  ;;  %v3213_v46 = vpop.f32.mrb[134].mxu0  ;;  %3562 = vmatprep.mubr.bf16.mxu1 %v3311_v63  ;;  %v7275_v63 = vld [vmem:[%s9515_s5] ss:$8 sps:$4 sm:$0xff]  }
 0x4f5   : > { %v3214_v5 = vadd.f32 %v3213_v46, %v8645_v37  ;;  %v3215_v47 = vpop.f32.mrb[135].mxu0  ;;  %3563 = vmatmul.mubr.bf16.vlgmr.msra.gmra.mrb[128].mxu1 %v3310_v62  ;;  %v3282_v51 = vmax.f32 %v3210_v0, 0.0  ;;  %3896 = vmatpush1.bf16.msra.mxu0 %v7275_v63  ;;  %v7305_v63 = vld [vmem:[%s9515_s5 + $0xa0] ss:$8 sps:$4 sm:$0xff]  }
 0x4f6   : > { %v3216_v7 = vadd.f32 %v3215_v47, %v8651_v40  ;;  %v3283_v8 = vmax.f32 %v3212_v4, 0.0  ;;  %v7280_v47 = vld [vmem:[%s9515_s5 + $0x14] ss:$8 sps:$4 sm:$0xff]  }
 0x4f7   : > { %v3284_v54 = vmax.f32 %v3214_v5, 0.0  ;;  %3897 = vmatprep.subr.bf16.mxu0 %v7280_v47  ;;  %v7319_v47 = vld [vmem:[%s9515_s5 + $0xe4] ss:$8 sps:$4 sm:$0xff]  }
 0x4f8   : > { %v3285_v9 = vmax.f32 %v3216_v7, 0.0 }
 0x4f9   : > { %v3312_v10 = vpack.c.bf16 %v3284_v54, %v3282_v51  ;;  %v7278_v51 = vld [vmem:[%s9515_s5 + $0x10] ss:$8 sps:$4 sm:$0xff]  }
 0x4fa   : > { %v3313_v11 = vpack.c.bf16 %v3285_v9, %v3283_v8  ;;  %v3219_v19 = vpop.f32.mrb[136].mxu0  ;;  %3898 = vmatpush1.bf16.msra.mxu0 %v7278_v51  ;;  %v7322_v51 = vld [vmem:[%s9515_s5 + $0xf4] ss:$8 sps:$4 sm:$0xff]  }
 0x4fb   : > { %v3220_v20 = vadd.f32 %v3219_v19, %v8645_v37  ;;  %v3221_v12 = vpop.f32.mrb[137].mxu0  ;;  %v7283_v19 = vld [vmem:[%s9515_s5 + $0x24] ss:$8 sps:$4 sm:$0xff]  }
 0x4fc   : > { %v3222_v13 = vadd.f32 %v3221_v12, %v8651_v40  ;;  %v3223_v3 = vpop.f32.mrb[138].mxu0  ;;  %3572 = vmatprep.mubr.bf16.mxu1 %v3313_v11  ;;  %3899 = vmatprep.subr.bf16.mxu0 %v7283_v19 }
 0x4fd   : > { %v3224_v21 = vadd.f32 %v3223_v3, %v8645_v37  ;;  %v3225_v22 = vpop.f32.mrb[139].mxu0  ;;  %3573 = vmatmul.mubr.bf16.gmra.mrb[132].mxu1 %v3312_v10  ;;  %v3286_v24 = vmax.f32 %v3220_v20, 0.0 }
 0x4fe   : > { %v3226_v23 = vadd.f32 %v3225_v22, %v8651_v40  ;;  %v3287_v26 = vmax.f32 %v3222_v13, 0.0  ;;  %v7281_v13 = vld [vmem:[%s9515_s5 + $0x20] ss:$8 sps:$4 sm:$0xff]  }
 0x4ff   : > { %v3288_v25 = vmax.f32 %v3224_v21, 0.0  ;;  %3900 = vmatpush1.bf16.msra.mxu0 %v7281_v13 }
 0x500   : > { %v3289_v27 = vmax.f32 %v3226_v23, 0.0 }
 0x501   : > { %v3314_v28 = vpack.c.bf16 %v3288_v25, %v3286_v24 }
 0x502   : > { %v3315_v29 = vpack.c.bf16 %v3289_v27, %v3287_v26  ;;  %v3229_v30 = vpop.f32.mrb[140].mxu0  ;;  %v7286_v26 = vld [vmem:[%s9515_s5 + $0x34] ss:$8 sps:$4 sm:$0xff]  }
 0x503   : > { %v3230_v31 = vadd.f32 %v3229_v30, %v8645_v37  ;;  %v3231_v32 = vpop.f32.mrb[141].mxu0  ;;  %3901 = vmatprep.subr.bf16.mxu0 %v7286_v26 }
 0x504   : > { %v3232_v33 = vadd.f32 %v3231_v32, %v8651_v40  ;;  %v3233_v34 = vpop.f32.mrb[142].mxu0  ;;  %3582 = vmatprep.mubr.bf16.mxu1 %v3315_v29 }
 0x505   : > { %v3234_v35 = vadd.f32 %v3233_v34, %v8645_v37  ;;  %v3235_v36 = vpop.f32.mrb[143].mxu0  ;;  %3583 = vmatmul.mubr.bf16.gmra.mrb[136].mxu1 %v3314_v28  ;;  %v3290_v17 = vmax.f32 %v3230_v31, 0.0  ;;  %v7284_v28 = vld [vmem:[%s9515_s5 + $0x30] ss:$8 sps:$4 sm:$0xff]   ;;  %v7289_v34 = vld [vmem:[%s9515_s5 + $0x44] ss:$8 sps:$4 sm:$0xff]  }
 0x506   : > { %v3236_v15 = vadd.f32 %v3235_v36, %v8651_v40  ;;  %v3291_v14 = vmax.f32 %v3232_v33, 0.0  ;;  %3902 = vmatpush1.bf16.msra.mxu0 %v7284_v28 }
 0x507   : > { %v3292_v38 = vmax.f32 %v3234_v35, 0.0  ;;  %3903 = vmatprep.subr.bf16.mxu0 %v7289_v34 }
 0x508   : > { %v3293_v39 = vmax.f32 %v3236_v15, 0.0  ;;  %v7287_v15 = vld [vmem:[%s9515_s5 + $0x40] ss:$8 sps:$4 sm:$0xff]  }
 0x509   : > { %v3316_v6 = vpack.c.bf16 %v3292_v38, %v3290_v17 }
 0x50a   : > { %v3317_v41 = vpack.c.bf16 %v3293_v39, %v3291_v14  ;;  %v3239_v43 = vpop.f32.mrb[144].mxu0  ;;  %3904 = vmatpush1.bf16.msra.mxu0 %v7287_v15 }
 0x50b   : > { %v3240_v44 = vadd.f32 %v3239_v43, %v8645_v37  ;;  %v3241_v45 = vpop.f32.mrb[145].mxu0  ;;  %v7292_v43 = vld [vmem:[%s9515_s5 + $0x54] ss:$8 sps:$4 sm:$0xff]  }
 0x50c   : > { %v3242_v48 = vadd.f32 %v3241_v45, %v8651_v40  ;;  %v3243_v49 = vpop.f32.mrb[146].mxu0  ;;  %3592 = vmatprep.mubr.bf16.mxu1 %v3317_v41  ;;  %v7290_v45 = vld [vmem:[%s9515_s5 + $0x50] ss:$8 sps:$4 sm:$0xff]   ;;  %3905 = vmatprep.subr.bf16.mxu0 %v7292_v43 }
 0x50d   : > { %v3244_v50 = vadd.f32 %v3243_v49, %v8645_v37  ;;  %v3245_v52 = vpop.f32.mrb[147].mxu0  ;;  %3593 = vmatmul.mubr.bf16.gmra.mrb[140].mxu1 %v3316_v6  ;;  %v3294_v55 = vmax.f32 %v3240_v44, 0.0 }
 0x50e   : > { %v3246_v53 = vadd.f32 %v3245_v52, %v8651_v40  ;;  %v3295_v57 = vmax.f32 %v3242_v48, 0.0  ;;  %3906 = vmatpush1.bf16.msra.mxu0 %v7290_v45 }
 0x50f   : > { %v3296_v56 = vmax.f32 %v3244_v50, 0.0 }
 0x510   : > { %v3297_v58 = vmax.f32 %v3246_v53, 0.0 }
 0x511   : > { %v3318_v59 = vpack.c.bf16 %v3296_v56, %v3294_v55  ;;  %v7298_v56 = vld [vmem:[%s9515_s5 + $0x74] ss:$8 sps:$4 sm:$0xff]  }
 0x512   : > { %v3319_v61 = vpack.c.bf16 %v3297_v58, %v3295_v57  ;;  %v3249_v62 = vpop.f32.mrb[148].mxu0  ;;  %v7296_v57 = vld [vmem:[%s9515_s5 + $0x70] ss:$8 sps:$4 sm:$0xff]   ;;  %v7301_v58 = vld [vmem:[%s9515_s5 + $0x84] ss:$8 sps:$4 sm:$0xff]  }
 0x513   : > { %v3250_v42 = vadd.f32 %v3249_v62, %v8645_v37  ;;  %v3251_v0 = vpop.f32.mrb[149].mxu0  ;;  %v7307_v62 = vld [vmem:[%s9515_s5 + $0xa4] ss:$8 sps:$4 sm:$0xff]  }
 0x514   : > { %v3252_v1 = vadd.f32 %v3251_v0, %v8651_v40  ;;  %v3253_v4 = vpop.f32.mrb[150].mxu0  ;;  %3602 = vmatprep.mubr.bf16.mxu1 %v3319_v61  ;;  %v7302_v61 = vld [vmem:[%s9515_s5 + $0x90] ss:$8 sps:$4 sm:$0xff]  }
 0x515   : > { %v3254_v46 = vadd.f32 %v3253_v4, %v8645_v37  ;;  %v3255_v5 = vpop.f32.mrb[151].mxu0  ;;  %3603 = vmatmul.mubr.bf16.gmra.mrb[144].mxu1 %v3318_v59  ;;  %v3298_v54 = vmax.f32 %v3250_v42, 0.0  ;;  %v7299_v59 = vld [vmem:[%s9515_s5 + $0x80] ss:$8 sps:$4 sm:$0xff]   ;;  %v7310_v42 = vld [vmem:[%s9515_s5 + $0xb4] ss:$8 sps:$4 sm:$0xff]  }
 0x516   : > { %v3256_v7 = vadd.f32 %v3255_v5, %v8651_v40  ;;  %v3299_v9 = vmax.f32 %v3252_v1, 0.0  ;;  %v7308_v0 = vld [vmem:[%s9515_s5 + $0xb0] ss:$8 sps:$4 sm:$0xff]   ;;  %v7313_v1 = vld [vmem:[%s9515_s5 + $0xc4] ss:$8 sps:$4 sm:$0xff]  }
 0x517   : > { %v3300_v8 = vmax.f32 %v3254_v46, 0.0  ;;  %v7311_v4 = vld [vmem:[%s9515_s5 + $0xc0] ss:$8 sps:$4 sm:$0xff]   ;;  %v7316_v46 = vld [vmem:[%s9515_s5 + $0xd4] ss:$8 sps:$4 sm:$0xff]  }
 0x518   : > { %v3301_v10 = vmax.f32 %v3256_v7, 0.0  ;;  %v7314_v5 = vld [vmem:[%s9515_s5 + $0xd0] ss:$8 sps:$4 sm:$0xff]   ;;  %v7317_v7 = vld [vmem:[%s9515_s5 + $0xe0] ss:$8 sps:$4 sm:$0xff]  }
 0x519   : > { %v3320_v11 = vpack.c.bf16 %v3300_v8, %v3298_v54  ;;  %v7320_v54 = vld [vmem:[%s9515_s5 + $0xf0] ss:$8 sps:$4 sm:$0xff]   ;;  %v7325_v8 = vld [vmem:[%s9511_s1 + $0x4] ss:$8 sps:$4 sm:$0xff]  }
 0x51a   : > { %v3321_v20 = vpack.c.bf16 %v3301_v10, %v3299_v9  ;;  %v3259_v12 = vpop.f32.mrb[152].mxu0 }
 0x51b   : > { %v3260_v3 = vadd.f32 %v3259_v12, %v8645_v37  ;;  %v3261_v21 = vpop.f32.mrb[153].mxu0 }
 0x51c   : > { %v3262_v22 = vadd.f32 %v3261_v21, %v8651_v40  ;;  %v3263_v23 = vpop.f32.mrb[154].mxu0  ;;  %3612 = vmatprep.mubr.bf16.mxu1 %v3321_v20  ;;  %v8796_v20 = vld [vmem:[%s9518_s8] ss:$0 sm:$0xff] }
 0x51d   : > { %v3264_v24 = vadd.f32 %v3263_v23, %v8645_v37  ;;  %v3265_v25 = vpop.f32.mrb[155].mxu0  ;;  %3613 = vmatmul.mubr.bf16.gmra.mrb[148].mxu1 %v3320_v11  ;;  %v3302_v29 = vmax.f32 %v3260_v3, 0.0 }
 0x51e   : > { %v3266_v27 = vadd.f32 %v3265_v25, %v8651_v40  ;;  %v3303_v31 = vmax.f32 %v3262_v22, 0.0 }
 0x51f   : > { %v3304_v30 = vmax.f32 %v3264_v24, 0.0 }
 0x520   : > { %v3305_v32 = vmax.f32 %v3266_v27, 0.0 }
 0x521   : > { %v3322_v33 = vpack.c.bf16 %v3304_v30, %v3302_v29 }
 0x522   : > { %v3323_v35 = vpack.c.bf16 %v3305_v32, %v3303_v31  ;;  %v3269_v36 = vpop.f32.mrb[156].mxu0 }
 0x523   : > { %v3270_v17 = vadd.f32 %v3269_v36, %v8645_v37  ;;  %v3271_v38 = vpop.f32.mrb[157].mxu0 }
 0x524   : > { %v3272_v14 = vadd.f32 %v3271_v38, %v8651_v40  ;;  %v3273_v39 = vpop.f32.mrb[158].mxu0  ;;  %3622 = vmatprep.mubr.bf16.mxu1 %v3323_v35 }
 0x525   : > { %v3274_v6 = vadd.f32 %v3273_v39, %v8645_v37  ;;  %v3275_v41 = vpop.f32.mrb[159].mxu0  ;;  %3623 = vmatmul.mubr.bf16.gmra.mrb[152].mxu1 %v3322_v33  ;;  %v3306_v48 = vmax.f32 %v3270_v17, 0.0  ;;  %v7295_v37 = vld [vmem:[%s9515_s5 + $0x64] ss:$8 sps:$4 sm:$0xff]  }
 0x526   : > { %v3276_v44 = vadd.f32 %v3275_v41, %v8651_v40  ;;  %v3307_v50 = vmax.f32 %v3272_v14, 0.0  ;;  %v7293_v40 = vld [vmem:[%s9515_s5 + $0x60] ss:$8 sps:$4 sm:$0xff]   ;;  %3907 = vmatprep.subr.bf16.mxu0 %v7295_v37 }
 0x527   : > { %v3308_v49 = vmax.f32 %v3274_v6, 0.0  ;;  %3908 = vmatpush1.bf16.msra.mxu0 %v7293_v40 }
 0x528   : > { %v3309_v52 = vmax.f32 %v3276_v44, 0.0  ;;  %3909 = vmatprep.subr.bf16.mxu0 %v7298_v56 }
 0x529   : > { %v3324_v53 = vpack.c.bf16 %v3308_v49, %v3306_v48 }
 0x52a   : > { %v3325_v55 = vpack.c.bf16 %v3309_v52, %v3307_v50 }
 0x52b   : > { %3910 = vmatpush1.bf16.msra.mxu0 %v7296_v57 }
 0x52c   : > { %3632 = vmatprep.mubr.bf16.mxu1 %v3325_v55  ;;  %3911 = vmatprep.subr.bf16.mxu0 %v7301_v58 }
 0x52d   : > { %3633 = vmatmul.mubr.bf16.gmra.mrb[156].mxu1 %v3324_v53 }
 0x52f   : > { %3912 = vmatpush1.bf16.msra.mxu0 %v7299_v59 }
 0x530   : > { %3913 = vmatprep.subr.bf16.mxu0 %v7304_v60 }
 0x533   : > { %3914 = vmatpush1.bf16.msra.mxu0 %v7302_v61 }
 0x534   : > { %3915 = vmatprep.subr.bf16.mxu0 %v7307_v62 }
 0x537   : > { %3916 = vmatpush1.bf16.msra.mxu0 %v7305_v63 }
 0x538   : > { %3917 = vmatprep.subr.bf16.mxu0 %v7310_v42 }
 0x53b   : > { %3918 = vmatpush1.bf16.msra.mxu0 %v7308_v0 }
 0x53c   : > { %3919 = vmatprep.subr.bf16.mxu0 %v7313_v1 }
 0x53f   : > { %3920 = vmatpush1.bf16.msra.mxu0 %v7311_v4 }
 0x540   : > { %3921 = vmatprep.subr.bf16.mxu0 %v7316_v46 }
 0x543   : > { %3922 = vmatpush1.bf16.msra.mxu0 %v7314_v5 }
 0x544   : > { %3923 = vmatprep.subr.bf16.mxu0 %v7319_v47 }
 0x547   : > { %3924 = vmatpush1.bf16.msra.mxu0 %v7317_v7 }
 0x548   : > { %3925 = vmatprep.subr.bf16.mxu0 %v7322_v51 }
 0x54b   : > { %3926 = vmatpush1.bf16.msra.mxu0 %v7320_v54 }
 0x54c   : > { %4510 = vmatprep.subr.bf16.mxu0 %v7325_v8 }
 0x588   : > { %v6718_v9 = vpop.f32.mrb[96].mxu1 }
 0x589   : > { %v6719_v10 = vpop.f32.mrb[97].mxu1 }
 0x58a   : > { %v6720_v11 = vadd.f32 %v6719_v10, %v6718_v9  ;;  %v6721_v19 = vpop.f32.mrb[98].mxu1 }
 0x58b   : > { %v6722_v12 = vpop.f32.mrb[99].mxu1 }
 0x58c   : > { %v6723_v13 = vadd.f32 %v6722_v12, %v6721_v19  ;;  %v2881_v3 = vadd.f32 %v6720_v11, %v8796_v20 }
 0x58e   : > { %v2884_v21 = vadd.f32 %v6723_v13, %v8796_v20 }
 0x590   : > { %v6490_v22 = vpack.c.bf16 %v2884_v21, %v2881_v3  ;;  %v6724_v23 = vpop.f32.mrb[100].mxu1  ;;  %v3358_v21 = vld [vmem:[%s9514_s4] sm:$0x3] }
 0x591   : > { %v6725_v24 = vpop.f32.mrb[101].mxu1 }
 0x592   : > { %6614 = vst [vmem:[%s8358_s22 + $0x40] sm:$0xff] %v6490_v22   ;;  %v6726_v25 = vadd.f32 %v6725_v24, %v6724_v23  ;;  %v6727_v26 = vpop.f32.mrb[102].mxu1  ;;  %v8823_v24 = vrot.slane %v3358_v21, %v7877_v16 }
 0x593   : > { %v6728_v27 = vpop.f32.mrb[103].mxu1 }
 0x594   : > { %v6729_v28 = vadd.f32 %v6728_v27, %v6727_v26  ;;  %v2889_v29 = vadd.f32 %v6726_v25, %v8796_v20  ;;  %v8828_v27 = vrot.slane %v3358_v21, %v7882_v18  ;;  %v7332_v21 = vld [vmem:[%s9511_s1 + $0x30] ss:$8 sps:$4 sm:$0xff]  }
 0x596   : > { %v2892_v30 = vadd.f32 %v6729_v28, %v8796_v20 }
 0x598   : > { %v6495_v31 = vpack.c.bf16 %v2892_v30, %v2889_v29  ;;  %v6730_v32 = vpop.f32.mrb[104].mxu1 }
 0x599   : > { %v6731_v33 = vpop.f32.mrb[105].mxu1 }
 0x59a   : > { %6615 = vst [vmem:[%s8358_s22 + $0x48] sm:$0xff] %v6495_v31   ;;  %v6732_v34 = vadd.f32 %v6731_v33, %v6730_v32  ;;  %v6733_v35 = vpop.f32.mrb[106].mxu1 }
 0x59b   : > { %v6734_v36 = vpop.f32.mrb[107].mxu1 }
 0x59c   : > { %v6735_v15 = vadd.f32 %v6734_v36, %v6733_v35  ;;  %v2897_v17 = vadd.f32 %v6732_v34, %v8796_v20  ;;  %v7343_v36 = vld [vmem:[%s9517_s7 + $0x40] sm:$0xff]  }
 0x59d   : > { %6766 = vmatprep.subr.bf16.mxu1 %v7343_v36 }
 0x59e   : > { %v2900_v38 = vadd.f32 %v6735_v15, %v8796_v20  ;;  %v7345_v15 = vld [vmem:[%s9517_s7 + $0x48] sm:$0xff]  }
 0x5a0   : > { %v6500_v14 = vpack.c.bf16 %v2900_v38, %v2897_v17  ;;  %v6736_v39 = vpop.f32.mrb[108].mxu1 }
 0x5a1   : > { %v6737_v6 = vpop.f32.mrb[109].mxu1 }
 0x5a2   : > { %6616 = vst [vmem:[%s8358_s22 + $0x50] sm:$0xff] %v6500_v14   ;;  %v6738_v41 = vadd.f32 %v6737_v6, %v6736_v39  ;;  %v6739_v43 = vpop.f32.mrb[110].mxu1 }
 0x5a3   : > { %v6740_v44 = vpop.f32.mrb[111].mxu1 }
 0x5a4   : > { %v6741_v45 = vadd.f32 %v6740_v44, %v6739_v43  ;;  %v2905_v48 = vadd.f32 %v6738_v41, %v8796_v20  ;;  %v7346_v41 = vld [vmem:[%s9517_s7 + $0x8] sm:$0xff]   ;;  %v7347_v44 = vld [vmem:[%s9517_s7 + $0x50] sm:$0xff]  }
 0x5a6   : > { %v2908_v49 = vadd.f32 %v6741_v45, %v8796_v20 }
 0x5a8   : > { %v6505_v50 = vpack.c.bf16 %v2908_v49, %v2905_v48  ;;  %v6742_v52 = vpop.f32.mrb[112].mxu1  ;;  %v7323_v49 = vld [vmem:[%s9511_s1] ss:$8 sps:$4 sm:$0xff]  }
 0x5a9   : > { %v6743_v53 = vpop.f32.mrb[113].mxu1 }
 0x5aa   : > { %6617 = vst [vmem:[%s8358_s22 + $0x58] sm:$0xff] %v6505_v50   ;;  %v6744_v37 = vadd.f32 %v6743_v53, %v6742_v52  ;;  %v6745_v55 = vpop.f32.mrb[114].mxu1  ;;  %v7328_v53 = vld [vmem:[%s9511_s1 + $0x14] ss:$8 sps:$4 sm:$0xff]  }
 0x5ab   : > { %v6746_v40 = vpop.f32.mrb[115].mxu1 }
 0x5ac   : > { %v6747_v56 = vadd.f32 %v6746_v40, %v6745_v55  ;;  %v2913_v57 = vadd.f32 %v6744_v37, %v8796_v20  ;;  %v7348_v40 = vld [vmem:[%s9517_s7 + $0x10] sm:$0xff]  }
 0x5ae   : > { %v2916_v58 = vadd.f32 %v6747_v56, %v8796_v20 }
 0x5b0   : > { %v6510_v59 = vpack.c.bf16 %v2916_v58, %v2913_v57  ;;  %v6748_v60 = vpop.f32.mrb[116].mxu1  ;;  %v7349_v58 = vld [vmem:[%s9517_s7 + $0x58] sm:$0xff]  }
 0x5b1   : > { %v6749_v61 = vpop.f32.mrb[117].mxu1 }
 0x5b2   : > { %6618 = vst [vmem:[%s8358_s22 + $0x60] sm:$0xff] %v6510_v59   ;;  %v6750_v62 = vadd.f32 %v6749_v61, %v6748_v60  ;;  %v6751_v63 = vpop.f32.mrb[118].mxu1  ;;  %v7326_v60 = vld [vmem:[%s9511_s1 + $0x10] ss:$8 sps:$4 sm:$0xff]  }
 0x5b3   : > { %v6752_v42 = vpop.f32.mrb[119].mxu1 }
 0x5b4   : > { %v6753_v0 = vadd.f32 %v6752_v42, %v6751_v63  ;;  %v2921_v1 = vadd.f32 %v6750_v62, %v8796_v20  ;;  %v7331_v63 = vld [vmem:[%s9511_s1 + $0x24] ss:$8 sps:$4 sm:$0xff]  }
 0x5b6   : > { %v2924_v4 = vadd.f32 %v6753_v0, %v8796_v20 }
 0x5b8   : > { %v6515_v46 = vpack.c.bf16 %v2924_v4, %v2921_v1  ;;  %v6754_v5 = vpop.f32.mrb[120].mxu1  ;;  %v7350_v1 = vld [vmem:[%s9517_s7 + $0x18] sm:$0xff]  }
 0x5b9   : > { %v6755_v47 = vpop.f32.mrb[121].mxu1 }
 0x5ba   : > { %6619 = vst [vmem:[%s8358_s22 + $0x68] sm:$0xff] %v6515_v46   ;;  %v6756_v7 = vadd.f32 %v6755_v47, %v6754_v5  ;;  %v6757_v51 = vpop.f32.mrb[122].mxu1  ;;  %v7351_v46 = vld [vmem:[%s9517_s7 + $0x60] sm:$0xff]  }
 0x5bb   : > { %v6758_v54 = vpop.f32.mrb[123].mxu1 }
 0x5bc   : > { %v6759_v8 = vadd.f32 %v6758_v54, %v6757_v51  ;;  %v2929_v9 = vadd.f32 %v6756_v7, %v8796_v20  ;;  %v7329_v7 = vld [vmem:[%s9511_s1 + $0x20] ss:$8 sps:$4 sm:$0xff]  }
 0x5be   : > { %v2932_v10 = vadd.f32 %v6759_v8, %v8796_v20  ;;  %v7334_v8 = vld [vmem:[%s9511_s1 + $0x34] ss:$8 sps:$4 sm:$0xff]  }
 0x5c0   : > { %v6520_v11 = vpack.c.bf16 %v2932_v10, %v2929_v9  ;;  %v6760_v19 = vpop.f32.mrb[124].mxu1 }
 0x5c1   : > { %v6761_v12 = vpop.f32.mrb[125].mxu1 }
 0x5c2   : > { %6620 = vst [vmem:[%s8358_s22 + $0x70] sm:$0xff] %v6520_v11   ;;  %v6762_v13 = vadd.f32 %v6761_v12, %v6760_v19  ;;  %v6763_v3 = vpop.f32.mrb[126].mxu1  ;;  %v7352_v11 = vld [vmem:[%s9517_s7 + $0x20] sm:$0xff]  }
 0x5c3   : > { %v6764_v22 = vpop.f32.mrb[127].mxu1 }
 0x5c4   : > { %v6765_v23 = vadd.f32 %v6764_v22, %v6763_v3  ;;  %v2937_v25 = vadd.f32 %v6762_v13, %v8796_v20  ;;  %v7353_v13 = vld [vmem:[%s9517_s7 + $0x68] sm:$0xff]  }
 0x5c6   : > { %v2940_v26 = vadd.f32 %v6765_v23, %v8796_v20  ;;  %v7344_v20 = vld [vmem:[%s9517_s7] sm:$0xff]  }
 0x5c7   : > { %6767 = vmatpush3.bf16.msra.mxu1 %v7344_v20  ;;  %v7356_v20 = vld [vmem:[%s9517_s7 + $0x30] sm:$0xff]  }
 0x5c8   : > { %v6525_v28 = vpack.c.bf16 %v2940_v26, %v2937_v25  ;;  %v3564_v29 = vpop.f32.mrb[128].mxu1  ;;  %6768 = vmatprep.subr.bf16.mxu1 %v7345_v15 }
 0x5c9   : > { %v3565_v30 = vadd.f32 %v3564_v29, %v8823_v24  ;;  %v3566_v31 = vpop.f32.mrb[129].mxu1 }
 0x5ca   : > { %6621 = vst [vmem:[%s8358_s22 + $0x78] sm:$0xff] %v6525_v28   ;;  %v3567_v32 = vadd.f32 %v3566_v31, %v8828_v27  ;;  %v3568_v33 = vpop.f32.mrb[130].mxu1  ;;  %v7354_v28 = vld [vmem:[%s9517_s7 + $0x28] sm:$0xff]  }
 0x5cb   : > { %v3569_v34 = vadd.f32 %v3568_v33, %v8823_v24  ;;  %v3570_v35 = vpop.f32.mrb[131].mxu1  ;;  %v3643_v38 = vmax.f32 %v3565_v30, 0.0  ;;  %6769 = vmatpush3.bf16.msra.mxu1 %v7346_v41  ;;  %v7355_v30 = vld [vmem:[%s9517_s7 + $0x70] sm:$0xff]  }
 0x5cc   : > { %v3571_v17 = vadd.f32 %v3570_v35, %v8828_v27  ;;  %v3644_v39 = vmax.f32 %v3567_v32, 0.0  ;;  %6770 = vmatprep.subr.bf16.mxu1 %v7347_v44 }
 0x5cd   : > { %v3645_v14 = vmax.f32 %v3569_v34, 0.0 }
 0x5ce   : > { %v3646_v6 = vmax.f32 %v3571_v17, 0.0 }
 0x5cf   : > { %v3675_v43 = vpack.c.bf16 %v3645_v14, %v3643_v38  ;;  %6771 = vmatpush3.bf16.msra.mxu1 %v7348_v40 }
 0x5d0   : > { %v3676_v45 = vpack.c.bf16 %v3646_v6, %v3644_v39  ;;  %v3574_v48 = vpop.f32.mrb[132].mxu1  ;;  %6772 = vmatprep.subr.bf16.mxu1 %v7349_v58 }
 0x5d1   : > { %v3575_v50 = vadd.f32 %v3574_v48, %v8823_v24  ;;  %v3576_v52 = vpop.f32.mrb[133].mxu1 }
 0x5d2   : > { %v3577_v37 = vadd.f32 %v3576_v52, %v8828_v27  ;;  %v3578_v55 = vpop.f32.mrb[134].mxu1  ;;  %3927 = vmatprep.mubr.bf16.mxu0 %v3676_v45 }
 0x5d3   : > { %v3579_v56 = vadd.f32 %v3578_v55, %v8823_v24  ;;  %v3580_v57 = vpop.f32.mrb[135].mxu1  ;;  %3928 = vmatmul.mubr.bf16.vlgmr.msra.gmra.mrb[160].mxu0 %v3675_v43  ;;  %v3647_v61 = vmax.f32 %v3575_v50, 0.0  ;;  %6773 = vmatpush3.bf16.msra.mxu1 %v7350_v1 }
 0x5d4   : > { %v3581_v59 = vadd.f32 %v3580_v57, %v8828_v27  ;;  %4511 = vmatpush1.bf16.msra.mxu0 %v7323_v49  ;;  %v3648_v42 = vmax.f32 %v3577_v37, 0.0  ;;  %6774 = vmatprep.subr.bf16.mxu1 %v7351_v46 }
 0x5d5   : > { %v3649_v62 = vmax.f32 %v3579_v56, 0.0  ;;  %4512 = vmatprep.subr.bf16.mxu0 %v7328_v53 }
 0x5d6   : > { %v3650_v0 = vmax.f32 %v3581_v59, 0.0 }
 0x5d7   : > { %v3677_v4 = vpack.c.bf16 %v3649_v62, %v3647_v61  ;;  %6775 = vmatpush3.bf16.msra.mxu1 %v7352_v11 }
 0x5d8   : > { %v3678_v5 = vpack.c.bf16 %v3650_v0, %v3648_v42  ;;  %v3584_v47 = vpop.f32.mrb[136].mxu1  ;;  %4513 = vmatpush1.bf16.msra.mxu0 %v7326_v60  ;;  %6776 = vmatprep.subr.bf16.mxu1 %v7353_v13 }
 0x5d9   : > { %v3585_v51 = vadd.f32 %v3584_v47, %v8823_v24  ;;  %v3586_v54 = vpop.f32.mrb[137].mxu1  ;;  %4514 = vmatprep.subr.bf16.mxu0 %v7331_v63 }
 0x5da   : > { %v3587_v9 = vadd.f32 %v3586_v54, %v8828_v27  ;;  %v3588_v10 = vpop.f32.mrb[138].mxu1  ;;  %3937 = vmatprep.mubr.bf16.mxu0 %v3678_v5 }
 0x5db   : > { %v3589_v19 = vadd.f32 %v3588_v10, %v8823_v24  ;;  %v3590_v12 = vpop.f32.mrb[139].mxu1  ;;  %3938 = vmatmul.mubr.bf16.gmra.mrb[164].mxu0 %v3677_v4  ;;  %v3651_v22 = vmax.f32 %v3585_v51, 0.0  ;;  %6777 = vmatpush3.bf16.msra.mxu1 %v7354_v28 }
 0x5dc   : > { %v3591_v3 = vadd.f32 %v3590_v12, %v8828_v27  ;;  %4515 = vmatpush1.bf16.msra.mxu0 %v7329_v7  ;;  %v3652_v25 = vmax.f32 %v3587_v9, 0.0  ;;  %6778 = vmatprep.subr.bf16.mxu1 %v7355_v30 }
 0x5dd   : > { %v3653_v23 = vmax.f32 %v3589_v19, 0.0  ;;  %4516 = vmatprep.subr.bf16.mxu0 %v7334_v8 }
 0x5de   : > { %v3654_v26 = vmax.f32 %v3591_v3, 0.0 }
 0x5df   : > { %v3679_v29 = vpack.c.bf16 %v3653_v23, %v3651_v22  ;;  %6779 = vmatpush3.bf16.msra.mxu1 %v7356_v20 }
 0x5e0   : > { %v3680_v31 = vpack.c.bf16 %v3654_v26, %v3652_v25  ;;  %v3594_v32 = vpop.f32.mrb[140].mxu1  ;;  %4517 = vmatpush1.bf16.msra.mxu0 %v7332_v21 }
 0x5e1   : > { %v3595_v33 = vadd.f32 %v3594_v32, %v8823_v24  ;;  %v3596_v34 = vpop.f32.mrb[141].mxu1 }
 0x5e2   : > { %v3597_v35 = vadd.f32 %v3596_v34, %v8828_v27  ;;  %v3598_v36 = vpop.f32.mrb[142].mxu1  ;;  %3947 = vmatprep.mubr.bf16.mxu0 %v3680_v31 }
 0x5e3   : > { %v3599_v15 = vadd.f32 %v3598_v36, %v8823_v24  ;;  %v3600_v17 = vpop.f32.mrb[143].mxu1  ;;  %3948 = vmatmul.mubr.bf16.gmra.mrb[168].mxu0 %v3679_v29  ;;  %v3655_v14 = vmax.f32 %v3595_v33, 0.0 }
 0x5e4   : > { %v3601_v38 = vadd.f32 %v3600_v17, %v8828_v27  ;;  %v3656_v6 = vmax.f32 %v3597_v35, 0.0 }
 0x5e5   : > { %v3657_v39 = vmax.f32 %v3599_v15, 0.0 }
 0x5e6   : > { %v3658_v41 = vmax.f32 %v3601_v38, 0.0 }
 0x5e7   : > { %v3681_v43 = vpack.c.bf16 %v3657_v39, %v3655_v14 }
 0x5e8   : > { %v3682_v44 = vpack.c.bf16 %v3658_v41, %v3656_v6  ;;  %v3604_v45 = vpop.f32.mrb[144].mxu1  ;;  %v7335_v41 = vld [vmem:[%s7663_s24 + $0xc0] sm:$0xff]  }
 0x5e9   : > { %v3605_v48 = vadd.f32 %v3604_v45, %v8823_v24  ;;  %v3606_v49 = vpop.f32.mrb[145].mxu1  ;;  %v7358_v45 = vld [vmem:[%s9517_s7 + $0x38] sm:$0xff]  }
 0x5ea   : > { %v3607_v50 = vadd.f32 %v3606_v49, %v8828_v27  ;;  %v3608_v52 = vpop.f32.mrb[146].mxu1  ;;  %3957 = vmatprep.mubr.bf16.mxu0 %v3682_v44  ;;  %v7357_v44 = vld [vmem:[%s9517_s7 + $0x78] sm:$0xff]   ;;  %v7361_v49 = vld [vmem:[%s9513_s3 + $0x4] ss:$8 sps:$4 sm:$0xff]  }
 0x5eb   : > { %v3609_v53 = vadd.f32 %v3608_v52, %v8823_v24  ;;  %v3610_v37 = vpop.f32.mrb[147].mxu1  ;;  %3958 = vmatmul.mubr.bf16.gmra.mrb[172].mxu0 %v3681_v43  ;;  %v3659_v40 = vmax.f32 %v3605_v48, 0.0  ;;  %v7338_v43 = vld [vmem:[%s7663_s24 + $0xd8] sm:$0xff]   ;;  %6780 = vmatprep.subr.bf16.mxu1 %v7357_v44  ;;  %v7339_v48 = vld [vmem:[%s7663_s24 + $0xe0] sm:$0xff]   ;;  %v7341_v52 = vld [vmem:[%s7663_s24 + $0xf0] sm:$0xff]  }
 0x5ec   : > { %v3611_v55 = vadd.f32 %v3610_v37, %v8828_v27  ;;  %v3660_v57 = vmax.f32 %v3607_v50, 0.0  ;;  %6781 = vmatpush3.bf16.msra.mxu1 %v7358_v45  ;;  %v7340_v50 = vld [vmem:[%s7663_s24 + $0xe8] sm:$0xff]   ;;  %v3723_v37 = vld [vmem:[%s9516_s6] sm:$0x3] }
 0x5ed   : > { %v3661_v56 = vmax.f32 %v3609_v53, 0.0  ;;  %4875 = vmatprep.subr.bf16.mxu1 %v7361_v49  ;;  %v7342_v53 = vld [vmem:[%s7663_s24 + $0xf8] sm:$0xff]  }
 0x5ee   : > { %v3662_v58 = vmax.f32 %v3611_v55, 0.0  ;;  %v8963_v55 = vrot.slane %v3723_v37, %v7877_v16 }
 0x5ef   : > { %v3683_v59 = vpack.c.bf16 %v3661_v56, %v3659_v40  ;;  %v8966_v40 = vrot.slane %v3723_v37, %v7882_v18 }
 0x5f0   : > { %v3684_v60 = vpack.c.bf16 %v3662_v58, %v3660_v57  ;;  %v3614_v61 = vpop.f32.mrb[148].mxu1 }
 0x5f1   : > { %v3615_v62 = vadd.f32 %v3614_v61, %v8823_v24  ;;  %v3616_v63 = vpop.f32.mrb[149].mxu1 }
 0x5f2   : > { %v3617_v42 = vadd.f32 %v3616_v63, %v8828_v27  ;;  %v3618_v0 = vpop.f32.mrb[150].mxu1  ;;  %3967 = vmatprep.mubr.bf16.mxu0 %v3684_v60 }
 0x5f3   : > { %v3619_v1 = vadd.f32 %v3618_v0, %v8823_v24  ;;  %v3620_v4 = vpop.f32.mrb[151].mxu1  ;;  %3968 = vmatmul.mubr.bf16.gmra.mrb[176].mxu0 %v3683_v59  ;;  %v3663_v5 = vmax.f32 %v3615_v62, 0.0 }
 0x5f4   : > { %v3621_v46 = vadd.f32 %v3620_v4, %v8828_v27  ;;  %v3664_v7 = vmax.f32 %v3617_v42, 0.0 }
 0x5f5   : > { %v3665_v47 = vmax.f32 %v3619_v1, 0.0 }
 0x5f6   : > { %v3666_v51 = vmax.f32 %v3621_v46, 0.0 }
 0x5f7   : > { %v3685_v54 = vpack.c.bf16 %v3665_v47, %v3663_v5  ;;  %v7359_v47 = vld [vmem:[%s9513_s3] ss:$8 sps:$4 sm:$0xff]  }
 0x5f8   : > { %v3686_v8 = vpack.c.bf16 %v3666_v51, %v3664_v7  ;;  %v3624_v9 = vpop.f32.mrb[152].mxu1 }
 0x5f9   : > { %v3625_v10 = vadd.f32 %v3624_v9, %v8823_v24  ;;  %v3626_v11 = vpop.f32.mrb[153].mxu1 }
 0x5fa   : > { %v3627_v19 = vadd.f32 %v3626_v11, %v8828_v27  ;;  %v3628_v12 = vpop.f32.mrb[154].mxu1  ;;  %3977 = vmatprep.mubr.bf16.mxu0 %v3686_v8 }
 0x5fb   : > { %v3629_v13 = vadd.f32 %v3628_v12, %v8823_v24  ;;  %v3630_v3 = vpop.f32.mrb[155].mxu1  ;;  %3978 = vmatmul.mubr.bf16.gmra.mrb[180].mxu0 %v3685_v54  ;;  %v3667_v22 = vmax.f32 %v3625_v10, 0.0  ;;  %v7364_v54 = vld [vmem:[%s9513_s3 + $0x14] ss:$8 sps:$4 sm:$0xff]   ;;  %v7362_v12 = vld [vmem:[%s9513_s3 + $0x10] ss:$8 sps:$4 sm:$0xff]  }
 0x5fc   : > { %v3631_v21 = vadd.f32 %v3630_v3, %v8828_v27  ;;  %v3668_v25 = vmax.f32 %v3627_v19, 0.0 }
 0x5fd   : > { %v3669_v23 = vmax.f32 %v3629_v13, 0.0 }
 0x5fe   : > { %v3670_v26 = vmax.f32 %v3631_v21, 0.0  ;;  %v7367_v21 = vld [vmem:[%s9513_s3 + $0x24] ss:$8 sps:$4 sm:$0xff]  }
 0x5ff   : > { %v3687_v28 = vpack.c.bf16 %v3669_v23, %v3667_v22 }
 0x600   : > { %v3688_v29 = vpack.c.bf16 %v3670_v26, %v3668_v25  ;;  %v3634_v30 = vpop.f32.mrb[156].mxu1 }
 0x601   : > { %v3635_v31 = vadd.f32 %v3634_v30, %v8823_v24  ;;  %v3636_v32 = vpop.f32.mrb[157].mxu1 }
 0x602   : > { %v3637_v33 = vadd.f32 %v3636_v32, %v8828_v27  ;;  %v3638_v34 = vpop.f32.mrb[158].mxu1  ;;  %3987 = vmatprep.mubr.bf16.mxu0 %v3688_v29  ;;  %v7365_v29 = vld [vmem:[%s9513_s3 + $0x20] ss:$8 sps:$4 sm:$0xff]   ;;  %v7370_v32 = vld [vmem:[%s9513_s3 + $0x34] ss:$8 sps:$4 sm:$0xff]  }
 0x603   : > { %v3639_v35 = vadd.f32 %v3638_v34, %v8823_v24  ;;  %v3640_v36 = vpop.f32.mrb[159].mxu1  ;;  %3988 = vmatmul.mubr.bf16.gmra.mrb[184].mxu0 %v3687_v28  ;;  %v3671_v15 = vmax.f32 %v3635_v31, 0.0  ;;  %v7336_v24 = vld [vmem:[%s7663_s24 + $0xc8] sm:$0xff]  }
 0x604   : > { %v3641_v20 = vadd.f32 %v3640_v36, %v8828_v27  ;;  %v3672_v38 = vmax.f32 %v3637_v33, 0.0  ;;  %v7337_v27 = vld [vmem:[%s7663_s24 + $0xd0] sm:$0xff]   ;;  %s7483_s24 = scalar_lea.vmem %s7482_s23, 8192 }
 0x605   : > { %v3673_v17 = vmax.f32 %v3639_v35, 0.0  ;;  %p7485_p1 = scmp.lt.s32.totalorder %s7483_s24, %s7477_s13 }
 0x606   : > { %v3674_v14 = vmax.f32 %v3641_v20, 0.0 }
 0x607   : > { %v3689_v39 = vpack.c.bf16 %v3673_v17, %v3671_v15  ;;  %v7368_v15 = vld [vmem:[%s9513_s3 + $0x30] ss:$8 sps:$4 sm:$0xff]   ;;  %p7486_p2 = por %p7485_p1, %p7484_p0 }
 0x608   : > { %v3690_v6 = vpack.c.bf16 %v3674_v14, %v3672_v38  ;;  %v7373_v14 = vld [vmem:[%s9513_s3 + $0x44] ss:$8 sps:$4 sm:$0xff]  }
 0x609   : > { %p7487_p3 = pnand %p7486_p2, %p7480_p13 }
 0x60a   : > { %3997 = vmatprep.mubr.bf16.mxu0 %v3690_v6 }
 0x60b   : > { %3998 = vmatmul.mubr.bf16.gmra.mrb[188].mxu0 %v3689_v39 }
 0x60c   : > { %4542 = vmatprep.mubr.bf16.mxu0 %v7541_v2 }
 0x613   : > { %6256 = vmatmul.mubr.msk.bf16.vlgmr.msra.gmra.mrb[192].mxu0 %vm451_vm0, %v7335_v41 }
 0x614   : > { %4552 = vmatprep.mubr.bf16.mxu0 %v7541_v2 }
 0x61b   : > { %6257 = vmatmul.mubr.msk.bf16.gmra.mrb[196].mxu0 %vm451_vm0, %v7336_v24 }
 0x61c   : > { %4562 = vmatprep.mubr.bf16.mxu0 %v7541_v2 }
 0x623   : > { %6258 = vmatmul.mubr.msk.bf16.gmra.mrb[200].mxu0 %vm451_vm0, %v7337_v27 }
 0x624   : > { %4572 = vmatprep.mubr.bf16.mxu0 %v7541_v2 }
 0x62b   : > { %6259 = vmatmul.mubr.msk.bf16.gmra.mrb[204].mxu0 %vm451_vm0, %v7338_v43  ;;  %v7371_v43 = vld [vmem:[%s9513_s3 + $0x40] ss:$8 sps:$4 sm:$0xff]  }
 0x62c   : > { %4582 = vmatprep.mubr.bf16.mxu0 %v7541_v2 }
 0x633   : > { %6260 = vmatmul.mubr.msk.bf16.gmra.mrb[208].mxu0 %vm451_vm0, %v7339_v48  ;;  %v7376_v48 = vld [vmem:[%s9513_s3 + $0x54] ss:$8 sps:$4 sm:$0xff]  }
 0x634   : > { %4592 = vmatprep.mubr.bf16.mxu0 %v7541_v2 }
 0x63b   : > { %6261 = vmatmul.mubr.msk.bf16.gmra.mrb[212].mxu0 %vm451_vm0, %v7340_v50 }
 0x63c   : > { %4602 = vmatprep.mubr.bf16.mxu0 %v7541_v2 }
 0x643   : > { %6262 = vmatmul.mubr.msk.bf16.gmra.mrb[216].mxu0 %vm451_vm0, %v7341_v52 }
 0x644   : > { %4612 = vmatprep.mubr.bf16.mxu0 %v7541_v2 }
 0x64b   : > { %6263 = vmatmul.mubr.msk.bf16.gmra.mrb[220].mxu0 %vm451_vm0, %v7342_v53 }
 0x6a6   : > { %v3929_v56 = vpop.f32.mrb[160].mxu0 }
 0x6a7   : > { %v3930_v57 = vadd.f32 %v3929_v56, %v8963_v55  ;;  %v3931_v58 = vpop.f32.mrb[161].mxu0  ;;  %v7374_v56 = vld [vmem:[%s9513_s3 + $0x50] ss:$8 sps:$4 sm:$0xff]  }
 0x6a8   : > { %v3932_v59 = vadd.f32 %v3931_v58, %v8966_v40  ;;  %v3933_v2 = vpop.f32.mrb[162].mxu0 }
 0x6a9   : > { %v3934_v60 = vadd.f32 %v3933_v2, %v8963_v55  ;;  %v3935_v61 = vpop.f32.mrb[163].mxu0  ;;  %v4008_v63 = vmax.f32 %v3930_v57, 0.0 }
 0x6aa   : > { %v3936_v62 = vadd.f32 %v3935_v61, %v8966_v40  ;;  %v4009_v0 = vmax.f32 %v3932_v59, 0.0  ;;  %v7379_v59 = vld [vmem:[%s9513_s3 + $0x64] ss:$8 sps:$4 sm:$0xff]  }
 0x6ab   : > { %v4010_v42 = vmax.f32 %v3934_v60, 0.0 }
 0x6ac   : > { %v4011_v1 = vmax.f32 %v3936_v62, 0.0 }
 0x6ad   : > { %v4040_v4 = vpack.c.bf16 %v4010_v42, %v4008_v63  ;;  %v7377_v42 = vld [vmem:[%s9513_s3 + $0x60] ss:$8 sps:$4 sm:$0xff]  }
 0x6ae   : > { %v4041_v46 = vpack.c.bf16 %v4011_v1, %v4009_v0  ;;  %v3939_v5 = vpop.f32.mrb[164].mxu0 }
 0x6af   : > { %v3940_v7 = vadd.f32 %v3939_v5, %v8963_v55  ;;  %v3941_v51 = vpop.f32.mrb[165].mxu0 }
 0x6b0   : > { %v3942_v8 = vadd.f32 %v3941_v51, %v8966_v40  ;;  %v3943_v9 = vpop.f32.mrb[166].mxu0  ;;  %4223 = vmatprep.mubr.bf16.mxu1 %v4041_v46 }
 0x6b1   : > { %v3944_v10 = vadd.f32 %v3943_v9, %v8963_v55  ;;  %v3945_v11 = vpop.f32.mrb[167].mxu0  ;;  %4224 = vmatmul.mubr.bf16.vlgmr.msra.gmra.mrb[160].mxu1 %v4040_v4  ;;  %v4012_v13 = vmax.f32 %v3940_v7, 0.0  ;;  %v7382_v4 = vld [vmem:[%s9513_s3 + $0x74] ss:$8 sps:$4 sm:$0xff]  }
 0x6b2   : > { %v3946_v19 = vadd.f32 %v3945_v11, %v8966_v40  ;;  %4876 = vmatpush1.bf16.msra.mxu1 %v7359_v47  ;;  %v4013_v22 = vmax.f32 %v3942_v8, 0.0 }
 0x6b3   : > { %v4014_v3 = vmax.f32 %v3944_v10, 0.0  ;;  %4877 = vmatprep.subr.bf16.mxu1 %v7364_v54  ;;  %v7380_v54 = vld [vmem:[%s9513_s3 + $0x70] ss:$8 sps:$4 sm:$0xff]   ;;  %v7385_v10 = vld [vmem:[%s9513_s3 + $0x84] ss:$8 sps:$4 sm:$0xff]  }
 0x6b4   : > { %v4015_v23 = vmax.f32 %v3946_v19, 0.0 }
 0x6b5   : > { %v4042_v25 = vpack.c.bf16 %v4014_v3, %v4012_v13 }
 0x6b6   : > { %v4043_v26 = vpack.c.bf16 %v4015_v23, %v4013_v22  ;;  %4878 = vmatpush1.bf16.msra.mxu1 %v7362_v12  ;;  %v3949_v28 = vpop.f32.mrb[168].mxu0 }
 0x6b7   : > { %v3950_v30 = vadd.f32 %v3949_v28, %v8963_v55  ;;  %v3951_v31 = vpop.f32.mrb[169].mxu0  ;;  %4879 = vmatprep.subr.bf16.mxu1 %v7367_v21  ;;  %v7383_v21 = vld [vmem:[%s9513_s3 + $0x80] ss:$8 sps:$4 sm:$0xff]  }
 0x6b8   : > { %v3952_v33 = vadd.f32 %v3951_v31, %v8966_v40  ;;  %v3953_v34 = vpop.f32.mrb[170].mxu0  ;;  %4231 = vmatprep.mubr.bf16.mxu1 %v4043_v26 }
 0x6b9   : > { %v3954_v35 = vadd.f32 %v3953_v34, %v8963_v55  ;;  %v3955_v36 = vpop.f32.mrb[171].mxu0  ;;  %4232 = vmatmul.mubr.bf16.gmra.mrb[164].mxu1 %v4042_v25  ;;  %v4016_v17 = vmax.f32 %v3950_v30, 0.0  ;;  %v7388_v25 = vld [vmem:[%s9513_s3 + $0x94] ss:$8 sps:$4 sm:$0xff]  }
 0x6ba   : > { %v3956_v20 = vadd.f32 %v3955_v36, %v8966_v40  ;;  %4880 = vmatpush1.bf16.msra.mxu1 %v7365_v29  ;;  %v4017_v39 = vmax.f32 %v3952_v33, 0.0 }
 0x6bb   : > { %v4018_v38 = vmax.f32 %v3954_v35, 0.0  ;;  %4881 = vmatprep.subr.bf16.mxu1 %v7370_v32  ;;  %v7386_v32 = vld [vmem:[%s9513_s3 + $0x90] ss:$8 sps:$4 sm:$0xff]   ;;  %v7391_v35 = vld [vmem:[%s9513_s3 + $0xa4] ss:$8 sps:$4 sm:$0xff]  }
 0x6bc   : > { %v4019_v6 = vmax.f32 %v3956_v20, 0.0 }
 0x6bd   : > { %v4044_v41 = vpack.c.bf16 %v4018_v38, %v4016_v17 }
 0x6be   : > { %v4045_v24 = vpack.c.bf16 %v4019_v6, %v4017_v39  ;;  %4882 = vmatpush1.bf16.msra.mxu1 %v7368_v15  ;;  %v3959_v27 = vpop.f32.mrb[172].mxu0 }
 0x6bf   : > { %v3960_v44 = vadd.f32 %v3959_v27, %v8963_v55  ;;  %v3961_v45 = vpop.f32.mrb[173].mxu0  ;;  %4883 = vmatprep.subr.bf16.mxu1 %v7373_v14  ;;  %v7389_v14 = vld [vmem:[%s9513_s3 + $0xa0] ss:$8 sps:$4 sm:$0xff]  }
 0x6c0   : > { %v3962_v49 = vadd.f32 %v3961_v45, %v8966_v40  ;;  %v3963_v50 = vpop.f32.mrb[174].mxu0  ;;  %4239 = vmatprep.mubr.bf16.mxu1 %v4045_v24 }
 0x6c1   : > { %v3964_v52 = vadd.f32 %v3963_v50, %v8963_v55  ;;  %v3965_v53 = vpop.f32.mrb[175].mxu0  ;;  %4240 = vmatmul.mubr.bf16.gmra.mrb[168].mxu1 %v4044_v41  ;;  %v4020_v57 = vmax.f32 %v3960_v44, 0.0  ;;  %v7394_v41 = vld [vmem:[%s9513_s3 + $0xb4] ss:$8 sps:$4 sm:$0xff]  }
 0x6c2   : > { %v3966_v37 = vadd.f32 %v3965_v53, %v8966_v40  ;;  %4884 = vmatpush1.bf16.msra.mxu1 %v7371_v43  ;;  %v4021_v2 = vmax.f32 %v3962_v49, 0.0 }
 0x6c3   : > { %v4022_v58 = vmax.f32 %v3964_v52, 0.0  ;;  %4885 = vmatprep.subr.bf16.mxu1 %v7376_v48  ;;  %v7392_v48 = vld [vmem:[%s9513_s3 + $0xb0] ss:$8 sps:$4 sm:$0xff]   ;;  %v7397_v52 = vld [vmem:[%s9513_s3 + $0xc4] ss:$8 sps:$4 sm:$0xff]  }
 0x6c4   : > { %v4023_v60 = vmax.f32 %v3966_v37, 0.0 }
 0x6c5   : > { %v4046_v61 = vpack.c.bf16 %v4022_v58, %v4020_v57 }
 0x6c6   : > { %v4047_v62 = vpack.c.bf16 %v4023_v60, %v4021_v2  ;;  %4886 = vmatpush1.bf16.msra.mxu1 %v7374_v56  ;;  %v3969_v63 = vpop.f32.mrb[176].mxu0 }
 0x6c7   : > { %v3970_v0 = vadd.f32 %v3969_v63, %v8963_v55  ;;  %v3971_v1 = vpop.f32.mrb[177].mxu0  ;;  %4887 = vmatprep.subr.bf16.mxu1 %v7379_v59  ;;  %v7395_v59 = vld [vmem:[%s9513_s3 + $0xc0] ss:$8 sps:$4 sm:$0xff]  }
 0x6c8   : > { %v3972_v46 = vadd.f32 %v3971_v1, %v8966_v40  ;;  %v3973_v5 = vpop.f32.mrb[178].mxu0  ;;  %4247 = vmatprep.mubr.bf16.mxu1 %v4047_v62 }
 0x6c9   : > { %v3974_v47 = vadd.f32 %v3973_v5, %v8963_v55  ;;  %v3975_v7 = vpop.f32.mrb[179].mxu0  ;;  %4248 = vmatmul.mubr.bf16.gmra.mrb[172].mxu1 %v4046_v61  ;;  %v4024_v8 = vmax.f32 %v3970_v0, 0.0  ;;  %v7400_v61 = vld [vmem:[%s9513_s3 + $0xd4] ss:$8 sps:$4 sm:$0xff]  }
 0x6ca   : > { %v3976_v51 = vadd.f32 %v3975_v7, %v8966_v40  ;;  %4888 = vmatpush1.bf16.msra.mxu1 %v7377_v42  ;;  %v4025_v11 = vmax.f32 %v3972_v46, 0.0  ;;  %v4394_v42 = vld [vmem:[%s9512_s2] sm:$0x3]  ;;  %v7398_v46 = vld [vmem:[%s9513_s3 + $0xd0] ss:$8 sps:$4 sm:$0xff]  }
 0x6cb   : > { %v4026_v9 = vmax.f32 %v3974_v47, 0.0  ;;  %4889 = vmatprep.subr.bf16.mxu1 %v7382_v4  ;;  %v9085_v7 = vrot.slane %v4394_v42, %v7877_v16 }
 0x6cc   : > { %v4027_v19 = vmax.f32 %v3976_v51, 0.0  ;;  %v7403_v51 = vld [vmem:[%s9513_s3 + $0xe4] ss:$8 sps:$4 sm:$0xff]  }
 0x6cd   : > { %v4048_v12 = vpack.c.bf16 %v4026_v9, %v4024_v8  ;;  %v9091_v8 = vrot.slane %v4394_v42, %v7882_v18 }
 0x6ce   : > { %v4049_v13 = vpack.c.bf16 %v4027_v19, %v4025_v11  ;;  %4890 = vmatpush1.bf16.msra.mxu1 %v7380_v54  ;;  %v3979_v3 = vpop.f32.mrb[180].mxu0  ;;  %v7401_v11 = vld [vmem:[%s9513_s3 + $0xe0] ss:$8 sps:$4 sm:$0xff]  }
 0x6cf   : > { %v3980_v22 = vadd.f32 %v3979_v3, %v8963_v55  ;;  %v3981_v23 = vpop.f32.mrb[181].mxu0  ;;  %4891 = vmatprep.subr.bf16.mxu1 %v7385_v10 }
 0x6d0   : > { %v3982_v26 = vadd.f32 %v3981_v23, %v8966_v40  ;;  %v3983_v28 = vpop.f32.mrb[182].mxu0  ;;  %4255 = vmatprep.mubr.bf16.mxu1 %v4049_v13  ;;  %v7406_v13 = vld [vmem:[%s9513_s3 + $0xf4] ss:$8 sps:$4 sm:$0xff]  }
 0x6d1   : > { %v3984_v29 = vadd.f32 %v3983_v28, %v8963_v55  ;;  %v3985_v30 = vpop.f32.mrb[183].mxu0  ;;  %4256 = vmatmul.mubr.bf16.gmra.mrb[176].mxu1 %v4048_v12  ;;  %v4028_v33 = vmax.f32 %v3980_v22, 0.0 }
 0x6d2   : > { %v3986_v31 = vadd.f32 %v3985_v30, %v8966_v40  ;;  %4892 = vmatpush1.bf16.msra.mxu1 %v7383_v21  ;;  %v4029_v36 = vmax.f32 %v3982_v26, 0.0  ;;  %v7404_v26 = vld [vmem:[%s9513_s3 + $0xf0] ss:$8 sps:$4 sm:$0xff]  }
 0x6d3   : > { %v4030_v34 = vmax.f32 %v3984_v29, 0.0  ;;  %4893 = vmatprep.subr.bf16.mxu1 %v7388_v25 }
 0x6d4   : > { %v4031_v20 = vmax.f32 %v3986_v31, 0.0 }
 0x6d5   : > { %v4050_v15 = vpack.c.bf16 %v4030_v34, %v4028_v33 }
 0x6d6   : > { %v4051_v17 = vpack.c.bf16 %v4031_v20, %v4029_v36  ;;  %4894 = vmatpush1.bf16.msra.mxu1 %v7386_v32  ;;  %v3989_v38 = vpop.f32.mrb[184].mxu0 }
 0x6d7   : > { %v3990_v39 = vadd.f32 %v3989_v38, %v8963_v55  ;;  %v3991_v6 = vpop.f32.mrb[185].mxu0  ;;  %4895 = vmatprep.subr.bf16.mxu1 %v7391_v35 }
 0x6d8   : > { %v3992_v24 = vadd.f32 %v3991_v6, %v8966_v40  ;;  %v3993_v27 = vpop.f32.mrb[186].mxu0  ;;  %4263 = vmatprep.mubr.bf16.mxu1 %v4051_v17 }
 0x6d9   : > { %v3994_v43 = vadd.f32 %v3993_v27, %v8963_v55  ;;  %v3995_v44 = vpop.f32.mrb[187].mxu0  ;;  %4264 = vmatmul.mubr.bf16.gmra.mrb[180].mxu1 %v4050_v15  ;;  %v4032_v49 = vmax.f32 %v3990_v39, 0.0 }
 0x6da   : > { %v3996_v45 = vadd.f32 %v3995_v44, %v8966_v40  ;;  %4896 = vmatpush1.bf16.msra.mxu1 %v7389_v14  ;;  %v4033_v53 = vmax.f32 %v3992_v24, 0.0 }
 0x6db   : > { %v4034_v50 = vmax.f32 %v3994_v43, 0.0  ;;  %4897 = vmatprep.subr.bf16.mxu1 %v7394_v41 }
 0x6dc   : > { %v4035_v37 = vmax.f32 %v3996_v45, 0.0 }
 0x6dd   : > { %v4052_v56 = vpack.c.bf16 %v4034_v50, %v4032_v49 }
 0x6de   : > { %v4053_v57 = vpack.c.bf16 %v4035_v37, %v4033_v53  ;;  %4898 = vmatpush1.bf16.msra.mxu1 %v7392_v48  ;;  %v3999_v58 = vpop.f32.mrb[188].mxu0 }
 0x6df   : > { %v4000_v2 = vadd.f32 %v3999_v58, %v8963_v55  ;;  %v4001_v60 = vpop.f32.mrb[189].mxu0  ;;  %4899 = vmatprep.subr.bf16.mxu1 %v7397_v52 }
 0x6e0   : > { %v4002_v62 = vadd.f32 %v4001_v60, %v8966_v40  ;;  %v4003_v63 = vpop.f32.mrb[190].mxu0  ;;  %4271 = vmatprep.mubr.bf16.mxu1 %v4053_v57 }
 0x6e1   : > { %v4004_v0 = vadd.f32 %v4003_v63, %v8963_v55  ;;  %v4005_v1 = vpop.f32.mrb[191].mxu0  ;;  %4272 = vmatmul.mubr.bf16.gmra.mrb[184].mxu1 %v4052_v56  ;;  %v4036_v5 = vmax.f32 %v4000_v2, 0.0 }
 0x6e2   : > { %v4006_v4 = vadd.f32 %v4005_v1, %v8966_v40  ;;  %4900 = vmatpush1.bf16.msra.mxu1 %v7395_v59  ;;  %v4037_v55 = vmax.f32 %v4002_v62, 0.0 }
 0x6e3   : > { %v4038_v47 = vmax.f32 %v4004_v0, 0.0  ;;  %4901 = vmatprep.subr.bf16.mxu1 %v7400_v61 }
 0x6e4   : > { %v4039_v54 = vmax.f32 %v4006_v4, 0.0 }
 0x6e5   : > { %v4054_v40 = vpack.c.bf16 %v4038_v47, %v4036_v5 }
 0x6e6   : > { %v4055_v9 = vpack.c.bf16 %v4039_v54, %v4037_v55  ;;  %4902 = vmatpush1.bf16.msra.mxu1 %v7398_v46  ;;  %v4544_v10 = vpop.f32.mrb[192].mxu0 }
 0x6e7   : > { %v4545_v19 = vadd.f32 %v4544_v10, %v9085_v7  ;;  %v4546_v12 = vpop.f32.mrb[193].mxu0  ;;  %4903 = vmatprep.subr.bf16.mxu1 %v7403_v51 }
 0x6e8   : > { %v4547_v3 = vadd.f32 %v4546_v12, %v9091_v8  ;;  %4279 = vmatprep.mubr.bf16.mxu1 %v4055_v9  ;;  %v4548_v21 = vpop.f32.mrb[194].mxu0 }
 0x6e9   : > { %v4549_v22 = vadd.f32 %v4548_v21, %v9085_v7  ;;  %4280 = vmatmul.mubr.bf16.gmra.mrb[188].mxu1 %v4054_v40  ;;  %v4550_v23 = vpop.f32.mrb[195].mxu0  ;;  %v4623_v28 = vmax.f32 %v4545_v19, 0.0 }
 0x6ea   : > { %v4551_v25 = vadd.f32 %v4550_v23, %v9091_v8  ;;  %4904 = vmatpush1.bf16.msra.mxu1 %v7401_v11  ;;  %v4624_v30 = vmax.f32 %v4547_v3, 0.0 }
 0x6eb   : > { %v4625_v29 = vmax.f32 %v4549_v22, 0.0  ;;  %4905 = vmatprep.subr.bf16.mxu1 %v7406_v13 }
 0x6ec   : > { %v4626_v31 = vmax.f32 %v4551_v25, 0.0 }
 0x6ed   : > { %v4655_v32 = vpack.c.bf16 %v4625_v29, %v4623_v28  ;;  %v7409_v29 = vld [vmem:[%s9515_s5 + $0x4] ss:$8 sps:$4 sm:$0xff]  }
 0x6ee   : > { %v4656_v33 = vpack.c.bf16 %v4626_v31, %v4624_v30  ;;  %4906 = vmatpush1.bf16.msra.mxu1 %v7404_v26  ;;  %v4554_v34 = vpop.f32.mrb[196].mxu0  ;;  %5240 = vmatprep.subr.bf16.mxu0 %v7409_v29  ;;  %v7434_v29 = vld [vmem:[%s9515_s5 + $0x90] ss:$8 sps:$4 sm:$0xff]  }
 0x6ef   : > { %v4555_v35 = vadd.f32 %v4554_v34, %v9085_v7  ;;  %v4556_v36 = vpop.f32.mrb[197].mxu0 }
 0x6f0   : > { %v4557_v20 = vadd.f32 %v4556_v36, %v9091_v8  ;;  %v4558_v15 = vpop.f32.mrb[198].mxu0  ;;  %4907 = vmatprep.mubr.bf16.mxu1 %v4656_v33 }
 0x6f1   : > { %v4559_v17 = vadd.f32 %v4558_v15, %v9085_v7  ;;  %v4560_v38 = vpop.f32.mrb[199].mxu0  ;;  %4908 = vmatmul.mubr.bf16.vlgmr.msra.gmra.mrb[192].mxu1 %v4655_v32  ;;  %v4627_v39 = vmax.f32 %v4555_v35, 0.0  ;;  %v7407_v32 = vld [vmem:[%s9515_s5] ss:$8 sps:$4 sm:$0xff]  }
 0x6f2   : > { %v4561_v14 = vadd.f32 %v4560_v38, %v9091_v8  ;;  %v4628_v41 = vmax.f32 %v4557_v20, 0.0  ;;  %5241 = vmatpush1.bf16.msra.mxu0 %v7407_v32  ;;  %v7442_v32 = vld [vmem:[%s9515_s5 + $0xb4] ss:$8 sps:$4 sm:$0xff]  }
 0x6f3   : > { %v4629_v6 = vmax.f32 %v4559_v17, 0.0  ;;  %v7412_v17 = vld [vmem:[%s9515_s5 + $0x14] ss:$8 sps:$4 sm:$0xff]  }
 0x6f4   : > { %v4630_v24 = vmax.f32 %v4561_v14, 0.0  ;;  %v7410_v14 = vld [vmem:[%s9515_s5 + $0x10] ss:$8 sps:$4 sm:$0xff]   ;;  %5242 = vmatprep.subr.bf16.mxu0 %v7412_v17  ;;  %v7449_v17 = vld [vmem:[%s9515_s5 + $0xe0] ss:$8 sps:$4 sm:$0xff]  }
 0x6f5   : > { %v4657_v27 = vpack.c.bf16 %v4629_v6, %v4627_v39 }
 0x6f6   : > { %v4658_v43 = vpack.c.bf16 %v4630_v24, %v4628_v41  ;;  %v4564_v44 = vpop.f32.mrb[200].mxu0  ;;  %5243 = vmatpush1.bf16.msra.mxu0 %v7410_v14  ;;  %v7452_v14 = vld [vmem:[%s9515_s5 + $0xf0] ss:$8 sps:$4 sm:$0xff]  }
 0x6f7   : > { %v4565_v45 = vadd.f32 %v4564_v44, %v9085_v7  ;;  %v4566_v48 = vpop.f32.mrb[201].mxu0 }
 0x6f8   : > { %v4567_v49 = vadd.f32 %v4566_v48, %v9091_v8  ;;  %v4568_v50 = vpop.f32.mrb[202].mxu0  ;;  %4917 = vmatprep.mubr.bf16.mxu1 %v4658_v43  ;;  %v7415_v43 = vld [vmem:[%s9515_s5 + $0x24] ss:$8 sps:$4 sm:$0xff]   ;;  %v7413_v48 = vld [vmem:[%s9515_s5 + $0x20] ss:$8 sps:$4 sm:$0xff]  }
 0x6f9   : > { %v4569_v52 = vadd.f32 %v4568_v50, %v9085_v7  ;;  %v4570_v53 = vpop.f32.mrb[203].mxu0  ;;  %4918 = vmatmul.mubr.bf16.gmra.mrb[196].mxu1 %v4657_v27  ;;  %v4631_v56 = vmax.f32 %v4565_v45, 0.0  ;;  %5244 = vmatprep.subr.bf16.mxu0 %v7415_v43 }
 0x6fa   : > { %v4571_v37 = vadd.f32 %v4570_v53, %v9091_v8  ;;  %v4632_v58 = vmax.f32 %v4567_v49, 0.0  ;;  %5245 = vmatpush1.bf16.msra.mxu0 %v7413_v48  ;;  %v9241_v48 = vld [vmem:[%s9517_s7] sm:$0xff]  }
 0x6fb   : > { %v4633_v57 = vmax.f32 %v4569_v52, 0.0 }
 0x6fc   : > { %v4634_v59 = vmax.f32 %v4571_v37, 0.0 }
 0x6fd   : > { %v4659_v2 = vpack.c.bf16 %v4633_v57, %v4631_v56  ;;  %v7418_v57 = vld [vmem:[%s9515_s5 + $0x34] ss:$8 sps:$4 sm:$0xff]  }
 0x6fe   : > { %v4660_v60 = vpack.c.bf16 %v4634_v59, %v4632_v58  ;;  %v4574_v61 = vpop.f32.mrb[204].mxu0  ;;  %v7416_v59 = vld [vmem:[%s9515_s5 + $0x30] ss:$8 sps:$4 sm:$0xff]   ;;  %5246 = vmatprep.subr.bf16.mxu0 %v7418_v57 }
 0x6ff   : > { %v4575_v62 = vadd.f32 %v4574_v61, %v9085_v7  ;;  %v4576_v63 = vpop.f32.mrb[205].mxu0  ;;  %5247 = vmatpush1.bf16.msra.mxu0 %v7416_v59 }
 0x700   : > { %v4577_v42 = vadd.f32 %v4576_v63, %v9091_v8  ;;  %v4578_v0 = vpop.f32.mrb[206].mxu0  ;;  %4927 = vmatprep.mubr.bf16.mxu1 %v4660_v60 }
 0x701   : > { %v4579_v1 = vadd.f32 %v4578_v0, %v9085_v7  ;;  %v4580_v4 = vpop.f32.mrb[207].mxu0  ;;  %4928 = vmatmul.mubr.bf16.gmra.mrb[200].mxu1 %v4659_v2  ;;  %v4635_v5 = vmax.f32 %v4575_v62, 0.0 }
 0x702   : > { %v4581_v46 = vadd.f32 %v4580_v4, %v9091_v8  ;;  %v4636_v51 = vmax.f32 %v4577_v42, 0.0  ;;  %v7421_v42 = vld [vmem:[%s9515_s5 + $0x44] ss:$8 sps:$4 sm:$0xff]   ;;  %v7419_v4 = vld [vmem:[%s9515_s5 + $0x40] ss:$8 sps:$4 sm:$0xff]  }
 0x703   : > { %v4637_v47 = vmax.f32 %v4579_v1, 0.0  ;;  %5248 = vmatprep.subr.bf16.mxu0 %v7421_v42 }
 0x704   : > { %v4638_v55 = vmax.f32 %v4581_v46, 0.0  ;;  %5249 = vmatpush1.bf16.msra.mxu0 %v7419_v4 }
 0x705   : > { %v4661_v54 = vpack.c.bf16 %v4637_v47, %v4635_v5 }
 0x706   : > { %v4662_v40 = vpack.c.bf16 %v4638_v55, %v4636_v51  ;;  %v4584_v9 = vpop.f32.mrb[208].mxu0 }
 0x707   : > { %v4585_v10 = vadd.f32 %v4584_v9, %v9085_v7  ;;  %v4586_v11 = vpop.f32.mrb[209].mxu0 }
 0x708   : > { %v4587_v19 = vadd.f32 %v4586_v11, %v9091_v8  ;;  %v4588_v12 = vpop.f32.mrb[210].mxu0  ;;  %4937 = vmatprep.mubr.bf16.mxu1 %v4662_v40  ;;  %v7424_v40 = vld [vmem:[%s9515_s5 + $0x54] ss:$8 sps:$4 sm:$0xff]  }
 0x709   : > { %v4589_v13 = vadd.f32 %v4588_v12, %v9085_v7  ;;  %v4590_v3 = vpop.f32.mrb[211].mxu0  ;;  %4938 = vmatmul.mubr.bf16.gmra.mrb[204].mxu1 %v4661_v54  ;;  %v4639_v22 = vmax.f32 %v4585_v10, 0.0  ;;  %v7422_v10 = vld [vmem:[%s9515_s5 + $0x50] ss:$8 sps:$4 sm:$0xff]   ;;  %5250 = vmatprep.subr.bf16.mxu0 %v7424_v40 }
 0x70a   : > { %v4591_v21 = vadd.f32 %v4590_v3, %v9091_v8  ;;  %v4640_v25 = vmax.f32 %v4587_v19, 0.0  ;;  %5251 = vmatpush1.bf16.msra.mxu0 %v7422_v10  ;;  %v9300_v10 = vld [vmem:[%s9517_s7 + $0x68] sm:$0xff]  }
 0x70b   : > { %v4641_v23 = vmax.f32 %v4589_v13, 0.0 }
 0x70c   : > { %v4642_v26 = vmax.f32 %v4591_v21, 0.0 }
 0x70d   : > { %v4663_v28 = vpack.c.bf16 %v4641_v23, %v4639_v22  ;;  %v7430_v22 = vld [vmem:[%s9515_s5 + $0x74] ss:$8 sps:$4 sm:$0xff]   ;;  %v7428_v23 = vld [vmem:[%s9515_s5 + $0x70] ss:$8 sps:$4 sm:$0xff]  }
 0x70e   : > { %v4664_v30 = vpack.c.bf16 %v4642_v26, %v4640_v25  ;;  %v4594_v31 = vpop.f32.mrb[212].mxu0  ;;  %v7433_v25 = vld [vmem:[%s9515_s5 + $0x84] ss:$8 sps:$4 sm:$0xff]   ;;  %v7431_v26 = vld [vmem:[%s9515_s5 + $0x80] ss:$8 sps:$4 sm:$0xff]  }
 0x70f   : > { %v4595_v33 = vadd.f32 %v4594_v31, %v9085_v7  ;;  %v4596_v34 = vpop.f32.mrb[213].mxu0  ;;  %v7437_v31 = vld [vmem:[%s9515_s5 + $0xa0] ss:$8 sps:$4 sm:$0xff]  }
 0x710   : > { %v4597_v35 = vadd.f32 %v4596_v34, %v9091_v8  ;;  %v4598_v36 = vpop.f32.mrb[214].mxu0  ;;  %4947 = vmatprep.mubr.bf16.mxu1 %v4664_v30  ;;  %v7439_v30 = vld [vmem:[%s9515_s5 + $0xa4] ss:$8 sps:$4 sm:$0xff]  }
 0x711   : > { %v4599_v20 = vadd.f32 %v4598_v36, %v9085_v7  ;;  %v4600_v15 = vpop.f32.mrb[215].mxu0  ;;  %4948 = vmatmul.mubr.bf16.gmra.mrb[208].mxu1 %v4663_v28  ;;  %v4643_v39 = vmax.f32 %v4595_v33, 0.0  ;;  %v7436_v28 = vld [vmem:[%s9515_s5 + $0x94] ss:$8 sps:$4 sm:$0xff]   ;;  %v7440_v33 = vld [vmem:[%s9515_s5 + $0xb0] ss:$8 sps:$4 sm:$0xff]  }
 0x712   : > { %v4601_v38 = vadd.f32 %v4600_v15, %v9091_v8  ;;  %v4644_v41 = vmax.f32 %v4597_v35, 0.0  ;;  %v7445_v34 = vld [vmem:[%s9515_s5 + $0xc4] ss:$8 sps:$4 sm:$0xff]   ;;  %v7443_v35 = vld [vmem:[%s9515_s5 + $0xc0] ss:$8 sps:$4 sm:$0xff]  }
 0x713   : > { %v4645_v6 = vmax.f32 %v4599_v20, 0.0  ;;  %v7448_v36 = vld [vmem:[%s9515_s5 + $0xd4] ss:$8 sps:$4 sm:$0xff]   ;;  %v7446_v20 = vld [vmem:[%s9515_s5 + $0xd0] ss:$8 sps:$4 sm:$0xff]  }
 0x714   : > { %v4646_v24 = vmax.f32 %v4601_v38, 0.0  ;;  %v7451_v15 = vld [vmem:[%s9515_s5 + $0xe4] ss:$8 sps:$4 sm:$0xff]   ;;  %v7454_v38 = vld [vmem:[%s9515_s5 + $0xf4] ss:$8 sps:$4 sm:$0xff]  }
 0x715   : > { %v4665_v27 = vpack.c.bf16 %v4645_v6, %v4643_v39 }
 0x716   : > { %v4666_v44 = vpack.c.bf16 %v4646_v24, %v4644_v41  ;;  %v4604_v45 = vpop.f32.mrb[216].mxu0 }
 0x717   : > { %v4605_v49 = vadd.f32 %v4604_v45, %v9085_v7  ;;  %v4606_v50 = vpop.f32.mrb[217].mxu0 }
 0x718   : > { %v4607_v52 = vadd.f32 %v4606_v50, %v9091_v8  ;;  %v4608_v53 = vpop.f32.mrb[218].mxu0  ;;  %4957 = vmatprep.mubr.bf16.mxu1 %v4666_v44  ;;  %v7455_v44 = vld [vmem:[%s9517_s7 + $0x40] sm:$0xff]  }
 0x719   : > { %v4609_v37 = vadd.f32 %v4608_v53, %v9085_v7  ;;  %v4610_v56 = vpop.f32.mrb[219].mxu0  ;;  %4958 = vmatmul.mubr.bf16.gmra.mrb[212].mxu1 %v4665_v27  ;;  %v4647_v2 = vmax.f32 %v4605_v49, 0.0  ;;  %v9233_v27 = vld [vmem:[%s9518_s8] ss:$0 sm:$0xff]  ;;  %6894 = vmatprep.subr.bf16.mxu1 %v7455_v44  ;;  %v9246_v49 = vld [vmem:[%s9517_s7 + $0x48] sm:$0xff]  }
 0x71a   : > { %v4611_v58 = vadd.f32 %v4610_v56, %v9091_v8  ;;  %v4648_v61 = vmax.f32 %v4607_v52, 0.0  ;;  %6902 = vmatpush3.bf16.msra.mxu1 %v9241_v48  ;;  %v9255_v56 = vld [vmem:[%s9517_s7 + $0x8] sm:$0xff]  }
 0x71b   : > { %v4649_v60 = vmax.f32 %v4609_v37, 0.0  ;;  %6895 = vmatprep.subr.bf16.mxu1 %v9246_v49 }
 0x71c   : > { %v4650_v62 = vmax.f32 %v4611_v58, 0.0  ;;  %v9260_v58 = vld [vmem:[%s9517_s7 + $0x50] sm:$0xff]  }
 0x71d   : > { %v4667_v63 = vpack.c.bf16 %v4649_v60, %v4647_v2 }
 0x71e   : > { %v4668_v0 = vpack.c.bf16 %v4650_v62, %v4648_v61  ;;  %v4614_v1 = vpop.f32.mrb[220].mxu0  ;;  %6903 = vmatpush3.bf16.msra.mxu1 %v9255_v56  ;;  %v9268_v62 = vld [vmem:[%s9517_s7 + $0x10] sm:$0xff]  }
 0x71f   : > { %v4615_v46 = vadd.f32 %v4614_v1, %v9085_v7  ;;  %v4616_v5 = vpop.f32.mrb[221].mxu0  ;;  %6896 = vmatprep.subr.bf16.mxu1 %v9260_v58 }
 0x720   : > { %v4617_v47 = vadd.f32 %v4616_v5, %v9091_v8  ;;  %v4618_v51 = vpop.f32.mrb[222].mxu0  ;;  %4967 = vmatprep.mubr.bf16.mxu1 %v4668_v0 }
 0x721   : > { %v4619_v55 = vadd.f32 %v4618_v51, %v9085_v7  ;;  %v4620_v54 = vpop.f32.mrb[223].mxu0  ;;  %4968 = vmatmul.mubr.bf16.gmra.mrb[216].mxu1 %v4667_v63  ;;  %v4651_v11 = vmax.f32 %v4615_v46, 0.0  ;;  %v7427_v7 = vld [vmem:[%s9515_s5 + $0x64] ss:$8 sps:$4 sm:$0xff]   ;;  %v9273_v63 = vld [vmem:[%s9517_s7 + $0x58] sm:$0xff]  }
 0x722   : > { %v4621_v9 = vadd.f32 %v4620_v54, %v9091_v8  ;;  %v4652_v12 = vmax.f32 %v4617_v47, 0.0  ;;  %v7425_v8 = vld [vmem:[%s9515_s5 + $0x60] ss:$8 sps:$4 sm:$0xff]   ;;  %5252 = vmatprep.subr.bf16.mxu0 %v7427_v7  ;;  %6904 = vmatpush3.bf16.msra.mxu1 %v9268_v62  ;;  %v9282_v46 = vld [vmem:[%s9517_s7 + $0x18] sm:$0xff]  }
 0x723   : > { %v4653_v19 = vmax.f32 %v4619_v55, 0.0  ;;  %5253 = vmatpush1.bf16.msra.mxu0 %v7425_v8  ;;  %6897 = vmatprep.subr.bf16.mxu1 %v9273_v63  ;;  %v9287_v47 = vld [vmem:[%s9517_s7 + $0x60] sm:$0xff]  }
 0x724   : > { %v4654_v13 = vmax.f32 %v4621_v9, 0.0  ;;  %5254 = vmatprep.subr.bf16.mxu0 %v7430_v22  ;;  %v9295_v9 = vld [vmem:[%s9517_s7 + $0x20] sm:$0xff]  }
 0x725   : > { %v4669_v3 = vpack.c.bf16 %v4653_v19, %v4651_v11 }
 0x726   : > { %v4670_v21 = vpack.c.bf16 %v4654_v13, %v4652_v12  ;;  %6905 = vmatpush3.bf16.msra.mxu1 %v9282_v46 }
 0x727   : > { %5255 = vmatpush1.bf16.msra.mxu0 %v7428_v23  ;;  %6898 = vmatprep.subr.bf16.mxu1 %v9287_v47 }
 0x728   : > { %4977 = vmatprep.mubr.bf16.mxu1 %v4670_v21  ;;  %5256 = vmatprep.subr.bf16.mxu0 %v7433_v25 }
 0x729   : > { %4978 = vmatmul.mubr.bf16.gmra.mrb[220].mxu1 %v4669_v3 }
 0x72a   : > { %6906 = vmatpush3.bf16.msra.mxu1 %v9295_v9 }
 0x72b   : > { %5257 = vmatpush1.bf16.msra.mxu0 %v7431_v26  ;;  %6899 = vmatprep.subr.bf16.mxu1 %v9300_v10 }
 0x72c   : > { %5258 = vmatprep.subr.bf16.mxu0 %v7436_v28 }
 0x72f   : > { %5259 = vmatpush1.bf16.msra.mxu0 %v7434_v29 }
 0x730   : > { %5260 = vmatprep.subr.bf16.mxu0 %v7439_v30 }
 0x733   : > { %5261 = vmatpush1.bf16.msra.mxu0 %v7437_v31 }
 0x734   : > { %5262 = vmatprep.subr.bf16.mxu0 %v7442_v32 }
 0x737   : > { %5263 = vmatpush1.bf16.msra.mxu0 %v7440_v33 }
 0x738   : > { %5264 = vmatprep.subr.bf16.mxu0 %v7445_v34 }
 0x73b   : > { %5265 = vmatpush1.bf16.msra.mxu0 %v7443_v35 }
 0x73c   : > { %5266 = vmatprep.subr.bf16.mxu0 %v7448_v36 }
 0x73f   : > { %5267 = vmatpush1.bf16.msra.mxu0 %v7446_v20 }
 0x740   : > { %5268 = vmatprep.subr.bf16.mxu0 %v7451_v15 }
 0x743   : > { %5269 = vmatpush1.bf16.msra.mxu0 %v7449_v17 }
 0x744   : > { %5270 = vmatprep.subr.bf16.mxu0 %v7454_v38 }
 0x747   : > { %5271 = vmatpush1.bf16.msra.mxu0 %v7452_v14 }
 0x748   : > { %6830 = vmatprep.subr.bf16.mxu0 %v7455_v44 }
 0x784   : > { %v6782_v39 = vpop.f32.mrb[160].mxu1 }
 0x785   : > { %v6783_v6 = vpop.f32.mrb[161].mxu1 }
 0x786   : > { %v6784_v41 = vadd.f32 %v6783_v6, %v6782_v39  ;;  %v6785_v24 = vpop.f32.mrb[162].mxu1 }
 0x787   : > { %v6786_v43 = vpop.f32.mrb[163].mxu1 }
 0x788   : > { %v6787_v45 = vadd.f32 %v6786_v43, %v6785_v24  ;;  %v4226_v50 = vadd.f32 %v6784_v41, %v9233_v27 }
 0x78a   : > { %v4229_v52 = vadd.f32 %v6787_v45, %v9233_v27 }
 0x78c   : > { %v6530_v53 = vpack.c.bf16 %v4229_v52, %v4226_v50  ;;  %v6788_v37 = vpop.f32.mrb[164].mxu1 }
 0x78d   : > { %v6789_v57 = vpop.f32.mrb[165].mxu1 }
 0x78e   : > { %6622 = vst [vmem:[%s8358_s22 + $0x80] sm:$0xff] %v6530_v53   ;;  %v6790_v59 = vadd.f32 %v6789_v57, %v6788_v37  ;;  %v6791_v2 = vpop.f32.mrb[166].mxu1 }
 0x78f   : > { %v6792_v60 = vpop.f32.mrb[167].mxu1 }
 0x790   : > { %v6793_v61 = vadd.f32 %v6792_v60, %v6791_v2  ;;  %v4234_v42 = vadd.f32 %v6790_v59, %v9233_v27 }
 0x792   : > { %v4237_v0 = vadd.f32 %v6793_v61, %v9233_v27 }
 0x794   : > { %v6535_v1 = vpack.c.bf16 %v4237_v0, %v4234_v42  ;;  %v6794_v4 = vpop.f32.mrb[168].mxu1  ;;  %v4703_v0 = vld [vmem:[%s9514_s4] sm:$0x3] }
 0x795   : > { %v6795_v5 = vpop.f32.mrb[169].mxu1 }
 0x796   : > { %6623 = vst [vmem:[%s8358_s22 + $0x88] sm:$0xff] %v6535_v1   ;;  %v6796_v51 = vadd.f32 %v6795_v5, %v6794_v4  ;;  %v6797_v55 = vpop.f32.mrb[170].mxu1  ;;  %v9323_v5 = vrot.slane %v4703_v0, %v7877_v16 }
 0x797   : > { %v6798_v54 = vpop.f32.mrb[171].mxu1 }
 0x798   : > { %v6799_v40 = vadd.f32 %v6798_v54, %v6797_v55  ;;  %v4242_v11 = vadd.f32 %v6796_v51, %v9233_v27  ;;  %v9328_v54 = vrot.slane %v4703_v0, %v7882_v18 }
 0x79a   : > { %v4245_v19 = vadd.f32 %v6799_v40, %v9233_v27 }
 0x79c   : > { %v6540_v12 = vpack.c.bf16 %v4245_v19, %v4242_v11  ;;  %v6800_v13 = vpop.f32.mrb[172].mxu1 }
 0x79d   : > { %v6801_v3 = vpop.f32.mrb[173].mxu1 }
 0x79e   : > { %6624 = vst [vmem:[%s8358_s22 + $0x90] sm:$0xff] %v6540_v12   ;;  %v6802_v7 = vadd.f32 %v6801_v3, %v6800_v13  ;;  %v6803_v21 = vpop.f32.mrb[174].mxu1 }
 0x79f   : > { %v6804_v8 = vpop.f32.mrb[175].mxu1 }
 0x7a0   : > { %v6805_v22 = vadd.f32 %v6804_v8, %v6803_v21  ;;  %v4250_v23 = vadd.f32 %v6802_v7, %v9233_v27 }
 0x7a2   : > { %v4253_v25 = vadd.f32 %v6805_v22, %v9233_v27 }
 0x7a4   : > { %v6545_v26 = vpack.c.bf16 %v4253_v25, %v4250_v23  ;;  %v6806_v28 = vpop.f32.mrb[176].mxu1 }
 0x7a5   : > { %v6807_v29 = vpop.f32.mrb[177].mxu1 }
 0x7a6   : > { %6625 = vst [vmem:[%s8358_s22 + $0x98] sm:$0xff] %v6545_v26   ;;  %v6808_v30 = vadd.f32 %v6807_v29, %v6806_v28  ;;  %v6809_v31 = vpop.f32.mrb[178].mxu1 }
 0x7a7   : > { %v6810_v32 = vpop.f32.mrb[179].mxu1 }
 0x7a8   : > { %v6811_v33 = vadd.f32 %v6810_v32, %v6809_v31  ;;  %v4258_v34 = vadd.f32 %v6808_v30, %v9233_v27 }
 0x7aa   : > { %v4261_v35 = vadd.f32 %v6811_v33, %v9233_v27 }
 0x7ac   : > { %v6550_v36 = vpack.c.bf16 %v4261_v35, %v4258_v34  ;;  %v6812_v20 = vpop.f32.mrb[180].mxu1 }
 0x7ad   : > { %v6813_v15 = vpop.f32.mrb[181].mxu1 }
 0x7ae   : > { %6626 = vst [vmem:[%s8358_s22 + $0xa0] sm:$0xff] %v6550_v36   ;;  %v6814_v17 = vadd.f32 %v6813_v15, %v6812_v20  ;;  %v6815_v38 = vpop.f32.mrb[182].mxu1 }
 0x7af   : > { %v6816_v14 = vpop.f32.mrb[183].mxu1 }
 0x7b0   : > { %v6817_v39 = vadd.f32 %v6816_v14, %v6815_v38  ;;  %v4266_v6 = vadd.f32 %v6814_v17, %v9233_v27 }
 0x7b2   : > { %v4269_v41 = vadd.f32 %v6817_v39, %v9233_v27 }
 0x7b4   : > { %v6555_v24 = vpack.c.bf16 %v4269_v41, %v4266_v6  ;;  %v6818_v43 = vpop.f32.mrb[184].mxu1 }
 0x7b5   : > { %v6819_v44 = vpop.f32.mrb[185].mxu1 }
 0x7b6   : > { %6627 = vst [vmem:[%s8358_s22 + $0xa8] sm:$0xff] %v6555_v24   ;;  %v6820_v45 = vadd.f32 %v6819_v44, %v6818_v43  ;;  %v6821_v50 = vpop.f32.mrb[186].mxu1 }
 0x7b7   : > { %v6822_v52 = vpop.f32.mrb[187].mxu1 }
 0x7b8   : > { %v6823_v53 = vadd.f32 %v6822_v52, %v6821_v50  ;;  %v4274_v37 = vadd.f32 %v6820_v45, %v9233_v27 }
 0x7ba   : > { %v4277_v57 = vadd.f32 %v6823_v53, %v9233_v27 }
 0x7bc   : > { %v6560_v59 = vpack.c.bf16 %v4277_v57, %v4274_v37  ;;  %v6824_v2 = vpop.f32.mrb[188].mxu1 }
 0x7bd   : > { %v6825_v60 = vpop.f32.mrb[189].mxu1 }
 0x7be   : > { %6628 = vst [vmem:[%s8358_s22 + $0xb0] sm:$0xff] %v6560_v59   ;;  %v6826_v61 = vadd.f32 %v6825_v60, %v6824_v2  ;;  %v6827_v42 = vpop.f32.mrb[190].mxu1 }
 0x7bf   : > { %v6828_v1 = vpop.f32.mrb[191].mxu1 }
 0x7c0   : > { %v6829_v4 = vadd.f32 %v6828_v1, %v6827_v42  ;;  %v4282_v51 = vadd.f32 %v6826_v61, %v9233_v27 }
 0x7c2   : > { %v4285_v55 = vadd.f32 %v6829_v4, %v9233_v27 }
 0x7c4   : > { %v6565_v40 = vpack.c.bf16 %v4285_v55, %v4282_v51  ;;  %v4909_v11 = vpop.f32.mrb[192].mxu1 }
 0x7c5   : > { %v4910_v19 = vadd.f32 %v4909_v11, %v9323_v5  ;;  %v4911_v12 = vpop.f32.mrb[193].mxu1 }
 0x7c6   : > { %6629 = vst [vmem:[%s8358_s22 + $0xb8] sm:$0xff] %v6565_v40   ;;  %v4912_v13 = vadd.f32 %v4911_v12, %v9328_v54  ;;  %v4913_v3 = vpop.f32.mrb[194].mxu1 }
 0x7c7   : > { %v4914_v7 = vadd.f32 %v4913_v3, %v9323_v5  ;;  %v4915_v21 = vpop.f32.mrb[195].mxu1  ;;  %v4988_v22 = vmax.f32 %v4910_v19, 0.0 }
 0x7c8   : > { %v4916_v8 = vadd.f32 %v4915_v21, %v9328_v54  ;;  %v4989_v27 = vmax.f32 %v4912_v13, 0.0 }
 0x7c9   : > { %v4990_v23 = vmax.f32 %v4914_v7, 0.0 }
 0x7ca   : > { %v4991_v25 = vmax.f32 %v4916_v8, 0.0 }
 0x7cb   : > { %v5020_v26 = vpack.c.bf16 %v4990_v23, %v4988_v22 }
 0x7cc   : > { %v5021_v28 = vpack.c.bf16 %v4991_v25, %v4989_v27  ;;  %v4919_v29 = vpop.f32.mrb[196].mxu1 }
 0x7cd   : > { %v4920_v30 = vadd.f32 %v4919_v29, %v9323_v5  ;;  %v4921_v31 = vpop.f32.mrb[197].mxu1 }
 0x7ce   : > { %v4922_v32 = vadd.f32 %v4921_v31, %v9328_v54  ;;  %v4923_v33 = vpop.f32.mrb[198].mxu1  ;;  %5272 = vmatprep.mubr.bf16.mxu0 %v5021_v28 }
 0x7cf   : > { %v4924_v34 = vadd.f32 %v4923_v33, %v9323_v5  ;;  %v4925_v35 = vpop.f32.mrb[199].mxu1  ;;  %5273 = vmatmul.mubr.bf16.vlgmr.msra.gmra.mrb[224].mxu0 %v5020_v26  ;;  %v4992_v20 = vmax.f32 %v4920_v30, 0.0 }
 0x7d0   : > { %v4926_v36 = vadd.f32 %v4925_v35, %v9328_v54  ;;  %6831 = vmatpush3.bf16.msra.mxu0 %v9241_v48  ;;  %v4993_v17 = vmax.f32 %v4922_v32, 0.0 }
 0x7d1   : > { %v4994_v15 = vmax.f32 %v4924_v34, 0.0  ;;  %6832 = vmatprep.subr.bf16.mxu0 %v9246_v49 }
 0x7d2   : > { %v4995_v38 = vmax.f32 %v4926_v36, 0.0 }
 0x7d3   : > { %v5022_v14 = vpack.c.bf16 %v4994_v15, %v4992_v20 }
 0x7d4   : > { %v5023_v39 = vpack.c.bf16 %v4995_v38, %v4993_v17  ;;  %v4929_v6 = vpop.f32.mrb[200].mxu1  ;;  %6833 = vmatpush3.bf16.msra.mxu0 %v9255_v56 }
 0x7d5   : > { %v4930_v41 = vadd.f32 %v4929_v6, %v9323_v5  ;;  %v4931_v24 = vpop.f32.mrb[201].mxu1  ;;  %6834 = vmatprep.subr.bf16.mxu0 %v9260_v58 }
 0x7d6   : > { %v4932_v43 = vadd.f32 %v4931_v24, %v9328_v54  ;;  %v4933_v44 = vpop.f32.mrb[202].mxu1  ;;  %5282 = vmatprep.mubr.bf16.mxu0 %v5023_v39 }
 0x7d7   : > { %v4934_v48 = vadd.f32 %v4933_v44, %v9323_v5  ;;  %v4935_v45 = vpop.f32.mrb[203].mxu1  ;;  %5283 = vmatmul.mubr.bf16.gmra.mrb[228].mxu0 %v5022_v14  ;;  %v4996_v50 = vmax.f32 %v4930_v41, 0.0 }
 0x7d8   : > { %v4936_v49 = vadd.f32 %v4935_v45, %v9328_v54  ;;  %6835 = vmatpush3.bf16.msra.mxu0 %v9268_v62  ;;  %v4997_v56 = vmax.f32 %v4932_v43, 0.0 }
 0x7d9   : > { %v4998_v52 = vmax.f32 %v4934_v48, 0.0  ;;  %6836 = vmatprep.subr.bf16.mxu0 %v9273_v63 }
 0x7da   : > { %v4999_v53 = vmax.f32 %v4936_v49, 0.0 }
 0x7db   : > { %v5024_v37 = vpack.c.bf16 %v4998_v52, %v4996_v50 }
 0x7dc   : > { %v5025_v58 = vpack.c.bf16 %v4999_v53, %v4997_v56  ;;  %v4939_v57 = vpop.f32.mrb[204].mxu1  ;;  %6837 = vmatpush3.bf16.msra.mxu0 %v9282_v46 }
 0x7dd   : > { %v4940_v59 = vadd.f32 %v4939_v57, %v9323_v5  ;;  %v4941_v2 = vpop.f32.mrb[205].mxu1  ;;  %6838 = vmatprep.subr.bf16.mxu0 %v9287_v47 }
 0x7de   : > { %v4942_v60 = vadd.f32 %v4941_v2, %v9328_v54  ;;  %v4943_v61 = vpop.f32.mrb[206].mxu1  ;;  %5292 = vmatprep.mubr.bf16.mxu0 %v5025_v58 }
 0x7df   : > { %v4944_v62 = vadd.f32 %v4943_v61, %v9323_v5  ;;  %v4945_v42 = vpop.f32.mrb[207].mxu1  ;;  %5293 = vmatmul.mubr.bf16.gmra.mrb[232].mxu0 %v5024_v37  ;;  %v5000_v0 = vmax.f32 %v4940_v59, 0.0 }
 0x7e0   : > { %v4946_v63 = vadd.f32 %v4945_v42, %v9328_v54  ;;  %6839 = vmatpush3.bf16.msra.mxu0 %v9295_v9  ;;  %v5001_v46 = vmax.f32 %v4942_v60, 0.0 }
 0x7e1   : > { %v5002_v1 = vmax.f32 %v4944_v62, 0.0  ;;  %6840 = vmatprep.subr.bf16.mxu0 %v9300_v10 }
 0x7e2   : > { %v5003_v4 = vmax.f32 %v4946_v63, 0.0 }
 0x7e3   : > { %v5026_v51 = vpack.c.bf16 %v5002_v1, %v5000_v0 }
 0x7e4   : > { %v5027_v47 = vpack.c.bf16 %v5003_v4, %v5001_v46  ;;  %v4949_v55 = vpop.f32.mrb[208].mxu1  ;;  %v7466_v46 = vld [vmem:[%s9517_s7 + $0x28] sm:$0xff]   ;;  %v7469_v4 = vld [vmem:[%s9517_s7 + $0x78] sm:$0xff]  }
 0x7e5   : > { %v4950_v40 = vadd.f32 %v4949_v55, %v9323_v5  ;;  %v4951_v11 = vpop.f32.mrb[209].mxu1  ;;  %6841 = vmatpush3.bf16.msra.mxu0 %v7466_v46  ;;  %6907 = vmatpush3.bf16.msra.mxu1 %v7466_v46 }
 0x7e6   : > { %v4952_v19 = vadd.f32 %v4951_v11, %v9328_v54  ;;  %v4953_v12 = vpop.f32.mrb[210].mxu1  ;;  %5302 = vmatprep.mubr.bf16.mxu0 %v5027_v47  ;;  %v5068_v47 = vld [vmem:[%s9516_s6] sm:$0x3] }
 0x7e7   : > { %v4954_v13 = vadd.f32 %v4953_v12, %v9323_v5  ;;  %v4955_v3 = vpop.f32.mrb[211].mxu1  ;;  %5303 = vmatmul.mubr.bf16.gmra.mrb[236].mxu0 %v5026_v51  ;;  %v5004_v7 = vmax.f32 %v4950_v40, 0.0  ;;  %v7470_v51 = vld [vmem:[%s9517_s7 + $0x38] sm:$0xff]   ;;  %v9392_v55 = vrot.slane %v5068_v47, %v7877_v16  ;;  %v9395_v40 = vrot.slane %v5068_v47, %v7882_v18 }
 0x7e8   : > { %v4956_v9 = vadd.f32 %v4955_v3, %v9328_v54  ;;  %v5005_v21 = vmax.f32 %v4952_v19, 0.0 }
 0x7e9   : > { %v5006_v10 = vmax.f32 %v4954_v13, 0.0 }
 0x7ea   : > { %v5007_v8 = vmax.f32 %v4956_v9, 0.0 }
 0x7eb   : > { %v5028_v22 = vpack.c.bf16 %v5006_v10, %v5004_v7 }
 0x7ec   : > { %v5029_v23 = vpack.c.bf16 %v5007_v8, %v5005_v21  ;;  %v4959_v27 = vpop.f32.mrb[212].mxu1 }
 0x7ed   : > { %v4960_v25 = vadd.f32 %v4959_v27, %v9323_v5  ;;  %v4961_v26 = vpop.f32.mrb[213].mxu1 }
 0x7ee   : > { %v4962_v28 = vadd.f32 %v4961_v26, %v9328_v54  ;;  %v4963_v29 = vpop.f32.mrb[214].mxu1  ;;  %5312 = vmatprep.mubr.bf16.mxu0 %v5029_v23 }
 0x7ef   : > { %v4964_v30 = vadd.f32 %v4963_v29, %v9323_v5  ;;  %v4965_v31 = vpop.f32.mrb[215].mxu1  ;;  %5313 = vmatmul.mubr.bf16.gmra.mrb[240].mxu0 %v5028_v22  ;;  %v5008_v33 = vmax.f32 %v4960_v25, 0.0 }
 0x7f0   : > { %v4966_v32 = vadd.f32 %v4965_v31, %v9328_v54  ;;  %v5009_v35 = vmax.f32 %v4962_v28, 0.0 }
 0x7f1   : > { %v5010_v34 = vmax.f32 %v4964_v30, 0.0 }
 0x7f2   : > { %v5011_v36 = vmax.f32 %v4966_v32, 0.0 }
 0x7f3   : > { %v5030_v20 = vpack.c.bf16 %v5010_v34, %v5008_v33 }
 0x7f4   : > { %v5031_v15 = vpack.c.bf16 %v5011_v36, %v5009_v35  ;;  %v4969_v17 = vpop.f32.mrb[216].mxu1 }
 0x7f5   : > { %v4970_v38 = vadd.f32 %v4969_v17, %v9323_v5  ;;  %v4971_v14 = vpop.f32.mrb[217].mxu1 }
 0x7f6   : > { %v4972_v39 = vadd.f32 %v4971_v14, %v9328_v54  ;;  %v4973_v6 = vpop.f32.mrb[218].mxu1  ;;  %5322 = vmatprep.mubr.bf16.mxu0 %v5031_v15 }
 0x7f7   : > { %v4974_v41 = vadd.f32 %v4973_v6, %v9323_v5  ;;  %v4975_v24 = vpop.f32.mrb[219].mxu1  ;;  %5323 = vmatmul.mubr.bf16.gmra.mrb[244].mxu0 %v5030_v20  ;;  %v5012_v44 = vmax.f32 %v4970_v38, 0.0 }
 0x7f8   : > { %v4976_v43 = vadd.f32 %v4975_v24, %v9328_v54  ;;  %v5013_v45 = vmax.f32 %v4972_v39, 0.0 }
 0x7f9   : > { %v5014_v48 = vmax.f32 %v4974_v41, 0.0 }
 0x7fa   : > { %v5015_v49 = vmax.f32 %v4976_v43, 0.0 }
 0x7fb   : > { %v5032_v50 = vpack.c.bf16 %v5014_v48, %v5012_v44 }
 0x7fc   : > { %v5033_v52 = vpack.c.bf16 %v5015_v49, %v5013_v45  ;;  %v4979_v56 = vpop.f32.mrb[220].mxu1 }
 0x7fd   : > { %v4980_v53 = vadd.f32 %v4979_v56, %v9323_v5  ;;  %v4981_v37 = vpop.f32.mrb[221].mxu1 }
 0x7fe   : > { %v4982_v58 = vadd.f32 %v4981_v37, %v9328_v54  ;;  %v4983_v57 = vpop.f32.mrb[222].mxu1  ;;  %5332 = vmatprep.mubr.bf16.mxu0 %v5033_v52 }
 0x7ff   : > { %v4984_v59 = vadd.f32 %v4983_v57, %v9323_v5  ;;  %v4985_v2 = vpop.f32.mrb[223].mxu1  ;;  %5333 = vmatmul.mubr.bf16.gmra.mrb[248].mxu0 %v5032_v50  ;;  %v5016_v61 = vmax.f32 %v4980_v53, 0.0  ;;  %v7467_v5 = vld [vmem:[%s9517_s7 + $0x70] sm:$0xff]  }
 0x800   : > { %v4986_v60 = vadd.f32 %v4985_v2, %v9328_v54  ;;  %v5017_v42 = vmax.f32 %v4982_v58, 0.0  ;;  %v7468_v54 = vld [vmem:[%s9517_s7 + $0x30] sm:$0xff]   ;;  %6842 = vmatprep.subr.bf16.mxu0 %v7467_v5  ;;  %6900 = vmatprep.subr.bf16.mxu1 %v7467_v5 }
 0x801   : > { %v5018_v62 = vmax.f32 %v4984_v59, 0.0  ;;  %6843 = vmatpush3.bf16.msra.mxu0 %v7468_v54  ;;  %6908 = vmatpush3.bf16.msra.mxu1 %v7468_v54 }
 0x802   : > { %v5019_v63 = vmax.f32 %v4986_v60, 0.0  ;;  %6844 = vmatprep.subr.bf16.mxu0 %v7469_v4  ;;  %6901 = vmatprep.subr.bf16.mxu1 %v7469_v4 }
 0x803   : > { %v5034_v0 = vpack.c.bf16 %v5018_v62, %v5016_v61 }
 0x804   : > { %v5035_v1 = vpack.c.bf16 %v5019_v63, %v5017_v42 }
 0x805   : > { %6845 = vmatpush3.bf16.msra.mxu0 %v7470_v51  ;;  %6909 = vmatpush3.bf16.msra.mxu1 %v7470_v51 }
 0x806   : > { %5342 = vmatprep.mubr.bf16.mxu0 %v5035_v1 }
 0x807   : > { %5343 = vmatmul.mubr.bf16.gmra.mrb[252].mxu0 %v5034_v0 }
 0x8a2   : > { %v5274_v11 = vpop.f32.mrb[224].mxu0 }
 0x8a3   : > { %v5275_v19 = vadd.f32 %v5274_v11, %v9392_v55  ;;  %v5276_v12 = vpop.f32.mrb[225].mxu0 }
 0x8a4   : > { %v5277_v13 = vadd.f32 %v5276_v12, %v9395_v40  ;;  %v5278_v3 = vpop.f32.mrb[226].mxu0 }
 0x8a5   : > { %v5279_v9 = vadd.f32 %v5278_v3, %v9392_v55  ;;  %v5280_v7 = vpop.f32.mrb[227].mxu0  ;;  %v5353_v21 = vmax.f32 %v5275_v19, 0.0 }
 0x8a6   : > { %v5281_v10 = vadd.f32 %v5280_v7, %v9395_v40  ;;  %v5354_v22 = vmax.f32 %v5277_v13, 0.0 }
 0x8a7   : > { %v5355_v8 = vmax.f32 %v5279_v9, 0.0 }
 0x8a8   : > { %v5356_v16 = vmax.f32 %v5281_v10, 0.0 }
 0x8a9   : > { %v5385_v23 = vpack.c.bf16 %v5355_v8, %v5353_v21 }
 0x8aa   : > { %v5386_v27 = vpack.c.bf16 %v5356_v16, %v5354_v22  ;;  %v5284_v18 = vpop.f32.mrb[228].mxu0 }
 0x8ab   : > { %v5285_v25 = vadd.f32 %v5284_v18, %v9392_v55  ;;  %v5286_v26 = vpop.f32.mrb[229].mxu0 }
 0x8ac   : > { %v5287_v28 = vadd.f32 %v5286_v26, %v9395_v40  ;;  %v5288_v29 = vpop.f32.mrb[230].mxu0  ;;  %5568 = vmatprep.mubr.bf16.mxu0 %v5386_v27 }
 0x8ad   : > { %v5289_v30 = vadd.f32 %v5288_v29, %v9392_v55  ;;  %v5290_v31 = vpop.f32.mrb[231].mxu0  ;;  %5569 = vmatmul.mubr.bf16.vlgmr.msra.gmra.mrb[0].mxu0 %v5385_v23  ;;  %v5357_v33 = vmax.f32 %v5285_v25, 0.0 }
 0x8ae   : > { %v5291_v32 = vadd.f32 %v5290_v31, %v9395_v40  ;;  %v5358_v35 = vmax.f32 %v5287_v28, 0.0 }
 0x8af   : > { %v5359_v34 = vmax.f32 %v5289_v30, 0.0 }
 0x8b0   : > { %v5360_v36 = vmax.f32 %v5291_v32, 0.0 }
 0x8b1   : > { %v5387_v20 = vpack.c.bf16 %v5359_v34, %v5357_v33 }
 0x8b2   : > { %v5388_v15 = vpack.c.bf16 %v5360_v36, %v5358_v35  ;;  %v5294_v17 = vpop.f32.mrb[232].mxu0 }
 0x8b3   : > { %v5295_v38 = vadd.f32 %v5294_v17, %v9392_v55  ;;  %v5296_v14 = vpop.f32.mrb[233].mxu0 }
 0x8b4   : > { %v5297_v39 = vadd.f32 %v5296_v14, %v9395_v40  ;;  %v5298_v6 = vpop.f32.mrb[234].mxu0  ;;  %5576 = vmatprep.mubr.bf16.mxu0 %v5388_v15 }
 0x8b5   : > { %v5299_v41 = vadd.f32 %v5298_v6, %v9392_v55  ;;  %v5300_v24 = vpop.f32.mrb[235].mxu0  ;;  %5577 = vmatmul.mubr.bf16.gmra.mrb[4].mxu0 %v5387_v20  ;;  %v5361_v44 = vmax.f32 %v5295_v38, 0.0 }
 0x8b6   : > { %v5301_v43 = vadd.f32 %v5300_v24, %v9395_v40  ;;  %v5362_v45 = vmax.f32 %v5297_v39, 0.0 }
 0x8b7   : > { %v5363_v48 = vmax.f32 %v5299_v41, 0.0 }
 0x8b8   : > { %v5364_v49 = vmax.f32 %v5301_v43, 0.0 }
 0x8b9   : > { %v5389_v50 = vpack.c.bf16 %v5363_v48, %v5361_v44 }
 0x8ba   : > { %v5390_v52 = vpack.c.bf16 %v5364_v49, %v5362_v45  ;;  %v5304_v56 = vpop.f32.mrb[236].mxu0 }
 0x8bb   : > { %v5305_v53 = vadd.f32 %v5304_v56, %v9392_v55  ;;  %v5306_v37 = vpop.f32.mrb[237].mxu0 }
 0x8bc   : > { %v5307_v58 = vadd.f32 %v5306_v37, %v9395_v40  ;;  %v5308_v57 = vpop.f32.mrb[238].mxu0  ;;  %5584 = vmatprep.mubr.bf16.mxu0 %v5390_v52 }
 0x8bd   : > { %v5309_v59 = vadd.f32 %v5308_v57, %v9392_v55  ;;  %v5310_v2 = vpop.f32.mrb[239].mxu0  ;;  %5585 = vmatmul.mubr.bf16.gmra.mrb[8].mxu0 %v5389_v50  ;;  %v5365_v61 = vmax.f32 %v5305_v53, 0.0 }
 0x8be   : > { %v5311_v60 = vadd.f32 %v5310_v2, %v9395_v40  ;;  %v5366_v42 = vmax.f32 %v5307_v58, 0.0 }
 0x8bf   : > { %v5367_v62 = vmax.f32 %v5309_v59, 0.0 }
 0x8c0   : > { %v5368_v63 = vmax.f32 %v5311_v60, 0.0 }
 0x8c1   : > { %v5391_v0 = vpack.c.bf16 %v5367_v62, %v5365_v61 }
 0x8c2   : > { %v5392_v1 = vpack.c.bf16 %v5368_v63, %v5366_v42  ;;  %v5314_v46 = vpop.f32.mrb[240].mxu0 }
 0x8c3   : > { %v5315_v5 = vadd.f32 %v5314_v46, %v9392_v55  ;;  %v5316_v54 = vpop.f32.mrb[241].mxu0 }
 0x8c4   : > { %v5317_v4 = vadd.f32 %v5316_v54, %v9395_v40  ;;  %v5318_v51 = vpop.f32.mrb[242].mxu0  ;;  %5592 = vmatprep.mubr.bf16.mxu1 %v5392_v1 }
 0x8c5   : > { %v5319_v47 = vadd.f32 %v5318_v51, %v9392_v55  ;;  %v5320_v11 = vpop.f32.mrb[243].mxu0  ;;  %5593 = vmatmul.mubr.bf16.vlgmr.msra.gmra.mrb[224].mxu1 %v5391_v0  ;;  %v5369_v12 = vmax.f32 %v5315_v5, 0.0 }
 0x8c6   : > { %v5321_v19 = vadd.f32 %v5320_v11, %v9395_v40  ;;  %v5370_v3 = vmax.f32 %v5317_v4, 0.0 }
 0x8c7   : > { %v5371_v13 = vmax.f32 %v5319_v47, 0.0 }
 0x8c8   : > { %v5372_v9 = vmax.f32 %v5321_v19, 0.0 }
 0x8c9   : > { %v5393_v7 = vpack.c.bf16 %v5371_v13, %v5369_v12 }
 0x8ca   : > { %v5394_v10 = vpack.c.bf16 %v5372_v9, %v5370_v3  ;;  %v5324_v21 = vpop.f32.mrb[244].mxu0 }
 0x8cb   : > { %v5325_v8 = vadd.f32 %v5324_v21, %v9392_v55  ;;  %v5326_v22 = vpop.f32.mrb[245].mxu0 }
 0x8cc   : > { %v5327_v16 = vadd.f32 %v5326_v22, %v9395_v40  ;;  %v5328_v23 = vpop.f32.mrb[246].mxu0  ;;  %5600 = vmatprep.mubr.bf16.mxu1 %v5394_v10 }
 0x8cd   : > { %v5329_v27 = vadd.f32 %v5328_v23, %v9392_v55  ;;  %v5330_v18 = vpop.f32.mrb[247].mxu0  ;;  %5601 = vmatmul.mubr.bf16.gmra.mrb[228].mxu1 %v5393_v7  ;;  %v5373_v26 = vmax.f32 %v5325_v8, 0.0 }
 0x8ce   : > { %v5331_v25 = vadd.f32 %v5330_v18, %v9395_v40  ;;  %v5374_v29 = vmax.f32 %v5327_v16, 0.0 }
 0x8cf   : > { %v5375_v28 = vmax.f32 %v5329_v27, 0.0 }
 0x8d0   : > { %v5376_v30 = vmax.f32 %v5331_v25, 0.0 }
 0x8d1   : > { %v5395_v31 = vpack.c.bf16 %v5375_v28, %v5373_v26 }
 0x8d2   : > { %v5396_v32 = vpack.c.bf16 %v5376_v30, %v5374_v29  ;;  %v5334_v33 = vpop.f32.mrb[248].mxu0 }
 0x8d3   : > { %v5335_v34 = vadd.f32 %v5334_v33, %v9392_v55  ;;  %v5336_v35 = vpop.f32.mrb[249].mxu0 }
 0x8d4   : > { %v5337_v36 = vadd.f32 %v5336_v35, %v9395_v40  ;;  %v5338_v20 = vpop.f32.mrb[250].mxu0  ;;  %5608 = vmatprep.mubr.bf16.mxu1 %v5396_v32 }
 0x8d5   : > { %v5339_v15 = vadd.f32 %v5338_v20, %v9392_v55  ;;  %v5340_v17 = vpop.f32.mrb[251].mxu0  ;;  %5609 = vmatmul.mubr.bf16.gmra.mrb[232].mxu1 %v5395_v31  ;;  %v5377_v14 = vmax.f32 %v5335_v34, 0.0 }
 0x8d6   : > { %v5341_v38 = vadd.f32 %v5340_v17, %v9395_v40  ;;  %v5378_v6 = vmax.f32 %v5337_v36, 0.0 }
 0x8d7   : > { %v5379_v39 = vmax.f32 %v5339_v15, 0.0 }
 0x8d8   : > { %v5380_v41 = vmax.f32 %v5341_v38, 0.0 }
 0x8d9   : > { %v5397_v24 = vpack.c.bf16 %v5379_v39, %v5377_v14 }
 0x8da   : > { %v5398_v43 = vpack.c.bf16 %v5380_v41, %v5378_v6  ;;  %v5344_v44 = vpop.f32.mrb[252].mxu0 }
 0x8db   : > { %v5345_v48 = vadd.f32 %v5344_v44, %v9392_v55  ;;  %v5346_v45 = vpop.f32.mrb[253].mxu0 }
 0x8dc   : > { %v5347_v49 = vadd.f32 %v5346_v45, %v9395_v40  ;;  %v5348_v50 = vpop.f32.mrb[254].mxu0  ;;  %5616 = vmatprep.mubr.bf16.mxu1 %v5398_v43 }
 0x8dd   : > { %v5349_v52 = vadd.f32 %v5348_v50, %v9392_v55  ;;  %v5350_v56 = vpop.f32.mrb[255].mxu0  ;;  %5617 = vmatmul.mubr.bf16.gmra.mrb[236].mxu1 %v5397_v24  ;;  %v5381_v37 = vmax.f32 %v5345_v48, 0.0  ;;  %v9432_v55 = vld [vmem:[%s9518_s8] ss:$0 sm:$0xff] }
 0x8de   : > { %v5351_v53 = vadd.f32 %v5350_v56, %v9395_v40  ;;  %v5382_v57 = vmax.f32 %v5347_v49, 0.0 }
 0x8df   : > { %v5383_v58 = vmax.f32 %v5349_v52, 0.0 }
 0x8e0   : > { %v5384_v59 = vmax.f32 %v5351_v53, 0.0 }
 0x8e1   : > { %v5399_v2 = vpack.c.bf16 %v5383_v58, %v5381_v37 }
 0x8e2   : > { %v5400_v60 = vpack.c.bf16 %v5384_v59, %v5382_v57 }
 0x8e4   : > { %5624 = vmatprep.mubr.bf16.mxu1 %v5400_v60 }
 0x8e5   : > { %5625 = vmatmul.mubr.bf16.gmra.mrb[240].mxu1 %v5399_v2 }
 0x980   : > { %v6846_v61 = vpop.f32.mrb[0].mxu0 }
 0x981   : > { %v6847_v62 = vpop.f32.mrb[1].mxu0 }
 0x982   : > { %v6848_v42 = vadd.f32 %v6847_v62, %v6846_v61  ;;  %v6849_v63 = vpop.f32.mrb[2].mxu0 }
 0x983   : > { %v6850_v0 = vpop.f32.mrb[3].mxu0 }
 0x984   : > { %v6851_v40 = vadd.f32 %v6850_v0, %v6849_v63  ;;  %v5571_v1 = vadd.f32 %v6848_v42, %v9432_v55 }
 0x986   : > { %v5574_v46 = vadd.f32 %v6851_v40, %v9432_v55 }
 0x988   : > { %v6570_v5 = vpack.c.bf16 %v5574_v46, %v5571_v1  ;;  %v6852_v54 = vpop.f32.mrb[4].mxu0 }
 0x989   : > { %v6853_v4 = vpop.f32.mrb[5].mxu0 }
 0x98a   : > { %6630 = vst [vmem:[%s8358_s22 + $0xc0] sm:$0xff] %v6570_v5   ;;  %v6854_v51 = vadd.f32 %v6853_v4, %v6852_v54  ;;  %v6855_v47 = vpop.f32.mrb[6].mxu0 }
 0x98b   : > { %v6856_v11 = vpop.f32.mrb[7].mxu0 }
 0x98c   : > { %v6857_v19 = vadd.f32 %v6856_v11, %v6855_v47  ;;  %v5579_v12 = vadd.f32 %v6854_v51, %v9432_v55 }
 0x98e   : > { %v5582_v13 = vadd.f32 %v6857_v19, %v9432_v55 }
 0x990   : > { %v6575_v3 = vpack.c.bf16 %v5582_v13, %v5579_v12  ;;  %v6858_v9 = vpop.f32.mrb[8].mxu0 }
 0x991   : > { %v6859_v7 = vpop.f32.mrb[9].mxu0 }
 0x992   : > { %6631 = vst [vmem:[%s8358_s22 + $0xc8] sm:$0xff] %v6575_v3   ;;  %v6860_v10 = vadd.f32 %v6859_v7, %v6858_v9  ;;  %v6861_v21 = vpop.f32.mrb[10].mxu0 }
 0x993   : > { %v6862_v8 = vpop.f32.mrb[11].mxu0 }
 0x994   : > { %v6863_v22 = vadd.f32 %v6862_v8, %v6861_v21  ;;  %v5587_v16 = vadd.f32 %v6860_v10, %v9432_v55 }
 0x996   : > { %v5590_v23 = vadd.f32 %v6863_v22, %v9432_v55 }
 0x998   : > { %v6580_v27 = vpack.c.bf16 %v5590_v23, %v5587_v16  ;;  %v6864_v18 = vpop.f32.mrb[224].mxu1 }
 0x999   : > { %v6865_v25 = vpop.f32.mrb[225].mxu1 }
 0x99a   : > { %6632 = vst [vmem:[%s8358_s22 + $0xd0] sm:$0xff] %v6580_v27   ;;  %v6866_v26 = vadd.f32 %v6865_v25, %v6864_v18  ;;  %v6867_v28 = vpop.f32.mrb[226].mxu1 }
 0x99b   : > { %v6868_v29 = vpop.f32.mrb[227].mxu1 }
 0x99c   : > { %v6869_v30 = vadd.f32 %v6868_v29, %v6867_v28  ;;  %v5595_v31 = vadd.f32 %v6866_v26, %v9432_v55 }
 0x99e   : > { %v5598_v32 = vadd.f32 %v6869_v30, %v9432_v55 }
 0x9a0   : > { %v6585_v33 = vpack.c.bf16 %v5598_v32, %v5595_v31  ;;  %v6870_v34 = vpop.f32.mrb[228].mxu1 }
 0x9a1   : > { %v6871_v35 = vpop.f32.mrb[229].mxu1 }
 0x9a2   : > { %6633 = vst [vmem:[%s8358_s22 + $0xd8] sm:$0xff] %v6585_v33   ;;  %v6872_v36 = vadd.f32 %v6871_v35, %v6870_v34  ;;  %v6873_v20 = vpop.f32.mrb[230].mxu1 }
 0x9a3   : > { %v6874_v15 = vpop.f32.mrb[231].mxu1 }
 0x9a4   : > { %v6875_v17 = vadd.f32 %v6874_v15, %v6873_v20  ;;  %v5603_v38 = vadd.f32 %v6872_v36, %v9432_v55 }
 0x9a6   : > { %v5606_v14 = vadd.f32 %v6875_v17, %v9432_v55 }
 0x9a8   : > { %v6590_v39 = vpack.c.bf16 %v5606_v14, %v5603_v38  ;;  %v6876_v6 = vpop.f32.mrb[232].mxu1 }
 0x9a9   : > { %v6877_v41 = vpop.f32.mrb[233].mxu1 }
 0x9aa   : > { %6634 = vst [vmem:[%s8358_s22 + $0xe0] sm:$0xff] %v6590_v39   ;;  %v6878_v24 = vadd.f32 %v6877_v41, %v6876_v6  ;;  %v6879_v43 = vpop.f32.mrb[234].mxu1 }
 0x9ab   : > { %v6880_v44 = vpop.f32.mrb[235].mxu1 }
 0x9ac   : > { %v6881_v48 = vadd.f32 %v6880_v44, %v6879_v43  ;;  %v5611_v45 = vadd.f32 %v6878_v24, %v9432_v55 }
 0x9ae   : > { %v5614_v49 = vadd.f32 %v6881_v48, %v9432_v55 }
 0x9b0   : > { %v6595_v50 = vpack.c.bf16 %v5614_v49, %v5611_v45  ;;  %v6882_v52 = vpop.f32.mrb[236].mxu1 }
 0x9b1   : > { %v6883_v56 = vpop.f32.mrb[237].mxu1 }
 0x9b2   : > { %6635 = vst [vmem:[%s8358_s22 + $0xe8] sm:$0xff] %v6595_v50   ;;  %v6884_v53 = vadd.f32 %v6883_v56, %v6882_v52  ;;  %v6885_v37 = vpop.f32.mrb[238].mxu1 }
 0x9b3   : > { %v6886_v58 = vpop.f32.mrb[239].mxu1 }
 0x9b4   : > { %v6887_v57 = vadd.f32 %v6886_v58, %v6885_v37  ;;  %v5619_v59 = vadd.f32 %v6884_v53, %v9432_v55 }
 0x9b6   : > { %v5622_v2 = vadd.f32 %v6887_v57, %v9432_v55 }
 0x9b8   : > { %v6600_v60 = vpack.c.bf16 %v5622_v2, %v5619_v59  ;;  %v6888_v61 = vpop.f32.mrb[240].mxu1 }
 0x9b9   : > { %v6889_v62 = vpop.f32.mrb[241].mxu1 }
 0x9ba   : > { %6636 = vst [vmem:[%s8358_s22 + $0xf0] sm:$0xff] %v6600_v60   ;;  %v6890_v42 = vadd.f32 %v6889_v62, %v6888_v61  ;;  %v6891_v63 = vpop.f32.mrb[242].mxu1 }
 0x9bb   : > { %v6892_v0 = vpop.f32.mrb[243].mxu1 }
 0x9bc   : > { %v6893_v40 = vadd.f32 %v6892_v0, %v6891_v63  ;;  %v5627_v1 = vadd.f32 %v6890_v42, %v9432_v55 }
 0x9be   : > { %v5630_v46 = vadd.f32 %v6893_v40, %v9432_v55 }
 0x9c0   : > { %v6605_v5 = vpack.c.bf16 %v5630_v46, %v5627_v1 }
 0x9c2   : > { %6637 = vst [vmem:[%s8358_s22 + $0xf8] sm:$0xff] %v6605_v5  }
 0x9c3   : > { %7490 = shalt.err (!%p7487_p3)
}
 0x9c4   : > { %s7491_s16 = scalar_lea.hbm %s9462_s27, 4096  ;;  %s7495_s17 = scalar_lea.hbm %s9519_s9, 8192 }
 0x9c5   : > { %p7492_p4 = scmp.ne.s32.totalorder %s9462_s27, %s7491_s16  ;;  %p7496_p9 = scmp.lt.u32.totalorder %s9462_s27, %s9519_s9 }
 0x9c6   : > { %p7497_p10 = scmp.lt.u32.totalorder %s7495_s17, %s7491_s16  ;;  %p7499_p12 = scmp.lt.u32.totalorder %s7491_s16, %s9462_s27 }
 0x9c7   : > { %p7493_p7 = pnand %p7492_p4, %p7633_p5 }
 0x9c8   : > { %p7498_p11 = por %p7497_p10, %p7496_p9 }
 0x9c9   : > { %p7494_p8 = pneg %p7493_p7 }
 0x9ca   : > { %p7500_p13 = por %p7499_p12, %p7498_p11 }
 0x9cc   : > { %p7501_p0 = pnand %p7500_p13, %p7494_p8 }
 0x9ce   : > { %7504 = shalt.err (!%p7501_p0)
}
 0x9cf   : > { %s7543_s26 = smov 64   ;;  %s7544_s13 = smov 4  }
 0x9d0   : > { %6910 = dma.vmem_to_hbm [thread:$0]  (%p7633_p5), %s9464_s18, 4096, %s9462_s27, %s9469_s28, %s7543_s26, %s7543_s26, %s7544_s13  }
 0x9d1 PF: > { %p6916_p1 = scmp.ge.s32.totalorder %s7539_s12, 2  ;;  %s5743_s29 = sand.u32 1, %s7527_s30  }
 0x9d2   : > { %s5744_s23 = scalar_lea.sflag [#allocation3], %s5743_s29 }
 0x9d3   : > { %p6913_p2 = pnand %p6916_p1, %p7637_p6 }
 0x9d5   : > { %7522 = dma.done.wait (!%p6913_p2), %s5744_s23, 4096  }
 0x9d6   : > { %7524 = vsyncadd (!%p6913_p2), %s5744_s23, 4294963200  ;;  %s9523_s24 = sld [smem:[#allocation5_spill]]  ;;  %p19_p3 = scmp.ge.s32.totalorder %s7620_s15, 4  }
 0x9d7   : > { %s9524_s30 = smov %s7531_s10  ;;  %s9525_s10 = smov %s7535_s11 }
 0x9d8   : > { %s9527_s12 = smov %s7620_s15  ;;  %21 = sbr.rel (!%p19_p3) target bundleno = 3 (0x3), region = 97 }
 0x9dc   : > { %s9526_s11 = smov %s9523_s24 }
 0x9df   :  { %5749 = vsyncpa [#allocation3], 1 }
 0x9e0   :  { %5751 = vsyncpa [#allocation3 + $0x1], 1 }

// kernel: tpu_custom_call.1
= control target key start
LH: loop header
LB: loop body
LE: loop exit
PB: predicated region body
PF: predicated region fallthrough
CT: control target
= control target key end

     0   :  { %14 = vsyncpa [#allocation3], 0  ;;  %s9510_s0 = inlined_call_operand.vmem [shape: bf16[1024,64], index: 0, kind: input, shape index: {}]   ;;  %s9511_s1 = inlined_call_operand.vmem [shape: bf16[64,256], index: 1, kind: input, shape index: {}]   ;;  %s9512_s2 = inlined_call_operand.vmem [shape: f32[1,256], index: 2, kind: input, shape index: {}]   ;;  %s9513_s3 = inlined_call_operand.vmem [shape: bf16[256,256], index: 3, kind: input, shape index: {}]   ;;  %s9514_s4 = inlined_call_operand.vmem [shape: f32[1,256], index: 4, kind: input, shape index: {}]   ;;  %s9515_s5 = inlined_call_operand.vmem [shape: bf16[256,256], index: 5, kind: input, shape index: {}]   ;;  %s9516_s6 = inlined_call_operand.vmem [shape: f32[1,256], index: 6, kind: input, shape index: {}]   ;;  %s9517_s7 = inlined_call_operand.vmem [shape: bf16[256,128], index: 7, kind: input, shape index: {}]   ;;  %s9518_s8 = inlined_call_operand.vmem [shape: f32[1,128], index: 8, kind: input, shape index: {}]   ;;  %s9519_s9 = inlined_call_operand.hbm [shape: bf16[1024,128], index: 9, kind: output, shape index: {}]  }
   0x1   :  { %16 = vsyncpa [#allocation3 + $0x1], 0  ;;  %s7595_s30 = smov 0   ;;  %s7597_s10 = smov 0  }
   0x2   :  { %s7599_s11 = smov 0   ;;  %s7601_s12 = smov 0  }
   0x3 LB: > { %s7616_s13 = sadd.s32 4294967295, %s7539_s12   ;;  %s5790_s14 = sadd.s32 4294967294, %s7539_s12   ;;  %s7539_s12 = sphi %s7601_s12, %s9527_s12   ;;  %s7535_s11 = sphi %s7599_s11, %s9526_s11   ;;  %s7531_s10 = sphi %s7597_s10, %s9525_s10   ;;  %s7527_s30 = sphi %s7595_s30, %s9524_s30  }
   0x4   : > { %s7620_s15 = sadd.s32 1, %s7539_s12   ;;  %s223_s16 = sadd.s32 1, %s7535_s11 }
   0x5   : > { %s220_s17 = ssub.s32 %s7539_s12, %s7620_s15  ;;  %p233_p0 = scmp.ne.s32.totalorder %s7535_s11, %s7531_s10 }
   0x6   : > { %p221_p1 = scmp.eq.s32.totalorder %s220_s17, 0  ;;  %p234_p2 = scmp.eq.s32.totalorder %s7616_s13, 1 }
   0x7   : > { %p239_p3 = scmp.ne.s32.totalorder %s7531_s10, %s7527_s30  ;;  %p240_p4 = scmp.eq.s32.totalorder %s5790_s14, 1 }
   0x8   : > { %s7631_s18 = scalar_select %p221_p1, %s7535_s11, %s223_s16  }
   0x9   : > { %p7633_p5 = por %p234_p2, %p233_p0  ;;  %p7637_p6 = por %p240_p4, %p239_p3 }
   0xa   : > { %9520 = sst [smem:[#allocation5_spill]] %s7631_s18  ;;  %p5793_p7 = scmp.ge.s32.totalorder %s7539_s12, 1 }
   0xb   : > { %p291_p8 = scmp.lt.s32.totalorder %s7539_s12, 3 }
   0xd   : > { %p292_p9 = pnand %p5793_p7, %p291_p8 }
   0xe   : > { %v6952_v0 = vld [vmem:[%s9511_s1 + $0x4] ss:$8 sps:$4 sm:$0xff] (!%p292_p9)   ;;  %s5795_s23 = sshll.u32 (!%p292_p9), %s7616_s13, 6  ;;  %v6954_v1 = vld [vmem:[%s9511_s1] ss:$8 sps:$4 sm:$0xff] (!%p292_p9)   ;;  %v7541_v2 = vmov (!%p292_p9), 0  }
   0xf   : > { %295 = sbr.rel (%p292_p9) target bundleno = 2513 (0x9d1), region = 56  ;;  %508 = vmatprep.mubr.bf16.mxu0 (!%p292_p9), %v7541_v2  ;;  %p328_p10 = scmp.lt.s32.totalorder (!%p292_p9), %s5795_s23, 127  ;;  %476 = vmatprep.subr.bf16.mxu0 (!%p292_p9), %v6952_v0  ;;  %v6955_v3 = vld [vmem:[%s9511_s1 + $0x14] ss:$8 sps:$4 sm:$0xff] (!%p292_p9)   ;;  %v6957_v4 = vld [vmem:[%s9511_s1 + $0x10] ss:$8 sps:$4 sm:$0xff] (!%p292_p9)  }
  0x10   : > { %477 = vmatpush1.bf16.msra.mxu0 (!%p292_p9), %v6954_v1  ;;  %v6958_v5 = vld [vmem:[%s9511_s1 + $0x24] ss:$8 sps:$4 sm:$0xff] (!%p292_p9)   ;;  %v6974_v7 = vld [vmem:[%s9513_s3] ss:$8 sps:$4 sm:$0xff] (!%p292_p9)   ;;  %v6961_v9 = vld [vmem:[%s9511_s1 + $0x34] ss:$8 sps:$4 sm:$0xff] (!%p292_p9)  }
  0x11   : > { %478 = vmatprep.subr.bf16.mxu0 (!%p292_p9), %v6955_v3  ;;  %v6972_v6 = vld [vmem:[%s9513_s3 + $0x4] ss:$8 sps:$4 sm:$0xff] (!%p292_p9)   ;;  %v6960_v8 = vld [vmem:[%s9511_s1 + $0x20] ss:$8 sps:$4 sm:$0xff] (!%p292_p9)   ;;  %v6963_v10 = vld [vmem:[%s9511_s1 + $0x30] ss:$8 sps:$4 sm:$0xff] (!%p292_p9)  }
  0x12   : > { %841 = vmatprep.subr.bf16.mxu1 (!%p292_p9), %v6972_v6  ;;  %vm451_vm0 = vcmask (!%p292_p9), 523264   ;;  %v6975_v12 = vld [vmem:[%s9513_s3 + $0x14] ss:$8 sps:$4 sm:$0xff] (!%p292_p9)   ;;  %v6977_v13 = vld [vmem:[%s9513_s3 + $0x10] ss:$8 sps:$4 sm:$0xff] (!%p292_p9)   ;;  %s324_s16 = sand.u32 (!%p292_p9), 1, %s7531_s10  }
  0x13   : > { %842 = vmatpush1.bf16.msra.mxu1 (!%p292_p9), %v6974_v7  ;;  %v6978_v14 = vld [vmem:[%s9513_s3 + $0x24] ss:$8 sps:$4 sm:$0xff] (!%p292_p9)   ;;  %v6980_v15 = vld [vmem:[%s9513_s3 + $0x20] ss:$8 sps:$4 sm:$0xff] (!%p292_p9)   ;;  %v6981_v16 = vld [vmem:[%s9513_s3 + $0x34] ss:$8 sps:$4 sm:$0xff] (!%p292_p9)  }
  0x14   : > { %479 = vmatpush1.bf16.msra.mxu0 (!%p292_p9), %v6957_v4  ;;  %843 = vmatprep.subr.bf16.mxu1 (!%p292_p9), %v6975_v12  ;;  %v6983_v18 = vld [vmem:[%s9513_s3 + $0x30] ss:$8 sps:$4 sm:$0xff] (!%p292_p9)   ;;  %v6984_v19 = vld [vmem:[%s9513_s3 + $0x44] ss:$8 sps:$4 sm:$0xff] (!%p292_p9)   ;;  %v6986_v20 = vld [vmem:[%s9513_s3 + $0x40] ss:$8 sps:$4 sm:$0xff] (!%p292_p9)  }
  0x15   : > { %480 = vmatprep.subr.bf16.mxu0 (!%p292_p9), %v6958_v5  ;;  %v6987_v21 = vld [vmem:[%s9513_s3 + $0x54] ss:$8 sps:$4 sm:$0xff] (!%p292_p9)   ;;  %v6989_v23 = vld [vmem:[%s9513_s3 + $0x50] ss:$8 sps:$4 sm:$0xff] (!%p292_p9)   ;;  %v6990_v24 = vld [vmem:[%s9513_s3 + $0x64] ss:$8 sps:$4 sm:$0xff] (!%p292_p9)  }
  0x16   : > { %s9529_s23 = smov (!%p328_p10, %s5795_s23), 127  ;;  %v6992_v25 = vld [vmem:[%s9513_s3 + $0x60] ss:$8 sps:$4 sm:$0xff]   ;;  %v6993_v26 = vld [vmem:[%s9513_s3 + $0x74] ss:$8 sps:$4 sm:$0xff]   ;;  %s5794_s18 = sshll.u32 %s324_s16, 8 }
  0x17   : > { %s5796_s17 = sshll.u32 %s9529_s23, 2  ;;  %844 = vmatpush1.bf16.msra.mxu1 %v6977_v13  ;;  %v6995_v28 = vld [vmem:[%s9513_s3 + $0x70] ss:$8 sps:$4 sm:$0xff]   ;;  %v6996_v29 = vld [vmem:[%s9513_s3 + $0x84] ss:$8 sps:$4 sm:$0xff]   ;;  %s8358_s22 = scalar_lea.vmem [#allocation2], %s5794_s18 }
  0x18   : > { %s7663_s24 = scalar_lea.vmem %s9510_s0, %s5796_s17  ;;  %481 = vmatpush1.bf16.msra.mxu0 %v6960_v8  ;;  %845 = vmatprep.subr.bf16.mxu1 %v6978_v14  ;;  %v6998_v30 = vld [vmem:[%s9513_s3 + $0x80] ss:$8 sps:$4 sm:$0xff]   ;;  %v6999_v31 = vld [vmem:[%s9513_s3 + $0x94] ss:$8 sps:$4 sm:$0xff]   ;;  %v7001_v33 = vld [vmem:[%s9513_s3 + $0x90] ss:$8 sps:$4 sm:$0xff]  }
  0x19   : > { %482 = vmatprep.subr.bf16.mxu0 %v6961_v9  ;;  %v6964_v11 = vld [vmem:[%s7663_s24] sm:$0xff]   ;;  %v6965_v17 = vld [vmem:[%s7663_s24 + $0x8] sm:$0xff]   ;;  %v6966_v22 = vld [vmem:[%s7663_s24 + $0x10] sm:$0xff]   ;;  %s6446_s21 = sshll.u32 %s7616_s13, 12  ;;  %s5728_s18 = sshll.u32 %s8358_s22, 4  ;;  %s9464_s18 = int_to_ptr.vmem [resolvable:$true] %s5728_s18 }
  0x1a   : > { %v6967_v27 = vld [vmem:[%s7663_s24 + $0x18] sm:$0xff]   ;;  %v6968_v32 = vld [vmem:[%s7663_s24 + $0x20] sm:$0xff]   ;;  %v6969_v37 = vld [vmem:[%s7663_s24 + $0x28] sm:$0xff]   ;;  %s9462_s27 = scalar_lea.hbm %s9519_s9, %s6446_s21  ;;  %s9469_s28 = scalar_lea.sflag [#allocation3], %s324_s16 }
  0x1b   : > { %846 = vmatpush1.bf16.msra.mxu1 %v6980_v15  ;;  %v7002_v34 = vld [vmem:[%s9513_s3 + $0xa4] ss:$8 sps:$4 sm:$0xff]   ;;  %v7004_v35 = vld [vmem:[%s9513_s3 + $0xa0] ss:$8 sps:$4 sm:$0xff]   ;;  %v7005_v36 = vld [vmem:[%s9513_s3 + $0xb4] ss:$8 sps:$4 sm:$0xff]  }
  0x1c   : > { %483 = vmatpush1.bf16.msra.mxu0 %v6963_v10  ;;  %847 = vmatprep.subr.bf16.mxu1 %v6981_v16  ;;  %v7007_v38 = vld [vmem:[%s9513_s3 + $0xb0] ss:$8 sps:$4 sm:$0xff]   ;;  %v7008_v39 = vld [vmem:[%s9513_s3 + $0xc4] ss:$8 sps:$4 sm:$0xff]   ;;  %v7010_v40 = vld [vmem:[%s9513_s3 + $0xc0] ss:$8 sps:$4 sm:$0xff]  }
  0x1d   : > { %v7011_v41 = vld [vmem:[%s9513_s3 + $0xd4] ss:$8 sps:$4 sm:$0xff]   ;;  %v7013_v44 = vld [vmem:[%s9513_s3 + $0xd0] ss:$8 sps:$4 sm:$0xff]   ;;  %v7014_v45 = vld [vmem:[%s9513_s3 + $0xe4] ss:$8 sps:$4 sm:$0xff]  }
  0x1e   : > { %v6970_v42 = vld [vmem:[%s7663_s24 + $0x30] sm:$0xff]   ;;  %v6971_v43 = vld [vmem:[%s7663_s24 + $0x38] sm:$0xff]   ;;  %v7016_v46 = vld [vmem:[%s9513_s3 + $0xe0] ss:$8 sps:$4 sm:$0xff]   ;;  %s7477_s13 = scalar_lea.vmem %s9464_s18, 4096  ;;  %s7542_s29 = smov [#allocation2]  }
  0x1f   : > { %5813 = vmatmul.mubr.msk.bf16.vlgmr.msra.gmra.mrb[0].mxu0 %vm451_vm0, %v6964_v11  ;;  %848 = vmatpush1.bf16.msra.mxu1 %v6983_v18  ;;  %v7017_v47 = vld [vmem:[%s9513_s3 + $0xf4] ss:$8 sps:$4 sm:$0xff]   ;;  %v7019_v48 = vld [vmem:[%s9513_s3 + $0xf0] ss:$8 sps:$4 sm:$0xff]   ;;  %v7020_v49 = vld [vmem:[%s9515_s5] ss:$8 sps:$4 sm:$0xff]   ;;  %v361_v11 = vlaneseq  ;;  %p7478_p11 = scmp.ne.s32.totalorder %s9464_s18, %s7477_s13 }
  0x20   : > { %518 = vmatprep.mubr.bf16.mxu0 %v7541_v2  ;;  %849 = vmatprep.subr.bf16.mxu1 %v6984_v19  ;;  %v7022_v50 = vld [vmem:[%s9515_s5 + $0x4] ss:$8 sps:$4 sm:$0xff]   ;;  %v7025_v51 = vld [vmem:[%s9515_s5 + $0x14] ss:$8 sps:$4 sm:$0xff]   ;;  %v7023_v52 = vld [vmem:[%s9515_s5 + $0x10] ss:$8 sps:$4 sm:$0xff]  }
  0x21   : > { %1206 = vmatprep.subr.bf16.mxu0 %v7022_v50  ;;  %v7028_v53 = vld [vmem:[%s9515_s5 + $0x24] ss:$8 sps:$4 sm:$0xff]   ;;  %v7026_v54 = vld [vmem:[%s9515_s5 + $0x20] ss:$8 sps:$4 sm:$0xff]   ;;  %v7031_v55 = vld [vmem:[%s9515_s5 + $0x34] ss:$8 sps:$4 sm:$0xff]   ;;  %p7479_p12 = pnand %p7478_p11, %p7633_p5 }
  0x22   : > { %1207 = vmatpush1.bf16.msra.mxu0 %v7020_v49  ;;  %v7029_v56 = vld [vmem:[%s9515_s5 + $0x30] ss:$8 sps:$4 sm:$0xff]   ;;  %v7034_v57 = vld [vmem:[%s9515_s5 + $0x44] ss:$8 sps:$4 sm:$0xff]   ;;  %v7032_v58 = vld [vmem:[%s9515_s5 + $0x40] ss:$8 sps:$4 sm:$0xff]  }
  0x23   : > { %850 = vmatpush1.bf16.msra.mxu1 %v6986_v20  ;;  %1208 = vmatprep.subr.bf16.mxu0 %v7025_v51  ;;  %v7037_v59 = vld [vmem:[%s9515_s5 + $0x54] ss:$8 sps:$4 sm:$0xff]   ;;  %v7035_v60 = vld [vmem:[%s9515_s5 + $0x50] ss:$8 sps:$4 sm:$0xff]   ;;  %v7040_v61 = vld [vmem:[%s9515_s5 + $0x64] ss:$8 sps:$4 sm:$0xff]   ;;  %p7480_p13 = pneg %p7479_p12 }
  0x24   : > { %851 = vmatprep.subr.bf16.mxu1 %v6987_v21  ;;  %v7038_v62 = vld [vmem:[%s9515_s5 + $0x60] ss:$8 sps:$4 sm:$0xff]   ;;  %v7043_v63 = vld [vmem:[%s9515_s5 + $0x74] ss:$8 sps:$4 sm:$0xff]   ;;  %v7041_v0 = vld [vmem:[%s9515_s5 + $0x70] ss:$8 sps:$4 sm:$0xff]  }
  0x25   : > { %v7046_v1 = vld [vmem:[%s9515_s5 + $0x84] ss:$8 sps:$4 sm:$0xff]   ;;  %v7044_v3 = vld [vmem:[%s9515_s5 + $0x80] ss:$8 sps:$4 sm:$0xff]   ;;  %v7049_v4 = vld [vmem:[%s9515_s5 + $0x94] ss:$8 sps:$4 sm:$0xff]  }
  0x26   : > { %1209 = vmatpush1.bf16.msra.mxu0 %v7023_v52  ;;  %v7047_v5 = vld [vmem:[%s9515_s5 + $0x90] ss:$8 sps:$4 sm:$0xff]   ;;  %v7052_v6 = vld [vmem:[%s9515_s5 + $0xa4] ss:$8 sps:$4 sm:$0xff]   ;;  %v7050_v7 = vld [vmem:[%s9515_s5 + $0xa0] ss:$8 sps:$4 sm:$0xff]  }
  0x27   : > { %5814 = vmatmul.mubr.msk.bf16.gmra.mrb[4].mxu0 %vm451_vm0, %v6965_v17  ;;  %852 = vmatpush1.bf16.msra.mxu1 %v6989_v23  ;;  %v7055_v8 = vld [vmem:[%s9515_s5 + $0xb4] ss:$8 sps:$4 sm:$0xff]   ;;  %v7053_v9 = vld [vmem:[%s9515_s5 + $0xb0] ss:$8 sps:$4 sm:$0xff]   ;;  %v7058_v10 = vld [vmem:[%s9515_s5 + $0xc4] ss:$8 sps:$4 sm:$0xff]  }
  0x28   : > { %528 = vmatprep.mubr.bf16.mxu0 %v7541_v2  ;;  %853 = vmatprep.subr.bf16.mxu1 %v6990_v24  ;;  %v7056_v12 = vld [vmem:[%s9515_s5 + $0xc0] ss:$8 sps:$4 sm:$0xff]   ;;  %v7061_v13 = vld [vmem:[%s9515_s5 + $0xd4] ss:$8 sps:$4 sm:$0xff]   ;;  %v362_v14 = vshrl.u32 %v361_v11, 7  ;;  %s7481_s23 = sshll.u32 %s7542_s29, 4  ;;  %s7482_s23 = int_to_ptr.vmem [resolvable:$false] %s7481_s23 }
  0x29   : > { %1210 = vmatprep.subr.bf16.mxu0 %v7028_v53  ;;  %v7059_v15 = vld [vmem:[%s9515_s5 + $0xd0] ss:$8 sps:$4 sm:$0xff]   ;;  %v359_v17 = vld [vmem:[%s9512_s2] sm:$0x3]  ;;  %p7484_p0 = scmp.lt.s32.totalorder %s9464_s18, %s7482_s23 }
  0x2a   : > { %1211 = vmatpush1.bf16.msra.mxu0 %v7026_v54  ;;  %v7877_v16 = vsub.s32 0, %v362_v14  ;;  %v7882_v18 = vsub.s32 1, %v362_v14 }
  0x2b   : > { %854 = vmatpush1.bf16.msra.mxu1 %v6992_v25  ;;  %1212 = vmatprep.subr.bf16.mxu0 %v7031_v55 }
  0x2c   : > { %855 = vmatprep.subr.bf16.mxu1 %v6993_v26  ;;  %v7885_v19 = vrot.slane %v359_v17, %v7877_v16  ;;  %v7888_v20 = vrot.slane %v359_v17, %v7882_v18 }
  0x2e   : > { %1213 = vmatpush1.bf16.msra.mxu0 %v7029_v56 }
  0x2f   : > { %5815 = vmatmul.mubr.msk.bf16.gmra.mrb[8].mxu0 %vm451_vm0, %v6966_v22  ;;  %856 = vmatpush1.bf16.msra.mxu1 %v6995_v28 }
  0x30   : > { %538 = vmatprep.mubr.bf16.mxu0 %v7541_v2  ;;  %857 = vmatprep.subr.bf16.mxu1 %v6996_v29 }
  0x31   : > { %1214 = vmatprep.subr.bf16.mxu0 %v7034_v57 }
  0x32   : > { %1215 = vmatpush1.bf16.msra.mxu0 %v7032_v58 }
  0x33   : > { %858 = vmatpush1.bf16.msra.mxu1 %v6998_v30  ;;  %1216 = vmatprep.subr.bf16.mxu0 %v7037_v59 }
  0x34   : > { %859 = vmatprep.subr.bf16.mxu1 %v6999_v31 }
  0x36   : > { %1217 = vmatpush1.bf16.msra.mxu0 %v7035_v60 }
  0x37   : > { %5816 = vmatmul.mubr.msk.bf16.gmra.mrb[12].mxu0 %vm451_vm0, %v6967_v27  ;;  %860 = vmatpush1.bf16.msra.mxu1 %v7001_v33 }
  0x38   : > { %548 = vmatprep.mubr.bf16.mxu0 %v7541_v2  ;;  %861 = vmatprep.subr.bf16.mxu1 %v7002_v34 }
  0x39   : > { %1218 = vmatprep.subr.bf16.mxu0 %v7040_v61 }
  0x3a   : > { %1219 = vmatpush1.bf16.msra.mxu0 %v7038_v62 }
  0x3b   : > { %862 = vmatpush1.bf16.msra.mxu1 %v7004_v35  ;;  %1220 = vmatprep.subr.bf16.mxu0 %v7043_v63 }
  0x3c   : > { %863 = vmatprep.subr.bf16.mxu1 %v7005_v36 }
  0x3e   : > { %1221 = vmatpush1.bf16.msra.mxu0 %v7041_v0 }
  0x3f   : > { %5817 = vmatmul.mubr.msk.bf16.gmra.mrb[16].mxu0 %vm451_vm0, %v6968_v32  ;;  %864 = vmatpush1.bf16.msra.mxu1 %v7007_v38 }
  0x40   : > { %558 = vmatprep.mubr.bf16.mxu0 %v7541_v2  ;;  %865 = vmatprep.subr.bf16.mxu1 %v7008_v39 }
  0x41   : > { %1222 = vmatprep.subr.bf16.mxu0 %v7046_v1 }
  0x42   : > { %1223 = vmatpush1.bf16.msra.mxu0 %v7044_v3 }
  0x43   : > { %866 = vmatpush1.bf16.msra.mxu1 %v7010_v40  ;;  %1224 = vmatprep.subr.bf16.mxu0 %v7049_v4 }
  0x44   : > { %867 = vmatprep.subr.bf16.mxu1 %v7011_v41 }
  0x46   : > { %1225 = vmatpush1.bf16.msra.mxu0 %v7047_v5 }
  0x47   : > { %5818 = vmatmul.mubr.msk.bf16.gmra.mrb[20].mxu0 %vm451_vm0, %v6969_v37  ;;  %868 = vmatpush1.bf16.msra.mxu1 %v7013_v44 }
  0x48   : > { %568 = vmatprep.mubr.bf16.mxu0 %v7541_v2  ;;  %869 = vmatprep.subr.bf16.mxu1 %v7014_v45 }
  0x49   : > { %1226 = vmatprep.subr.bf16.mxu0 %v7052_v6 }
  0x4a   : > { %1227 = vmatpush1.bf16.msra.mxu0 %v7050_v7 }
  0x4b   : > { %870 = vmatpush1.bf16.msra.mxu1 %v7016_v46  ;;  %1228 = vmatprep.subr.bf16.mxu0 %v7055_v8 }
  0x4c   : > { %871 = vmatprep.subr.bf16.mxu1 %v7017_v47 }
  0x4e   : > { %1229 = vmatpush1.bf16.msra.mxu0 %v7053_v9 }
  0x4f   : > { %5819 = vmatmul.mubr.msk.bf16.gmra.mrb[24].mxu0 %vm451_vm0, %v6970_v42  ;;  %872 = vmatpush1.bf16.msra.mxu1 %v7019_v48 }
  0x50   : > { %578 = vmatprep.mubr.bf16.mxu0 %v7541_v2  ;;  %1230 = vmatprep.subr.bf16.mxu0 %v7058_v10 }
  0x52   : > { %1231 = vmatpush1.bf16.msra.mxu0 %v7056_v12 }
  0x53   : > { %1232 = vmatprep.subr.bf16.mxu0 %v7061_v13 }
  0x56   : > { %1233 = vmatpush1.bf16.msra.mxu0 %v7059_v15 }
  0x57   : > { %5820 = vmatmul.mubr.msk.bf16.gmra.mrb[28].mxu0 %vm451_vm0, %v6971_v43 }
  0xf2   : > { %v510_v21 = vpop.f32.mrb[0].mxu0 }
  0xf3   : > { %v511_v22 = vadd.f32 %v510_v21, %v7885_v19  ;;  %v512_v23 = vpop.f32.mrb[1].mxu0 }
  0xf4   : > { %v514_v24 = vpop.f32.mrb[2].mxu0  ;;  %v513_v25 = vadd.f32 %v512_v23, %v7888_v20 }
  0xf5   : > { %v515_v26 = vadd.f32 %v514_v24, %v7885_v19  ;;  %v516_v27 = vpop.f32.mrb[3].mxu0  ;;  %v589_v29 = vmax.f32 %v511_v22, 0.0 }
  0xf6   : > { %v517_v28 = vadd.f32 %v516_v27, %v7888_v20  ;;  %v590_v31 = vmax.f32 %v513_v25, 0.0 }
  0xf7   : > { %v591_v30 = vmax.f32 %v515_v26, 0.0 }
  0xf8   : > { %v592_v32 = vmax.f32 %v517_v28, 0.0 }
  0xf9   : > { %v621_v33 = vpack.c.bf16 %v591_v30, %v589_v29 }
  0xfa   : > { %v520_v34 = vpop.f32.mrb[4].mxu0  ;;  %v622_v35 = vpack.c.bf16 %v592_v32, %v590_v31 }
  0xfb   : > { %v521_v36 = vadd.f32 %v520_v34, %v7885_v19  ;;  %v522_v37 = vpop.f32.mrb[5].mxu0 }
  0xfc   : > { %v523_v38 = vadd.f32 %v522_v37, %v7888_v20  ;;  %v524_v39 = vpop.f32.mrb[6].mxu0  ;;  %873 = vmatprep.mubr.bf16.mxu1 %v622_v35 }
  0xfd   : > { %v525_v40 = vadd.f32 %v524_v39, %v7885_v19  ;;  %v526_v41 = vpop.f32.mrb[7].mxu0  ;;  %874 = vmatmul.mubr.bf16.vlgmr.msra.gmra.mrb[0].mxu1 %v621_v33  ;;  %v593_v43 = vmax.f32 %v521_v36, 0.0 }
  0xfe   : > { %v527_v42 = vadd.f32 %v526_v41, %v7888_v20  ;;  %v594_v45 = vmax.f32 %v523_v38, 0.0 }
  0xff   : > { %v595_v44 = vmax.f32 %v525_v40, 0.0 }
 0x100   : > { %v596_v46 = vmax.f32 %v527_v42, 0.0 }
 0x101   : > { %v623_v47 = vpack.c.bf16 %v595_v44, %v593_v43 }
 0x102   : > { %v530_v48 = vpop.f32.mrb[8].mxu0  ;;  %v624_v49 = vpack.c.bf16 %v596_v46, %v594_v45 }
 0x103   : > { %v531_v50 = vadd.f32 %v530_v48, %v7885_v19  ;;  %v532_v51 = vpop.f32.mrb[9].mxu0 }
 0x104   : > { %v533_v52 = vadd.f32 %v532_v51, %v7888_v20  ;;  %v534_v53 = vpop.f32.mrb[10].mxu0  ;;  %883 = vmatprep.mubr.bf16.mxu1 %v624_v49 }
 0x105   : > { %v535_v54 = vadd.f32 %v534_v53, %v7885_v19  ;;  %v536_v55 = vpop.f32.mrb[11].mxu0  ;;  %884 = vmatmul.mubr.bf16.gmra.mrb[4].mxu1 %v623_v47  ;;  %v597_v57 = vmax.f32 %v531_v50, 0.0 }
 0x106   : > { %v537_v56 = vadd.f32 %v536_v55, %v7888_v20  ;;  %v598_v59 = vmax.f32 %v533_v52, 0.0 }
 0x107   : > { %v599_v58 = vmax.f32 %v535_v54, 0.0 }
 0x108   : > { %v600_v60 = vmax.f32 %v537_v56, 0.0 }
 0x109   : > { %v625_v61 = vpack.c.bf16 %v599_v58, %v597_v57 }
 0x10a   : > { %v540_v62 = vpop.f32.mrb[12].mxu0  ;;  %v626_v63 = vpack.c.bf16 %v600_v60, %v598_v59 }
 0x10b   : > { %v541_v0 = vadd.f32 %v540_v62, %v7885_v19  ;;  %v542_v1 = vpop.f32.mrb[13].mxu0 }
 0x10c   : > { %v543_v3 = vadd.f32 %v542_v1, %v7888_v20  ;;  %v544_v4 = vpop.f32.mrb[14].mxu0  ;;  %893 = vmatprep.mubr.bf16.mxu1 %v626_v63 }
 0x10d   : > { %v545_v5 = vadd.f32 %v544_v4, %v7885_v19  ;;  %v546_v6 = vpop.f32.mrb[15].mxu0  ;;  %894 = vmatmul.mubr.bf16.gmra.mrb[8].mxu1 %v625_v61  ;;  %v601_v8 = vmax.f32 %v541_v0, 0.0 }
 0x10e   : > { %v547_v7 = vadd.f32 %v546_v6, %v7888_v20  ;;  %v602_v10 = vmax.f32 %v543_v3, 0.0 }
 0x10f   : > { %v603_v9 = vmax.f32 %v545_v5, 0.0 }
 0x110   : > { %v604_v11 = vmax.f32 %v547_v7, 0.0 }
 0x111   : > { %v627_v12 = vpack.c.bf16 %v603_v9, %v601_v8 }
 0x112   : > { %v628_v13 = vpack.c.bf16 %v604_v11, %v602_v10  ;;  %v550_v14 = vpop.f32.mrb[16].mxu0  ;;  %v7064_v11 = vld [vmem:[%s9515_s5 + $0xe4] ss:$8 sps:$4 sm:$0xff]  }
 0x113   : > { %v551_v15 = vadd.f32 %v550_v14, %v7885_v19  ;;  %v552_v17 = vpop.f32.mrb[17].mxu0  ;;  %1234 = vmatprep.subr.bf16.mxu0 %v7064_v11  ;;  %v669_v14 = vld [vmem:[%s9514_s4] sm:$0x3]  ;;  %v7068_v11 = vld [vmem:[%s9511_s1 + $0x30] ss:$8 sps:$4 sm:$0xff]  }
 0x114   : > { %v553_v21 = vadd.f32 %v552_v17, %v7888_v20  ;;  %v554_v22 = vpop.f32.mrb[18].mxu0  ;;  %903 = vmatprep.mubr.bf16.mxu1 %v628_v13  ;;  %v7471_v13 = vld [vmem:[%s9511_s1 + $0x4] ss:$8 sps:$4 sm:$0xff]   ;;  %v7944_v17 = vrot.slane %v669_v14, %v7882_v18 }
 0x115   : > { %v555_v23 = vadd.f32 %v554_v22, %v7885_v19  ;;  %v556_v24 = vpop.f32.mrb[19].mxu0  ;;  %904 = vmatmul.mubr.bf16.gmra.mrb[12].mxu1 %v627_v12  ;;  %v605_v26 = vmax.f32 %v551_v15, 0.0  ;;  %v7065_v12 = vld [vmem:[%s9515_s5 + $0xf0] ss:$8 sps:$4 sm:$0xff]   ;;  %v7941_v15 = vrot.slane %v669_v14, %v7877_v16  ;;  %v7090_v14 = vld [vmem:[%s9517_s7 + $0x28] sm:$0xff]  }
 0x116   : > { %v557_v25 = vadd.f32 %v556_v24, %v7888_v20  ;;  %v606_v28 = vmax.f32 %v553_v21, 0.0 }
 0x117   : > { %v607_v27 = vmax.f32 %v555_v23, 0.0 }
 0x118   : > { %v608_v29 = vmax.f32 %v557_v25, 0.0 }
 0x119   : > { %v629_v30 = vpack.c.bf16 %v607_v27, %v605_v26 }
 0x11a   : > { %v630_v31 = vpack.c.bf16 %v608_v29, %v606_v28  ;;  %v560_v32 = vpop.f32.mrb[20].mxu0  ;;  %v7079_v28 = vld [vmem:[%s9517_s7 + $0x40] sm:$0xff]  }
 0x11b   : > { %v561_v33 = vadd.f32 %v560_v32, %v7885_v19  ;;  %v562_v34 = vpop.f32.mrb[21].mxu0  ;;  %v7080_v29 = vld [vmem:[%s9517_s7] sm:$0xff]   ;;  %6638 = vmatprep.subr.bf16.mxu1 %v7079_v28 }
 0x11c   : > { %v563_v35 = vadd.f32 %v562_v34, %v7888_v20  ;;  %v564_v36 = vpop.f32.mrb[22].mxu0  ;;  %913 = vmatprep.mubr.bf16.mxu1 %v630_v31  ;;  %6639 = vmatpush3.bf16.msra.mxu1 %v7080_v29  ;;  %v7092_v29 = vld [vmem:[%s9517_s7 + $0x30] sm:$0xff]  }
 0x11d   : > { %v565_v37 = vadd.f32 %v564_v36, %v7885_v19  ;;  %v566_v38 = vpop.f32.mrb[23].mxu0  ;;  %914 = vmatmul.mubr.bf16.gmra.mrb[16].mxu1 %v629_v30  ;;  %v609_v40 = vmax.f32 %v561_v33, 0.0  ;;  %v7081_v30 = vld [vmem:[%s9517_s7 + $0x48] sm:$0xff]  }
 0x11e   : > { %v567_v39 = vadd.f32 %v566_v38, %v7888_v20  ;;  %v610_v42 = vmax.f32 %v563_v35, 0.0  ;;  %v7082_v36 = vld [vmem:[%s9517_s7 + $0x8] sm:$0xff]   ;;  %6640 = vmatprep.subr.bf16.mxu1 %v7081_v30  ;;  %v7083_v38 = vld [vmem:[%s9517_s7 + $0x50] sm:$0xff]  }
 0x11f   : > { %v611_v41 = vmax.f32 %v565_v37, 0.0 }
 0x120   : > { %v612_v43 = vmax.f32 %v567_v39, 0.0  ;;  %6641 = vmatpush3.bf16.msra.mxu1 %v7082_v36 }
 0x121   : > { %v631_v44 = vpack.c.bf16 %v611_v41, %v609_v40  ;;  %6642 = vmatprep.subr.bf16.mxu1 %v7083_v38 }
 0x122   : > { %v632_v45 = vpack.c.bf16 %v612_v43, %v610_v42  ;;  %v570_v46 = vpop.f32.mrb[24].mxu0 }
 0x123   : > { %v571_v47 = vadd.f32 %v570_v46, %v7885_v19  ;;  %v572_v48 = vpop.f32.mrb[25].mxu0 }
 0x124   : > { %v573_v49 = vadd.f32 %v572_v48, %v7888_v20  ;;  %v574_v50 = vpop.f32.mrb[26].mxu0  ;;  %923 = vmatprep.mubr.bf16.mxu1 %v632_v45  ;;  %v7084_v45 = vld [vmem:[%s9517_s7 + $0x10] sm:$0xff]   ;;  %v7085_v48 = vld [vmem:[%s9517_s7 + $0x58] sm:$0xff]  }
 0x125   : > { %v575_v51 = vadd.f32 %v574_v50, %v7885_v19  ;;  %v576_v52 = vpop.f32.mrb[27].mxu0  ;;  %924 = vmatmul.mubr.bf16.gmra.mrb[20].mxu1 %v631_v44  ;;  %v613_v54 = vmax.f32 %v571_v47, 0.0  ;;  %v7472_v50 = vld [vmem:[%s9511_s1] ss:$8 sps:$4 sm:$0xff]  }
 0x126   : > { %v577_v53 = vadd.f32 %v576_v52, %v7888_v20  ;;  %v614_v56 = vmax.f32 %v573_v49, 0.0  ;;  %6643 = vmatpush3.bf16.msra.mxu1 %v7084_v45 }
 0x127   : > { %v615_v55 = vmax.f32 %v575_v51, 0.0  ;;  %6644 = vmatprep.subr.bf16.mxu1 %v7085_v48 }
 0x128   : > { %v616_v57 = vmax.f32 %v577_v53, 0.0  ;;  %v7473_v53 = vld [vmem:[%s9511_s1 + $0x14] ss:$8 sps:$4 sm:$0xff]  }
 0x129   : > { %v633_v58 = vpack.c.bf16 %v615_v55, %v613_v54 }
 0x12a   : > { %v634_v59 = vpack.c.bf16 %v616_v57, %v614_v56  ;;  %v580_v60 = vpop.f32.mrb[28].mxu0  ;;  %v7086_v56 = vld [vmem:[%s9517_s7 + $0x18] sm:$0xff]  }
 0x12b   : > { %v581_v61 = vadd.f32 %v580_v60, %v7885_v19  ;;  %v582_v62 = vpop.f32.mrb[29].mxu0  ;;  %6645 = vmatpush3.bf16.msra.mxu1 %v7086_v56 }
 0x12c   : > { %v583_v63 = vadd.f32 %v582_v62, %v7888_v20  ;;  %v584_v0 = vpop.f32.mrb[30].mxu0  ;;  %933 = vmatprep.mubr.bf16.mxu1 %v634_v59 }
 0x12d   : > { %v585_v1 = vadd.f32 %v584_v0, %v7885_v19  ;;  %v586_v3 = vpop.f32.mrb[31].mxu0  ;;  %934 = vmatmul.mubr.bf16.gmra.mrb[24].mxu1 %v633_v58  ;;  %v617_v5 = vmax.f32 %v581_v61, 0.0  ;;  %v7062_v19 = vld [vmem:[%s9515_s5 + $0xe0] ss:$8 sps:$4 sm:$0xff]   ;;  %v7474_v61 = vld [vmem:[%s9511_s1 + $0x10] ss:$8 sps:$4 sm:$0xff]  }
 0x12e   : > { %v587_v4 = vadd.f32 %v586_v3, %v7888_v20  ;;  %v618_v7 = vmax.f32 %v583_v63, 0.0  ;;  %1235 = vmatpush1.bf16.msra.mxu0 %v7062_v19  ;;  %v7067_v20 = vld [vmem:[%s9515_s5 + $0xf4] ss:$8 sps:$4 sm:$0xff]   ;;  %v7087_v58 = vld [vmem:[%s9517_s7 + $0x60] sm:$0xff]  }
 0x12f   : > { %v619_v6 = vmax.f32 %v585_v1, 0.0  ;;  %1236 = vmatprep.subr.bf16.mxu0 %v7067_v20  ;;  %v7475_v0 = vld [vmem:[%s9511_s1 + $0x24] ss:$8 sps:$4 sm:$0xff]   ;;  %v7070_v1 = vld [vmem:[%s9511_s1 + $0x34] ss:$8 sps:$4 sm:$0xff]   ;;  %6646 = vmatprep.subr.bf16.mxu1 %v7087_v58 }
 0x130   : > { %v620_v8 = vmax.f32 %v587_v4, 0.0 }
 0x131   : > { %v635_v9 = vpack.c.bf16 %v619_v6, %v617_v5  ;;  %v7088_v5 = vld [vmem:[%s9517_s7 + $0x20] sm:$0xff]  }
 0x132   : > { %v636_v10 = vpack.c.bf16 %v620_v8, %v618_v7  ;;  %1237 = vmatpush1.bf16.msra.mxu0 %v7065_v12  ;;  %v7089_v8 = vld [vmem:[%s9517_s7 + $0x68] sm:$0xff]   ;;  %6647 = vmatpush3.bf16.msra.mxu1 %v7088_v5 }
 0x133   : > { %1820 = vmatprep.subr.bf16.mxu0 %v7471_v13  ;;  %6648 = vmatprep.subr.bf16.mxu1 %v7089_v8 }
 0x134   : > { %943 = vmatprep.mubr.bf16.mxu1 %v636_v10  ;;  %v7476_v10 = vld [vmem:[%s9511_s1 + $0x20] ss:$8 sps:$4 sm:$0xff]  }
 0x135   : > { %944 = vmatmul.mubr.bf16.gmra.mrb[28].mxu1 %v635_v9 }
 0x136   : > { %6649 = vmatpush3.bf16.msra.mxu1 %v7090_v14 }
 0x1d0   : > { %v875_v21 = vpop.f32.mrb[0].mxu1 }
 0x1d1   : > { %v876_v22 = vadd.f32 %v875_v21, %v7941_v15  ;;  %v877_v23 = vpop.f32.mrb[1].mxu1 }
 0x1d2   : > { %v878_v24 = vadd.f32 %v877_v23, %v7944_v17  ;;  %v879_v25 = vpop.f32.mrb[2].mxu1 }
 0x1d3   : > { %v880_v26 = vadd.f32 %v879_v25, %v7941_v15  ;;  %v881_v27 = vpop.f32.mrb[3].mxu1  ;;  %v954_v32 = vmax.f32 %v876_v22, 0.0  ;;  %v7091_v22 = vld [vmem:[%s9517_s7 + $0x70] sm:$0xff]  }
 0x1d4   : > { %v882_v31 = vadd.f32 %v881_v27, %v7944_v17  ;;  %v955_v34 = vmax.f32 %v878_v24, 0.0  ;;  %6650 = vmatprep.subr.bf16.mxu1 %v7091_v22 }
 0x1d5   : > { %v956_v33 = vmax.f32 %v880_v26, 0.0  ;;  %6651 = vmatpush3.bf16.msra.mxu1 %v7092_v29 }
 0x1d6   : > { %v957_v35 = vmax.f32 %v882_v31, 0.0 }
 0x1d7   : > { %v986_v37 = vpack.c.bf16 %v956_v33, %v954_v32 }
 0x1d8   : > { %v987_v39 = vpack.c.bf16 %v957_v35, %v955_v34  ;;  %v885_v40 = vpop.f32.mrb[4].mxu1 }
 0x1d9   : > { %v886_v41 = vadd.f32 %v885_v40, %v7941_v15  ;;  %v887_v42 = vpop.f32.mrb[5].mxu1 }
 0x1da   : > { %v888_v43 = vadd.f32 %v887_v42, %v7944_v17  ;;  %v889_v44 = vpop.f32.mrb[6].mxu1  ;;  %1238 = vmatprep.mubr.bf16.mxu0 %v987_v39 }
 0x1db   : > { %v890_v46 = vadd.f32 %v889_v44, %v7941_v15  ;;  %v891_v47 = vpop.f32.mrb[7].mxu1  ;;  %1239 = vmatmul.mubr.bf16.vlgmr.msra.gmra.mrb[32].mxu0 %v986_v37  ;;  %v958_v51 = vmax.f32 %v886_v41, 0.0 }
 0x1dc   : > { %v892_v49 = vadd.f32 %v891_v47, %v7944_v17  ;;  %1821 = vmatpush1.bf16.msra.mxu0 %v7472_v50  ;;  %v959_v54 = vmax.f32 %v888_v43, 0.0 }
 0x1dd   : > { %v960_v52 = vmax.f32 %v890_v46, 0.0  ;;  %1822 = vmatprep.subr.bf16.mxu0 %v7473_v53 }
 0x1de   : > { %v961_v55 = vmax.f32 %v892_v49, 0.0 }
 0x1df   : > { %v988_v57 = vpack.c.bf16 %v960_v52, %v958_v51 }
 0x1e0   : > { %v989_v59 = vpack.c.bf16 %v961_v55, %v959_v54  ;;  %v895_v60 = vpop.f32.mrb[8].mxu1  ;;  %1823 = vmatpush1.bf16.msra.mxu0 %v7474_v61 }
 0x1e1   : > { %v896_v62 = vadd.f32 %v895_v60, %v7941_v15  ;;  %v897_v63 = vpop.f32.mrb[9].mxu1  ;;  %1824 = vmatprep.subr.bf16.mxu0 %v7475_v0 }
 0x1e2   : > { %v898_v3 = vadd.f32 %v897_v63, %v7944_v17  ;;  %v899_v4 = vpop.f32.mrb[10].mxu1  ;;  %1248 = vmatprep.mubr.bf16.mxu0 %v989_v59 }
 0x1e3   : > { %v900_v6 = vadd.f32 %v899_v4, %v7941_v15  ;;  %v901_v7 = vpop.f32.mrb[11].mxu1  ;;  %1249 = vmatmul.mubr.bf16.gmra.mrb[36].mxu0 %v988_v57  ;;  %v962_v19 = vmax.f32 %v896_v62, 0.0 }
 0x1e4   : > { %v902_v9 = vadd.f32 %v901_v7, %v7944_v17  ;;  %1825 = vmatpush1.bf16.msra.mxu0 %v7476_v10  ;;  %v963_v12 = vmax.f32 %v898_v3, 0.0 }
 0x1e5   : > { %v964_v20 = vmax.f32 %v900_v6, 0.0  ;;  %1826 = vmatprep.subr.bf16.mxu0 %v7070_v1 }
 0x1e6   : > { %v965_v13 = vmax.f32 %v902_v9, 0.0 }
 0x1e7   : > { %v990_v21 = vpack.c.bf16 %v964_v20, %v962_v19 }
 0x1e8   : > { %v991_v23 = vpack.c.bf16 %v965_v13, %v963_v12  ;;  %v905_v24 = vpop.f32.mrb[12].mxu1  ;;  %1827 = vmatpush1.bf16.msra.mxu0 %v7068_v11 }
 0x1e9   : > { %v906_v25 = vadd.f32 %v905_v24, %v7941_v15  ;;  %v907_v26 = vpop.f32.mrb[13].mxu1 }
 0x1ea   : > { %v908_v27 = vadd.f32 %v907_v26, %v7944_v17  ;;  %v909_v28 = vpop.f32.mrb[14].mxu1  ;;  %1258 = vmatprep.mubr.bf16.mxu0 %v991_v23 }
 0x1eb   : > { %v910_v30 = vadd.f32 %v909_v28, %v7941_v15  ;;  %v911_v31 = vpop.f32.mrb[15].mxu1  ;;  %1259 = vmatmul.mubr.bf16.gmra.mrb[40].mxu0 %v990_v21  ;;  %v966_v33 = vmax.f32 %v906_v25, 0.0 }
 0x1ec   : > { %v912_v32 = vadd.f32 %v911_v31, %v7944_v17  ;;  %v967_v35 = vmax.f32 %v908_v27, 0.0 }
 0x1ed   : > { %v968_v34 = vmax.f32 %v910_v30, 0.0 }
 0x1ee   : > { %v969_v36 = vmax.f32 %v912_v32, 0.0 }
 0x1ef   : > { %v992_v37 = vpack.c.bf16 %v968_v34, %v966_v33 }
 0x1f0   : > { %v993_v38 = vpack.c.bf16 %v969_v36, %v967_v35  ;;  %v915_v39 = vpop.f32.mrb[16].mxu1  ;;  %v7071_v36 = vld [vmem:[%s7663_s24 + $0x40] sm:$0xff]  }
 0x1f1   : > { %v916_v40 = vadd.f32 %v915_v39, %v7941_v15  ;;  %v917_v41 = vpop.f32.mrb[17].mxu1  ;;  %v7094_v39 = vld [vmem:[%s9517_s7 + $0x38] sm:$0xff]  }
 0x1f2   : > { %v918_v42 = vadd.f32 %v917_v41, %v7944_v17  ;;  %v919_v43 = vpop.f32.mrb[18].mxu1  ;;  %1268 = vmatprep.mubr.bf16.mxu0 %v993_v38  ;;  %v7093_v38 = vld [vmem:[%s9517_s7 + $0x78] sm:$0xff]   ;;  %v7097_v41 = vld [vmem:[%s9513_s3 + $0x4] ss:$8 sps:$4 sm:$0xff]  }
 0x1f3   : > { %v920_v44 = vadd.f32 %v919_v43, %v7941_v15  ;;  %v921_v45 = vpop.f32.mrb[19].mxu1  ;;  %1269 = vmatmul.mubr.bf16.gmra.mrb[44].mxu0 %v992_v37  ;;  %v970_v47 = vmax.f32 %v916_v40, 0.0  ;;  %v7074_v37 = vld [vmem:[%s7663_s24 + $0x58] sm:$0xff]   ;;  %6652 = vmatprep.subr.bf16.mxu1 %v7093_v38  ;;  %v7075_v40 = vld [vmem:[%s7663_s24 + $0x60] sm:$0xff]   ;;  %v7077_v43 = vld [vmem:[%s7663_s24 + $0x70] sm:$0xff]  }
 0x1f4   : > { %v922_v46 = vadd.f32 %v921_v45, %v7944_v17  ;;  %v971_v49 = vmax.f32 %v918_v42, 0.0  ;;  %6653 = vmatpush3.bf16.msra.mxu1 %v7094_v39  ;;  %v7076_v42 = vld [vmem:[%s7663_s24 + $0x68] sm:$0xff]   ;;  %v1034_v45 = vld [vmem:[%s9516_s6] sm:$0x3] }
 0x1f5   : > { %v972_v48 = vmax.f32 %v920_v44, 0.0  ;;  %2185 = vmatprep.subr.bf16.mxu1 %v7097_v41  ;;  %v7078_v44 = vld [vmem:[%s7663_s24 + $0x78] sm:$0xff]   ;;  %v7107_v38 = vld [vmem:[%s9513_s3 + $0x40] ss:$8 sps:$4 sm:$0xff]  }
 0x1f6   : > { %v973_v50 = vmax.f32 %v922_v46, 0.0  ;;  %v8078_v46 = vrot.slane %v1034_v45, %v7877_v16  ;;  %v7112_v41 = vld [vmem:[%s9513_s3 + $0x54] ss:$8 sps:$4 sm:$0xff]  }
 0x1f7   : > { %v994_v51 = vpack.c.bf16 %v972_v48, %v970_v47  ;;  %v8081_v47 = vrot.slane %v1034_v45, %v7882_v18 }
 0x1f8   : > { %v995_v52 = vpack.c.bf16 %v973_v50, %v971_v49  ;;  %v925_v53 = vpop.f32.mrb[20].mxu1 }
 0x1f9   : > { %v926_v54 = vadd.f32 %v925_v53, %v7941_v15  ;;  %v927_v55 = vpop.f32.mrb[21].mxu1 }
 0x1fa   : > { %v928_v56 = vadd.f32 %v927_v55, %v7944_v17  ;;  %v929_v57 = vpop.f32.mrb[22].mxu1  ;;  %1278 = vmatprep.mubr.bf16.mxu0 %v995_v52 }
 0x1fb   : > { %v930_v58 = vadd.f32 %v929_v57, %v7941_v15  ;;  %v931_v59 = vpop.f32.mrb[23].mxu1  ;;  %1279 = vmatmul.mubr.bf16.gmra.mrb[48].mxu0 %v994_v51  ;;  %v974_v61 = vmax.f32 %v926_v54, 0.0 }
 0x1fc   : > { %v932_v60 = vadd.f32 %v931_v59, %v7944_v17  ;;  %v975_v63 = vmax.f32 %v928_v56, 0.0 }
 0x1fd   : > { %v976_v62 = vmax.f32 %v930_v58, 0.0 }
 0x1fe   : > { %v977_v0 = vmax.f32 %v932_v60, 0.0 }
 0x1ff   : > { %v996_v1 = vpack.c.bf16 %v976_v62, %v974_v61 }
 0x200   : > { %v997_v3 = vpack.c.bf16 %v977_v0, %v975_v63  ;;  %v935_v4 = vpop.f32.mrb[24].mxu1  ;;  %v7095_v63 = vld [vmem:[%s9513_s3] ss:$8 sps:$4 sm:$0xff]  }
 0x201   : > { %v936_v5 = vadd.f32 %v935_v4, %v7941_v15  ;;  %v937_v6 = vpop.f32.mrb[25].mxu1 }
 0x202   : > { %v938_v7 = vadd.f32 %v937_v6, %v7944_v17  ;;  %v939_v8 = vpop.f32.mrb[26].mxu1  ;;  %1288 = vmatprep.mubr.bf16.mxu0 %v997_v3  ;;  %v7100_v3 = vld [vmem:[%s9513_s3 + $0x14] ss:$8 sps:$4 sm:$0xff]  }
 0x203   : > { %v940_v9 = vadd.f32 %v939_v8, %v7941_v15  ;;  %v941_v10 = vpop.f32.mrb[27].mxu1  ;;  %1289 = vmatmul.mubr.bf16.gmra.mrb[52].mxu0 %v996_v1  ;;  %v978_v19 = vmax.f32 %v936_v5, 0.0 }
 0x204   : > { %v942_v11 = vadd.f32 %v941_v10, %v7944_v17  ;;  %v979_v12 = vmax.f32 %v938_v7, 0.0 }
 0x205   : > { %v980_v20 = vmax.f32 %v940_v9, 0.0  ;;  %v7098_v9 = vld [vmem:[%s9513_s3 + $0x10] ss:$8 sps:$4 sm:$0xff]  }
 0x206   : > { %v981_v13 = vmax.f32 %v942_v11, 0.0 }
 0x207   : > { %v998_v14 = vpack.c.bf16 %v980_v20, %v978_v19  ;;  %v7103_v19 = vld [vmem:[%s9513_s3 + $0x24] ss:$8 sps:$4 sm:$0xff]  }
 0x208   : > { %v999_v21 = vpack.c.bf16 %v981_v13, %v979_v12  ;;  %v945_v22 = vpop.f32.mrb[28].mxu1 }
 0x209   : > { %v946_v23 = vadd.f32 %v945_v22, %v7941_v15  ;;  %v947_v24 = vpop.f32.mrb[29].mxu1  ;;  %v7101_v22 = vld [vmem:[%s9513_s3 + $0x20] ss:$8 sps:$4 sm:$0xff]  }
 0x20a   : > { %v948_v25 = vadd.f32 %v947_v24, %v7944_v17  ;;  %v949_v26 = vpop.f32.mrb[30].mxu1  ;;  %1298 = vmatprep.mubr.bf16.mxu0 %v999_v21 }
 0x20b   : > { %v950_v27 = vadd.f32 %v949_v26, %v7941_v15  ;;  %v951_v28 = vpop.f32.mrb[31].mxu1  ;;  %1299 = vmatmul.mubr.bf16.gmra.mrb[56].mxu0 %v998_v14  ;;  %v982_v30 = vmax.f32 %v946_v23, 0.0  ;;  %v7072_v15 = vld [vmem:[%s7663_s24 + $0x48] sm:$0xff]  }
 0x20c   : > { %v952_v29 = vadd.f32 %v951_v28, %v7944_v17  ;;  %v983_v32 = vmax.f32 %v948_v25, 0.0  ;;  %v7073_v17 = vld [vmem:[%s7663_s24 + $0x50] sm:$0xff]  }
 0x20d   : > { %v984_v31 = vmax.f32 %v950_v27, 0.0  ;;  %v7106_v25 = vld [vmem:[%s9513_s3 + $0x34] ss:$8 sps:$4 sm:$0xff]  }
 0x20e   : > { %v985_v33 = vmax.f32 %v952_v29, 0.0 }
 0x20f   : > { %v1000_v34 = vpack.c.bf16 %v984_v31, %v982_v30  ;;  %v7104_v31 = vld [vmem:[%s9513_s3 + $0x30] ss:$8 sps:$4 sm:$0xff]  }
 0x210   : > { %v1001_v35 = vpack.c.bf16 %v985_v33, %v983_v32 }
 0x212   : > { %1308 = vmatprep.mubr.bf16.mxu0 %v1001_v35 }
 0x213   : > { %1309 = vmatmul.mubr.bf16.gmra.mrb[60].mxu0 %v1000_v34  ;;  %v7109_v34 = vld [vmem:[%s9513_s3 + $0x44] ss:$8 sps:$4 sm:$0xff]  }
 0x214   : > { %1852 = vmatprep.mubr.bf16.mxu0 %v7541_v2 }
 0x21b   : > { %5950 = vmatmul.mubr.msk.bf16.vlgmr.msra.gmra.mrb[64].mxu0 %vm451_vm0, %v7071_v36 }
 0x21c   : > { %1862 = vmatprep.mubr.bf16.mxu0 %v7541_v2 }
 0x223   : > { %5951 = vmatmul.mubr.msk.bf16.gmra.mrb[68].mxu0 %vm451_vm0, %v7072_v15 }
 0x224   : > { %1872 = vmatprep.mubr.bf16.mxu0 %v7541_v2 }
 0x22b   : > { %5952 = vmatmul.mubr.msk.bf16.gmra.mrb[72].mxu0 %vm451_vm0, %v7073_v17 }
 0x22c   : > { %1882 = vmatprep.mubr.bf16.mxu0 %v7541_v2 }
 0x233   : > { %5953 = vmatmul.mubr.msk.bf16.gmra.mrb[76].mxu0 %vm451_vm0, %v7074_v37 }
 0x234   : > { %1892 = vmatprep.mubr.bf16.mxu0 %v7541_v2 }
 0x23b   : > { %5954 = vmatmul.mubr.msk.bf16.gmra.mrb[80].mxu0 %vm451_vm0, %v7075_v40 }
 0x23c   : > { %1902 = vmatprep.mubr.bf16.mxu0 %v7541_v2 }
 0x243   : > { %5955 = vmatmul.mubr.msk.bf16.gmra.mrb[84].mxu0 %vm451_vm0, %v7076_v42 }
 0x244   : > { %1912 = vmatprep.mubr.bf16.mxu0 %v7541_v2 }
 0x24b   : > { %5956 = vmatmul.mubr.msk.bf16.gmra.mrb[88].mxu0 %vm451_vm0, %v7077_v43 }
 0x24c   : > { %1922 = vmatprep.mubr.bf16.mxu0 %v7541_v2 }
 0x253   : > { %5957 = vmatmul.mubr.msk.bf16.gmra.mrb[92].mxu0 %vm451_vm0, %v7078_v44 }
 0x2ae   : > { %v1240_v48 = vpop.f32.mrb[32].mxu0 }
 0x2af   : > { %v1241_v49 = vadd.f32 %v1240_v48, %v8078_v46  ;;  %v1242_v50 = vpop.f32.mrb[33].mxu0 }
 0x2b0   : > { %v1243_v51 = vadd.f32 %v1242_v50, %v8081_v47  ;;  %v1244_v52 = vpop.f32.mrb[34].mxu0 }
 0x2b1   : > { %v1245_v53 = vadd.f32 %v1244_v52, %v8078_v46  ;;  %v1246_v54 = vpop.f32.mrb[35].mxu0  ;;  %v1319_v56 = vmax.f32 %v1241_v49, 0.0  ;;  %v7110_v49 = vld [vmem:[%s9513_s3 + $0x50] ss:$8 sps:$4 sm:$0xff]   ;;  %v7115_v52 = vld [vmem:[%s9513_s3 + $0x64] ss:$8 sps:$4 sm:$0xff]  }
 0x2b2   : > { %v1247_v55 = vadd.f32 %v1246_v54, %v8081_v47  ;;  %v1320_v58 = vmax.f32 %v1243_v51, 0.0 }
 0x2b3   : > { %v1321_v57 = vmax.f32 %v1245_v53, 0.0 }
 0x2b4   : > { %v1322_v59 = vmax.f32 %v1247_v55, 0.0 }
 0x2b5   : > { %v1351_v60 = vpack.c.bf16 %v1321_v57, %v1319_v56 }
 0x2b6   : > { %v1352_v61 = vpack.c.bf16 %v1322_v59, %v1320_v58  ;;  %v1250_v62 = vpop.f32.mrb[36].mxu0  ;;  %v7113_v58 = vld [vmem:[%s9513_s3 + $0x60] ss:$8 sps:$4 sm:$0xff]  }
 0x2b7   : > { %v1251_v0 = vadd.f32 %v1250_v62, %v8078_v46  ;;  %v1252_v1 = vpop.f32.mrb[37].mxu0 }
 0x2b8   : > { %v1253_v4 = vadd.f32 %v1252_v1, %v8081_v47  ;;  %v1254_v5 = vpop.f32.mrb[38].mxu0  ;;  %1534 = vmatprep.mubr.bf16.mxu1 %v1352_v61  ;;  %v7118_v61 = vld [vmem:[%s9513_s3 + $0x74] ss:$8 sps:$4 sm:$0xff]  }
 0x2b9   : > { %v1255_v6 = vadd.f32 %v1254_v5, %v8078_v46  ;;  %v1256_v7 = vpop.f32.mrb[39].mxu0  ;;  %1535 = vmatmul.mubr.bf16.vlgmr.msra.gmra.mrb[32].mxu1 %v1351_v60  ;;  %v1323_v10 = vmax.f32 %v1251_v0, 0.0 }
 0x2ba   : > { %v1257_v8 = vadd.f32 %v1256_v7, %v8081_v47  ;;  %2186 = vmatpush1.bf16.msra.mxu1 %v7095_v63  ;;  %v1324_v20 = vmax.f32 %v1253_v4, 0.0  ;;  %v7116_v4 = vld [vmem:[%s9513_s3 + $0x70] ss:$8 sps:$4 sm:$0xff]   ;;  %v7121_v7 = vld [vmem:[%s9513_s3 + $0x84] ss:$8 sps:$4 sm:$0xff]  }
 0x2bb   : > { %v1325_v11 = vmax.f32 %v1255_v6, 0.0  ;;  %2187 = vmatprep.subr.bf16.mxu1 %v7100_v3 }
 0x2bc   : > { %v1326_v12 = vmax.f32 %v1257_v8, 0.0 }
 0x2bd   : > { %v1353_v13 = vpack.c.bf16 %v1325_v11, %v1323_v10 }
 0x2be   : > { %v1354_v14 = vpack.c.bf16 %v1326_v12, %v1324_v20  ;;  %2188 = vmatpush1.bf16.msra.mxu1 %v7098_v9  ;;  %v1260_v21 = vpop.f32.mrb[40].mxu0  ;;  %v7119_v20 = vld [vmem:[%s9513_s3 + $0x80] ss:$8 sps:$4 sm:$0xff]  }
 0x2bf   : > { %v1261_v23 = vadd.f32 %v1260_v21, %v8078_v46  ;;  %v1262_v24 = vpop.f32.mrb[41].mxu0  ;;  %2189 = vmatprep.subr.bf16.mxu1 %v7103_v19 }
 0x2c0   : > { %v1263_v26 = vadd.f32 %v1262_v24, %v8081_v47  ;;  %v1264_v27 = vpop.f32.mrb[42].mxu0  ;;  %1542 = vmatprep.mubr.bf16.mxu1 %v1354_v14  ;;  %v7124_v14 = vld [vmem:[%s9513_s3 + $0x94] ss:$8 sps:$4 sm:$0xff]  }
 0x2c1   : > { %v1265_v28 = vadd.f32 %v1264_v27, %v8078_v46  ;;  %v1266_v29 = vpop.f32.mrb[43].mxu0  ;;  %1543 = vmatmul.mubr.bf16.gmra.mrb[36].mxu1 %v1353_v13  ;;  %v1327_v32 = vmax.f32 %v1261_v23, 0.0 }
 0x2c2   : > { %v1267_v30 = vadd.f32 %v1266_v29, %v8081_v47  ;;  %2190 = vmatpush1.bf16.msra.mxu1 %v7101_v22  ;;  %v1328_v35 = vmax.f32 %v1263_v26, 0.0  ;;  %v7122_v26 = vld [vmem:[%s9513_s3 + $0x90] ss:$8 sps:$4 sm:$0xff]   ;;  %v7127_v29 = vld [vmem:[%s9513_s3 + $0xa4] ss:$8 sps:$4 sm:$0xff]  }
 0x2c3   : > { %v1329_v33 = vmax.f32 %v1265_v28, 0.0  ;;  %2191 = vmatprep.subr.bf16.mxu1 %v7106_v25 }
 0x2c4   : > { %v1330_v36 = vmax.f32 %v1267_v30, 0.0 }
 0x2c5   : > { %v1355_v15 = vpack.c.bf16 %v1329_v33, %v1327_v32 }
 0x2c6   : > { %v1356_v17 = vpack.c.bf16 %v1330_v36, %v1328_v35  ;;  %2192 = vmatpush1.bf16.msra.mxu1 %v7104_v31  ;;  %v1270_v37 = vpop.f32.mrb[44].mxu0  ;;  %v7125_v35 = vld [vmem:[%s9513_s3 + $0xa0] ss:$8 sps:$4 sm:$0xff]  }
 0x2c7   : > { %v1271_v39 = vadd.f32 %v1270_v37, %v8078_v46  ;;  %v1272_v40 = vpop.f32.mrb[45].mxu0  ;;  %2193 = vmatprep.subr.bf16.mxu1 %v7109_v34 }
 0x2c8   : > { %v1273_v42 = vadd.f32 %v1272_v40, %v8081_v47  ;;  %v1274_v43 = vpop.f32.mrb[46].mxu0  ;;  %1550 = vmatprep.mubr.bf16.mxu1 %v1356_v17  ;;  %v7130_v17 = vld [vmem:[%s9513_s3 + $0xb4] ss:$8 sps:$4 sm:$0xff]  }
 0x2c9   : > { %v1275_v44 = vadd.f32 %v1274_v43, %v8078_v46  ;;  %v1276_v45 = vpop.f32.mrb[47].mxu0  ;;  %1551 = vmatmul.mubr.bf16.gmra.mrb[40].mxu1 %v1355_v15  ;;  %v1331_v50 = vmax.f32 %v1271_v39, 0.0 }
 0x2ca   : > { %v1277_v48 = vadd.f32 %v1276_v45, %v8081_v47  ;;  %2194 = vmatpush1.bf16.msra.mxu1 %v7107_v38  ;;  %v1332_v53 = vmax.f32 %v1273_v42, 0.0  ;;  %v7128_v42 = vld [vmem:[%s9513_s3 + $0xb0] ss:$8 sps:$4 sm:$0xff]   ;;  %v7133_v45 = vld [vmem:[%s9513_s3 + $0xc4] ss:$8 sps:$4 sm:$0xff]  }
 0x2cb   : > { %v1333_v51 = vmax.f32 %v1275_v44, 0.0  ;;  %2195 = vmatprep.subr.bf16.mxu1 %v7112_v41 }
 0x2cc   : > { %v1334_v54 = vmax.f32 %v1277_v48, 0.0 }
 0x2cd   : > { %v1357_v55 = vpack.c.bf16 %v1333_v51, %v1331_v50 }
 0x2ce   : > { %v1358_v56 = vpack.c.bf16 %v1334_v54, %v1332_v53  ;;  %2196 = vmatpush1.bf16.msra.mxu1 %v7110_v49  ;;  %v1280_v57 = vpop.f32.mrb[48].mxu0  ;;  %v7131_v53 = vld [vmem:[%s9513_s3 + $0xc0] ss:$8 sps:$4 sm:$0xff]  }
 0x2cf   : > { %v1281_v59 = vadd.f32 %v1280_v57, %v8078_v46  ;;  %v1282_v60 = vpop.f32.mrb[49].mxu0  ;;  %2197 = vmatprep.subr.bf16.mxu1 %v7115_v52 }
 0x2d0   : > { %v1283_v62 = vadd.f32 %v1282_v60, %v8081_v47  ;;  %v1284_v63 = vpop.f32.mrb[50].mxu0  ;;  %1558 = vmatprep.mubr.bf16.mxu1 %v1358_v56  ;;  %v7136_v56 = vld [vmem:[%s9513_s3 + $0xd4] ss:$8 sps:$4 sm:$0xff]  }
 0x2d1   : > { %v1285_v0 = vadd.f32 %v1284_v63, %v8078_v46  ;;  %v1286_v1 = vpop.f32.mrb[51].mxu0  ;;  %1559 = vmatmul.mubr.bf16.gmra.mrb[44].mxu1 %v1357_v55  ;;  %v1335_v5 = vmax.f32 %v1281_v59, 0.0  ;;  %v1704_v59 = vld [vmem:[%s9512_s2] sm:$0x3]  ;;  %v7134_v63 = vld [vmem:[%s9513_s3 + $0xd0] ss:$8 sps:$4 sm:$0xff]  }
 0x2d2   : > { %v1287_v3 = vadd.f32 %v1286_v1, %v8081_v47  ;;  %2198 = vmatpush1.bf16.msra.mxu1 %v7113_v58  ;;  %v1336_v8 = vmax.f32 %v1283_v62, 0.0 }
 0x2d3   : > { %v1337_v6 = vmax.f32 %v1285_v0, 0.0  ;;  %2199 = vmatprep.subr.bf16.mxu1 %v7118_v61 }
 0x2d4   : > { %v1338_v9 = vmax.f32 %v1287_v3, 0.0  ;;  %v8200_v3 = vrot.slane %v1704_v59, %v7877_v16 }
 0x2d5   : > { %v1359_v10 = vpack.c.bf16 %v1337_v6, %v1335_v5  ;;  %v8206_v6 = vrot.slane %v1704_v59, %v7882_v18 }
 0x2d6   : > { %v1360_v11 = vpack.c.bf16 %v1338_v9, %v1336_v8  ;;  %2200 = vmatpush1.bf16.msra.mxu1 %v7116_v4  ;;  %v1290_v19 = vpop.f32.mrb[52].mxu0  ;;  %v7139_v4 = vld [vmem:[%s9513_s3 + $0xe4] ss:$8 sps:$4 sm:$0xff]   ;;  %v7137_v9 = vld [vmem:[%s9513_s3 + $0xe0] ss:$8 sps:$4 sm:$0xff]  }
 0x2d7   : > { %v1291_v12 = vadd.f32 %v1290_v19, %v8078_v46  ;;  %v1292_v13 = vpop.f32.mrb[53].mxu0  ;;  %2201 = vmatprep.subr.bf16.mxu1 %v7121_v7  ;;  %v7142_v19 = vld [vmem:[%s9513_s3 + $0xf4] ss:$8 sps:$4 sm:$0xff]  }
 0x2d8   : > { %v1293_v21 = vadd.f32 %v1292_v13, %v8081_v47  ;;  %v1294_v22 = vpop.f32.mrb[54].mxu0  ;;  %1566 = vmatprep.mubr.bf16.mxu1 %v1360_v11 }
 0x2d9   : > { %v1295_v23 = vadd.f32 %v1294_v22, %v8078_v46  ;;  %v1296_v24 = vpop.f32.mrb[55].mxu0  ;;  %1567 = vmatmul.mubr.bf16.gmra.mrb[48].mxu1 %v1359_v10  ;;  %v1339_v27 = vmax.f32 %v1291_v12, 0.0  ;;  %v7140_v22 = vld [vmem:[%s9513_s3 + $0xf0] ss:$8 sps:$4 sm:$0xff]  }
 0x2da   : > { %v1297_v25 = vadd.f32 %v1296_v24, %v8081_v47  ;;  %2202 = vmatpush1.bf16.msra.mxu1 %v7119_v20  ;;  %v1340_v30 = vmax.f32 %v1293_v21, 0.0 }
 0x2db   : > { %v1341_v28 = vmax.f32 %v1295_v23, 0.0  ;;  %2203 = vmatprep.subr.bf16.mxu1 %v7124_v14 }
 0x2dc   : > { %v1342_v31 = vmax.f32 %v1297_v25, 0.0 }
 0x2dd   : > { %v1361_v32 = vpack.c.bf16 %v1341_v28, %v1339_v27 }
 0x2de   : > { %v1362_v33 = vpack.c.bf16 %v1342_v31, %v1340_v30  ;;  %2204 = vmatpush1.bf16.msra.mxu1 %v7122_v26  ;;  %v1300_v34 = vpop.f32.mrb[56].mxu0 }
 0x2df   : > { %v1301_v36 = vadd.f32 %v1300_v34, %v8078_v46  ;;  %v1302_v15 = vpop.f32.mrb[57].mxu0  ;;  %2205 = vmatprep.subr.bf16.mxu1 %v7127_v29 }
 0x2e0   : > { %v1303_v37 = vadd.f32 %v1302_v15, %v8081_v47  ;;  %v1304_v38 = vpop.f32.mrb[58].mxu0  ;;  %1574 = vmatprep.mubr.bf16.mxu1 %v1362_v33 }
 0x2e1   : > { %v1305_v39 = vadd.f32 %v1304_v38, %v8078_v46  ;;  %v1306_v40 = vpop.f32.mrb[59].mxu0  ;;  %1575 = vmatmul.mubr.bf16.gmra.mrb[52].mxu1 %v1361_v32  ;;  %v1343_v43 = vmax.f32 %v1301_v36, 0.0 }
 0x2e2   : > { %v1307_v41 = vadd.f32 %v1306_v40, %v8081_v47  ;;  %2206 = vmatpush1.bf16.msra.mxu1 %v7125_v35  ;;  %v1344_v48 = vmax.f32 %v1303_v37, 0.0 }
 0x2e3   : > { %v1345_v44 = vmax.f32 %v1305_v39, 0.0  ;;  %2207 = vmatprep.subr.bf16.mxu1 %v7130_v17 }
 0x2e4   : > { %v1346_v49 = vmax.f32 %v1307_v41, 0.0 }
 0x2e5   : > { %v1363_v50 = vpack.c.bf16 %v1345_v44, %v1343_v43 }
 0x2e6   : > { %v1364_v51 = vpack.c.bf16 %v1346_v49, %v1344_v48  ;;  %2208 = vmatpush1.bf16.msra.mxu1 %v7128_v42  ;;  %v1310_v52 = vpop.f32.mrb[60].mxu0 }
 0x2e7   : > { %v1311_v54 = vadd.f32 %v1310_v52, %v8078_v46  ;;  %v1312_v55 = vpop.f32.mrb[61].mxu0  ;;  %2209 = vmatprep.subr.bf16.mxu1 %v7133_v45 }
 0x2e8   : > { %v1313_v57 = vadd.f32 %v1312_v55, %v8081_v47  ;;  %v1314_v58 = vpop.f32.mrb[62].mxu0  ;;  %1582 = vmatprep.mubr.bf16.mxu1 %v1364_v51 }
 0x2e9   : > { %v1315_v60 = vadd.f32 %v1314_v58, %v8078_v46  ;;  %v1316_v61 = vpop.f32.mrb[63].mxu0  ;;  %1583 = vmatmul.mubr.bf16.gmra.mrb[56].mxu1 %v1363_v50  ;;  %v1347_v0 = vmax.f32 %v1311_v54, 0.0 }
 0x2ea   : > { %v1317_v62 = vadd.f32 %v1316_v61, %v8081_v47  ;;  %2210 = vmatpush1.bf16.msra.mxu1 %v7131_v53  ;;  %v1348_v46 = vmax.f32 %v1313_v57, 0.0 }
 0x2eb   : > { %v1349_v1 = vmax.f32 %v1315_v60, 0.0  ;;  %2211 = vmatprep.subr.bf16.mxu1 %v7136_v56 }
 0x2ec   : > { %v1350_v5 = vmax.f32 %v1317_v62, 0.0 }
 0x2ed   : > { %v1365_v47 = vpack.c.bf16 %v1349_v1, %v1347_v0 }
 0x2ee   : > { %v1366_v7 = vpack.c.bf16 %v1350_v5, %v1348_v46  ;;  %2212 = vmatpush1.bf16.msra.mxu1 %v7134_v63  ;;  %v1854_v8 = vpop.f32.mrb[64].mxu0 }
 0x2ef   : > { %v1855_v10 = vadd.f32 %v1854_v8, %v8200_v3  ;;  %v1856_v11 = vpop.f32.mrb[65].mxu0  ;;  %2213 = vmatprep.subr.bf16.mxu1 %v7139_v4 }
 0x2f0   : > { %v1857_v20 = vadd.f32 %v1856_v11, %v8206_v6  ;;  %1590 = vmatprep.mubr.bf16.mxu1 %v1366_v7  ;;  %v1858_v12 = vpop.f32.mrb[66].mxu0 }
 0x2f1   : > { %v1859_v13 = vadd.f32 %v1858_v12, %v8200_v3  ;;  %1591 = vmatmul.mubr.bf16.gmra.mrb[60].mxu1 %v1365_v47  ;;  %v1860_v14 = vpop.f32.mrb[67].mxu0  ;;  %v1933_v23 = vmax.f32 %v1855_v10, 0.0 }
 0x2f2   : > { %v1861_v21 = vadd.f32 %v1860_v14, %v8206_v6  ;;  %2214 = vmatpush1.bf16.msra.mxu1 %v7137_v9  ;;  %v1934_v25 = vmax.f32 %v1857_v20, 0.0 }
 0x2f3   : > { %v1935_v24 = vmax.f32 %v1859_v13, 0.0  ;;  %2215 = vmatprep.subr.bf16.mxu1 %v7142_v19 }
 0x2f4   : > { %v1936_v26 = vmax.f32 %v1861_v21, 0.0 }
 0x2f5   : > { %v1965_v27 = vpack.c.bf16 %v1935_v24, %v1933_v23 }
 0x2f6   : > { %v1966_v28 = vpack.c.bf16 %v1936_v26, %v1934_v25  ;;  %2216 = vmatpush1.bf16.msra.mxu1 %v7140_v22  ;;  %v1864_v29 = vpop.f32.mrb[68].mxu0  ;;  %v7145_v25 = vld [vmem:[%s9515_s5 + $0x4] ss:$8 sps:$4 sm:$0xff]  }
 0x2f7   : > { %v1865_v30 = vadd.f32 %v1864_v29, %v8200_v3  ;;  %v1866_v31 = vpop.f32.mrb[69].mxu0  ;;  %2550 = vmatprep.subr.bf16.mxu0 %v7145_v25  ;;  %v7172_v25 = vld [vmem:[%s9515_s5 + $0x94] ss:$8 sps:$4 sm:$0xff]  }
 0x2f8   : > { %v1867_v32 = vadd.f32 %v1866_v31, %v8206_v6  ;;  %v1868_v33 = vpop.f32.mrb[70].mxu0  ;;  %2217 = vmatprep.mubr.bf16.mxu1 %v1966_v28  ;;  %v7143_v28 = vld [vmem:[%s9515_s5] ss:$8 sps:$4 sm:$0xff]  }
 0x2f9   : > { %v1869_v34 = vadd.f32 %v1868_v33, %v8200_v3  ;;  %v1870_v35 = vpop.f32.mrb[71].mxu0  ;;  %2218 = vmatmul.mubr.bf16.vlgmr.msra.gmra.mrb[64].mxu1 %v1965_v27  ;;  %v1937_v15 = vmax.f32 %v1865_v30, 0.0  ;;  %2551 = vmatpush1.bf16.msra.mxu0 %v7143_v28  ;;  %v7173_v28 = vld [vmem:[%s9515_s5 + $0xa0] ss:$8 sps:$4 sm:$0xff]  }
 0x2fa   : > { %v1871_v36 = vadd.f32 %v1870_v35, %v8206_v6  ;;  %v1938_v37 = vmax.f32 %v1867_v32, 0.0  ;;  %v7148_v35 = vld [vmem:[%s9515_s5 + $0x14] ss:$8 sps:$4 sm:$0xff]  }
 0x2fb   : > { %v1939_v17 = vmax.f32 %v1869_v34, 0.0  ;;  %2552 = vmatprep.subr.bf16.mxu0 %v7148_v35  ;;  %v7187_v35 = vld [vmem:[%s9515_s5 + $0xe4] ss:$8 sps:$4 sm:$0xff]  }
 0x2fc   : > { %v1940_v38 = vmax.f32 %v1871_v36, 0.0 }
 0x2fd   : > { %v1967_v39 = vpack.c.bf16 %v1939_v17, %v1937_v15  ;;  %v7146_v15 = vld [vmem:[%s9515_s5 + $0x10] ss:$8 sps:$4 sm:$0xff]  }
 0x2fe   : > { %v1968_v40 = vpack.c.bf16 %v1940_v38, %v1938_v37  ;;  %v1874_v41 = vpop.f32.mrb[72].mxu0  ;;  %2553 = vmatpush1.bf16.msra.mxu0 %v7146_v15  ;;  %v7190_v15 = vld [vmem:[%s9515_s5 + $0xf4] ss:$8 sps:$4 sm:$0xff]  }
 0x2ff   : > { %v1875_v42 = vadd.f32 %v1874_v41, %v8200_v3  ;;  %v1876_v43 = vpop.f32.mrb[73].mxu0  ;;  %v7151_v41 = vld [vmem:[%s9515_s5 + $0x24] ss:$8 sps:$4 sm:$0xff]  }
 0x300   : > { %v1877_v44 = vadd.f32 %v1876_v43, %v8206_v6  ;;  %v1878_v45 = vpop.f32.mrb[74].mxu0  ;;  %2227 = vmatprep.mubr.bf16.mxu1 %v1968_v40  ;;  %2554 = vmatprep.subr.bf16.mxu0 %v7151_v41 }
 0x301   : > { %v1879_v48 = vadd.f32 %v1878_v45, %v8200_v3  ;;  %v1880_v49 = vpop.f32.mrb[75].mxu0  ;;  %2228 = vmatmul.mubr.bf16.gmra.mrb[68].mxu1 %v1967_v39  ;;  %v1941_v51 = vmax.f32 %v1875_v42, 0.0 }
 0x302   : > { %v1881_v50 = vadd.f32 %v1880_v49, %v8206_v6  ;;  %v1942_v53 = vmax.f32 %v1877_v44, 0.0  ;;  %v7149_v44 = vld [vmem:[%s9515_s5 + $0x20] ss:$8 sps:$4 sm:$0xff]  }
 0x303   : > { %v1943_v52 = vmax.f32 %v1879_v48, 0.0  ;;  %2555 = vmatpush1.bf16.msra.mxu0 %v7149_v44 }
 0x304   : > { %v1944_v54 = vmax.f32 %v1881_v50, 0.0 }
 0x305   : > { %v1969_v55 = vpack.c.bf16 %v1943_v52, %v1941_v51 }
 0x306   : > { %v1970_v56 = vpack.c.bf16 %v1944_v54, %v1942_v53  ;;  %v1884_v57 = vpop.f32.mrb[76].mxu0  ;;  %v7154_v53 = vld [vmem:[%s9515_s5 + $0x34] ss:$8 sps:$4 sm:$0xff]  }
 0x307   : > { %v1885_v58 = vadd.f32 %v1884_v57, %v8200_v3  ;;  %v1886_v59 = vpop.f32.mrb[77].mxu0  ;;  %2556 = vmatprep.subr.bf16.mxu0 %v7154_v53 }
 0x308   : > { %v1887_v60 = vadd.f32 %v1886_v59, %v8206_v6  ;;  %v1888_v61 = vpop.f32.mrb[78].mxu0  ;;  %2237 = vmatprep.mubr.bf16.mxu1 %v1970_v56 }
 0x309   : > { %v1889_v62 = vadd.f32 %v1888_v61, %v8200_v3  ;;  %v1890_v63 = vpop.f32.mrb[79].mxu0  ;;  %2238 = vmatmul.mubr.bf16.gmra.mrb[72].mxu1 %v1969_v55  ;;  %v1945_v1 = vmax.f32 %v1885_v58, 0.0  ;;  %v7152_v55 = vld [vmem:[%s9515_s5 + $0x30] ss:$8 sps:$4 sm:$0xff]   ;;  %v7157_v61 = vld [vmem:[%s9515_s5 + $0x44] ss:$8 sps:$4 sm:$0xff]  }
 0x30a   : > { %v1891_v0 = vadd.f32 %v1890_v63, %v8206_v6  ;;  %v1946_v46 = vmax.f32 %v1887_v60, 0.0  ;;  %2557 = vmatpush1.bf16.msra.mxu0 %v7152_v55 }
 0x30b   : > { %v1947_v4 = vmax.f32 %v1889_v62, 0.0  ;;  %2558 = vmatprep.subr.bf16.mxu0 %v7157_v61 }
 0x30c   : > { %v1948_v5 = vmax.f32 %v1891_v0, 0.0  ;;  %v7155_v0 = vld [vmem:[%s9515_s5 + $0x40] ss:$8 sps:$4 sm:$0xff]  }
 0x30d   : > { %v1971_v47 = vpack.c.bf16 %v1947_v4, %v1945_v1 }
 0x30e   : > { %v1972_v7 = vpack.c.bf16 %v1948_v5, %v1946_v46  ;;  %v1894_v8 = vpop.f32.mrb[80].mxu0  ;;  %2559 = vmatpush1.bf16.msra.mxu0 %v7155_v0 }
 0x30f   : > { %v1895_v9 = vadd.f32 %v1894_v8, %v8200_v3  ;;  %v1896_v10 = vpop.f32.mrb[81].mxu0  ;;  %v7160_v8 = vld [vmem:[%s9515_s5 + $0x54] ss:$8 sps:$4 sm:$0xff]  }
 0x310   : > { %v1897_v11 = vadd.f32 %v1896_v10, %v8206_v6  ;;  %v1898_v19 = vpop.f32.mrb[82].mxu0  ;;  %2247 = vmatprep.mubr.bf16.mxu1 %v1972_v7  ;;  %v7158_v10 = vld [vmem:[%s9515_s5 + $0x50] ss:$8 sps:$4 sm:$0xff]   ;;  %2560 = vmatprep.subr.bf16.mxu0 %v7160_v8 }
 0x311   : > { %v1899_v20 = vadd.f32 %v1898_v19, %v8200_v3  ;;  %v1900_v12 = vpop.f32.mrb[83].mxu0  ;;  %2248 = vmatmul.mubr.bf16.gmra.mrb[76].mxu1 %v1971_v47  ;;  %v1949_v14 = vmax.f32 %v1895_v9, 0.0 }
 0x312   : > { %v1901_v13 = vadd.f32 %v1900_v12, %v8206_v6  ;;  %v1950_v22 = vmax.f32 %v1897_v11, 0.0  ;;  %2561 = vmatpush1.bf16.msra.mxu0 %v7158_v10 }
 0x313   : > { %v1951_v21 = vmax.f32 %v1899_v20, 0.0 }
 0x314   : > { %v1952_v23 = vmax.f32 %v1901_v13, 0.0 }
 0x315   : > { %v1973_v24 = vpack.c.bf16 %v1951_v21, %v1949_v14  ;;  %v7166_v21 = vld [vmem:[%s9515_s5 + $0x74] ss:$8 sps:$4 sm:$0xff]  }
 0x316   : > { %v1974_v26 = vpack.c.bf16 %v1952_v23, %v1950_v22  ;;  %v1904_v27 = vpop.f32.mrb[84].mxu0  ;;  %v7164_v22 = vld [vmem:[%s9515_s5 + $0x70] ss:$8 sps:$4 sm:$0xff]   ;;  %v7169_v23 = vld [vmem:[%s9515_s5 + $0x84] ss:$8 sps:$4 sm:$0xff]  }
 0x317   : > { %v1905_v29 = vadd.f32 %v1904_v27, %v8200_v3  ;;  %v1906_v30 = vpop.f32.mrb[85].mxu0  ;;  %v7175_v27 = vld [vmem:[%s9515_s5 + $0xa4] ss:$8 sps:$4 sm:$0xff]  }
 0x318   : > { %v1907_v31 = vadd.f32 %v1906_v30, %v8206_v6  ;;  %v1908_v32 = vpop.f32.mrb[86].mxu0  ;;  %2257 = vmatprep.mubr.bf16.mxu1 %v1974_v26  ;;  %v7170_v26 = vld [vmem:[%s9515_s5 + $0x90] ss:$8 sps:$4 sm:$0xff]  }
 0x319   : > { %v1909_v33 = vadd.f32 %v1908_v32, %v8200_v3  ;;  %v1910_v34 = vpop.f32.mrb[87].mxu0  ;;  %2258 = vmatmul.mubr.bf16.gmra.mrb[80].mxu1 %v1973_v24  ;;  %v1953_v17 = vmax.f32 %v1905_v29, 0.0  ;;  %v7167_v24 = vld [vmem:[%s9515_s5 + $0x80] ss:$8 sps:$4 sm:$0xff]   ;;  %v7178_v29 = vld [vmem:[%s9515_s5 + $0xb4] ss:$8 sps:$4 sm:$0xff]  }
 0x31a   : > { %v1911_v36 = vadd.f32 %v1910_v34, %v8206_v6  ;;  %v1954_v38 = vmax.f32 %v1907_v31, 0.0  ;;  %v7176_v30 = vld [vmem:[%s9515_s5 + $0xb0] ss:$8 sps:$4 sm:$0xff]   ;;  %v7181_v31 = vld [vmem:[%s9515_s5 + $0xc4] ss:$8 sps:$4 sm:$0xff]  }
 0x31b   : > { %v1955_v37 = vmax.f32 %v1909_v33, 0.0  ;;  %v7179_v32 = vld [vmem:[%s9515_s5 + $0xc0] ss:$8 sps:$4 sm:$0xff]   ;;  %v7184_v33 = vld [vmem:[%s9515_s5 + $0xd4] ss:$8 sps:$4 sm:$0xff]  }
 0x31c   : > { %v1956_v39 = vmax.f32 %v1911_v36, 0.0  ;;  %v7182_v34 = vld [vmem:[%s9515_s5 + $0xd0] ss:$8 sps:$4 sm:$0xff]   ;;  %v7185_v36 = vld [vmem:[%s9515_s5 + $0xe0] ss:$8 sps:$4 sm:$0xff]  }
 0x31d   : > { %v1975_v40 = vpack.c.bf16 %v1955_v37, %v1953_v17  ;;  %v7188_v17 = vld [vmem:[%s9515_s5 + $0xf0] ss:$8 sps:$4 sm:$0xff]   ;;  %v7193_v37 = vld [vmem:[%s9511_s1 + $0x4] ss:$8 sps:$4 sm:$0xff]  }
 0x31e   : > { %v1976_v42 = vpack.c.bf16 %v1956_v39, %v1954_v38  ;;  %v1914_v43 = vpop.f32.mrb[88].mxu0 }
 0x31f   : > { %v1915_v45 = vadd.f32 %v1914_v43, %v8200_v3  ;;  %v1916_v48 = vpop.f32.mrb[89].mxu0 }
 0x320   : > { %v1917_v49 = vadd.f32 %v1916_v48, %v8206_v6  ;;  %v1918_v50 = vpop.f32.mrb[90].mxu0  ;;  %2267 = vmatprep.mubr.bf16.mxu1 %v1976_v42  ;;  %v8352_v42 = vld [vmem:[%s9518_s8] ss:$0 sm:$0xff] }
 0x321   : > { %v1919_v51 = vadd.f32 %v1918_v50, %v8200_v3  ;;  %v1920_v52 = vpop.f32.mrb[91].mxu0  ;;  %2268 = vmatmul.mubr.bf16.gmra.mrb[84].mxu1 %v1975_v40  ;;  %v1957_v56 = vmax.f32 %v1915_v45, 0.0 }
 0x322   : > { %v1921_v54 = vadd.f32 %v1920_v52, %v8206_v6  ;;  %v1958_v58 = vmax.f32 %v1917_v49, 0.0 }
 0x323   : > { %v1959_v57 = vmax.f32 %v1919_v51, 0.0 }
 0x324   : > { %v1960_v59 = vmax.f32 %v1921_v54, 0.0 }
 0x325   : > { %v1977_v60 = vpack.c.bf16 %v1959_v57, %v1957_v56 }
 0x326   : > { %v1978_v62 = vpack.c.bf16 %v1960_v59, %v1958_v58  ;;  %v1924_v63 = vpop.f32.mrb[92].mxu0 }
 0x327   : > { %v1925_v1 = vadd.f32 %v1924_v63, %v8200_v3  ;;  %v1926_v4 = vpop.f32.mrb[93].mxu0 }
 0x328   : > { %v1927_v46 = vadd.f32 %v1926_v4, %v8206_v6  ;;  %v1928_v5 = vpop.f32.mrb[94].mxu0  ;;  %2277 = vmatprep.mubr.bf16.mxu1 %v1978_v62 }
 0x329   : > { %v1929_v47 = vadd.f32 %v1928_v5, %v8200_v3  ;;  %v1930_v7 = vpop.f32.mrb[95].mxu0  ;;  %2278 = vmatmul.mubr.bf16.gmra.mrb[88].mxu1 %v1977_v60  ;;  %v1961_v11 = vmax.f32 %v1925_v1, 0.0  ;;  %v7163_v3 = vld [vmem:[%s9515_s5 + $0x64] ss:$8 sps:$4 sm:$0xff]  }
 0x32a   : > { %v1931_v9 = vadd.f32 %v1930_v7, %v8206_v6  ;;  %v1962_v20 = vmax.f32 %v1927_v46, 0.0  ;;  %v7161_v6 = vld [vmem:[%s9515_s5 + $0x60] ss:$8 sps:$4 sm:$0xff]   ;;  %2562 = vmatprep.subr.bf16.mxu0 %v7163_v3 }
 0x32b   : > { %v1963_v19 = vmax.f32 %v1929_v47, 0.0  ;;  %2563 = vmatpush1.bf16.msra.mxu0 %v7161_v6 }
 0x32c   : > { %v1964_v12 = vmax.f32 %v1931_v9, 0.0  ;;  %2564 = vmatprep.subr.bf16.mxu0 %v7166_v21 }
 0x32d   : > { %v1979_v13 = vpack.c.bf16 %v1963_v19, %v1961_v11 }
 0x32e   : > { %v1980_v14 = vpack.c.bf16 %v1964_v12, %v1962_v20 }
 0x32f   : > { %2565 = vmatpush1.bf16.msra.mxu0 %v7164_v22 }
 0x330   : > { %2287 = vmatprep.mubr.bf16.mxu1 %v1980_v14  ;;  %2566 = vmatprep.subr.bf16.mxu0 %v7169_v23 }
 0x331   : > { %2288 = vmatmul.mubr.bf16.gmra.mrb[92].mxu1 %v1979_v13 }
 0x333   : > { %2567 = vmatpush1.bf16.msra.mxu0 %v7167_v24 }
 0x334   : > { %2568 = vmatprep.subr.bf16.mxu0 %v7172_v25 }
 0x337   : > { %2569 = vmatpush1.bf16.msra.mxu0 %v7170_v26 }
 0x338   : > { %2570 = vmatprep.subr.bf16.mxu0 %v7175_v27 }
 0x33b   : > { %2571 = vmatpush1.bf16.msra.mxu0 %v7173_v28 }
 0x33c   : > { %2572 = vmatprep.subr.bf16.mxu0 %v7178_v29 }
 0x33f   : > { %2573 = vmatpush1.bf16.msra.mxu0 %v7176_v30 }
 0x340   : > { %2574 = vmatprep.subr.bf16.mxu0 %v7181_v31 }
 0x343   : > { %2575 = vmatpush1.bf16.msra.mxu0 %v7179_v32 }
 0x344   : > { %2576 = vmatprep.subr.bf16.mxu0 %v7184_v33 }
 0x347   : > { %2577 = vmatpush1.bf16.msra.mxu0 %v7182_v34 }
 0x348   : > { %2578 = vmatprep.subr.bf16.mxu0 %v7187_v35 }
 0x34b   : > { %2579 = vmatpush1.bf16.msra.mxu0 %v7185_v36 }
 0x34c   : > { %2580 = vmatprep.subr.bf16.mxu0 %v7190_v15 }
 0x34f   : > { %2581 = vmatpush1.bf16.msra.mxu0 %v7188_v17 }
 0x350   : > { %3165 = vmatprep.subr.bf16.mxu0 %v7193_v37 }
 0x38c   : > { %v6654_v38 = vpop.f32.mrb[32].mxu1 }
 0x38d   : > { %v6655_v39 = vpop.f32.mrb[33].mxu1 }
 0x38e   : > { %v6656_v40 = vadd.f32 %v6655_v39, %v6654_v38  ;;  %v6657_v41 = vpop.f32.mrb[34].mxu1 }
 0x38f   : > { %v6658_v43 = vpop.f32.mrb[35].mxu1 }
 0x390   : > { %v6659_v44 = vadd.f32 %v6658_v43, %v6657_v41  ;;  %v1537_v45 = vadd.f32 %v6656_v40, %v8352_v42 }
 0x392   : > { %v1540_v48 = vadd.f32 %v6659_v44, %v8352_v42 }
 0x394   : > { %v6450_v49 = vpack.c.bf16 %v1540_v48, %v1537_v45  ;;  %v6660_v50 = vpop.f32.mrb[36].mxu1  ;;  %v2013_v48 = vld [vmem:[%s9514_s4] sm:$0x3] }
 0x395   : > { %v6661_v51 = vpop.f32.mrb[37].mxu1 }
 0x396   : > { %6451 = vst [vmem:[%s8358_s22] sm:$0xff] %v6450_v49   ;;  %v6662_v52 = vadd.f32 %v6661_v51, %v6660_v50  ;;  %v6663_v53 = vpop.f32.mrb[38].mxu1  ;;  %v8383_v51 = vrot.slane %v2013_v48, %v7877_v16 }
 0x397   : > { %v6664_v54 = vpop.f32.mrb[39].mxu1 }
 0x398   : > { %v6665_v55 = vadd.f32 %v6664_v54, %v6663_v53  ;;  %v1545_v56 = vadd.f32 %v6662_v52, %v8352_v42  ;;  %v8388_v54 = vrot.slane %v2013_v48, %v7882_v18  ;;  %v7200_v48 = vld [vmem:[%s9511_s1 + $0x30] ss:$8 sps:$4 sm:$0xff]  }
 0x39a   : > { %v1548_v57 = vadd.f32 %v6665_v55, %v8352_v42 }
 0x39c   : > { %v6455_v58 = vpack.c.bf16 %v1548_v57, %v1545_v56  ;;  %v6666_v59 = vpop.f32.mrb[40].mxu1 }
 0x39d   : > { %v6667_v60 = vpop.f32.mrb[41].mxu1 }
 0x39e   : > { %6607 = vst [vmem:[%s8358_s22 + $0x8] sm:$0xff] %v6455_v58   ;;  %v6668_v61 = vadd.f32 %v6667_v60, %v6666_v59  ;;  %v6669_v62 = vpop.f32.mrb[42].mxu1 }
 0x39f   : > { %v6670_v63 = vpop.f32.mrb[43].mxu1 }
 0x3a0   : > { %v6671_v0 = vadd.f32 %v6670_v63, %v6669_v62  ;;  %v1553_v1 = vadd.f32 %v6668_v61, %v8352_v42  ;;  %v7211_v63 = vld [vmem:[%s9517_s7 + $0x40] sm:$0xff]  }
 0x3a1   : > { %6702 = vmatprep.subr.bf16.mxu1 %v7211_v63 }
 0x3a2   : > { %v1556_v4 = vadd.f32 %v6671_v0, %v8352_v42  ;;  %v7213_v0 = vld [vmem:[%s9517_s7 + $0x48] sm:$0xff]  }
 0x3a4   : > { %v6460_v46 = vpack.c.bf16 %v1556_v4, %v1553_v1  ;;  %v6672_v5 = vpop.f32.mrb[44].mxu1 }
 0x3a5   : > { %v6673_v47 = vpop.f32.mrb[45].mxu1 }
 0x3a6   : > { %6608 = vst [vmem:[%s8358_s22 + $0x10] sm:$0xff] %v6460_v46   ;;  %v6674_v7 = vadd.f32 %v6673_v47, %v6672_v5  ;;  %v6675_v8 = vpop.f32.mrb[46].mxu1 }
 0x3a7   : > { %v6676_v9 = vpop.f32.mrb[47].mxu1 }
 0x3a8   : > { %v6677_v10 = vadd.f32 %v6676_v9, %v6675_v8  ;;  %v1561_v11 = vadd.f32 %v6674_v7, %v8352_v42  ;;  %v7214_v7 = vld [vmem:[%s9517_s7 + $0x8] sm:$0xff]   ;;  %v7215_v9 = vld [vmem:[%s9517_s7 + $0x50] sm:$0xff]  }
 0x3aa   : > { %v1564_v19 = vadd.f32 %v6677_v10, %v8352_v42 }
 0x3ac   : > { %v6465_v20 = vpack.c.bf16 %v1564_v19, %v1561_v11  ;;  %v6678_v12 = vpop.f32.mrb[48].mxu1  ;;  %v7191_v19 = vld [vmem:[%s9511_s1] ss:$8 sps:$4 sm:$0xff]  }
 0x3ad   : > { %v6679_v13 = vpop.f32.mrb[49].mxu1 }
 0x3ae   : > { %6609 = vst [vmem:[%s8358_s22 + $0x18] sm:$0xff] %v6465_v20   ;;  %v6680_v3 = vadd.f32 %v6679_v13, %v6678_v12  ;;  %v6681_v14 = vpop.f32.mrb[50].mxu1  ;;  %v7196_v13 = vld [vmem:[%s9511_s1 + $0x14] ss:$8 sps:$4 sm:$0xff]  }
 0x3af   : > { %v6682_v6 = vpop.f32.mrb[51].mxu1 }
 0x3b0   : > { %v6683_v21 = vadd.f32 %v6682_v6, %v6681_v14  ;;  %v1569_v22 = vadd.f32 %v6680_v3, %v8352_v42  ;;  %v7216_v6 = vld [vmem:[%s9517_s7 + $0x10] sm:$0xff]  }
 0x3b2   : > { %v1572_v23 = vadd.f32 %v6683_v21, %v8352_v42 }
 0x3b4   : > { %v6470_v24 = vpack.c.bf16 %v1572_v23, %v1569_v22  ;;  %v6684_v25 = vpop.f32.mrb[52].mxu1  ;;  %v7217_v23 = vld [vmem:[%s9517_s7 + $0x58] sm:$0xff]  }
 0x3b5   : > { %v6685_v26 = vpop.f32.mrb[53].mxu1 }
 0x3b6   : > { %6610 = vst [vmem:[%s8358_s22 + $0x20] sm:$0xff] %v6470_v24   ;;  %v6686_v27 = vadd.f32 %v6685_v26, %v6684_v25  ;;  %v6687_v28 = vpop.f32.mrb[54].mxu1  ;;  %v7194_v25 = vld [vmem:[%s9511_s1 + $0x10] ss:$8 sps:$4 sm:$0xff]  }
 0x3b7   : > { %v6688_v29 = vpop.f32.mrb[55].mxu1 }
 0x3b8   : > { %v6689_v30 = vadd.f32 %v6688_v29, %v6687_v28  ;;  %v1577_v31 = vadd.f32 %v6686_v27, %v8352_v42  ;;  %v7199_v28 = vld [vmem:[%s9511_s1 + $0x24] ss:$8 sps:$4 sm:$0xff]  }
 0x3ba   : > { %v1580_v32 = vadd.f32 %v6689_v30, %v8352_v42 }
 0x3bc   : > { %v6475_v33 = vpack.c.bf16 %v1580_v32, %v1577_v31  ;;  %v6690_v34 = vpop.f32.mrb[56].mxu1  ;;  %v7218_v31 = vld [vmem:[%s9517_s7 + $0x18] sm:$0xff]  }
 0x3bd   : > { %v6691_v35 = vpop.f32.mrb[57].mxu1 }
 0x3be   : > { %6611 = vst [vmem:[%s8358_s22 + $0x28] sm:$0xff] %v6475_v33   ;;  %v6692_v36 = vadd.f32 %v6691_v35, %v6690_v34  ;;  %v6693_v15 = vpop.f32.mrb[58].mxu1  ;;  %v7219_v33 = vld [vmem:[%s9517_s7 + $0x60] sm:$0xff]  }
 0x3bf   : > { %v6694_v17 = vpop.f32.mrb[59].mxu1 }
 0x3c0   : > { %v6695_v37 = vadd.f32 %v6694_v17, %v6693_v15  ;;  %v1585_v38 = vadd.f32 %v6692_v36, %v8352_v42  ;;  %v7197_v36 = vld [vmem:[%s9511_s1 + $0x20] ss:$8 sps:$4 sm:$0xff]  }
 0x3c2   : > { %v1588_v39 = vadd.f32 %v6695_v37, %v8352_v42  ;;  %v7202_v37 = vld [vmem:[%s9511_s1 + $0x34] ss:$8 sps:$4 sm:$0xff]  }
 0x3c4   : > { %v6480_v40 = vpack.c.bf16 %v1588_v39, %v1585_v38  ;;  %v6696_v41 = vpop.f32.mrb[60].mxu1 }
 0x3c5   : > { %v6697_v43 = vpop.f32.mrb[61].mxu1 }
 0x3c6   : > { %6612 = vst [vmem:[%s8358_s22 + $0x30] sm:$0xff] %v6480_v40   ;;  %v6698_v44 = vadd.f32 %v6697_v43, %v6696_v41  ;;  %v6699_v45 = vpop.f32.mrb[62].mxu1  ;;  %v7220_v40 = vld [vmem:[%s9517_s7 + $0x20] sm:$0xff]  }
 0x3c7   : > { %v6700_v49 = vpop.f32.mrb[63].mxu1 }
 0x3c8   : > { %v6701_v50 = vadd.f32 %v6700_v49, %v6699_v45  ;;  %v1593_v52 = vadd.f32 %v6698_v44, %v8352_v42  ;;  %v7221_v44 = vld [vmem:[%s9517_s7 + $0x68] sm:$0xff]  }
 0x3ca   : > { %v1596_v53 = vadd.f32 %v6701_v50, %v8352_v42  ;;  %v7212_v42 = vld [vmem:[%s9517_s7] sm:$0xff]  }
 0x3cb   : > { %6703 = vmatpush3.bf16.msra.mxu1 %v7212_v42  ;;  %v7224_v42 = vld [vmem:[%s9517_s7 + $0x30] sm:$0xff]  }
 0x3cc   : > { %v6485_v55 = vpack.c.bf16 %v1596_v53, %v1593_v52  ;;  %v2219_v56 = vpop.f32.mrb[64].mxu1  ;;  %6704 = vmatprep.subr.bf16.mxu1 %v7213_v0 }
 0x3cd   : > { %v2220_v57 = vadd.f32 %v2219_v56, %v8383_v51  ;;  %v2221_v58 = vpop.f32.mrb[65].mxu1 }
 0x3ce   : > { %6613 = vst [vmem:[%s8358_s22 + $0x38] sm:$0xff] %v6485_v55   ;;  %v2222_v59 = vadd.f32 %v2221_v58, %v8388_v54  ;;  %v2223_v60 = vpop.f32.mrb[66].mxu1  ;;  %v7222_v55 = vld [vmem:[%s9517_s7 + $0x28] sm:$0xff]  }
 0x3cf   : > { %v2224_v61 = vadd.f32 %v2223_v60, %v8383_v51  ;;  %v2225_v62 = vpop.f32.mrb[67].mxu1  ;;  %v2298_v4 = vmax.f32 %v2220_v57, 0.0  ;;  %6705 = vmatpush3.bf16.msra.mxu1 %v7214_v7  ;;  %v7223_v57 = vld [vmem:[%s9517_s7 + $0x70] sm:$0xff]  }
 0x3d0   : > { %v2226_v1 = vadd.f32 %v2225_v62, %v8388_v54  ;;  %v2299_v5 = vmax.f32 %v2222_v59, 0.0  ;;  %6706 = vmatprep.subr.bf16.mxu1 %v7215_v9 }
 0x3d1   : > { %v2300_v46 = vmax.f32 %v2224_v61, 0.0 }
 0x3d2   : > { %v2301_v47 = vmax.f32 %v2226_v1, 0.0 }
 0x3d3   : > { %v2330_v8 = vpack.c.bf16 %v2300_v46, %v2298_v4  ;;  %6707 = vmatpush3.bf16.msra.mxu1 %v7216_v6 }
 0x3d4   : > { %v2331_v10 = vpack.c.bf16 %v2301_v47, %v2299_v5  ;;  %v2229_v11 = vpop.f32.mrb[68].mxu1  ;;  %6708 = vmatprep.subr.bf16.mxu1 %v7217_v23 }
 0x3d5   : > { %v2230_v20 = vadd.f32 %v2229_v11, %v8383_v51  ;;  %v2231_v12 = vpop.f32.mrb[69].mxu1 }
 0x3d6   : > { %v2232_v3 = vadd.f32 %v2231_v12, %v8388_v54  ;;  %v2233_v14 = vpop.f32.mrb[70].mxu1  ;;  %2582 = vmatprep.mubr.bf16.mxu0 %v2331_v10 }
 0x3d7   : > { %v2234_v21 = vadd.f32 %v2233_v14, %v8383_v51  ;;  %v2235_v22 = vpop.f32.mrb[71].mxu1  ;;  %2583 = vmatmul.mubr.bf16.vlgmr.msra.gmra.mrb[96].mxu0 %v2330_v8  ;;  %v2302_v26 = vmax.f32 %v2230_v20, 0.0  ;;  %6709 = vmatpush3.bf16.msra.mxu1 %v7218_v31 }
 0x3d8   : > { %v2236_v24 = vadd.f32 %v2235_v22, %v8388_v54  ;;  %3166 = vmatpush1.bf16.msra.mxu0 %v7191_v19  ;;  %v2303_v29 = vmax.f32 %v2232_v3, 0.0  ;;  %6710 = vmatprep.subr.bf16.mxu1 %v7219_v33 }
 0x3d9   : > { %v2304_v27 = vmax.f32 %v2234_v21, 0.0  ;;  %3167 = vmatprep.subr.bf16.mxu0 %v7196_v13 }
 0x3da   : > { %v2305_v30 = vmax.f32 %v2236_v24, 0.0 }
 0x3db   : > { %v2332_v32 = vpack.c.bf16 %v2304_v27, %v2302_v26  ;;  %6711 = vmatpush3.bf16.msra.mxu1 %v7220_v40 }
 0x3dc   : > { %v2333_v34 = vpack.c.bf16 %v2305_v30, %v2303_v29  ;;  %v2239_v35 = vpop.f32.mrb[72].mxu1  ;;  %3168 = vmatpush1.bf16.msra.mxu0 %v7194_v25  ;;  %6712 = vmatprep.subr.bf16.mxu1 %v7221_v44 }
 0x3dd   : > { %v2240_v15 = vadd.f32 %v2239_v35, %v8383_v51  ;;  %v2241_v17 = vpop.f32.mrb[73].mxu1  ;;  %3169 = vmatprep.subr.bf16.mxu0 %v7199_v28 }
 0x3de   : > { %v2242_v38 = vadd.f32 %v2241_v17, %v8388_v54  ;;  %v2243_v39 = vpop.f32.mrb[74].mxu1  ;;  %2592 = vmatprep.mubr.bf16.mxu0 %v2333_v34 }
 0x3df   : > { %v2244_v41 = vadd.f32 %v2243_v39, %v8383_v51  ;;  %v2245_v43 = vpop.f32.mrb[75].mxu1  ;;  %2593 = vmatmul.mubr.bf16.gmra.mrb[100].mxu0 %v2332_v32  ;;  %v2306_v49 = vmax.f32 %v2240_v15, 0.0  ;;  %6713 = vmatpush3.bf16.msra.mxu1 %v7222_v55 }
 0x3e0   : > { %v2246_v45 = vadd.f32 %v2245_v43, %v8388_v54  ;;  %3170 = vmatpush1.bf16.msra.mxu0 %v7197_v36  ;;  %v2307_v52 = vmax.f32 %v2242_v38, 0.0  ;;  %6714 = vmatprep.subr.bf16.mxu1 %v7223_v57 }
 0x3e1   : > { %v2308_v50 = vmax.f32 %v2244_v41, 0.0  ;;  %3171 = vmatprep.subr.bf16.mxu0 %v7202_v37 }
 0x3e2   : > { %v2309_v53 = vmax.f32 %v2246_v45, 0.0 }
 0x3e3   : > { %v2334_v56 = vpack.c.bf16 %v2308_v50, %v2306_v49  ;;  %6715 = vmatpush3.bf16.msra.mxu1 %v7224_v42 }
 0x3e4   : > { %v2335_v58 = vpack.c.bf16 %v2309_v53, %v2307_v52  ;;  %v2249_v59 = vpop.f32.mrb[76].mxu1  ;;  %3172 = vmatpush1.bf16.msra.mxu0 %v7200_v48 }
 0x3e5   : > { %v2250_v60 = vadd.f32 %v2249_v59, %v8383_v51  ;;  %v2251_v61 = vpop.f32.mrb[77].mxu1 }
 0x3e6   : > { %v2252_v62 = vadd.f32 %v2251_v61, %v8388_v54  ;;  %v2253_v63 = vpop.f32.mrb[78].mxu1  ;;  %2602 = vmatprep.mubr.bf16.mxu0 %v2335_v58 }
 0x3e7   : > { %v2254_v0 = vadd.f32 %v2253_v63, %v8383_v51  ;;  %v2255_v1 = vpop.f32.mrb[79].mxu1  ;;  %2603 = vmatmul.mubr.bf16.gmra.mrb[104].mxu0 %v2334_v56  ;;  %v2310_v46 = vmax.f32 %v2250_v60, 0.0 }
 0x3e8   : > { %v2256_v4 = vadd.f32 %v2255_v1, %v8388_v54  ;;  %v2311_v47 = vmax.f32 %v2252_v62, 0.0 }
 0x3e9   : > { %v2312_v5 = vmax.f32 %v2254_v0, 0.0 }
 0x3ea   : > { %v2313_v7 = vmax.f32 %v2256_v4, 0.0 }
 0x3eb   : > { %v2336_v8 = vpack.c.bf16 %v2312_v5, %v2310_v46 }
 0x3ec   : > { %v2337_v9 = vpack.c.bf16 %v2313_v7, %v2311_v47  ;;  %v2259_v10 = vpop.f32.mrb[80].mxu1  ;;  %v7203_v7 = vld [vmem:[%s7663_s24 + $0x80] sm:$0xff]  }
 0x3ed   : > { %v2260_v11 = vadd.f32 %v2259_v10, %v8383_v51  ;;  %v2261_v19 = vpop.f32.mrb[81].mxu1  ;;  %v7226_v10 = vld [vmem:[%s9517_s7 + $0x38] sm:$0xff]  }
 0x3ee   : > { %v2262_v20 = vadd.f32 %v2261_v19, %v8388_v54  ;;  %v2263_v12 = vpop.f32.mrb[82].mxu1  ;;  %2612 = vmatprep.mubr.bf16.mxu0 %v2337_v9  ;;  %v7225_v9 = vld [vmem:[%s9517_s7 + $0x78] sm:$0xff]   ;;  %v7229_v19 = vld [vmem:[%s9513_s3 + $0x4] ss:$8 sps:$4 sm:$0xff]  }
 0x3ef   : > { %v2264_v13 = vadd.f32 %v2263_v12, %v8383_v51  ;;  %v2265_v3 = vpop.f32.mrb[83].mxu1  ;;  %2613 = vmatmul.mubr.bf16.gmra.mrb[108].mxu0 %v2336_v8  ;;  %v2314_v6 = vmax.f32 %v2260_v11, 0.0  ;;  %v7206_v8 = vld [vmem:[%s7663_s24 + $0x98] sm:$0xff]   ;;  %6716 = vmatprep.subr.bf16.mxu1 %v7225_v9  ;;  %v7207_v11 = vld [vmem:[%s7663_s24 + $0xa0] sm:$0xff]   ;;  %v7209_v12 = vld [vmem:[%s7663_s24 + $0xb0] sm:$0xff]  }
 0x3f0   : > { %v2266_v14 = vadd.f32 %v2265_v3, %v8388_v54  ;;  %v2315_v22 = vmax.f32 %v2262_v20, 0.0  ;;  %6717 = vmatpush3.bf16.msra.mxu1 %v7226_v10  ;;  %v7208_v20 = vld [vmem:[%s7663_s24 + $0xa8] sm:$0xff]   ;;  %v2378_v3 = vld [vmem:[%s9516_s6] sm:$0x3] }
 0x3f1   : > { %v2316_v21 = vmax.f32 %v2264_v13, 0.0  ;;  %3530 = vmatprep.subr.bf16.mxu1 %v7229_v19  ;;  %v7210_v13 = vld [vmem:[%s7663_s24 + $0xb8] sm:$0xff]   ;;  %v7239_v9 = vld [vmem:[%s9513_s3 + $0x40] ss:$8 sps:$4 sm:$0xff]  }
 0x3f2   : > { %v2317_v23 = vmax.f32 %v2266_v14, 0.0  ;;  %v8523_v14 = vrot.slane %v2378_v3, %v7877_v16  ;;  %v7244_v19 = vld [vmem:[%s9513_s3 + $0x54] ss:$8 sps:$4 sm:$0xff]  }
 0x3f3   : > { %v2338_v24 = vpack.c.bf16 %v2316_v21, %v2314_v6  ;;  %v8526_v6 = vrot.slane %v2378_v3, %v7882_v18 }
 0x3f4   : > { %v2339_v25 = vpack.c.bf16 %v2317_v23, %v2315_v22  ;;  %v2269_v26 = vpop.f32.mrb[84].mxu1 }
 0x3f5   : > { %v2270_v27 = vadd.f32 %v2269_v26, %v8383_v51  ;;  %v2271_v28 = vpop.f32.mrb[85].mxu1 }
 0x3f6   : > { %v2272_v29 = vadd.f32 %v2271_v28, %v8388_v54  ;;  %v2273_v30 = vpop.f32.mrb[86].mxu1  ;;  %2622 = vmatprep.mubr.bf16.mxu0 %v2339_v25 }
 0x3f7   : > { %v2274_v31 = vadd.f32 %v2273_v30, %v8383_v51  ;;  %v2275_v32 = vpop.f32.mrb[87].mxu1  ;;  %2623 = vmatmul.mubr.bf16.gmra.mrb[112].mxu0 %v2338_v24  ;;  %v2318_v34 = vmax.f32 %v2270_v27, 0.0 }
 0x3f8   : > { %v2276_v33 = vadd.f32 %v2275_v32, %v8388_v54  ;;  %v2319_v36 = vmax.f32 %v2272_v29, 0.0 }
 0x3f9   : > { %v2320_v35 = vmax.f32 %v2274_v31, 0.0 }
 0x3fa   : > { %v2321_v15 = vmax.f32 %v2276_v33, 0.0 }
 0x3fb   : > { %v2340_v17 = vpack.c.bf16 %v2320_v35, %v2318_v34 }
 0x3fc   : > { %v2341_v37 = vpack.c.bf16 %v2321_v15, %v2319_v36  ;;  %v2279_v38 = vpop.f32.mrb[88].mxu1  ;;  %v7227_v36 = vld [vmem:[%s9513_s3] ss:$8 sps:$4 sm:$0xff]  }
 0x3fd   : > { %v2280_v39 = vadd.f32 %v2279_v38, %v8383_v51  ;;  %v2281_v40 = vpop.f32.mrb[89].mxu1 }
 0x3fe   : > { %v2282_v41 = vadd.f32 %v2281_v40, %v8388_v54  ;;  %v2283_v43 = vpop.f32.mrb[90].mxu1  ;;  %2632 = vmatprep.mubr.bf16.mxu0 %v2341_v37  ;;  %v7232_v37 = vld [vmem:[%s9513_s3 + $0x14] ss:$8 sps:$4 sm:$0xff]  }
 0x3ff   : > { %v2284_v44 = vadd.f32 %v2283_v43, %v8383_v51  ;;  %v2285_v45 = vpop.f32.mrb[91].mxu1  ;;  %2633 = vmatmul.mubr.bf16.gmra.mrb[116].mxu0 %v2340_v17  ;;  %v2322_v49 = vmax.f32 %v2280_v39, 0.0 }
 0x400   : > { %v2286_v48 = vadd.f32 %v2285_v45, %v8388_v54  ;;  %v2323_v52 = vmax.f32 %v2282_v41, 0.0 }
 0x401   : > { %v2324_v50 = vmax.f32 %v2284_v44, 0.0  ;;  %v7230_v44 = vld [vmem:[%s9513_s3 + $0x10] ss:$8 sps:$4 sm:$0xff]  }
 0x402   : > { %v2325_v53 = vmax.f32 %v2286_v48, 0.0 }
 0x403   : > { %v2342_v55 = vpack.c.bf16 %v2324_v50, %v2322_v49  ;;  %v7235_v49 = vld [vmem:[%s9513_s3 + $0x24] ss:$8 sps:$4 sm:$0xff]  }
 0x404   : > { %v2343_v56 = vpack.c.bf16 %v2325_v53, %v2323_v52  ;;  %v2289_v57 = vpop.f32.mrb[92].mxu1 }
 0x405   : > { %v2290_v58 = vadd.f32 %v2289_v57, %v8383_v51  ;;  %v2291_v59 = vpop.f32.mrb[93].mxu1  ;;  %v7233_v57 = vld [vmem:[%s9513_s3 + $0x20] ss:$8 sps:$4 sm:$0xff]  }
 0x406   : > { %v2292_v60 = vadd.f32 %v2291_v59, %v8388_v54  ;;  %v2293_v61 = vpop.f32.mrb[94].mxu1  ;;  %2642 = vmatprep.mubr.bf16.mxu0 %v2343_v56 }
 0x407   : > { %v2294_v62 = vadd.f32 %v2293_v61, %v8383_v51  ;;  %v2295_v63 = vpop.f32.mrb[95].mxu1  ;;  %2643 = vmatmul.mubr.bf16.gmra.mrb[120].mxu0 %v2342_v55  ;;  %v2326_v0 = vmax.f32 %v2290_v58, 0.0  ;;  %v7204_v51 = vld [vmem:[%s7663_s24 + $0x88] sm:$0xff]  }
 0x408   : > { %v2296_v42 = vadd.f32 %v2295_v63, %v8388_v54  ;;  %v2327_v4 = vmax.f32 %v2292_v60, 0.0  ;;  %v7205_v54 = vld [vmem:[%s7663_s24 + $0x90] sm:$0xff]  }
 0x409   : > { %v2328_v1 = vmax.f32 %v2294_v62, 0.0  ;;  %v7238_v60 = vld [vmem:[%s9513_s3 + $0x34] ss:$8 sps:$4 sm:$0xff]  }
 0x40a   : > { %v2329_v46 = vmax.f32 %v2296_v42, 0.0 }
 0x40b   : > { %v2344_v5 = vpack.c.bf16 %v2328_v1, %v2326_v0  ;;  %v7236_v1 = vld [vmem:[%s9513_s3 + $0x30] ss:$8 sps:$4 sm:$0xff]  }
 0x40c   : > { %v2345_v47 = vpack.c.bf16 %v2329_v46, %v2327_v4 }
 0x40e   : > { %2652 = vmatprep.mubr.bf16.mxu0 %v2345_v47 }
 0x40f   : > { %2653 = vmatmul.mubr.bf16.gmra.mrb[124].mxu0 %v2344_v5  ;;  %v7241_v5 = vld [vmem:[%s9513_s3 + $0x44] ss:$8 sps:$4 sm:$0xff]  }
 0x410   : > { %3197 = vmatprep.mubr.bf16.mxu0 %v7541_v2 }
 0x417   : > { %6103 = vmatmul.mubr.msk.bf16.vlgmr.msra.gmra.mrb[128].mxu0 %vm451_vm0, %v7203_v7 }
 0x418   : > { %3207 = vmatprep.mubr.bf16.mxu0 %v7541_v2 }
 0x41f   : > { %6104 = vmatmul.mubr.msk.bf16.gmra.mrb[132].mxu0 %vm451_vm0, %v7204_v51 }
 0x420   : > { %3217 = vmatprep.mubr.bf16.mxu0 %v7541_v2 }
 0x427   : > { %6105 = vmatmul.mubr.msk.bf16.gmra.mrb[136].mxu0 %vm451_vm0, %v7205_v54 }
 0x428   : > { %3227 = vmatprep.mubr.bf16.mxu0 %v7541_v2 }
 0x42f   : > { %6106 = vmatmul.mubr.msk.bf16.gmra.mrb[140].mxu0 %vm451_vm0, %v7206_v8 }
 0x430   : > { %3237 = vmatprep.mubr.bf16.mxu0 %v7541_v2 }
 0x437   : > { %6107 = vmatmul.mubr.msk.bf16.gmra.mrb[144].mxu0 %vm451_vm0, %v7207_v11 }
 0x438   : > { %3247 = vmatprep.mubr.bf16.mxu0 %v7541_v2 }
 0x43f   : > { %6108 = vmatmul.mubr.msk.bf16.gmra.mrb[148].mxu0 %vm451_vm0, %v7208_v20 }
 0x440   : > { %3257 = vmatprep.mubr.bf16.mxu0 %v7541_v2 }
 0x447   : > { %6109 = vmatmul.mubr.msk.bf16.gmra.mrb[152].mxu0 %vm451_vm0, %v7209_v12 }
 0x448   : > { %3267 = vmatprep.mubr.bf16.mxu0 %v7541_v2 }
 0x44f   : > { %6110 = vmatmul.mubr.msk.bf16.gmra.mrb[156].mxu0 %vm451_vm0, %v7210_v13 }
 0x4aa   : > { %v2584_v21 = vpop.f32.mrb[96].mxu0 }
 0x4ab   : > { %v2585_v22 = vadd.f32 %v2584_v21, %v8523_v14  ;;  %v2586_v23 = vpop.f32.mrb[97].mxu0 }
 0x4ac   : > { %v2587_v24 = vadd.f32 %v2586_v23, %v8526_v6  ;;  %v2588_v25 = vpop.f32.mrb[98].mxu0 }
 0x4ad   : > { %v2589_v26 = vadd.f32 %v2588_v25, %v8523_v14  ;;  %v2590_v27 = vpop.f32.mrb[99].mxu0  ;;  %v2663_v29 = vmax.f32 %v2585_v22, 0.0  ;;  %v7242_v22 = vld [vmem:[%s9513_s3 + $0x50] ss:$8 sps:$4 sm:$0xff]   ;;  %v7247_v25 = vld [vmem:[%s9513_s3 + $0x64] ss:$8 sps:$4 sm:$0xff]  }
 0x4ae   : > { %v2591_v28 = vadd.f32 %v2590_v27, %v8526_v6  ;;  %v2664_v31 = vmax.f32 %v2587_v24, 0.0 }
 0x4af   : > { %v2665_v30 = vmax.f32 %v2589_v26, 0.0 }
 0x4b0   : > { %v2666_v32 = vmax.f32 %v2591_v28, 0.0 }
 0x4b1   : > { %v2695_v33 = vpack.c.bf16 %v2665_v30, %v2663_v29 }
 0x4b2   : > { %v2696_v34 = vpack.c.bf16 %v2666_v32, %v2664_v31  ;;  %v2594_v35 = vpop.f32.mrb[100].mxu0  ;;  %v7245_v31 = vld [vmem:[%s9513_s3 + $0x60] ss:$8 sps:$4 sm:$0xff]  }
 0x4b3   : > { %v2595_v15 = vadd.f32 %v2594_v35, %v8523_v14  ;;  %v2596_v17 = vpop.f32.mrb[101].mxu0 }
 0x4b4   : > { %v2597_v38 = vadd.f32 %v2596_v17, %v8526_v6  ;;  %v2598_v39 = vpop.f32.mrb[102].mxu0  ;;  %2878 = vmatprep.mubr.bf16.mxu1 %v2696_v34  ;;  %v7250_v34 = vld [vmem:[%s9513_s3 + $0x74] ss:$8 sps:$4 sm:$0xff]  }
 0x4b5   : > { %v2599_v40 = vadd.f32 %v2598_v39, %v8523_v14  ;;  %v2600_v41 = vpop.f32.mrb[103].mxu0  ;;  %2879 = vmatmul.mubr.bf16.vlgmr.msra.gmra.mrb[96].mxu1 %v2695_v33  ;;  %v2667_v45 = vmax.f32 %v2595_v15, 0.0 }
 0x4b6   : > { %v2601_v43 = vadd.f32 %v2600_v41, %v8526_v6  ;;  %3531 = vmatpush1.bf16.msra.mxu1 %v7227_v36  ;;  %v2668_v50 = vmax.f32 %v2597_v38, 0.0  ;;  %v7248_v38 = vld [vmem:[%s9513_s3 + $0x70] ss:$8 sps:$4 sm:$0xff]   ;;  %v7253_v41 = vld [vmem:[%s9513_s3 + $0x84] ss:$8 sps:$4 sm:$0xff]  }
 0x4b7   : > { %v2669_v48 = vmax.f32 %v2599_v40, 0.0  ;;  %3532 = vmatprep.subr.bf16.mxu1 %v7232_v37 }
 0x4b8   : > { %v2670_v52 = vmax.f32 %v2601_v43, 0.0 }
 0x4b9   : > { %v2697_v53 = vpack.c.bf16 %v2669_v48, %v2667_v45 }
 0x4ba   : > { %v2698_v55 = vpack.c.bf16 %v2670_v52, %v2668_v50  ;;  %3533 = vmatpush1.bf16.msra.mxu1 %v7230_v44  ;;  %v2604_v56 = vpop.f32.mrb[104].mxu0  ;;  %v7251_v50 = vld [vmem:[%s9513_s3 + $0x80] ss:$8 sps:$4 sm:$0xff]  }
 0x4bb   : > { %v2605_v58 = vadd.f32 %v2604_v56, %v8523_v14  ;;  %v2606_v59 = vpop.f32.mrb[105].mxu0  ;;  %3534 = vmatprep.subr.bf16.mxu1 %v7235_v49 }
 0x4bc   : > { %v2607_v61 = vadd.f32 %v2606_v59, %v8526_v6  ;;  %v2608_v62 = vpop.f32.mrb[106].mxu0  ;;  %2886 = vmatprep.mubr.bf16.mxu1 %v2698_v55  ;;  %v7256_v55 = vld [vmem:[%s9513_s3 + $0x94] ss:$8 sps:$4 sm:$0xff]  }
 0x4bd   : > { %v2609_v63 = vadd.f32 %v2608_v62, %v8523_v14  ;;  %v2610_v42 = vpop.f32.mrb[107].mxu0  ;;  %2887 = vmatmul.mubr.bf16.gmra.mrb[100].mxu1 %v2697_v53  ;;  %v2671_v4 = vmax.f32 %v2605_v58, 0.0 }
 0x4be   : > { %v2611_v0 = vadd.f32 %v2610_v42, %v8526_v6  ;;  %3535 = vmatpush1.bf16.msra.mxu1 %v7233_v57  ;;  %v2672_v47 = vmax.f32 %v2607_v61, 0.0  ;;  %v7254_v61 = vld [vmem:[%s9513_s3 + $0x90] ss:$8 sps:$4 sm:$0xff]   ;;  %v7259_v42 = vld [vmem:[%s9513_s3 + $0xa4] ss:$8 sps:$4 sm:$0xff]  }
 0x4bf   : > { %v2673_v46 = vmax.f32 %v2609_v63, 0.0  ;;  %3536 = vmatprep.subr.bf16.mxu1 %v7238_v60 }
 0x4c0   : > { %v2674_v7 = vmax.f32 %v2611_v0, 0.0 }
 0x4c1   : > { %v2699_v51 = vpack.c.bf16 %v2673_v46, %v2671_v4 }
 0x4c2   : > { %v2700_v54 = vpack.c.bf16 %v2674_v7, %v2672_v47  ;;  %3537 = vmatpush1.bf16.msra.mxu1 %v7236_v1  ;;  %v2614_v8 = vpop.f32.mrb[108].mxu0  ;;  %v7257_v47 = vld [vmem:[%s9513_s3 + $0xa0] ss:$8 sps:$4 sm:$0xff]  }
 0x4c3   : > { %v2615_v10 = vadd.f32 %v2614_v8, %v8523_v14  ;;  %v2616_v11 = vpop.f32.mrb[109].mxu0  ;;  %3538 = vmatprep.subr.bf16.mxu1 %v7241_v5 }
 0x4c4   : > { %v2617_v20 = vadd.f32 %v2616_v11, %v8526_v6  ;;  %v2618_v12 = vpop.f32.mrb[110].mxu0  ;;  %2894 = vmatprep.mubr.bf16.mxu1 %v2700_v54  ;;  %v7262_v54 = vld [vmem:[%s9513_s3 + $0xb4] ss:$8 sps:$4 sm:$0xff]  }
 0x4c5   : > { %v2619_v13 = vadd.f32 %v2618_v12, %v8523_v14  ;;  %v2620_v3 = vpop.f32.mrb[111].mxu0  ;;  %2895 = vmatmul.mubr.bf16.gmra.mrb[104].mxu1 %v2699_v51  ;;  %v2675_v23 = vmax.f32 %v2615_v10, 0.0 }
 0x4c6   : > { %v2621_v21 = vadd.f32 %v2620_v3, %v8526_v6  ;;  %3539 = vmatpush1.bf16.msra.mxu1 %v7239_v9  ;;  %v2676_v26 = vmax.f32 %v2617_v20, 0.0  ;;  %v7260_v20 = vld [vmem:[%s9513_s3 + $0xb0] ss:$8 sps:$4 sm:$0xff]   ;;  %v7265_v3 = vld [vmem:[%s9513_s3 + $0xc4] ss:$8 sps:$4 sm:$0xff]  }
 0x4c7   : > { %v2677_v24 = vmax.f32 %v2619_v13, 0.0  ;;  %3540 = vmatprep.subr.bf16.mxu1 %v7244_v19 }
 0x4c8   : > { %v2678_v27 = vmax.f32 %v2621_v21, 0.0 }
 0x4c9   : > { %v2701_v28 = vpack.c.bf16 %v2677_v24, %v2675_v23 }
 0x4ca   : > { %v2702_v29 = vpack.c.bf16 %v2678_v27, %v2676_v26  ;;  %3541 = vmatpush1.bf16.msra.mxu1 %v7242_v22  ;;  %v2624_v30 = vpop.f32.mrb[112].mxu0  ;;  %v7263_v26 = vld [vmem:[%s9513_s3 + $0xc0] ss:$8 sps:$4 sm:$0xff]  }
 0x4cb   : > { %v2625_v32 = vadd.f32 %v2624_v30, %v8523_v14  ;;  %v2626_v33 = vpop.f32.mrb[113].mxu0  ;;  %3542 = vmatprep.subr.bf16.mxu1 %v7247_v25 }
 0x4cc   : > { %v2627_v35 = vadd.f32 %v2626_v33, %v8526_v6  ;;  %v2628_v36 = vpop.f32.mrb[114].mxu0  ;;  %2902 = vmatprep.mubr.bf16.mxu1 %v2702_v29  ;;  %v7268_v29 = vld [vmem:[%s9513_s3 + $0xd4] ss:$8 sps:$4 sm:$0xff]  }
 0x4cd   : > { %v2629_v15 = vadd.f32 %v2628_v36, %v8523_v14  ;;  %v2630_v17 = vpop.f32.mrb[115].mxu0  ;;  %2903 = vmatmul.mubr.bf16.gmra.mrb[108].mxu1 %v2701_v28  ;;  %v2679_v39 = vmax.f32 %v2625_v32, 0.0  ;;  %v3049_v32 = vld [vmem:[%s9512_s2] sm:$0x3]  ;;  %v7266_v36 = vld [vmem:[%s9513_s3 + $0xd0] ss:$8 sps:$4 sm:$0xff]  }
 0x4ce   : > { %v2631_v37 = vadd.f32 %v2630_v17, %v8526_v6  ;;  %3543 = vmatpush1.bf16.msra.mxu1 %v7245_v31  ;;  %v2680_v43 = vmax.f32 %v2627_v35, 0.0 }
 0x4cf   : > { %v2681_v40 = vmax.f32 %v2629_v15, 0.0  ;;  %3544 = vmatprep.subr.bf16.mxu1 %v7250_v34 }
 0x4d0   : > { %v2682_v44 = vmax.f32 %v2631_v37, 0.0  ;;  %v8645_v37 = vrot.slane %v3049_v32, %v7877_v16 }
 0x4d1   : > { %v2703_v45 = vpack.c.bf16 %v2681_v40, %v2679_v39  ;;  %v8651_v40 = vrot.slane %v3049_v32, %v7882_v18 }
 0x4d2   : > { %v2704_v48 = vpack.c.bf16 %v2682_v44, %v2680_v43  ;;  %3545 = vmatpush1.bf16.msra.mxu1 %v7248_v38  ;;  %v2634_v49 = vpop.f32.mrb[116].mxu0  ;;  %v7271_v38 = vld [vmem:[%s9513_s3 + $0xe4] ss:$8 sps:$4 sm:$0xff]   ;;  %v7269_v44 = vld [vmem:[%s9513_s3 + $0xe0] ss:$8 sps:$4 sm:$0xff]  }
 0x4d3   : > { %v2635_v52 = vadd.f32 %v2634_v49, %v8523_v14  ;;  %v2636_v53 = vpop.f32.mrb[117].mxu0  ;;  %3546 = vmatprep.subr.bf16.mxu1 %v7253_v41  ;;  %v7274_v49 = vld [vmem:[%s9513_s3 + $0xf4] ss:$8 sps:$4 sm:$0xff]  }
 0x4d4   : > { %v2637_v56 = vadd.f32 %v2636_v53, %v8526_v6  ;;  %v2638_v57 = vpop.f32.mrb[118].mxu0  ;;  %2910 = vmatprep.mubr.bf16.mxu1 %v2704_v48 }
 0x4d5   : > { %v2639_v58 = vadd.f32 %v2638_v57, %v8523_v14  ;;  %v2640_v59 = vpop.f32.mrb[119].mxu0  ;;  %2911 = vmatmul.mubr.bf16.gmra.mrb[112].mxu1 %v2703_v45  ;;  %v2683_v62 = vmax.f32 %v2635_v52, 0.0  ;;  %v7272_v57 = vld [vmem:[%s9513_s3 + $0xf0] ss:$8 sps:$4 sm:$0xff]  }
 0x4d6   : > { %v2641_v60 = vadd.f32 %v2640_v59, %v8526_v6  ;;  %3547 = vmatpush1.bf16.msra.mxu1 %v7251_v50  ;;  %v2684_v0 = vmax.f32 %v2637_v56, 0.0 }
 0x4d7   : > { %v2685_v63 = vmax.f32 %v2639_v58, 0.0  ;;  %3548 = vmatprep.subr.bf16.mxu1 %v7256_v55 }
 0x4d8   : > { %v2686_v1 = vmax.f32 %v2641_v60, 0.0 }
 0x4d9   : > { %v2705_v4 = vpack.c.bf16 %v2685_v63, %v2683_v62 }
 0x4da   : > { %v2706_v46 = vpack.c.bf16 %v2686_v1, %v2684_v0  ;;  %3549 = vmatpush1.bf16.msra.mxu1 %v7254_v61  ;;  %v2644_v5 = vpop.f32.mrb[120].mxu0 }
 0x4db   : > { %v2645_v7 = vadd.f32 %v2644_v5, %v8523_v14  ;;  %v2646_v51 = vpop.f32.mrb[121].mxu0  ;;  %3550 = vmatprep.subr.bf16.mxu1 %v7259_v42 }
 0x4dc   : > { %v2647_v8 = vadd.f32 %v2646_v51, %v8526_v6  ;;  %v2648_v9 = vpop.f32.mrb[122].mxu0  ;;  %2918 = vmatprep.mubr.bf16.mxu1 %v2706_v46 }
 0x4dd   : > { %v2649_v10 = vadd.f32 %v2648_v9, %v8523_v14  ;;  %v2650_v11 = vpop.f32.mrb[123].mxu0  ;;  %2919 = vmatmul.mubr.bf16.gmra.mrb[116].mxu1 %v2705_v4  ;;  %v2687_v12 = vmax.f32 %v2645_v7, 0.0 }
 0x4de   : > { %v2651_v19 = vadd.f32 %v2650_v11, %v8526_v6  ;;  %3551 = vmatpush1.bf16.msra.mxu1 %v7257_v47  ;;  %v2688_v21 = vmax.f32 %v2647_v8, 0.0 }
 0x4df   : > { %v2689_v13 = vmax.f32 %v2649_v10, 0.0  ;;  %3552 = vmatprep.subr.bf16.mxu1 %v7262_v54 }
 0x4e0   : > { %v2690_v22 = vmax.f32 %v2651_v19, 0.0 }
 0x4e1   : > { %v2707_v23 = vpack.c.bf16 %v2689_v13, %v2687_v12 }
 0x4e2   : > { %v2708_v24 = vpack.c.bf16 %v2690_v22, %v2688_v21  ;;  %3553 = vmatpush1.bf16.msra.mxu1 %v7260_v20  ;;  %v2654_v25 = vpop.f32.mrb[124].mxu0 }
 0x4e3   : > { %v2655_v27 = vadd.f32 %v2654_v25, %v8523_v14  ;;  %v2656_v28 = vpop.f32.mrb[125].mxu0  ;;  %3554 = vmatprep.subr.bf16.mxu1 %v7265_v3 }
 0x4e4   : > { %v2657_v30 = vadd.f32 %v2656_v28, %v8526_v6  ;;  %v2658_v31 = vpop.f32.mrb[126].mxu0  ;;  %2926 = vmatprep.mubr.bf16.mxu1 %v2708_v24 }
 0x4e5   : > { %v2659_v33 = vadd.f32 %v2658_v31, %v8523_v14  ;;  %v2660_v34 = vpop.f32.mrb[127].mxu0  ;;  %2927 = vmatmul.mubr.bf16.gmra.mrb[120].mxu1 %v2707_v23  ;;  %v2691_v15 = vmax.f32 %v2655_v27, 0.0 }
 0x4e6   : > { %v2661_v35 = vadd.f32 %v2660_v34, %v8526_v6  ;;  %3555 = vmatpush1.bf16.msra.mxu1 %v7263_v26  ;;  %v2692_v14 = vmax.f32 %v2657_v30, 0.0 }
 0x4e7   : > { %v2693_v17 = vmax.f32 %v2659_v33, 0.0  ;;  %3556 = vmatprep.subr.bf16.mxu1 %v7268_v29 }
 0x4e8   : > { %v2694_v39 = vmax.f32 %v2661_v35, 0.0 }
 0x4e9   : > { %v2709_v6 = vpack.c.bf16 %v2693_v17, %v2691_v15 }
 0x4ea   : > { %v2710_v41 = vpack.c.bf16 %v2694_v39, %v2692_v14  ;;  %3557 = vmatpush1.bf16.msra.mxu1 %v7266_v36  ;;  %v3199_v43 = vpop.f32.mrb[128].mxu0 }
 0x4eb   : > { %v3200_v45 = vadd.f32 %v3199_v43, %v8645_v37  ;;  %v3201_v48 = vpop.f32.mrb[129].mxu0  ;;  %3558 = vmatprep.subr.bf16.mxu1 %v7271_v38 }
 0x4ec   : > { %v3202_v50 = vadd.f32 %v3201_v48, %v8651_v40  ;;  %2934 = vmatprep.mubr.bf16.mxu1 %v2710_v41  ;;  %v3203_v52 = vpop.f32.mrb[130].mxu0 }
 0x4ed   : > { %v3204_v53 = vadd.f32 %v3203_v52, %v8645_v37  ;;  %2935 = vmatmul.mubr.bf16.gmra.mrb[124].mxu1 %v2709_v6  ;;  %v3205_v55 = vpop.f32.mrb[131].mxu0  ;;  %v3278_v58 = vmax.f32 %v3200_v45, 0.0 }
 0x4ee   : > { %v3206_v56 = vadd.f32 %v3205_v55, %v8651_v40  ;;  %3559 = vmatpush1.bf16.msra.mxu1 %v7269_v44  ;;  %v3279_v60 = vmax.f32 %v3202_v50, 0.0 }
 0x4ef   : > { %v3280_v59 = vmax.f32 %v3204_v53, 0.0  ;;  %3560 = vmatprep.subr.bf16.mxu1 %v7274_v49 }
 0x4f0   : > { %v3281_v61 = vmax.f32 %v3206_v56, 0.0 }
 0x4f1   : > { %v3310_v62 = vpack.c.bf16 %v3280_v59, %v3278_v58 }
 0x4f2   : > { %v3311_v63 = vpack.c.bf16 %v3281_v61, %v3279_v60  ;;  %3561 = vmatpush1.bf16.msra.mxu1 %v7272_v57  ;;  %v3209_v42 = vpop.f32.mrb[132].mxu0  ;;  %v7277_v60 = vld [vmem:[%s9515_s5 + $0x4] ss:$8 sps:$4 sm:$0xff]  }
 0x4f3   : > { %v3210_v0 = vadd.f32 %v3209_v42, %v8645_v37  ;;  %v3211_v1 = vpop.f32.mrb[133].mxu0  ;;  %3895 = vmatprep.subr.bf16.mxu0 %v7277_v60  ;;  %v7304_v60 = vld [vmem:[%s9515_s5 + $0x94] ss:$8 sps:$4 sm:$0xff]  }
 0x4f4   : > { %v3212_v4 = vadd.f32 %v3211_v1, %v8651_v40  ;;  %v3213_v46 = vpop.f32.mrb[134].mxu0  ;;  %3562 = vmatprep.mubr.bf16.mxu1 %v3311_v63  ;;  %v7275_v63 = vld [vmem:[%s9515_s5] ss:$8 sps:$4 sm:$0xff]  }
 0x4f5   : > { %v3214_v5 = vadd.f32 %v3213_v46, %v8645_v37  ;;  %v3215_v47 = vpop.f32.mrb[135].mxu0  ;;  %3563 = vmatmul.mubr.bf16.vlgmr.msra.gmra.mrb[128].mxu1 %v3310_v62  ;;  %v3282_v51 = vmax.f32 %v3210_v0, 0.0  ;;  %3896 = vmatpush1.bf16.msra.mxu0 %v7275_v63  ;;  %v7305_v63 = vld [vmem:[%s9515_s5 + $0xa0] ss:$8 sps:$4 sm:$0xff]  }
 0x4f6   : > { %v3216_v7 = vadd.f32 %v3215_v47, %v8651_v40  ;;  %v3283_v8 = vmax.f32 %v3212_v4, 0.0  ;;  %v7280_v47 = vld [vmem:[%s9515_s5 + $0x14] ss:$8 sps:$4 sm:$0xff]  }
 0x4f7   : > { %v3284_v54 = vmax.f32 %v3214_v5, 0.0  ;;  %3897 = vmatprep.subr.bf16.mxu0 %v7280_v47  ;;  %v7319_v47 = vld [vmem:[%s9515_s5 + $0xe4] ss:$8 sps:$4 sm:$0xff]  }
 0x4f8   : > { %v3285_v9 = vmax.f32 %v3216_v7, 0.0 }
 0x4f9   : > { %v3312_v10 = vpack.c.bf16 %v3284_v54, %v3282_v51  ;;  %v7278_v51 = vld [vmem:[%s9515_s5 + $0x10] ss:$8 sps:$4 sm:$0xff]  }
 0x4fa   : > { %v3313_v11 = vpack.c.bf16 %v3285_v9, %v3283_v8  ;;  %v3219_v19 = vpop.f32.mrb[136].mxu0  ;;  %3898 = vmatpush1.bf16.msra.mxu0 %v7278_v51  ;;  %v7322_v51 = vld [vmem:[%s9515_s5 + $0xf4] ss:$8 sps:$4 sm:$0xff]  }
 0x4fb   : > { %v3220_v20 = vadd.f32 %v3219_v19, %v8645_v37  ;;  %v3221_v12 = vpop.f32.mrb[137].mxu0  ;;  %v7283_v19 = vld [vmem:[%s9515_s5 + $0x24] ss:$8 sps:$4 sm:$0xff]  }
 0x4fc   : > { %v3222_v13 = vadd.f32 %v3221_v12, %v8651_v40  ;;  %v3223_v3 = vpop.f32.mrb[138].mxu0  ;;  %3572 = vmatprep.mubr.bf16.mxu1 %v3313_v11  ;;  %3899 = vmatprep.subr.bf16.mxu0 %v7283_v19 }
 0x4fd   : > { %v3224_v21 = vadd.f32 %v3223_v3, %v8645_v37  ;;  %v3225_v22 = vpop.f32.mrb[139].mxu0  ;;  %3573 = vmatmul.mubr.bf16.gmra.mrb[132].mxu1 %v3312_v10  ;;  %v3286_v24 = vmax.f32 %v3220_v20, 0.0 }
 0x4fe   : > { %v3226_v23 = vadd.f32 %v3225_v22, %v8651_v40  ;;  %v3287_v26 = vmax.f32 %v3222_v13, 0.0  ;;  %v7281_v13 = vld [vmem:[%s9515_s5 + $0x20] ss:$8 sps:$4 sm:$0xff]  }
 0x4ff   : > { %v3288_v25 = vmax.f32 %v3224_v21, 0.0  ;;  %3900 = vmatpush1.bf16.msra.mxu0 %v7281_v13 }
 0x500   : > { %v3289_v27 = vmax.f32 %v3226_v23, 0.0 }
 0x501   : > { %v3314_v28 = vpack.c.bf16 %v3288_v25, %v3286_v24 }
 0x502   : > { %v3315_v29 = vpack.c.bf16 %v3289_v27, %v3287_v26  ;;  %v3229_v30 = vpop.f32.mrb[140].mxu0  ;;  %v7286_v26 = vld [vmem:[%s9515_s5 + $0x34] ss:$8 sps:$4 sm:$0xff]  }
 0x503   : > { %v3230_v31 = vadd.f32 %v3229_v30, %v8645_v37  ;;  %v3231_v32 = vpop.f32.mrb[141].mxu0  ;;  %3901 = vmatprep.subr.bf16.mxu0 %v7286_v26 }
 0x504   : > { %v3232_v33 = vadd.f32 %v3231_v32, %v8651_v40  ;;  %v3233_v34 = vpop.f32.mrb[142].mxu0  ;;  %3582 = vmatprep.mubr.bf16.mxu1 %v3315_v29 }
 0x505   : > { %v3234_v35 = vadd.f32 %v3233_v34, %v8645_v37  ;;  %v3235_v36 = vpop.f32.mrb[143].mxu0  ;;  %3583 = vmatmul.mubr.bf16.gmra.mrb[136].mxu1 %v3314_v28  ;;  %v3290_v17 = vmax.f32 %v3230_v31, 0.0  ;;  %v7284_v28 = vld [vmem:[%s9515_s5 + $0x30] ss:$8 sps:$4 sm:$0xff]   ;;  %v7289_v34 = vld [vmem:[%s9515_s5 + $0x44] ss:$8 sps:$4 sm:$0xff]  }
 0x506   : > { %v3236_v15 = vadd.f32 %v3235_v36, %v8651_v40  ;;  %v3291_v14 = vmax.f32 %v3232_v33, 0.0  ;;  %3902 = vmatpush1.bf16.msra.mxu0 %v7284_v28 }
 0x507   : > { %v3292_v38 = vmax.f32 %v3234_v35, 0.0  ;;  %3903 = vmatprep.subr.bf16.mxu0 %v7289_v34 }
 0x508   : > { %v3293_v39 = vmax.f32 %v3236_v15, 0.0  ;;  %v7287_v15 = vld [vmem:[%s9515_s5 + $0x40] ss:$8 sps:$4 sm:$0xff]  }
 0x509   : > { %v3316_v6 = vpack.c.bf16 %v3292_v38, %v3290_v17 }
 0x50a   : > { %v3317_v41 = vpack.c.bf16 %v3293_v39, %v3291_v14  ;;  %v3239_v43 = vpop.f32.mrb[144].mxu0  ;;  %3904 = vmatpush1.bf16.msra.mxu0 %v7287_v15 }
 0x50b   : > { %v3240_v44 = vadd.f32 %v3239_v43, %v8645_v37  ;;  %v3241_v45 = vpop.f32.mrb[145].mxu0  ;;  %v7292_v43 = vld [vmem:[%s9515_s5 + $0x54] ss:$8 sps:$4 sm:$0xff]  }
 0x50c   : > { %v3242_v48 = vadd.f32 %v3241_v45, %v8651_v40  ;;  %v3243_v49 = vpop.f32.mrb[146].mxu0  ;;  %3592 = vmatprep.mubr.bf16.mxu1 %v3317_v41  ;;  %v7290_v45 = vld [vmem:[%s9515_s5 + $0x50] ss:$8 sps:$4 sm:$0xff]   ;;  %3905 = vmatprep.subr.bf16.mxu0 %v7292_v43 }
 0x50d   : > { %v3244_v50 = vadd.f32 %v3243_v49, %v8645_v37  ;;  %v3245_v52 = vpop.f32.mrb[147].mxu0  ;;  %3593 = vmatmul.mubr.bf16.gmra.mrb[140].mxu1 %v3316_v6  ;;  %v3294_v55 = vmax.f32 %v3240_v44, 0.0 }
 0x50e   : > { %v3246_v53 = vadd.f32 %v3245_v52, %v8651_v40  ;;  %v3295_v57 = vmax.f32 %v3242_v48, 0.0  ;;  %3906 = vmatpush1.bf16.msra.mxu0 %v7290_v45 }
 0x50f   : > { %v3296_v56 = vmax.f32 %v3244_v50, 0.0 }
 0x510   : > { %v3297_v58 = vmax.f32 %v3246_v53, 0.0 }
 0x511   : > { %v3318_v59 = vpack.c.bf16 %v3296_v56, %v3294_v55  ;;  %v7298_v56 = vld [vmem:[%s9515_s5 + $0x74] ss:$8 sps:$4 sm:$0xff]  }
 0x512   : > { %v3319_v61 = vpack.c.bf16 %v3297_v58, %v3295_v57  ;;  %v3249_v62 = vpop.f32.mrb[148].mxu0  ;;  %v7296_v57 = vld [vmem:[%s9515_s5 + $0x70] ss:$8 sps:$4 sm:$0xff]   ;;  %v7301_v58 = vld [vmem:[%s9515_s5 + $0x84] ss:$8 sps:$4 sm:$0xff]  }
 0x513   : > { %v3250_v42 = vadd.f32 %v3249_v62, %v8645_v37  ;;  %v3251_v0 = vpop.f32.mrb[149].mxu0  ;;  %v7307_v62 = vld [vmem:[%s9515_s5 + $0xa4] ss:$8 sps:$4 sm:$0xff]  }
 0x514   : > { %v3252_v1 = vadd.f32 %v3251_v0, %v8651_v40  ;;  %v3253_v4 = vpop.f32.mrb[150].mxu0  ;;  %3602 = vmatprep.mubr.bf16.mxu1 %v3319_v61  ;;  %v7302_v61 = vld [vmem:[%s9515_s5 + $0x90] ss:$8 sps:$4 sm:$0xff]  }
 0x515   : > { %v3254_v46 = vadd.f32 %v3253_v4, %v8645_v37  ;;  %v3255_v5 = vpop.f32.mrb[151].mxu0  ;;  %3603 = vmatmul.mubr.bf16.gmra.mrb[144].mxu1 %v3318_v59  ;;  %v3298_v54 = vmax.f32 %v3250_v42, 0.0  ;;  %v7299_v59 = vld [vmem:[%s9515_s5 + $0x80] ss:$8 sps:$4 sm:$0xff]   ;;  %v7310_v42 = vld [vmem:[%s9515_s5 + $0xb4] ss:$8 sps:$4 sm:$0xff]  }
 0x516   : > { %v3256_v7 = vadd.f32 %v3255_v5, %v8651_v40  ;;  %v3299_v9 = vmax.f32 %v3252_v1, 0.0  ;;  %v7308_v0 = vld [vmem:[%s9515_s5 + $0xb0] ss:$8 sps:$4 sm:$0xff]   ;;  %v7313_v1 = vld [vmem:[%s9515_s5 + $0xc4] ss:$8 sps:$4 sm:$0xff]  }
 0x517   : > { %v3300_v8 = vmax.f32 %v3254_v46, 0.0  ;;  %v7311_v4 = vld [vmem:[%s9515_s5 + $0xc0] ss:$8 sps:$4 sm:$0xff]   ;;  %v7316_v46 = vld [vmem:[%s9515_s5 + $0xd4] ss:$8 sps:$4 sm:$0xff]  }
 0x518   : > { %v3301_v10 = vmax.f32 %v3256_v7, 0.0  ;;  %v7314_v5 = vld [vmem:[%s9515_s5 + $0xd0] ss:$8 sps:$4 sm:$0xff]   ;;  %v7317_v7 = vld [vmem:[%s9515_s5 + $0xe0] ss:$8 sps:$4 sm:$0xff]  }
 0x519   : > { %v3320_v11 = vpack.c.bf16 %v3300_v8, %v3298_v54  ;;  %v7320_v54 = vld [vmem:[%s9515_s5 + $0xf0] ss:$8 sps:$4 sm:$0xff]   ;;  %v7325_v8 = vld [vmem:[%s9511_s1 + $0x4] ss:$8 sps:$4 sm:$0xff]  }
 0x51a   : > { %v3321_v20 = vpack.c.bf16 %v3301_v10, %v3299_v9  ;;  %v3259_v12 = vpop.f32.mrb[152].mxu0 }
 0x51b   : > { %v3260_v3 = vadd.f32 %v3259_v12, %v8645_v37  ;;  %v3261_v21 = vpop.f32.mrb[153].mxu0 }
 0x51c   : > { %v3262_v22 = vadd.f32 %v3261_v21, %v8651_v40  ;;  %v3263_v23 = vpop.f32.mrb[154].mxu0  ;;  %3612 = vmatprep.mubr.bf16.mxu1 %v3321_v20  ;;  %v8796_v20 = vld [vmem:[%s9518_s8] ss:$0 sm:$0xff] }
 0x51d   : > { %v3264_v24 = vadd.f32 %v3263_v23, %v8645_v37  ;;  %v3265_v25 = vpop.f32.mrb[155].mxu0  ;;  %3613 = vmatmul.mubr.bf16.gmra.mrb[148].mxu1 %v3320_v11  ;;  %v3302_v29 = vmax.f32 %v3260_v3, 0.0 }
 0x51e   : > { %v3266_v27 = vadd.f32 %v3265_v25, %v8651_v40  ;;  %v3303_v31 = vmax.f32 %v3262_v22, 0.0 }
 0x51f   : > { %v3304_v30 = vmax.f32 %v3264_v24, 0.0 }
 0x520   : > { %v3305_v32 = vmax.f32 %v3266_v27, 0.0 }
 0x521   : > { %v3322_v33 = vpack.c.bf16 %v3304_v30, %v3302_v29 }
 0x522   : > { %v3323_v35 = vpack.c.bf16 %v3305_v32, %v3303_v31  ;;  %v3269_v36 = vpop.f32.mrb[156].mxu0 }
 0x523   : > { %v3270_v17 = vadd.f32 %v3269_v36, %v8645_v37  ;;  %v3271_v38 = vpop.f32.mrb[157].mxu0 }
 0x524   : > { %v3272_v14 = vadd.f32 %v3271_v38, %v8651_v40  ;;  %v3273_v39 = vpop.f32.mrb[158].mxu0  ;;  %3622 = vmatprep.mubr.bf16.mxu1 %v3323_v35 }
 0x525   : > { %v3274_v6 = vadd.f32 %v3273_v39, %v8645_v37  ;;  %v3275_v41 = vpop.f32.mrb[159].mxu0  ;;  %3623 = vmatmul.mubr.bf16.gmra.mrb[152].mxu1 %v3322_v33  ;;  %v3306_v48 = vmax.f32 %v3270_v17, 0.0  ;;  %v7295_v37 = vld [vmem:[%s9515_s5 + $0x64] ss:$8 sps:$4 sm:$0xff]  }
 0x526   : > { %v3276_v44 = vadd.f32 %v3275_v41, %v8651_v40  ;;  %v3307_v50 = vmax.f32 %v3272_v14, 0.0  ;;  %v7293_v40 = vld [vmem:[%s9515_s5 + $0x60] ss:$8 sps:$4 sm:$0xff]   ;;  %3907 = vmatprep.subr.bf16.mxu0 %v7295_v37 }
 0x527   : > { %v3308_v49 = vmax.f32 %v3274_v6, 0.0  ;;  %3908 = vmatpush1.bf16.msra.mxu0 %v7293_v40 }
 0x528   : > { %v3309_v52 = vmax.f32 %v3276_v44, 0.0  ;;  %3909 = vmatprep.subr.bf16.mxu0 %v7298_v56 }
 0x529   : > { %v3324_v53 = vpack.c.bf16 %v3308_v49, %v3306_v48 }
 0x52a   : > { %v3325_v55 = vpack.c.bf16 %v3309_v52, %v3307_v50 }
 0x52b   : > { %3910 = vmatpush1.bf16.msra.mxu0 %v7296_v57 }
 0x52c   : > { %3632 = vmatprep.mubr.bf16.mxu1 %v3325_v55  ;;  %3911 = vmatprep.subr.bf16.mxu0 %v7301_v58 }
 0x52d   : > { %3633 = vmatmul.mubr.bf16.gmra.mrb[156].mxu1 %v3324_v53 }
 0x52f   : > { %3912 = vmatpush1.bf16.msra.mxu0 %v7299_v59 }
 0x530   : > { %3913 = vmatprep.subr.bf16.mxu0 %v7304_v60 }
 0x533   : > { %3914 = vmatpush1.bf16.msra.mxu0 %v7302_v61 }
 0x534   : > { %3915 = vmatprep.subr.bf16.mxu0 %v7307_v62 }
 0x537   : > { %3916 = vmatpush1.bf16.msra.mxu0 %v7305_v63 }
 0x538   : > { %3917 = vmatprep.subr.bf16.mxu0 %v7310_v42 }
 0x53b   : > { %3918 = vmatpush1.bf16.msra.mxu0 %v7308_v0 }
 0x53c   : > { %3919 = vmatprep.subr.bf16.mxu0 %v7313_v1 }
 0x53f   : > { %3920 = vmatpush1.bf16.msra.mxu0 %v7311_v4 }
 0x540   : > { %3921 = vmatprep.subr.bf16.mxu0 %v7316_v46 }
 0x543   : > { %3922 = vmatpush1.bf16.msra.mxu0 %v7314_v5 }
 0x544   : > { %3923 = vmatprep.subr.bf16.mxu0 %v7319_v47 }
 0x547   : > { %3924 = vmatpush1.bf16.msra.mxu0 %v7317_v7 }
 0x548   : > { %3925 = vmatprep.subr.bf16.mxu0 %v7322_v51 }
 0x54b   : > { %3926 = vmatpush1.bf16.msra.mxu0 %v7320_v54 }
 0x54c   : > { %4510 = vmatprep.subr.bf16.mxu0 %v7325_v8 }
 0x588   : > { %v6718_v9 = vpop.f32.mrb[96].mxu1 }
 0x589   : > { %v6719_v10 = vpop.f32.mrb[97].mxu1 }
 0x58a   : > { %v6720_v11 = vadd.f32 %v6719_v10, %v6718_v9  ;;  %v6721_v19 = vpop.f32.mrb[98].mxu1 }
 0x58b   : > { %v6722_v12 = vpop.f32.mrb[99].mxu1 }
 0x58c   : > { %v6723_v13 = vadd.f32 %v6722_v12, %v6721_v19  ;;  %v2881_v3 = vadd.f32 %v6720_v11, %v8796_v20 }
 0x58e   : > { %v2884_v21 = vadd.f32 %v6723_v13, %v8796_v20 }
 0x590   : > { %v6490_v22 = vpack.c.bf16 %v2884_v21, %v2881_v3  ;;  %v6724_v23 = vpop.f32.mrb[100].mxu1  ;;  %v3358_v21 = vld [vmem:[%s9514_s4] sm:$0x3] }
 0x591   : > { %v6725_v24 = vpop.f32.mrb[101].mxu1 }
 0x592   : > { %6614 = vst [vmem:[%s8358_s22 + $0x40] sm:$0xff] %v6490_v22   ;;  %v6726_v25 = vadd.f32 %v6725_v24, %v6724_v23  ;;  %v6727_v26 = vpop.f32.mrb[102].mxu1  ;;  %v8823_v24 = vrot.slane %v3358_v21, %v7877_v16 }
 0x593   : > { %v6728_v27 = vpop.f32.mrb[103].mxu1 }
 0x594   : > { %v6729_v28 = vadd.f32 %v6728_v27, %v6727_v26  ;;  %v2889_v29 = vadd.f32 %v6726_v25, %v8796_v20  ;;  %v8828_v27 = vrot.slane %v3358_v21, %v7882_v18  ;;  %v7332_v21 = vld [vmem:[%s9511_s1 + $0x30] ss:$8 sps:$4 sm:$0xff]  }
 0x596   : > { %v2892_v30 = vadd.f32 %v6729_v28, %v8796_v20 }
 0x598   : > { %v6495_v31 = vpack.c.bf16 %v2892_v30, %v2889_v29  ;;  %v6730_v32 = vpop.f32.mrb[104].mxu1 }
 0x599   : > { %v6731_v33 = vpop.f32.mrb[105].mxu1 }
 0x59a   : > { %6615 = vst [vmem:[%s8358_s22 + $0x48] sm:$0xff] %v6495_v31   ;;  %v6732_v34 = vadd.f32 %v6731_v33, %v6730_v32  ;;  %v6733_v35 = vpop.f32.mrb[106].mxu1 }
 0x59b   : > { %v6734_v36 = vpop.f32.mrb[107].mxu1 }
 0x59c   : > { %v6735_v15 = vadd.f32 %v6734_v36, %v6733_v35  ;;  %v2897_v17 = vadd.f32 %v6732_v34, %v8796_v20  ;;  %v7343_v36 = vld [vmem:[%s9517_s7 + $0x40] sm:$0xff]  }
 0x59d   : > { %6766 = vmatprep.subr.bf16.mxu1 %v7343_v36 }
 0x59e   : > { %v2900_v38 = vadd.f32 %v6735_v15, %v8796_v20  ;;  %v7345_v15 = vld [vmem:[%s9517_s7 + $0x48] sm:$0xff]  }
 0x5a0   : > { %v6500_v14 = vpack.c.bf16 %v2900_v38, %v2897_v17  ;;  %v6736_v39 = vpop.f32.mrb[108].mxu1 }
 0x5a1   : > { %v6737_v6 = vpop.f32.mrb[109].mxu1 }
 0x5a2   : > { %6616 = vst [vmem:[%s8358_s22 + $0x50] sm:$0xff] %v6500_v14   ;;  %v6738_v41 = vadd.f32 %v6737_v6, %v6736_v39  ;;  %v6739_v43 = vpop.f32.mrb[110].mxu1 }
 0x5a3   : > { %v6740_v44 = vpop.f32.mrb[111].mxu1 }
 0x5a4   : > { %v6741_v45 = vadd.f32 %v6740_v44, %v6739_v43  ;;  %v2905_v48 = vadd.f32 %v6738_v41, %v8796_v20  ;;  %v7346_v41 = vld [vmem:[%s9517_s7 + $0x8] sm:$0xff]   ;;  %v7347_v44 = vld [vmem:[%s9517_s7 + $0x50] sm:$0xff]  }
 0x5a6   : > { %v2908_v49 = vadd.f32 %v6741_v45, %v8796_v20 }
 0x5a8   : > { %v6505_v50 = vpack.c.bf16 %v2908_v49, %v2905_v48  ;;  %v6742_v52 = vpop.f32.mrb[112].mxu1  ;;  %v7323_v49 = vld [vmem:[%s9511_s1] ss:$8 sps:$4 sm:$0xff]  }
 0x5a9   : > { %v6743_v53 = vpop.f32.mrb[113].mxu1 }
 0x5aa   : > { %6617 = vst [vmem:[%s8358_s22 + $0x58] sm:$0xff] %v6505_v50   ;;  %v6744_v37 = vadd.f32 %v6743_v53, %v6742_v52  ;;  %v6745_v55 = vpop.f32.mrb[114].mxu1  ;;  %v7328_v53 = vld [vmem:[%s9511_s1 + $0x14] ss:$8 sps:$4 sm:$0xff]  }
 0x5ab   : > { %v6746_v40 = vpop.f32.mrb[115].mxu1 }
 0x5ac   : > { %v6747_v56 = vadd.f32 %v6746_v40, %v6745_v55  ;;  %v2913_v57 = vadd.f32 %v6744_v37, %v8796_v20  ;;  %v7348_v40 = vld [vmem:[%s9517_s7 + $0x10] sm:$0xff]  }
 0x5ae   : > { %v2916_v58 = vadd.f32 %v6747_v56, %v8796_v20 }
 0x5b0   : > { %v6510_v59 = vpack.c.bf16 %v2916_v58, %v2913_v57  ;;  %v6748_v60 = vpop.f32.mrb[116].mxu1  ;;  %v7349_v58 = vld [vmem:[%s9517_s7 + $0x58] sm:$0xff]  }
 0x5b1   : > { %v6749_v61 = vpop.f32.mrb[117].mxu1 }
 0x5b2   : > { %6618 = vst [vmem:[%s8358_s22 + $0x60] sm:$0xff] %v6510_v59   ;;  %v6750_v62 = vadd.f32 %v6749_v61, %v6748_v60  ;;  %v6751_v63 = vpop.f32.mrb[118].mxu1  ;;  %v7326_v60 = vld [vmem:[%s9511_s1 + $0x10] ss:$8 sps:$4 sm:$0xff]  }
 0x5b3   : > { %v6752_v42 = vpop.f32.mrb[119].mxu1 }
 0x5b4   : > { %v6753_v0 = vadd.f32 %v6752_v42, %v6751_v63  ;;  %v2921_v1 = vadd.f32 %v6750_v62, %v8796_v20  ;;  %v7331_v63 = vld [vmem:[%s9511_s1 + $0x24] ss:$8 sps:$4 sm:$0xff]  }
 0x5b6   : > { %v2924_v4 = vadd.f32 %v6753_v0, %v8796_v20 }
 0x5b8   : > { %v6515_v46 = vpack.c.bf16 %v2924_v4, %v2921_v1  ;;  %v6754_v5 = vpop.f32.mrb[120].mxu1  ;;  %v7350_v1 = vld [vmem:[%s9517_s7 + $0x18] sm:$0xff]  }
 0x5b9   : > { %v6755_v47 = vpop.f32.mrb[121].mxu1 }
 0x5ba   : > { %6619 = vst [vmem:[%s8358_s22 + $0x68] sm:$0xff] %v6515_v46   ;;  %v6756_v7 = vadd.f32 %v6755_v47, %v6754_v5  ;;  %v6757_v51 = vpop.f32.mrb[122].mxu1  ;;  %v7351_v46 = vld [vmem:[%s9517_s7 + $0x60] sm:$0xff]  }
 0x5bb   : > { %v6758_v54 = vpop.f32.mrb[123].mxu1 }
 0x5bc   : > { %v6759_v8 = vadd.f32 %v6758_v54, %v6757_v51  ;;  %v2929_v9 = vadd.f32 %v6756_v7, %v8796_v20  ;;  %v7329_v7 = vld [vmem:[%s9511_s1 + $0x20] ss:$8 sps:$4 sm:$0xff]  }
 0x5be   : > { %v2932_v10 = vadd.f32 %v6759_v8, %v8796_v20  ;;  %v7334_v8 = vld [vmem:[%s9511_s1 + $0x34] ss:$8 sps:$4 sm:$0xff]  }
 0x5c0   : > { %v6520_v11 = vpack.c.bf16 %v2932_v10, %v2929_v9  ;;  %v6760_v19 = vpop.f32.mrb[124].mxu1 }
 0x5c1   : > { %v6761_v12 = vpop.f32.mrb[125].mxu1 }
 0x5c2   : > { %6620 = vst [vmem:[%s8358_s22 + $0x70] sm:$0xff] %v6520_v11   ;;  %v6762_v13 = vadd.f32 %v6761_v12, %v6760_v19  ;;  %v6763_v3 = vpop.f32.mrb[126].mxu1  ;;  %v7352_v11 = vld [vmem:[%s9517_s7 + $0x20] sm:$0xff]  }
 0x5c3   : > { %v6764_v22 = vpop.f32.mrb[127].mxu1 }
 0x5c4   : > { %v6765_v23 = vadd.f32 %v6764_v22, %v6763_v3  ;;  %v2937_v25 = vadd.f32 %v6762_v13, %v8796_v20  ;;  %v7353_v13 = vld [vmem:[%s9517_s7 + $0x68] sm:$0xff]  }
 0x5c6   : > { %v2940_v26 = vadd.f32 %v6765_v23, %v8796_v20  ;;  %v7344_v20 = vld [vmem:[%s9517_s7] sm:$0xff]  }
 0x5c7   : > { %6767 = vmatpush3.bf16.msra.mxu1 %v7344_v20  ;;  %v7356_v20 = vld [vmem:[%s9517_s7 + $0x30] sm:$0xff]  }
 0x5c8   : > { %v6525_v28 = vpack.c.bf16 %v2940_v26, %v2937_v25  ;;  %v3564_v29 = vpop.f32.mrb[128].mxu1  ;;  %6768 = vmatprep.subr.bf16.mxu1 %v7345_v15 }
 0x5c9   : > { %v3565_v30 = vadd.f32 %v3564_v29, %v8823_v24  ;;  %v3566_v31 = vpop.f32.mrb[129].mxu1 }
 0x5ca   : > { %6621 = vst [vmem:[%s8358_s22 + $0x78] sm:$0xff] %v6525_v28   ;;  %v3567_v32 = vadd.f32 %v3566_v31, %v8828_v27  ;;  %v3568_v33 = vpop.f32.mrb[130].mxu1  ;;  %v7354_v28 = vld [vmem:[%s9517_s7 + $0x28] sm:$0xff]  }
 0x5cb   : > { %v3569_v34 = vadd.f32 %v3568_v33, %v8823_v24  ;;  %v3570_v35 = vpop.f32.mrb[131].mxu1  ;;  %v3643_v38 = vmax.f32 %v3565_v30, 0.0  ;;  %6769 = vmatpush3.bf16.msra.mxu1 %v7346_v41  ;;  %v7355_v30 = vld [vmem:[%s9517_s7 + $0x70] sm:$0xff]  }
 0x5cc   : > { %v3571_v17 = vadd.f32 %v3570_v35, %v8828_v27  ;;  %v3644_v39 = vmax.f32 %v3567_v32, 0.0  ;;  %6770 = vmatprep.subr.bf16.mxu1 %v7347_v44 }
 0x5cd   : > { %v3645_v14 = vmax.f32 %v3569_v34, 0.0 }
 0x5ce   : > { %v3646_v6 = vmax.f32 %v3571_v17, 0.0 }
 0x5cf   : > { %v3675_v43 = vpack.c.bf16 %v3645_v14, %v3643_v38  ;;  %6771 = vmatpush3.bf16.msra.mxu1 %v7348_v40 }
 0x5d0   : > { %v3676_v45 = vpack.c.bf16 %v3646_v6, %v3644_v39  ;;  %v3574_v48 = vpop.f32.mrb[132].mxu1  ;;  %6772 = vmatprep.subr.bf16.mxu1 %v7349_v58 }
 0x5d1   : > { %v3575_v50 = vadd.f32 %v3574_v48, %v8823_v24  ;;  %v3576_v52 = vpop.f32.mrb[133].mxu1 }
 0x5d2   : > { %v3577_v37 = vadd.f32 %v3576_v52, %v8828_v27  ;;  %v3578_v55 = vpop.f32.mrb[134].mxu1  ;;  %3927 = vmatprep.mubr.bf16.mxu0 %v3676_v45 }
 0x5d3   : > { %v3579_v56 = vadd.f32 %v3578_v55, %v8823_v24  ;;  %v3580_v57 = vpop.f32.mrb[135].mxu1  ;;  %3928 = vmatmul.mubr.bf16.vlgmr.msra.gmra.mrb[160].mxu0 %v3675_v43  ;;  %v3647_v61 = vmax.f32 %v3575_v50, 0.0  ;;  %6773 = vmatpush3.bf16.msra.mxu1 %v7350_v1 }
 0x5d4   : > { %v3581_v59 = vadd.f32 %v3580_v57, %v8828_v27  ;;  %4511 = vmatpush1.bf16.msra.mxu0 %v7323_v49  ;;  %v3648_v42 = vmax.f32 %v3577_v37, 0.0  ;;  %6774 = vmatprep.subr.bf16.mxu1 %v7351_v46 }
 0x5d5   : > { %v3649_v62 = vmax.f32 %v3579_v56, 0.0  ;;  %4512 = vmatprep.subr.bf16.mxu0 %v7328_v53 }
 0x5d6   : > { %v3650_v0 = vmax.f32 %v3581_v59, 0.0 }
 0x5d7   : > { %v3677_v4 = vpack.c.bf16 %v3649_v62, %v3647_v61  ;;  %6775 = vmatpush3.bf16.msra.mxu1 %v7352_v11 }
 0x5d8   : > { %v3678_v5 = vpack.c.bf16 %v3650_v0, %v3648_v42  ;;  %v3584_v47 = vpop.f32.mrb[136].mxu1  ;;  %4513 = vmatpush1.bf16.msra.mxu0 %v7326_v60  ;;  %6776 = vmatprep.subr.bf16.mxu1 %v7353_v13 }
 0x5d9   : > { %v3585_v51 = vadd.f32 %v3584_v47, %v8823_v24  ;;  %v3586_v54 = vpop.f32.mrb[137].mxu1  ;;  %4514 = vmatprep.subr.bf16.mxu0 %v7331_v63 }
 0x5da   : > { %v3587_v9 = vadd.f32 %v3586_v54, %v8828_v27  ;;  %v3588_v10 = vpop.f32.mrb[138].mxu1  ;;  %3937 = vmatprep.mubr.bf16.mxu0 %v3678_v5 }
 0x5db   : > { %v3589_v19 = vadd.f32 %v3588_v10, %v8823_v24  ;;  %v3590_v12 = vpop.f32.mrb[139].mxu1  ;;  %3938 = vmatmul.mubr.bf16.gmra.mrb[164].mxu0 %v3677_v4  ;;  %v3651_v22 = vmax.f32 %v3585_v51, 0.0  ;;  %6777 = vmatpush3.bf16.msra.mxu1 %v7354_v28 }
 0x5dc   : > { %v3591_v3 = vadd.f32 %v3590_v12, %v8828_v27  ;;  %4515 = vmatpush1.bf16.msra.mxu0 %v7329_v7  ;;  %v3652_v25 = vmax.f32 %v3587_v9, 0.0  ;;  %6778 = vmatprep.subr.bf16.mxu1 %v7355_v30 }
 0x5dd   : > { %v3653_v23 = vmax.f32 %v3589_v19, 0.0  ;;  %4516 = vmatprep.subr.bf16.mxu0 %v7334_v8 }
 0x5de   : > { %v3654_v26 = vmax.f32 %v3591_v3, 0.0 }
 0x5df   : > { %v3679_v29 = vpack.c.bf16 %v3653_v23, %v3651_v22  ;;  %6779 = vmatpush3.bf16.msra.mxu1 %v7356_v20 }
 0x5e0   : > { %v3680_v31 = vpack.c.bf16 %v3654_v26, %v3652_v25  ;;  %v3594_v32 = vpop.f32.mrb[140].mxu1  ;;  %4517 = vmatpush1.bf16.msra.mxu0 %v7332_v21 }
 0x5e1   : > { %v3595_v33 = vadd.f32 %v3594_v32, %v8823_v24  ;;  %v3596_v34 = vpop.f32.mrb[141].mxu1 }
 0x5e2   : > { %v3597_v35 = vadd.f32 %v3596_v34, %v8828_v27  ;;  %v3598_v36 = vpop.f32.mrb[142].mxu1  ;;  %3947 = vmatprep.mubr.bf16.mxu0 %v3680_v31 }
 0x5e3   : > { %v3599_v15 = vadd.f32 %v3598_v36, %v8823_v24  ;;  %v3600_v17 = vpop.f32.mrb[143].mxu1  ;;  %3948 = vmatmul.mubr.bf16.gmra.mrb[168].mxu0 %v3679_v29  ;;  %v3655_v14 = vmax.f32 %v3595_v33, 0.0 }
 0x5e4   : > { %v3601_v38 = vadd.f32 %v3600_v17, %v8828_v27  ;;  %v3656_v6 = vmax.f32 %v3597_v35, 0.0 }
 0x5e5   : > { %v3657_v39 = vmax.f32 %v3599_v15, 0.0 }
 0x5e6   : > { %v3658_v41 = vmax.f32 %v3601_v38, 0.0 }
 0x5e7   : > { %v3681_v43 = vpack.c.bf16 %v3657_v39, %v3655_v14 }
 0x5e8   : > { %v3682_v44 = vpack.c.bf16 %v3658_v41, %v3656_v6  ;;  %v3604_v45 = vpop.f32.mrb[144].mxu1  ;;  %v7335_v41 = vld [vmem:[%s7663_s24 + $0xc0] sm:$0xff]  }
 0x5e9   : > { %v3605_v48 = vadd.f32 %v3604_v45, %v8823_v24  ;;  %v3606_v49 = vpop.f32.mrb[145].mxu1  ;;  %v7358_v45 = vld [vmem:[%s9517_s7 + $0x38] sm:$0xff]  }
 0x5ea   : > { %v3607_v50 = vadd.f32 %v3606_v49, %v8828_v27  ;;  %v3608_v52 = vpop.f32.mrb[146].mxu1  ;;  %3957 = vmatprep.mubr.bf16.mxu0 %v3682_v44  ;;  %v7357_v44 = vld [vmem:[%s9517_s7 + $0x78] sm:$0xff]   ;;  %v7361_v49 = vld [vmem:[%s9513_s3 + $0x4] ss:$8 sps:$4 sm:$0xff]  }
 0x5eb   : > { %v3609_v53 = vadd.f32 %v3608_v52, %v8823_v24  ;;  %v3610_v37 = vpop.f32.mrb[147].mxu1  ;;  %3958 = vmatmul.mubr.bf16.gmra.mrb[172].mxu0 %v3681_v43  ;;  %v3659_v40 = vmax.f32 %v3605_v48, 0.0  ;;  %v7338_v43 = vld [vmem:[%s7663_s24 + $0xd8] sm:$0xff]   ;;  %6780 = vmatprep.subr.bf16.mxu1 %v7357_v44  ;;  %v7339_v48 = vld [vmem:[%s7663_s24 + $0xe0] sm:$0xff]   ;;  %v7341_v52 = vld [vmem:[%s7663_s24 + $0xf0] sm:$0xff]  }
 0x5ec   : > { %v3611_v55 = vadd.f32 %v3610_v37, %v8828_v27  ;;  %v3660_v57 = vmax.f32 %v3607_v50, 0.0  ;;  %6781 = vmatpush3.bf16.msra.mxu1 %v7358_v45  ;;  %v7340_v50 = vld [vmem:[%s7663_s24 + $0xe8] sm:$0xff]   ;;  %v3723_v37 = vld [vmem:[%s9516_s6] sm:$0x3] }
 0x5ed   : > { %v3661_v56 = vmax.f32 %v3609_v53, 0.0  ;;  %4875 = vmatprep.subr.bf16.mxu1 %v7361_v49  ;;  %v7342_v53 = vld [vmem:[%s7663_s24 + $0xf8] sm:$0xff]  }
 0x5ee   : > { %v3662_v58 = vmax.f32 %v3611_v55, 0.0  ;;  %v8963_v55 = vrot.slane %v3723_v37, %v7877_v16 }
 0x5ef   : > { %v3683_v59 = vpack.c.bf16 %v3661_v56, %v3659_v40  ;;  %v8966_v40 = vrot.slane %v3723_v37, %v7882_v18 }
 0x5f0   : > { %v3684_v60 = vpack.c.bf16 %v3662_v58, %v3660_v57  ;;  %v3614_v61 = vpop.f32.mrb[148].mxu1 }
 0x5f1   : > { %v3615_v62 = vadd.f32 %v3614_v61, %v8823_v24  ;;  %v3616_v63 = vpop.f32.mrb[149].mxu1 }
 0x5f2   : > { %v3617_v42 = vadd.f32 %v3616_v63, %v8828_v27  ;;  %v3618_v0 = vpop.f32.mrb[150].mxu1  ;;  %3967 = vmatprep.mubr.bf16.mxu0 %v3684_v60 }
 0x5f3   : > { %v3619_v1 = vadd.f32 %v3618_v0, %v8823_v24  ;;  %v3620_v4 = vpop.f32.mrb[151].mxu1  ;;  %3968 = vmatmul.mubr.bf16.gmra.mrb[176].mxu0 %v3683_v59  ;;  %v3663_v5 = vmax.f32 %v3615_v62, 0.0 }
 0x5f4   : > { %v3621_v46 = vadd.f32 %v3620_v4, %v8828_v27  ;;  %v3664_v7 = vmax.f32 %v3617_v42, 0.0 }
 0x5f5   : > { %v3665_v47 = vmax.f32 %v3619_v1, 0.0 }
 0x5f6   : > { %v3666_v51 = vmax.f32 %v3621_v46, 0.0 }
 0x5f7   : > { %v3685_v54 = vpack.c.bf16 %v3665_v47, %v3663_v5  ;;  %v7359_v47 = vld [vmem:[%s9513_s3] ss:$8 sps:$4 sm:$0xff]  }
 0x5f8   : > { %v3686_v8 = vpack.c.bf16 %v3666_v51, %v3664_v7  ;;  %v3624_v9 = vpop.f32.mrb[152].mxu1 }
 0x5f9   : > { %v3625_v10 = vadd.f32 %v3624_v9, %v8823_v24  ;;  %v3626_v11 = vpop.f32.mrb[153].mxu1 }
 0x5fa   : > { %v3627_v19 = vadd.f32 %v3626_v11, %v8828_v27  ;;  %v3628_v12 = vpop.f32.mrb[154].mxu1  ;;  %3977 = vmatprep.mubr.bf16.mxu0 %v3686_v8 }
 0x5fb   : > { %v3629_v13 = vadd.f32 %v3628_v12, %v8823_v24  ;;  %v3630_v3 = vpop.f32.mrb[155].mxu1  ;;  %3978 = vmatmul.mubr.bf16.gmra.mrb[180].mxu0 %v3685_v54  ;;  %v3667_v22 = vmax.f32 %v3625_v10, 0.0  ;;  %v7364_v54 = vld [vmem:[%s9513_s3 + $0x14] ss:$8 sps:$4 sm:$0xff]   ;;  %v7362_v12 = vld [vmem:[%s9513_s3 + $0x10] ss:$8 sps:$4 sm:$0xff]  }
 0x5fc   : > { %v3631_v21 = vadd.f32 %v3630_v3, %v8828_v27  ;;  %v3668_v25 = vmax.f32 %v3627_v19, 0.0 }
 0x5fd   : > { %v3669_v23 = vmax.f32 %v3629_v13, 0.0 }
 0x5fe   : > { %v3670_v26 = vmax.f32 %v3631_v21, 0.0  ;;  %v7367_v21 = vld [vmem:[%s9513_s3 + $0x24] ss:$8 sps:$4 sm:$0xff]  }
 0x5ff   : > { %v3687_v28 = vpack.c.bf16 %v3669_v23, %v3667_v22 }
 0x600   : > { %v3688_v29 = vpack.c.bf16 %v3670_v26, %v3668_v25  ;;  %v3634_v30 = vpop.f32.mrb[156].mxu1 }
 0x601   : > { %v3635_v31 = vadd.f32 %v3634_v30, %v8823_v24  ;;  %v3636_v32 = vpop.f32.mrb[157].mxu1 }
 0x602   : > { %v3637_v33 = vadd.f32 %v3636_v32, %v8828_v27  ;;  %v3638_v34 = vpop.f32.mrb[158].mxu1  ;;  %3987 = vmatprep.mubr.bf16.mxu0 %v3688_v29  ;;  %v7365_v29 = vld [vmem:[%s9513_s3 + $0x20] ss:$8 sps:$4 sm:$0xff]   ;;  %v7370_v32 = vld [vmem:[%s9513_s3 + $0x34] ss:$8 sps:$4 sm:$0xff]  }
 0x603   : > { %v3639_v35 = vadd.f32 %v3638_v34, %v8823_v24  ;;  %v3640_v36 = vpop.f32.mrb[159].mxu1  ;;  %3988 = vmatmul.mubr.bf16.gmra.mrb[184].mxu0 %v3687_v28  ;;  %v3671_v15 = vmax.f32 %v3635_v31, 0.0  ;;  %v7336_v24 = vld [vmem:[%s7663_s24 + $0xc8] sm:$0xff]  }
 0x604   : > { %v3641_v20 = vadd.f32 %v3640_v36, %v8828_v27  ;;  %v3672_v38 = vmax.f32 %v3637_v33, 0.0  ;;  %v7337_v27 = vld [vmem:[%s7663_s24 + $0xd0] sm:$0xff]   ;;  %s7483_s24 = scalar_lea.vmem %s7482_s23, 8192 }
 0x605   : > { %v3673_v17 = vmax.f32 %v3639_v35, 0.0  ;;  %p7485_p1 = scmp.lt.s32.totalorder %s7483_s24, %s7477_s13 }
 0x606   : > { %v3674_v14 = vmax.f32 %v3641_v20, 0.0 }
 0x607   : > { %v3689_v39 = vpack.c.bf16 %v3673_v17, %v3671_v15  ;;  %v7368_v15 = vld [vmem:[%s9513_s3 + $0x30] ss:$8 sps:$4 sm:$0xff]   ;;  %p7486_p2 = por %p7485_p1, %p7484_p0 }
 0x608   : > { %v3690_v6 = vpack.c.bf16 %v3674_v14, %v3672_v38  ;;  %v7373_v14 = vld [vmem:[%s9513_s3 + $0x44] ss:$8 sps:$4 sm:$0xff]  }
 0x609   : > { %p7487_p3 = pnand %p7486_p2, %p7480_p13 }
 0x60a   : > { %3997 = vmatprep.mubr.bf16.mxu0 %v3690_v6 }
 0x60b   : > { %3998 = vmatmul.mubr.bf16.gmra.mrb[188].mxu0 %v3689_v39 }
 0x60c   : > { %4542 = vmatprep.mubr.bf16.mxu0 %v7541_v2 }
 0x613   : > { %6256 = vmatmul.mubr.msk.bf16.vlgmr.msra.gmra.mrb[192].mxu0 %vm451_vm0, %v7335_v41 }
 0x614   : > { %4552 = vmatprep.mubr.bf16.mxu0 %v7541_v2 }
 0x61b   : > { %6257 = vmatmul.mubr.msk.bf16.gmra.mrb[196].mxu0 %vm451_vm0, %v7336_v24 }
 0x61c   : > { %4562 = vmatprep.mubr.bf16.mxu0 %v7541_v2 }
 0x623   : > { %6258 = vmatmul.mubr.msk.bf16.gmra.mrb[200].mxu0 %vm451_vm0, %v7337_v27 }
 0x624   : > { %4572 = vmatprep.mubr.bf16.mxu0 %v7541_v2 }
 0x62b   : > { %6259 = vmatmul.mubr.msk.bf16.gmra.mrb[204].mxu0 %vm451_vm0, %v7338_v43  ;;  %v7371_v43 = vld [vmem:[%s9513_s3 + $0x40] ss:$8 sps:$4 sm:$0xff]  }
 0x62c   : > { %4582 = vmatprep.mubr.bf16.mxu0 %v7541_v2 }
 0x633   : > { %6260 = vmatmul.mubr.msk.bf16.gmra.mrb[208].mxu0 %vm451_vm0, %v7339_v48  ;;  %v7376_v48 = vld [vmem:[%s9513_s3 + $0x54] ss:$8 sps:$4 sm:$0xff]  }
 0x634   : > { %4592 = vmatprep.mubr.bf16.mxu0 %v7541_v2 }
 0x63b   : > { %6261 = vmatmul.mubr.msk.bf16.gmra.mrb[212].mxu0 %vm451_vm0, %v7340_v50 }
 0x63c   : > { %4602 = vmatprep.mubr.bf16.mxu0 %v7541_v2 }
 0x643   : > { %6262 = vmatmul.mubr.msk.bf16.gmra.mrb[216].mxu0 %vm451_vm0, %v7341_v52 }
 0x644   : > { %4612 = vmatprep.mubr.bf16.mxu0 %v7541_v2 }
 0x64b   : > { %6263 = vmatmul.mubr.msk.bf16.gmra.mrb[220].mxu0 %vm451_vm0, %v7342_v53 }
 0x6a6   : > { %v3929_v56 = vpop.f32.mrb[160].mxu0 }
 0x6a7   : > { %v3930_v57 = vadd.f32 %v3929_v56, %v8963_v55  ;;  %v3931_v58 = vpop.f32.mrb[161].mxu0  ;;  %v7374_v56 = vld [vmem:[%s9513_s3 + $0x50] ss:$8 sps:$4 sm:$0xff]  }
 0x6a8   : > { %v3932_v59 = vadd.f32 %v3931_v58, %v8966_v40  ;;  %v3933_v2 = vpop.f32.mrb[162].mxu0 }
 0x6a9   : > { %v3934_v60 = vadd.f32 %v3933_v2, %v8963_v55  ;;  %v3935_v61 = vpop.f32.mrb[163].mxu0  ;;  %v4008_v63 = vmax.f32 %v3930_v57, 0.0 }
 0x6aa   : > { %v3936_v62 = vadd.f32 %v3935_v61, %v8966_v40  ;;  %v4009_v0 = vmax.f32 %v3932_v59, 0.0  ;;  %v7379_v59 = vld [vmem:[%s9513_s3 + $0x64] ss:$8 sps:$4 sm:$0xff]  }
 0x6ab   : > { %v4010_v42 = vmax.f32 %v3934_v60, 0.0 }
 0x6ac   : > { %v4011_v1 = vmax.f32 %v3936_v62, 0.0 }
 0x6ad   : > { %v4040_v4 = vpack.c.bf16 %v4010_v42, %v4008_v63  ;;  %v7377_v42 = vld [vmem:[%s9513_s3 + $0x60] ss:$8 sps:$4 sm:$0xff]  }
 0x6ae   : > { %v4041_v46 = vpack.c.bf16 %v4011_v1, %v4009_v0  ;;  %v3939_v5 = vpop.f32.mrb[164].mxu0 }
 0x6af   : > { %v3940_v7 = vadd.f32 %v3939_v5, %v8963_v55  ;;  %v3941_v51 = vpop.f32.mrb[165].mxu0 }
 0x6b0   : > { %v3942_v8 = vadd.f32 %v3941_v51, %v8966_v40  ;;  %v3943_v9 = vpop.f32.mrb[166].mxu0  ;;  %4223 = vmatprep.mubr.bf16.mxu1 %v4041_v46 }
 0x6b1   : > { %v3944_v10 = vadd.f32 %v3943_v9, %v8963_v55  ;;  %v3945_v11 = vpop.f32.mrb[167].mxu0  ;;  %4224 = vmatmul.mubr.bf16.vlgmr.msra.gmra.mrb[160].mxu1 %v4040_v4  ;;  %v4012_v13 = vmax.f32 %v3940_v7, 0.0  ;;  %v7382_v4 = vld [vmem:[%s9513_s3 + $0x74] ss:$8 sps:$4 sm:$0xff]  }
 0x6b2   : > { %v3946_v19 = vadd.f32 %v3945_v11, %v8966_v40  ;;  %4876 = vmatpush1.bf16.msra.mxu1 %v7359_v47  ;;  %v4013_v22 = vmax.f32 %v3942_v8, 0.0 }
 0x6b3   : > { %v4014_v3 = vmax.f32 %v3944_v10, 0.0  ;;  %4877 = vmatprep.subr.bf16.mxu1 %v7364_v54  ;;  %v7380_v54 = vld [vmem:[%s9513_s3 + $0x70] ss:$8 sps:$4 sm:$0xff]   ;;  %v7385_v10 = vld [vmem:[%s9513_s3 + $0x84] ss:$8 sps:$4 sm:$0xff]  }
 0x6b4   : > { %v4015_v23 = vmax.f32 %v3946_v19, 0.0 }
 0x6b5   : > { %v4042_v25 = vpack.c.bf16 %v4014_v3, %v4012_v13 }
 0x6b6   : > { %v4043_v26 = vpack.c.bf16 %v4015_v23, %v4013_v22  ;;  %4878 = vmatpush1.bf16.msra.mxu1 %v7362_v12  ;;  %v3949_v28 = vpop.f32.mrb[168].mxu0 }
 0x6b7   : > { %v3950_v30 = vadd.f32 %v3949_v28, %v8963_v55  ;;  %v3951_v31 = vpop.f32.mrb[169].mxu0  ;;  %4879 = vmatprep.subr.bf16.mxu1 %v7367_v21  ;;  %v7383_v21 = vld [vmem:[%s9513_s3 + $0x80] ss:$8 sps:$4 sm:$0xff]  }
 0x6b8   : > { %v3952_v33 = vadd.f32 %v3951_v31, %v8966_v40  ;;  %v3953_v34 = vpop.f32.mrb[170].mxu0  ;;  %4231 = vmatprep.mubr.bf16.mxu1 %v4043_v26 }
 0x6b9   : > { %v3954_v35 = vadd.f32 %v3953_v34, %v8963_v55  ;;  %v3955_v36 = vpop.f32.mrb[171].mxu0  ;;  %4232 = vmatmul.mubr.bf16.gmra.mrb[164].mxu1 %v4042_v25  ;;  %v4016_v17 = vmax.f32 %v3950_v30, 0.0  ;;  %v7388_v25 = vld [vmem:[%s9513_s3 + $0x94] ss:$8 sps:$4 sm:$0xff]  }
 0x6ba   : > { %v3956_v20 = vadd.f32 %v3955_v36, %v8966_v40  ;;  %4880 = vmatpush1.bf16.msra.mxu1 %v7365_v29  ;;  %v4017_v39 = vmax.f32 %v3952_v33, 0.0 }
 0x6bb   : > { %v4018_v38 = vmax.f32 %v3954_v35, 0.0  ;;  %4881 = vmatprep.subr.bf16.mxu1 %v7370_v32  ;;  %v7386_v32 = vld [vmem:[%s9513_s3 + $0x90] ss:$8 sps:$4 sm:$0xff]   ;;  %v7391_v35 = vld [vmem:[%s9513_s3 + $0xa4] ss:$8 sps:$4 sm:$0xff]  }
 0x6bc   : > { %v4019_v6 = vmax.f32 %v3956_v20, 0.0 }
 0x6bd   : > { %v4044_v41 = vpack.c.bf16 %v4018_v38, %v4016_v17 }
 0x6be   : > { %v4045_v24 = vpack.c.bf16 %v4019_v6, %v4017_v39  ;;  %4882 = vmatpush1.bf16.msra.mxu1 %v7368_v15  ;;  %v3959_v27 = vpop.f32.mrb[172].mxu0 }
 0x6bf   : > { %v3960_v44 = vadd.f32 %v3959_v27, %v8963_v55  ;;  %v3961_v45 = vpop.f32.mrb[173].mxu0  ;;  %4883 = vmatprep.subr.bf16.mxu1 %v7373_v14  ;;  %v7389_v14 = vld [vmem:[%s9513_s3 + $0xa0] ss:$8 sps:$4 sm:$0xff]  }
 0x6c0   : > { %v3962_v49 = vadd.f32 %v3961_v45, %v8966_v40  ;;  %v3963_v50 = vpop.f32.mrb[174].mxu0  ;;  %4239 = vmatprep.mubr.bf16.mxu1 %v4045_v24 }
 0x6c1   : > { %v3964_v52 = vadd.f32 %v3963_v50, %v8963_v55  ;;  %v3965_v53 = vpop.f32.mrb[175].mxu0  ;;  %4240 = vmatmul.mubr.bf16.gmra.mrb[168].mxu1 %v4044_v41  ;;  %v4020_v57 = vmax.f32 %v3960_v44, 0.0  ;;  %v7394_v41 = vld [vmem:[%s9513_s3 + $0xb4] ss:$8 sps:$4 sm:$0xff]  }
 0x6c2   : > { %v3966_v37 = vadd.f32 %v3965_v53, %v8966_v40  ;;  %4884 = vmatpush1.bf16.msra.mxu1 %v7371_v43  ;;  %v4021_v2 = vmax.f32 %v3962_v49, 0.0 }
 0x6c3   : > { %v4022_v58 = vmax.f32 %v3964_v52, 0.0  ;;  %4885 = vmatprep.subr.bf16.mxu1 %v7376_v48  ;;  %v7392_v48 = vld [vmem:[%s9513_s3 + $0xb0] ss:$8 sps:$4 sm:$0xff]   ;;  %v7397_v52 = vld [vmem:[%s9513_s3 + $0xc4] ss:$8 sps:$4 sm:$0xff]  }
 0x6c4   : > { %v4023_v60 = vmax.f32 %v3966_v37, 0.0 }
 0x6c5   : > { %v4046_v61 = vpack.c.bf16 %v4022_v58, %v4020_v57 }
 0x6c6   : > { %v4047_v62 = vpack.c.bf16 %v4023_v60, %v4021_v2  ;;  %4886 = vmatpush1.bf16.msra.mxu1 %v7374_v56  ;;  %v3969_v63 = vpop.f32.mrb[176].mxu0 }
 0x6c7   : > { %v3970_v0 = vadd.f32 %v3969_v63, %v8963_v55  ;;  %v3971_v1 = vpop.f32.mrb[177].mxu0  ;;  %4887 = vmatprep.subr.bf16.mxu1 %v7379_v59  ;;  %v7395_v59 = vld [vmem:[%s9513_s3 + $0xc0] ss:$8 sps:$4 sm:$0xff]  }
 0x6c8   : > { %v3972_v46 = vadd.f32 %v3971_v1, %v8966_v40  ;;  %v3973_v5 = vpop.f32.mrb[178].mxu0  ;;  %4247 = vmatprep.mubr.bf16.mxu1 %v4047_v62 }
 0x6c9   : > { %v3974_v47 = vadd.f32 %v3973_v5, %v8963_v55  ;;  %v3975_v7 = vpop.f32.mrb[179].mxu0  ;;  %4248 = vmatmul.mubr.bf16.gmra.mrb[172].mxu1 %v4046_v61  ;;  %v4024_v8 = vmax.f32 %v3970_v0, 0.0  ;;  %v7400_v61 = vld [vmem:[%s9513_s3 + $0xd4] ss:$8 sps:$4 sm:$0xff]  }
 0x6ca   : > { %v3976_v51 = vadd.f32 %v3975_v7, %v8966_v40  ;;  %4888 = vmatpush1.bf16.msra.mxu1 %v7377_v42  ;;  %v4025_v11 = vmax.f32 %v3972_v46, 0.0  ;;  %v4394_v42 = vld [vmem:[%s9512_s2] sm:$0x3]  ;;  %v7398_v46 = vld [vmem:[%s9513_s3 + $0xd0] ss:$8 sps:$4 sm:$0xff]  }
 0x6cb   : > { %v4026_v9 = vmax.f32 %v3974_v47, 0.0  ;;  %4889 = vmatprep.subr.bf16.mxu1 %v7382_v4  ;;  %v9085_v7 = vrot.slane %v4394_v42, %v7877_v16 }
 0x6cc   : > { %v4027_v19 = vmax.f32 %v3976_v51, 0.0  ;;  %v7403_v51 = vld [vmem:[%s9513_s3 + $0xe4] ss:$8 sps:$4 sm:$0xff]  }
 0x6cd   : > { %v4048_v12 = vpack.c.bf16 %v4026_v9, %v4024_v8  ;;  %v9091_v8 = vrot.slane %v4394_v42, %v7882_v18 }
 0x6ce   : > { %v4049_v13 = vpack.c.bf16 %v4027_v19, %v4025_v11  ;;  %4890 = vmatpush1.bf16.msra.mxu1 %v7380_v54  ;;  %v3979_v3 = vpop.f32.mrb[180].mxu0  ;;  %v7401_v11 = vld [vmem:[%s9513_s3 + $0xe0] ss:$8 sps:$4 sm:$0xff]  }
 0x6cf   : > { %v3980_v22 = vadd.f32 %v3979_v3, %v8963_v55  ;;  %v3981_v23 = vpop.f32.mrb[181].mxu0  ;;  %4891 = vmatprep.subr.bf16.mxu1 %v7385_v10 }
 0x6d0   : > { %v3982_v26 = vadd.f32 %v3981_v23, %v8966_v40  ;;  %v3983_v28 = vpop.f32.mrb[182].mxu0  ;;  %4255 = vmatprep.mubr.bf16.mxu1 %v4049_v13  ;;  %v7406_v13 = vld [vmem:[%s9513_s3 + $0xf4] ss:$8 sps:$4 sm:$0xff]  }
 0x6d1   : > { %v3984_v29 = vadd.f32 %v3983_v28, %v8963_v55  ;;  %v3985_v30 = vpop.f32.mrb[183].mxu0  ;;  %4256 = vmatmul.mubr.bf16.gmra.mrb[176].mxu1 %v4048_v12  ;;  %v4028_v33 = vmax.f32 %v3980_v22, 0.0 }
 0x6d2   : > { %v3986_v31 = vadd.f32 %v3985_v30, %v8966_v40  ;;  %4892 = vmatpush1.bf16.msra.mxu1 %v7383_v21  ;;  %v4029_v36 = vmax.f32 %v3982_v26, 0.0  ;;  %v7404_v26 = vld [vmem:[%s9513_s3 + $0xf0] ss:$8 sps:$4 sm:$0xff]  }
 0x6d3   : > { %v4030_v34 = vmax.f32 %v3984_v29, 0.0  ;;  %4893 = vmatprep.subr.bf16.mxu1 %v7388_v25 }
 0x6d4   : > { %v4031_v20 = vmax.f32 %v3986_v31, 0.0 }
 0x6d5   : > { %v4050_v15 = vpack.c.bf16 %v4030_v34, %v4028_v33 }
 0x6d6   : > { %v4051_v17 = vpack.c.bf16 %v4031_v20, %v4029_v36  ;;  %4894 = vmatpush1.bf16.msra.mxu1 %v7386_v32  ;;  %v3989_v38 = vpop.f32.mrb[184].mxu0 }
 0x6d7   : > { %v3990_v39 = vadd.f32 %v3989_v38, %v8963_v55  ;;  %v3991_v6 = vpop.f32.mrb[185].mxu0  ;;  %4895 = vmatprep.subr.bf16.mxu1 %v7391_v35 }
 0x6d8   : > { %v3992_v24 = vadd.f32 %v3991_v6, %v8966_v40  ;;  %v3993_v27 = vpop.f32.mrb[186].mxu0  ;;  %4263 = vmatprep.mubr.bf16.mxu1 %v4051_v17 }
 0x6d9   : > { %v3994_v43 = vadd.f32 %v3993_v27, %v8963_v55  ;;  %v3995_v44 = vpop.f32.mrb[187].mxu0  ;;  %4264 = vmatmul.mubr.bf16.gmra.mrb[180].mxu1 %v4050_v15  ;;  %v4032_v49 = vmax.f32 %v3990_v39, 0.0 }
 0x6da   : > { %v3996_v45 = vadd.f32 %v3995_v44, %v8966_v40  ;;  %4896 = vmatpush1.bf16.msra.mxu1 %v7389_v14  ;;  %v4033_v53 = vmax.f32 %v3992_v24, 0.0 }
 0x6db   : > { %v4034_v50 = vmax.f32 %v3994_v43, 0.0  ;;  %4897 = vmatprep.subr.bf16.mxu1 %v7394_v41 }
 0x6dc   : > { %v4035_v37 = vmax.f32 %v3996_v45, 0.0 }
 0x6dd   : > { %v4052_v56 = vpack.c.bf16 %v4034_v50, %v4032_v49 }
 0x6de   : > { %v4053_v57 = vpack.c.bf16 %v4035_v37, %v4033_v53  ;;  %4898 = vmatpush1.bf16.msra.mxu1 %v7392_v48  ;;  %v3999_v58 = vpop.f32.mrb[188].mxu0 }
 0x6df   : > { %v4000_v2 = vadd.f32 %v3999_v58, %v8963_v55  ;;  %v4001_v60 = vpop.f32.mrb[189].mxu0  ;;  %4899 = vmatprep.subr.bf16.mxu1 %v7397_v52 }
 0x6e0   : > { %v4002_v62 = vadd.f32 %v4001_v60, %v8966_v40  ;;  %v4003_v63 = vpop.f32.mrb[190].mxu0  ;;  %4271 = vmatprep.mubr.bf16.mxu1 %v4053_v57 }
 0x6e1   : > { %v4004_v0 = vadd.f32 %v4003_v63, %v8963_v55  ;;  %v4005_v1 = vpop.f32.mrb[191].mxu0  ;;  %4272 = vmatmul.mubr.bf16.gmra.mrb[184].mxu1 %v4052_v56  ;;  %v4036_v5 = vmax.f32 %v4000_v2, 0.0 }
 0x6e2   : > { %v4006_v4 = vadd.f32 %v4005_v1, %v8966_v40  ;;  %4900 = vmatpush1.bf16.msra.mxu1 %v7395_v59  ;;  %v4037_v55 = vmax.f32 %v4002_v62, 0.0 }
 0x6e3   : > { %v4038_v47 = vmax.f32 %v4004_v0, 0.0  ;;  %4901 = vmatprep.subr.bf16.mxu1 %v7400_v61 }
 0x6e4   : > { %v4039_v54 = vmax.f32 %v4006_v4, 0.0 }
 0x6e5   : > { %v4054_v40 = vpack.c.bf16 %v4038_v47, %v4036_v5 }
 0x6e6   : > { %v4055_v9 = vpack.c.bf16 %v4039_v54, %v4037_v55  ;;  %4902 = vmatpush1.bf16.msra.mxu1 %v7398_v46  ;;  %v4544_v10 = vpop.f32.mrb[192].mxu0 }
 0x6e7   : > { %v4545_v19 = vadd.f32 %v4544_v10, %v9085_v7  ;;  %v4546_v12 = vpop.f32.mrb[193].mxu0  ;;  %4903 = vmatprep.subr.bf16.mxu1 %v7403_v51 }
 0x6e8   : > { %v4547_v3 = vadd.f32 %v4546_v12, %v9091_v8  ;;  %4279 = vmatprep.mubr.bf16.mxu1 %v4055_v9  ;;  %v4548_v21 = vpop.f32.mrb[194].mxu0 }
 0x6e9   : > { %v4549_v22 = vadd.f32 %v4548_v21, %v9085_v7  ;;  %4280 = vmatmul.mubr.bf16.gmra.mrb[188].mxu1 %v4054_v40  ;;  %v4550_v23 = vpop.f32.mrb[195].mxu0  ;;  %v4623_v28 = vmax.f32 %v4545_v19, 0.0 }
 0x6ea   : > { %v4551_v25 = vadd.f32 %v4550_v23, %v9091_v8  ;;  %4904 = vmatpush1.bf16.msra.mxu1 %v7401_v11  ;;  %v4624_v30 = vmax.f32 %v4547_v3, 0.0 }
 0x6eb   : > { %v4625_v29 = vmax.f32 %v4549_v22, 0.0  ;;  %4905 = vmatprep.subr.bf16.mxu1 %v7406_v13 }
 0x6ec   : > { %v4626_v31 = vmax.f32 %v4551_v25, 0.0 }
 0x6ed   : > { %v4655_v32 = vpack.c.bf16 %v4625_v29, %v4623_v28  ;;  %v7409_v29 = vld [vmem:[%s9515_s5 + $0x4] ss:$8 sps:$4 sm:$0xff]  }
 0x6ee   : > { %v4656_v33 = vpack.c.bf16 %v4626_v31, %v4624_v30  ;;  %4906 = vmatpush1.bf16.msra.mxu1 %v7404_v26  ;;  %v4554_v34 = vpop.f32.mrb[196].mxu0  ;;  %5240 = vmatprep.subr.bf16.mxu0 %v7409_v29  ;;  %v7434_v29 = vld [vmem:[%s9515_s5 + $0x90] ss:$8 sps:$4 sm:$0xff]  }
 0x6ef   : > { %v4555_v35 = vadd.f32 %v4554_v34, %v9085_v7  ;;  %v4556_v36 = vpop.f32.mrb[197].mxu0 }
 0x6f0   : > { %v4557_v20 = vadd.f32 %v4556_v36, %v9091_v8  ;;  %v4558_v15 = vpop.f32.mrb[198].mxu0  ;;  %4907 = vmatprep.mubr.bf16.mxu1 %v4656_v33 }
 0x6f1   : > { %v4559_v17 = vadd.f32 %v4558_v15, %v9085_v7  ;;  %v4560_v38 = vpop.f32.mrb[199].mxu0  ;;  %4908 = vmatmul.mubr.bf16.vlgmr.msra.gmra.mrb[192].mxu1 %v4655_v32  ;;  %v4627_v39 = vmax.f32 %v4555_v35, 0.0  ;;  %v7407_v32 = vld [vmem:[%s9515_s5] ss:$8 sps:$4 sm:$0xff]  }
 0x6f2   : > { %v4561_v14 = vadd.f32 %v4560_v38, %v9091_v8  ;;  %v4628_v41 = vmax.f32 %v4557_v20, 0.0  ;;  %5241 = vmatpush1.bf16.msra.mxu0 %v7407_v32  ;;  %v7442_v32 = vld [vmem:[%s9515_s5 + $0xb4] ss:$8 sps:$4 sm:$0xff]  }
 0x6f3   : > { %v4629_v6 = vmax.f32 %v4559_v17, 0.0  ;;  %v7412_v17 = vld [vmem:[%s9515_s5 + $0x14] ss:$8 sps:$4 sm:$0xff]  }
 0x6f4   : > { %v4630_v24 = vmax.f32 %v4561_v14, 0.0  ;;  %v7410_v14 = vld [vmem:[%s9515_s5 + $0x10] ss:$8 sps:$4 sm:$0xff]   ;;  %5242 = vmatprep.subr.bf16.mxu0 %v7412_v17  ;;  %v7449_v17 = vld [vmem:[%s9515_s5 + $0xe0] ss:$8 sps:$4 sm:$0xff]  }
 0x6f5   : > { %v4657_v27 = vpack.c.bf16 %v4629_v6, %v4627_v39 }
 0x6f6   : > { %v4658_v43 = vpack.c.bf16 %v4630_v24, %v4628_v41  ;;  %v4564_v44 = vpop.f32.mrb[200].mxu0  ;;  %5243 = vmatpush1.bf16.msra.mxu0 %v7410_v14  ;;  %v7452_v14 = vld [vmem:[%s9515_s5 + $0xf0] ss:$8 sps:$4 sm:$0xff]  }
 0x6f7   : > { %v4565_v45 = vadd.f32 %v4564_v44, %v9085_v7  ;;  %v4566_v48 = vpop.f32.mrb[201].mxu0 }
 0x6f8   : > { %v4567_v49 = vadd.f32 %v4566_v48, %v9091_v8  ;;  %v4568_v50 = vpop.f32.mrb[202].mxu0  ;;  %4917 = vmatprep.mubr.bf16.mxu1 %v4658_v43  ;;  %v7415_v43 = vld [vmem:[%s9515_s5 + $0x24] ss:$8 sps:$4 sm:$0xff]   ;;  %v7413_v48 = vld [vmem:[%s9515_s5 + $0x20] ss:$8 sps:$4 sm:$0xff]  }
 0x6f9   : > { %v4569_v52 = vadd.f32 %v4568_v50, %v9085_v7  ;;  %v4570_v53 = vpop.f32.mrb[203].mxu0  ;;  %4918 = vmatmul.mubr.bf16.gmra.mrb[196].mxu1 %v4657_v27  ;;  %v4631_v56 = vmax.f32 %v4565_v45, 0.0  ;;  %5244 = vmatprep.subr.bf16.mxu0 %v7415_v43 }
 0x6fa   : > { %v4571_v37 = vadd.f32 %v4570_v53, %v9091_v8  ;;  %v4632_v58 = vmax.f32 %v4567_v49, 0.0  ;;  %5245 = vmatpush1.bf16.msra.mxu0 %v7413_v48  ;;  %v9241_v48 = vld [vmem:[%s9517_s7] sm:$0xff]  }
 0x6fb   : > { %v4633_v57 = vmax.f32 %v4569_v52, 0.0 }
 0x6fc   : > { %v4634_v59 = vmax.f32 %v4571_v37, 0.0 }
 0x6fd   : > { %v4659_v2 = vpack.c.bf16 %v4633_v57, %v4631_v56  ;;  %v7418_v57 = vld [vmem:[%s9515_s5 + $0x34] ss:$8 sps:$4 sm:$0xff]  }
 0x6fe   : > { %v4660_v60 = vpack.c.bf16 %v4634_v59, %v4632_v58  ;;  %v4574_v61 = vpop.f32.mrb[204].mxu0  ;;  %v7416_v59 = vld [vmem:[%s9515_s5 + $0x30] ss:$8 sps:$4 sm:$0xff]   ;;  %5246 = vmatprep.subr.bf16.mxu0 %v7418_v57 }
 0x6ff   : > { %v4575_v62 = vadd.f32 %v4574_v61, %v9085_v7  ;;  %v4576_v63 = vpop.f32.mrb[205].mxu0  ;;  %5247 = vmatpush1.bf16.msra.mxu0 %v7416_v59 }
 0x700   : > { %v4577_v42 = vadd.f32 %v4576_v63, %v9091_v8  ;;  %v4578_v0 = vpop.f32.mrb[206].mxu0  ;;  %4927 = vmatprep.mubr.bf16.mxu1 %v4660_v60 }
 0x701   : > { %v4579_v1 = vadd.f32 %v4578_v0, %v9085_v7  ;;  %v4580_v4 = vpop.f32.mrb[207].mxu0  ;;  %4928 = vmatmul.mubr.bf16.gmra.mrb[200].mxu1 %v4659_v2  ;;  %v4635_v5 = vmax.f32 %v4575_v62, 0.0 }
 0x702   : > { %v4581_v46 = vadd.f32 %v4580_v4, %v9091_v8  ;;  %v4636_v51 = vmax.f32 %v4577_v42, 0.0  ;;  %v7421_v42 = vld [vmem:[%s9515_s5 + $0x44] ss:$8 sps:$4 sm:$0xff]   ;;  %v7419_v4 = vld [vmem:[%s9515_s5 + $0x40] ss:$8 sps:$4 sm:$0xff]  }
 0x703   : > { %v4637_v47 = vmax.f32 %v4579_v1, 0.0  ;;  %5248 = vmatprep.subr.bf16.mxu0 %v7421_v42 }
 0x704   : > { %v4638_v55 = vmax.f32 %v4581_v46, 0.0  ;;  %5249 = vmatpush1.bf16.msra.mxu0 %v7419_v4 }
 0x705   : > { %v4661_v54 = vpack.c.bf16 %v4637_v47, %v4635_v5 }
 0x706   : > { %v4662_v40 = vpack.c.bf16 %v4638_v55, %v4636_v51  ;;  %v4584_v9 = vpop.f32.mrb[208].mxu0 }
 0x707   : > { %v4585_v10 = vadd.f32 %v4584_v9, %v9085_v7  ;;  %v4586_v11 = vpop.f32.mrb[209].mxu0 }
 0x708   : > { %v4587_v19 = vadd.f32 %v4586_v11, %v9091_v8  ;;  %v4588_v12 = vpop.f32.mrb[210].mxu0  ;;  %4937 = vmatprep.mubr.bf16.mxu1 %v4662_v40  ;;  %v7424_v40 = vld [vmem:[%s9515_s5 + $0x54] ss:$8 sps:$4 sm:$0xff]  }
 0x709   : > { %v4589_v13 = vadd.f32 %v4588_v12, %v9085_v7  ;;  %v4590_v3 = vpop.f32.mrb[211].mxu0  ;;  %4938 = vmatmul.mubr.bf16.gmra.mrb[204].mxu1 %v4661_v54  ;;  %v4639_v22 = vmax.f32 %v4585_v10, 0.0  ;;  %v7422_v10 = vld [vmem:[%s9515_s5 + $0x50] ss:$8 sps:$4 sm:$0xff]   ;;  %5250 = vmatprep.subr.bf16.mxu0 %v7424_v40 }
 0x70a   : > { %v4591_v21 = vadd.f32 %v4590_v3, %v9091_v8  ;;  %v4640_v25 = vmax.f32 %v4587_v19, 0.0  ;;  %5251 = vmatpush1.bf16.msra.mxu0 %v7422_v10  ;;  %v9300_v10 = vld [vmem:[%s9517_s7 + $0x68] sm:$0xff]  }
 0x70b   : > { %v4641_v23 = vmax.f32 %v4589_v13, 0.0 }
 0x70c   : > { %v4642_v26 = vmax.f32 %v4591_v21, 0.0 }
 0x70d   : > { %v4663_v28 = vpack.c.bf16 %v4641_v23, %v4639_v22  ;;  %v7430_v22 = vld [vmem:[%s9515_s5 + $0x74] ss:$8 sps:$4 sm:$0xff]   ;;  %v7428_v23 = vld [vmem:[%s9515_s5 + $0x70] ss:$8 sps:$4 sm:$0xff]  }
 0x70e   : > { %v4664_v30 = vpack.c.bf16 %v4642_v26, %v4640_v25  ;;  %v4594_v31 = vpop.f32.mrb[212].mxu0  ;;  %v7433_v25 = vld [vmem:[%s9515_s5 + $0x84] ss:$8 sps:$4 sm:$0xff]   ;;  %v7431_v26 = vld [vmem:[%s9515_s5 + $0x80] ss:$8 sps:$4 sm:$0xff]  }
 0x70f   : > { %v4595_v33 = vadd.f32 %v4594_v31, %v9085_v7  ;;  %v4596_v34 = vpop.f32.mrb[213].mxu0  ;;  %v7437_v31 = vld [vmem:[%s9515_s5 + $0xa0] ss:$8 sps:$4 sm:$0xff]  }
 0x710   : > { %v4597_v35 = vadd.f32 %v4596_v34, %v9091_v8  ;;  %v4598_v36 = vpop.f32.mrb[214].mxu0  ;;  %4947 = vmatprep.mubr.bf16.mxu1 %v4664_v30  ;;  %v7439_v30 = vld [vmem:[%s9515_s5 + $0xa4] ss:$8 sps:$4 sm:$0xff]  }
 0x711   : > { %v4599_v20 = vadd.f32 %v4598_v36, %v9085_v7  ;;  %v4600_v15 = vpop.f32.mrb[215].mxu0  ;;  %4948 = vmatmul.mubr.bf16.gmra.mrb[208].mxu1 %v4663_v28  ;;  %v4643_v39 = vmax.f32 %v4595_v33, 0.0  ;;  %v7436_v28 = vld [vmem:[%s9515_s5 + $0x94] ss:$8 sps:$4 sm:$0xff]   ;;  %v7440_v33 = vld [vmem:[%s9515_s5 + $0xb0] ss:$8 sps:$4 sm:$0xff]  }
 0x712   : > { %v4601_v38 = vadd.f32 %v4600_v15, %v9091_v8  ;;  %v4644_v41 = vmax.f32 %v4597_v35, 0.0  ;;  %v7445_v34 = vld [vmem:[%s9515_s5 + $0xc4] ss:$8 sps:$4 sm:$0xff]   ;;  %v7443_v35 = vld [vmem:[%s9515_s5 + $0xc0] ss:$8 sps:$4 sm:$0xff]  }
 0x713   : > { %v4645_v6 = vmax.f32 %v4599_v20, 0.0  ;;  %v7448_v36 = vld [vmem:[%s9515_s5 + $0xd4] ss:$8 sps:$4 sm:$0xff]   ;;  %v7446_v20 = vld [vmem:[%s9515_s5 + $0xd0] ss:$8 sps:$4 sm:$0xff]  }
 0x714   : > { %v4646_v24 = vmax.f32 %v4601_v38, 0.0  ;;  %v7451_v15 = vld [vmem:[%s9515_s5 + $0xe4] ss:$8 sps:$4 sm:$0xff]   ;;  %v7454_v38 = vld [vmem:[%s9515_s5 + $0xf4] ss:$8 sps:$4 sm:$0xff]  }
 0x715   : > { %v4665_v27 = vpack.c.bf16 %v4645_v6, %v4643_v39 }
 0x716   : > { %v4666_v44 = vpack.c.bf16 %v4646_v24, %v4644_v41  ;;  %v4604_v45 = vpop.f32.mrb[216].mxu0 }
 0x717   : > { %v4605_v49 = vadd.f32 %v4604_v45, %v9085_v7  ;;  %v4606_v50 = vpop.f32.mrb[217].mxu0 }
 0x718   : > { %v4607_v52 = vadd.f32 %v4606_v50, %v9091_v8  ;;  %v4608_v53 = vpop.f32.mrb[218].mxu0  ;;  %4957 = vmatprep.mubr.bf16.mxu1 %v4666_v44  ;;  %v7455_v44 = vld [vmem:[%s9517_s7 + $0x40] sm:$0xff]  }
 0x719   : > { %v4609_v37 = vadd.f32 %v4608_v53, %v9085_v7  ;;  %v4610_v56 = vpop.f32.mrb[219].mxu0  ;;  %4958 = vmatmul.mubr.bf16.gmra.mrb[212].mxu1 %v4665_v27  ;;  %v4647_v2 = vmax.f32 %v4605_v49, 0.0  ;;  %v9233_v27 = vld [vmem:[%s9518_s8] ss:$0 sm:$0xff]  ;;  %6894 = vmatprep.subr.bf16.mxu1 %v7455_v44  ;;  %v9246_v49 = vld [vmem:[%s9517_s7 + $0x48] sm:$0xff]  }
 0x71a   : > { %v4611_v58 = vadd.f32 %v4610_v56, %v9091_v8  ;;  %v4648_v61 = vmax.f32 %v4607_v52, 0.0  ;;  %6902 = vmatpush3.bf16.msra.mxu1 %v9241_v48  ;;  %v9255_v56 = vld [vmem:[%s9517_s7 + $0x8] sm:$0xff]  }
 0x71b   : > { %v4649_v60 = vmax.f32 %v4609_v37, 0.0  ;;  %6895 = vmatprep.subr.bf16.mxu1 %v9246_v49 }
 0x71c   : > { %v4650_v62 = vmax.f32 %v4611_v58, 0.0  ;;  %v9260_v58 = vld [vmem:[%s9517_s7 + $0x50] sm:$0xff]  }
 0x71d   : > { %v4667_v63 = vpack.c.bf16 %v4649_v60, %v4647_v2 }
 0x71e   : > { %v4668_v0 = vpack.c.bf16 %v4650_v62, %v4648_v61  ;;  %v4614_v1 = vpop.f32.mrb[220].mxu0  ;;  %6903 = vmatpush3.bf16.msra.mxu1 %v9255_v56  ;;  %v9268_v62 = vld [vmem:[%s9517_s7 + $0x10] sm:$0xff]  }
 0x71f   : > { %v4615_v46 = vadd.f32 %v4614_v1, %v9085_v7  ;;  %v4616_v5 = vpop.f32.mrb[221].mxu0  ;;  %6896 = vmatprep.subr.bf16.mxu1 %v9260_v58 }
 0x720   : > { %v4617_v47 = vadd.f32 %v4616_v5, %v9091_v8  ;;  %v4618_v51 = vpop.f32.mrb[222].mxu0  ;;  %4967 = vmatprep.mubr.bf16.mxu1 %v4668_v0 }
 0x721   : > { %v4619_v55 = vadd.f32 %v4618_v51, %v9085_v7  ;;  %v4620_v54 = vpop.f32.mrb[223].mxu0  ;;  %4968 = vmatmul.mubr.bf16.gmra.mrb[216].mxu1 %v4667_v63  ;;  %v4651_v11 = vmax.f32 %v4615_v46, 0.0  ;;  %v7427_v7 = vld [vmem:[%s9515_s5 + $0x64] ss:$8 sps:$4 sm:$0xff]   ;;  %v9273_v63 = vld [vmem:[%s9517_s7 + $0x58] sm:$0xff]  }
 0x722   : > { %v4621_v9 = vadd.f32 %v4620_v54, %v9091_v8  ;;  %v4652_v12 = vmax.f32 %v4617_v47, 0.0  ;;  %v7425_v8 = vld [vmem:[%s9515_s5 + $0x60] ss:$8 sps:$4 sm:$0xff]   ;;  %5252 = vmatprep.subr.bf16.mxu0 %v7427_v7  ;;  %6904 = vmatpush3.bf16.msra.mxu1 %v9268_v62  ;;  %v9282_v46 = vld [vmem:[%s9517_s7 + $0x18] sm:$0xff]  }
 0x723   : > { %v4653_v19 = vmax.f32 %v4619_v55, 0.0  ;;  %5253 = vmatpush1.bf16.msra.mxu0 %v7425_v8  ;;  %6897 = vmatprep.subr.bf16.mxu1 %v9273_v63  ;;  %v9287_v47 = vld [vmem:[%s9517_s7 + $0x60] sm:$0xff]  }
 0x724   : > { %v4654_v13 = vmax.f32 %v4621_v9, 0.0  ;;  %5254 = vmatprep.subr.bf16.mxu0 %v7430_v22  ;;  %v9295_v9 = vld [vmem:[%s9517_s7 + $0x20] sm:$0xff]  }
 0x725   : > { %v4669_v3 = vpack.c.bf16 %v4653_v19, %v4651_v11 }
 0x726   : > { %v4670_v21 = vpack.c.bf16 %v4654_v13, %v4652_v12  ;;  %6905 = vmatpush3.bf16.msra.mxu1 %v9282_v46 }
 0x727   : > { %5255 = vmatpush1.bf16.msra.mxu0 %v7428_v23  ;;  %6898 = vmatprep.subr.bf16.mxu1 %v9287_v47 }
 0x728   : > { %4977 = vmatprep.mubr.bf16.mxu1 %v4670_v21  ;;  %5256 = vmatprep.subr.bf16.mxu0 %v7433_v25 }
 0x729   : > { %4978 = vmatmul.mubr.bf16.gmra.mrb[220].mxu1 %v4669_v3 }
 0x72a   : > { %6906 = vmatpush3.bf16.msra.mxu1 %v9295_v9 }
 0x72b   : > { %5257 = vmatpush1.bf16.msra.mxu0 %v7431_v26  ;;  %6899 = vmatprep.subr.bf16.mxu1 %v9300_v10 }
 0x72c   : > { %5258 = vmatprep.subr.bf16.mxu0 %v7436_v28 }
 0x72f   : > { %5259 = vmatpush1.bf16.msra.mxu0 %v7434_v29 }
 0x730   : > { %5260 = vmatprep.subr.bf16.mxu0 %v7439_v30 }
 0x733   : > { %5261 = vmatpush1.bf16.msra.mxu0 %v7437_v31 }
 0x734   : > { %5262 = vmatprep.subr.bf16.mxu0 %v7442_v32 }
 0x737   : > { %5263 = vmatpush1.bf16.msra.mxu0 %v7440_v33 }
 0x738   : > { %5264 = vmatprep.subr.bf16.mxu0 %v7445_v34 }
 0x73b   : > { %5265 = vmatpush1.bf16.msra.mxu0 %v7443_v35 }
 0x73c   : > { %5266 = vmatprep.subr.bf16.mxu0 %v7448_v36 }
 0x73f   : > { %5267 = vmatpush1.bf16.msra.mxu0 %v7446_v20 }
 0x740   : > { %5268 = vmatprep.subr.bf16.mxu0 %v7451_v15 }
 0x743   : > { %5269 = vmatpush1.bf16.msra.mxu0 %v7449_v17 }
 0x744   : > { %5270 = vmatprep.subr.bf16.mxu0 %v7454_v38 }
 0x747   : > { %5271 = vmatpush1.bf16.msra.mxu0 %v7452_v14 }
 0x748   : > { %6830 = vmatprep.subr.bf16.mxu0 %v7455_v44 }
 0x784   : > { %v6782_v39 = vpop.f32.mrb[160].mxu1 }
 0x785   : > { %v6783_v6 = vpop.f32.mrb[161].mxu1 }
 0x786   : > { %v6784_v41 = vadd.f32 %v6783_v6, %v6782_v39  ;;  %v6785_v24 = vpop.f32.mrb[162].mxu1 }
 0x787   : > { %v6786_v43 = vpop.f32.mrb[163].mxu1 }
 0x788   : > { %v6787_v45 = vadd.f32 %v6786_v43, %v6785_v24  ;;  %v4226_v50 = vadd.f32 %v6784_v41, %v9233_v27 }
 0x78a   : > { %v4229_v52 = vadd.f32 %v6787_v45, %v9233_v27 }
 0x78c   : > { %v6530_v53 = vpack.c.bf16 %v4229_v52, %v4226_v50  ;;  %v6788_v37 = vpop.f32.mrb[164].mxu1 }
 0x78d   : > { %v6789_v57 = vpop.f32.mrb[165].mxu1 }
 0x78e   : > { %6622 = vst [vmem:[%s8358_s22 + $0x80] sm:$0xff] %v6530_v53   ;;  %v6790_v59 = vadd.f32 %v6789_v57, %v6788_v37  ;;  %v6791_v2 = vpop.f32.mrb[166].mxu1 }
 0x78f   : > { %v6792_v60 = vpop.f32.mrb[167].mxu1 }
 0x790   : > { %v6793_v61 = vadd.f32 %v6792_v60, %v6791_v2  ;;  %v4234_v42 = vadd.f32 %v6790_v59, %v9233_v27 }
 0x792   : > { %v4237_v0 = vadd.f32 %v6793_v61, %v9233_v27 }
 0x794   : > { %v6535_v1 = vpack.c.bf16 %v4237_v0, %v4234_v42  ;;  %v6794_v4 = vpop.f32.mrb[168].mxu1  ;;  %v4703_v0 = vld [vmem:[%s9514_s4] sm:$0x3] }
 0x795   : > { %v6795_v5 = vpop.f32.mrb[169].mxu1 }
 0x796   : > { %6623 = vst [vmem:[%s8358_s22 + $0x88] sm:$0xff] %v6535_v1   ;;  %v6796_v51 = vadd.f32 %v6795_v5, %v6794_v4  ;;  %v6797_v55 = vpop.f32.mrb[170].mxu1  ;;  %v9323_v5 = vrot.slane %v4703_v0, %v7877_v16 }
 0x797   : > { %v6798_v54 = vpop.f32.mrb[171].mxu1 }
 0x798   : > { %v6799_v40 = vadd.f32 %v6798_v54, %v6797_v55  ;;  %v4242_v11 = vadd.f32 %v6796_v51, %v9233_v27  ;;  %v9328_v54 = vrot.slane %v4703_v0, %v7882_v18 }
 0x79a   : > { %v4245_v19 = vadd.f32 %v6799_v40, %v9233_v27 }
 0x79c   : > { %v6540_v12 = vpack.c.bf16 %v4245_v19, %v4242_v11  ;;  %v6800_v13 = vpop.f32.mrb[172].mxu1 }
 0x79d   : > { %v6801_v3 = vpop.f32.mrb[173].mxu1 }
 0x79e   : > { %6624 = vst [vmem:[%s8358_s22 + $0x90] sm:$0xff] %v6540_v12   ;;  %v6802_v7 = vadd.f32 %v6801_v3, %v6800_v13  ;;  %v6803_v21 = vpop.f32.mrb[174].mxu1 }
 0x79f   : > { %v6804_v8 = vpop.f32.mrb[175].mxu1 }
 0x7a0   : > { %v6805_v22 = vadd.f32 %v6804_v8, %v6803_v21  ;;  %v4250_v23 = vadd.f32 %v6802_v7, %v9233_v27 }
 0x7a2   : > { %v4253_v25 = vadd.f32 %v6805_v22, %v9233_v27 }
 0x7a4   : > { %v6545_v26 = vpack.c.bf16 %v4253_v25, %v4250_v23  ;;  %v6806_v28 = vpop.f32.mrb[176].mxu1 }
 0x7a5   : > { %v6807_v29 = vpop.f32.mrb[177].mxu1 }
 0x7a6   : > { %6625 = vst [vmem:[%s8358_s22 + $0x98] sm:$0xff] %v6545_v26   ;;  %v6808_v30 = vadd.f32 %v6807_v29, %v6806_v28  ;;  %v6809_v31 = vpop.f32.mrb[178].mxu1 }
 0x7a7   : > { %v6810_v32 = vpop.f32.mrb[179].mxu1 }
 0x7a8   : > { %v6811_v33 = vadd.f32 %v6810_v32, %v6809_v31  ;;  %v4258_v34 = vadd.f32 %v6808_v30, %v9233_v27 }
 0x7aa   : > { %v4261_v35 = vadd.f32 %v6811_v33, %v9233_v27 }
 0x7ac   : > { %v6550_v36 = vpack.c.bf16 %v4261_v35, %v4258_v34  ;;  %v6812_v20 = vpop.f32.mrb[180].mxu1 }
 0x7ad   : > { %v6813_v15 = vpop.f32.mrb[181].mxu1 }
 0x7ae   : > { %6626 = vst [vmem:[%s8358_s22 + $0xa0] sm:$0xff] %v6550_v36   ;;  %v6814_v17 = vadd.f32 %v6813_v15, %v6812_v20  ;;  %v6815_v38 = vpop.f32.mrb[182].mxu1 }
 0x7af   : > { %v6816_v14 = vpop.f32.mrb[183].mxu1 }
 0x7b0   : > { %v6817_v39 = vadd.f32 %v6816_v14, %v6815_v38  ;;  %v4266_v6 = vadd.f32 %v6814_v17, %v9233_v27 }
 0x7b2   : > { %v4269_v41 = vadd.f32 %v6817_v39, %v9233_v27 }
 0x7b4   : > { %v6555_v24 = vpack.c.bf16 %v4269_v41, %v4266_v6  ;;  %v6818_v43 = vpop.f32.mrb[184].mxu1 }
 0x7b5   : > { %v6819_v44 = vpop.f32.mrb[185].mxu1 }
 0x7b6   : > { %6627 = vst [vmem:[%s8358_s22 + $0xa8] sm:$0xff] %v6555_v24   ;;  %v6820_v45 = vadd.f32 %v6819_v44, %v6818_v43  ;;  %v6821_v50 = vpop.f32.mrb[186].mxu1 }
 0x7b7   : > { %v6822_v52 = vpop.f32.mrb[187].mxu1 }
 0x7b8   : > { %v6823_v53 = vadd.f32 %v6822_v52, %v6821_v50  ;;  %v4274_v37 = vadd.f32 %v6820_v45, %v9233_v27 }
 0x7ba   : > { %v4277_v57 = vadd.f32 %v6823_v53, %v9233_v27 }
 0x7bc   : > { %v6560_v59 = vpack.c.bf16 %v4277_v57, %v4274_v37  ;;  %v6824_v2 = vpop.f32.mrb[188].mxu1 }
 0x7bd   : > { %v6825_v60 = vpop.f32.mrb[189].mxu1 }
 0x7be   : > { %6628 = vst [vmem:[%s8358_s22 + $0xb0] sm:$0xff] %v6560_v59   ;;  %v6826_v61 = vadd.f32 %v6825_v60, %v6824_v2  ;;  %v6827_v42 = vpop.f32.mrb[190].mxu1 }
 0x7bf   : > { %v6828_v1 = vpop.f32.mrb[191].mxu1 }
 0x7c0   : > { %v6829_v4 = vadd.f32 %v6828_v1, %v6827_v42  ;;  %v4282_v51 = vadd.f32 %v6826_v61, %v9233_v27 }
 0x7c2   : > { %v4285_v55 = vadd.f32 %v6829_v4, %v9233_v27 }
 0x7c4   : > { %v6565_v40 = vpack.c.bf16 %v4285_v55, %v4282_v51  ;;  %v4909_v11 = vpop.f32.mrb[192].mxu1 }
 0x7c5   : > { %v4910_v19 = vadd.f32 %v4909_v11, %v9323_v5  ;;  %v4911_v12 = vpop.f32.mrb[193].mxu1 }
 0x7c6   : > { %6629 = vst [vmem:[%s8358_s22 + $0xb8] sm:$0xff] %v6565_v40   ;;  %v4912_v13 = vadd.f32 %v4911_v12, %v9328_v54  ;;  %v4913_v3 = vpop.f32.mrb[194].mxu1 }
 0x7c7   : > { %v4914_v7 = vadd.f32 %v4913_v3, %v9323_v5  ;;  %v4915_v21 = vpop.f32.mrb[195].mxu1  ;;  %v4988_v22 = vmax.f32 %v4910_v19, 0.0 }
 0x7c8   : > { %v4916_v8 = vadd.f32 %v4915_v21, %v9328_v54  ;;  %v4989_v27 = vmax.f32 %v4912_v13, 0.0 }
 0x7c9   : > { %v4990_v23 = vmax.f32 %v4914_v7, 0.0 }
 0x7ca   : > { %v4991_v25 = vmax.f32 %v4916_v8, 0.0 }
 0x7cb   : > { %v5020_v26 = vpack.c.bf16 %v4990_v23, %v4988_v22 }
 0x7cc   : > { %v5021_v28 = vpack.c.bf16 %v4991_v25, %v4989_v27  ;;  %v4919_v29 = vpop.f32.mrb[196].mxu1 }
 0x7cd   : > { %v4920_v30 = vadd.f32 %v4919_v29, %v9323_v5  ;;  %v4921_v31 = vpop.f32.mrb[197].mxu1 }
 0x7ce   : > { %v4922_v32 = vadd.f32 %v4921_v31, %v9328_v54  ;;  %v4923_v33 = vpop.f32.mrb[198].mxu1  ;;  %5272 = vmatprep.mubr.bf16.mxu0 %v5021_v28 }
 0x7cf   : > { %v4924_v34 = vadd.f32 %v4923_v33, %v9323_v5  ;;  %v4925_v35 = vpop.f32.mrb[199].mxu1  ;;  %5273 = vmatmul.mubr.bf16.vlgmr.msra.gmra.mrb[224].mxu0 %v5020_v26  ;;  %v4992_v20 = vmax.f32 %v4920_v30, 0.0 }
 0x7d0   : > { %v4926_v36 = vadd.f32 %v4925_v35, %v9328_v54  ;;  %6831 = vmatpush3.bf16.msra.mxu0 %v9241_v48  ;;  %v4993_v17 = vmax.f32 %v4922_v32, 0.0 }
 0x7d1   : > { %v4994_v15 = vmax.f32 %v4924_v34, 0.0  ;;  %6832 = vmatprep.subr.bf16.mxu0 %v9246_v49 }
 0x7d2   : > { %v4995_v38 = vmax.f32 %v4926_v36, 0.0 }
 0x7d3   : > { %v5022_v14 = vpack.c.bf16 %v4994_v15, %v4992_v20 }
 0x7d4   : > { %v5023_v39 = vpack.c.bf16 %v4995_v38, %v4993_v17  ;;  %v4929_v6 = vpop.f32.mrb[200].mxu1  ;;  %6833 = vmatpush3.bf16.msra.mxu0 %v9255_v56 }
 0x7d5   : > { %v4930_v41 = vadd.f32 %v4929_v6, %v9323_v5  ;;  %v4931_v24 = vpop.f32.mrb[201].mxu1  ;;  %6834 = vmatprep.subr.bf16.mxu0 %v9260_v58 }
 0x7d6   : > { %v4932_v43 = vadd.f32 %v4931_v24, %v9328_v54  ;;  %v4933_v44 = vpop.f32.mrb[202].mxu1  ;;  %5282 = vmatprep.mubr.bf16.mxu0 %v5023_v39 }
 0x7d7   : > { %v4934_v48 = vadd.f32 %v4933_v44, %v9323_v5  ;;  %v4935_v45 = vpop.f32.mrb[203].mxu1  ;;  %5283 = vmatmul.mubr.bf16.gmra.mrb[228].mxu0 %v5022_v14  ;;  %v4996_v50 = vmax.f32 %v4930_v41, 0.0 }
 0x7d8   : > { %v4936_v49 = vadd.f32 %v4935_v45, %v9328_v54  ;;  %6835 = vmatpush3.bf16.msra.mxu0 %v9268_v62  ;;  %v4997_v56 = vmax.f32 %v4932_v43, 0.0 }
 0x7d9   : > { %v4998_v52 = vmax.f32 %v4934_v48, 0.0  ;;  %6836 = vmatprep.subr.bf16.mxu0 %v9273_v63 }
 0x7da   : > { %v4999_v53 = vmax.f32 %v4936_v49, 0.0 }
 0x7db   : > { %v5024_v37 = vpack.c.bf16 %v4998_v52, %v4996_v50 }
 0x7dc   : > { %v5025_v58 = vpack.c.bf16 %v4999_v53, %v4997_v56  ;;  %v4939_v57 = vpop.f32.mrb[204].mxu1  ;;  %6837 = vmatpush3.bf16.msra.mxu0 %v9282_v46 }
 0x7dd   : > { %v4940_v59 = vadd.f32 %v4939_v57, %v9323_v5  ;;  %v4941_v2 = vpop.f32.mrb[205].mxu1  ;;  %6838 = vmatprep.subr.bf16.mxu0 %v9287_v47 }
 0x7de   : > { %v4942_v60 = vadd.f32 %v4941_v2, %v9328_v54  ;;  %v4943_v61 = vpop.f32.mrb[206].mxu1  ;;  %5292 = vmatprep.mubr.bf16.mxu0 %v5025_v58 }
 0x7df   : > { %v4944_v62 = vadd.f32 %v4943_v61, %v9323_v5  ;;  %v4945_v42 = vpop.f32.mrb[207].mxu1  ;;  %5293 = vmatmul.mubr.bf16.gmra.mrb[232].mxu0 %v5024_v37  ;;  %v5000_v0 = vmax.f32 %v4940_v59, 0.0 }
 0x7e0   : > { %v4946_v63 = vadd.f32 %v4945_v42, %v9328_v54  ;;  %6839 = vmatpush3.bf16.msra.mxu0 %v9295_v9  ;;  %v5001_v46 = vmax.f32 %v4942_v60, 0.0 }
 0x7e1   : > { %v5002_v1 = vmax.f32 %v4944_v62, 0.0  ;;  %6840 = vmatprep.subr.bf16.mxu0 %v9300_v10 }
 0x7e2   : > { %v5003_v4 = vmax.f32 %v4946_v63, 0.0 }
 0x7e3   : > { %v5026_v51 = vpack.c.bf16 %v5002_v1, %v5000_v0 }
 0x7e4   : > { %v5027_v47 = vpack.c.bf16 %v5003_v4, %v5001_v46  ;;  %v4949_v55 = vpop.f32.mrb[208].mxu1  ;;  %v7466_v46 = vld [vmem:[%s9517_s7 + $0x28] sm:$0xff]   ;;  %v7469_v4 = vld [vmem:[%s9517_s7 + $0x78] sm:$0xff]  }
 0x7e5   : > { %v4950_v40 = vadd.f32 %v4949_v55, %v9323_v5  ;;  %v4951_v11 = vpop.f32.mrb[209].mxu1  ;;  %6841 = vmatpush3.bf16.msra.mxu0 %v7466_v46  ;;  %6907 = vmatpush3.bf16.msra.mxu1 %v7466_v46 }
 0x7e6   : > { %v4952_v19 = vadd.f32 %v4951_v11, %v9328_v54  ;;  %v4953_v12 = vpop.f32.mrb[210].mxu1  ;;  %5302 = vmatprep.mubr.bf16.mxu0 %v5027_v47  ;;  %v5068_v47 = vld [vmem:[%s9516_s6] sm:$0x3] }
 0x7e7   : > { %v4954_v13 = vadd.f32 %v4953_v12, %v9323_v5  ;;  %v4955_v3 = vpop.f32.mrb[211].mxu1  ;;  %5303 = vmatmul.mubr.bf16.gmra.mrb[236].mxu0 %v5026_v51  ;;  %v5004_v7 = vmax.f32 %v4950_v40, 0.0  ;;  %v7470_v51 = vld [vmem:[%s9517_s7 + $0x38] sm:$0xff]   ;;  %v9392_v55 = vrot.slane %v5068_v47, %v7877_v16  ;;  %v9395_v40 = vrot.slane %v5068_v47, %v7882_v18 }
 0x7e8   : > { %v4956_v9 = vadd.f32 %v4955_v3, %v9328_v54  ;;  %v5005_v21 = vmax.f32 %v4952_v19, 0.0 }
 0x7e9   : > { %v5006_v10 = vmax.f32 %v4954_v13, 0.0 }
 0x7ea   : > { %v5007_v8 = vmax.f32 %v4956_v9, 0.0 }
 0x7eb   : > { %v5028_v22 = vpack.c.bf16 %v5006_v10, %v5004_v7 }
 0x7ec   : > { %v5029_v23 = vpack.c.bf16 %v5007_v8, %v5005_v21  ;;  %v4959_v27 = vpop.f32.mrb[212].mxu1 }
 0x7ed   : > { %v4960_v25 = vadd.f32 %v4959_v27, %v9323_v5  ;;  %v4961_v26 = vpop.f32.mrb[213].mxu1 }
 0x7ee   : > { %v4962_v28 = vadd.f32 %v4961_v26, %v9328_v54  ;;  %v4963_v29 = vpop.f32.mrb[214].mxu1  ;;  %5312 = vmatprep.mubr.bf16.mxu0 %v5029_v23 }
 0x7ef   : > { %v4964_v30 = vadd.f32 %v4963_v29, %v9323_v5  ;;  %v4965_v31 = vpop.f32.mrb[215].mxu1  ;;  %5313 = vmatmul.mubr.bf16.gmra.mrb[240].mxu0 %v5028_v22  ;;  %v5008_v33 = vmax.f32 %v4960_v25, 0.0 }
 0x7f0   : > { %v4966_v32 = vadd.f32 %v4965_v31, %v9328_v54  ;;  %v5009_v35 = vmax.f32 %v4962_v28, 0.0 }
 0x7f1   : > { %v5010_v34 = vmax.f32 %v4964_v30, 0.0 }
 0x7f2   : > { %v5011_v36 = vmax.f32 %v4966_v32, 0.0 }
 0x7f3   : > { %v5030_v20 = vpack.c.bf16 %v5010_v34, %v5008_v33 }
 0x7f4   : > { %v5031_v15 = vpack.c.bf16 %v5011_v36, %v5009_v35  ;;  %v4969_v17 = vpop.f32.mrb[216].mxu1 }
 0x7f5   : > { %v4970_v38 = vadd.f32 %v4969_v17, %v9323_v5  ;;  %v4971_v14 = vpop.f32.mrb[217].mxu1 }
 0x7f6   : > { %v4972_v39 = vadd.f32 %v4971_v14, %v9328_v54  ;;  %v4973_v6 = vpop.f32.mrb[218].mxu1  ;;  %5322 = vmatprep.mubr.bf16.mxu0 %v5031_v15 }
 0x7f7   : > { %v4974_v41 = vadd.f32 %v4973_v6, %v9323_v5  ;;  %v4975_v24 = vpop.f32.mrb[219].mxu1  ;;  %5323 = vmatmul.mubr.bf16.gmra.mrb[244].mxu0 %v5030_v20  ;;  %v5012_v44 = vmax.f32 %v4970_v38, 0.0 }
 0x7f8   : > { %v4976_v43 = vadd.f32 %v4975_v24, %v9328_v54  ;;  %v5013_v45 = vmax.f32 %v4972_v39, 0.0 }
 0x7f9   : > { %v5014_v48 = vmax.f32 %v4974_v41, 0.0 }
 0x7fa   : > { %v5015_v49 = vmax.f32 %v4976_v43, 0.0 }
 0x7fb   : > { %v5032_v50 = vpack.c.bf16 %v5014_v48, %v5012_v44 }
 0x7fc   : > { %v5033_v52 = vpack.c.bf16 %v5015_v49, %v5013_v45  ;;  %v4979_v56 = vpop.f32.mrb[220].mxu1 }
 0x7fd   : > { %v4980_v53 = vadd.f32 %v4979_v56, %v9323_v5  ;;  %v4981_v37 = vpop.f32.mrb[221].mxu1 }
 0x7fe   : > { %v4982_v58 = vadd.f32 %v4981_v37, %v9328_v54  ;;  %v4983_v57 = vpop.f32.mrb[222].mxu1  ;;  %5332 = vmatprep.mubr.bf16.mxu0 %v5033_v52 }
 0x7ff   : > { %v4984_v59 = vadd.f32 %v4983_v57, %v9323_v5  ;;  %v4985_v2 = vpop.f32.mrb[223].mxu1  ;;  %5333 = vmatmul.mubr.bf16.gmra.mrb[248].mxu0 %v5032_v50  ;;  %v5016_v61 = vmax.f32 %v4980_v53, 0.0  ;;  %v7467_v5 = vld [vmem:[%s9517_s7 + $0x70] sm:$0xff]  }
 0x800   : > { %v4986_v60 = vadd.f32 %v4985_v2, %v9328_v54  ;;  %v5017_v42 = vmax.f32 %v4982_v58, 0.0  ;;  %v7468_v54 = vld [vmem:[%s9517_s7 + $0x30] sm:$0xff]   ;;  %6842 = vmatprep.subr.bf16.mxu0 %v7467_v5  ;;  %6900 = vmatprep.subr.bf16.mxu1 %v7467_v5 }
 0x801   : > { %v5018_v62 = vmax.f32 %v4984_v59, 0.0  ;;  %6843 = vmatpush3.bf16.msra.mxu0 %v7468_v54  ;;  %6908 = vmatpush3.bf16.msra.mxu1 %v7468_v54 }
 0x802   : > { %v5019_v63 = vmax.f32 %v4986_v60, 0.0  ;;  %6844 = vmatprep.subr.bf16.mxu0 %v7469_v4  ;;  %6901 = vmatprep.subr.bf16.mxu1 %v7469_v4 }
 0x803   : > { %v5034_v0 = vpack.c.bf16 %v5018_v62, %v5016_v61 }
 0x804   : > { %v5035_v1 = vpack.c.bf16 %v5019_v63, %v5017_v42 }
 0x805   : > { %6845 = vmatpush3.bf16.msra.mxu0 %v7470_v51  ;;  %6909 = vmatpush3.bf16.msra.mxu1 %v7470_v51 }
 0x806   : > { %5342 = vmatprep.mubr.bf16.mxu0 %v5035_v1 }
 0x807   : > { %5343 = vmatmul.mubr.bf16.gmra.mrb[252].mxu0 %v5034_v0 }
 0x8a2   : > { %v5274_v11 = vpop.f32.mrb[224].mxu0 }
 0x8a3   : > { %v5275_v19 = vadd.f32 %v5274_v11, %v9392_v55  ;;  %v5276_v12 = vpop.f32.mrb[225].mxu0 }
 0x8a4   : > { %v5277_v13 = vadd.f32 %v5276_v12, %v9395_v40  ;;  %v5278_v3 = vpop.f32.mrb[226].mxu0 }
 0x8a5   : > { %v5279_v9 = vadd.f32 %v5278_v3, %v9392_v55  ;;  %v5280_v7 = vpop.f32.mrb[227].mxu0  ;;  %v5353_v21 = vmax.f32 %v5275_v19, 0.0 }
 0x8a6   : > { %v5281_v10 = vadd.f32 %v5280_v7, %v9395_v40  ;;  %v5354_v22 = vmax.f32 %v5277_v13, 0.0 }
 0x8a7   : > { %v5355_v8 = vmax.f32 %v5279_v9, 0.0 }
 0x8a8   : > { %v5356_v16 = vmax.f32 %v5281_v10, 0.0 }
 0x8a9   : > { %v5385_v23 = vpack.c.bf16 %v5355_v8, %v5353_v21 }
 0x8aa   : > { %v5386_v27 = vpack.c.bf16 %v5356_v16, %v5354_v22  ;;  %v5284_v18 = vpop.f32.mrb[228].mxu0 }
 0x8ab   : > { %v5285_v25 = vadd.f32 %v5284_v18, %v9392_v55  ;;  %v5286_v26 = vpop.f32.mrb[229].mxu0 }
 0x8ac   : > { %v5287_v28 = vadd.f32 %v5286_v26, %v9395_v40  ;;  %v5288_v29 = vpop.f32.mrb[230].mxu0  ;;  %5568 = vmatprep.mubr.bf16.mxu0 %v5386_v27 }
 0x8ad   : > { %v5289_v30 = vadd.f32 %v5288_v29, %v9392_v55  ;;  %v5290_v31 = vpop.f32.mrb[231].mxu0  ;;  %5569 = vmatmul.mubr.bf16.vlgmr.msra.gmra.mrb[0].mxu0 %v5385_v23  ;;  %v5357_v33 = vmax.f32 %v5285_v25, 0.0 }
 0x8ae   : > { %v5291_v32 = vadd.f32 %v5290_v31, %v9395_v40  ;;  %v5358_v35 = vmax.f32 %v5287_v28, 0.0 }
 0x8af   : > { %v5359_v34 = vmax.f32 %v5289_v30, 0.0 }
 0x8b0   : > { %v5360_v36 = vmax.f32 %v5291_v32, 0.0 }
 0x8b1   : > { %v5387_v20 = vpack.c.bf16 %v5359_v34, %v5357_v33 }
 0x8b2   : > { %v5388_v15 = vpack.c.bf16 %v5360_v36, %v5358_v35  ;;  %v5294_v17 = vpop.f32.mrb[232].mxu0 }
 0x8b3   : > { %v5295_v38 = vadd.f32 %v5294_v17, %v9392_v55  ;;  %v5296_v14 = vpop.f32.mrb[233].mxu0 }
 0x8b4   : > { %v5297_v39 = vadd.f32 %v5296_v14, %v9395_v40  ;;  %v5298_v6 = vpop.f32.mrb[234].mxu0  ;;  %5576 = vmatprep.mubr.bf16.mxu0 %v5388_v15 }
 0x8b5   : > { %v5299_v41 = vadd.f32 %v5298_v6, %v9392_v55  ;;  %v5300_v24 = vpop.f32.mrb[235].mxu0  ;;  %5577 = vmatmul.mubr.bf16.gmra.mrb[4].mxu0 %v5387_v20  ;;  %v5361_v44 = vmax.f32 %v5295_v38, 0.0 }
 0x8b6   : > { %v5301_v43 = vadd.f32 %v5300_v24, %v9395_v40  ;;  %v5362_v45 = vmax.f32 %v5297_v39, 0.0 }
 0x8b7   : > { %v5363_v48 = vmax.f32 %v5299_v41, 0.0 }
 0x8b8   : > { %v5364_v49 = vmax.f32 %v5301_v43, 0.0 }
 0x8b9   : > { %v5389_v50 = vpack.c.bf16 %v5363_v48, %v5361_v44 }
 0x8ba   : > { %v5390_v52 = vpack.c.bf16 %v5364_v49, %v5362_v45  ;;  %v5304_v56 = vpop.f32.mrb[236].mxu0 }
 0x8bb   : > { %v5305_v53 = vadd.f32 %v5304_v56, %v9392_v55  ;;  %v5306_v37 = vpop.f32.mrb[237].mxu0 }
 0x8bc   : > { %v5307_v58 = vadd.f32 %v5306_v37, %v9395_v40  ;;  %v5308_v57 = vpop.f32.mrb[238].mxu0  ;;  %5584 = vmatprep.mubr.bf16.mxu0 %v5390_v52 }
 0x8bd   : > { %v5309_v59 = vadd.f32 %v5308_v57, %v9392_v55  ;;  %v5310_v2 = vpop.f32.mrb[239].mxu0  ;;  %5585 = vmatmul.mubr.bf16.gmra.mrb[8].mxu0 %v5389_v50  ;;  %v5365_v61 = vmax.f32 %v5305_v53, 0.0 }
 0x8be   : > { %v5311_v60 = vadd.f32 %v5310_v2, %v9395_v40  ;;  %v5366_v42 = vmax.f32 %v5307_v58, 0.0 }
 0x8bf   : > { %v5367_v62 = vmax.f32 %v5309_v59, 0.0 }
 0x8c0   : > { %v5368_v63 = vmax.f32 %v5311_v60, 0.0 }
 0x8c1   : > { %v5391_v0 = vpack.c.bf16 %v5367_v62, %v5365_v61 }
 0x8c2   : > { %v5392_v1 = vpack.c.bf16 %v5368_v63, %v5366_v42  ;;  %v5314_v46 = vpop.f32.mrb[240].mxu0 }
 0x8c3   : > { %v5315_v5 = vadd.f32 %v5314_v46, %v9392_v55  ;;  %v5316_v54 = vpop.f32.mrb[241].mxu0 }
 0x8c4   : > { %v5317_v4 = vadd.f32 %v5316_v54, %v9395_v40  ;;  %v5318_v51 = vpop.f32.mrb[242].mxu0  ;;  %5592 = vmatprep.mubr.bf16.mxu1 %v5392_v1 }
 0x8c5   : > { %v5319_v47 = vadd.f32 %v5318_v51, %v9392_v55  ;;  %v5320_v11 = vpop.f32.mrb[243].mxu0  ;;  %5593 = vmatmul.mubr.bf16.vlgmr.msra.gmra.mrb[224].mxu1 %v5391_v0  ;;  %v5369_v12 = vmax.f32 %v5315_v5, 0.0 }
 0x8c6   : > { %v5321_v19 = vadd.f32 %v5320_v11, %v9395_v40  ;;  %v5370_v3 = vmax.f32 %v5317_v4, 0.0 }
 0x8c7   : > { %v5371_v13 = vmax.f32 %v5319_v47, 0.0 }
 0x8c8   : > { %v5372_v9 = vmax.f32 %v5321_v19, 0.0 }
 0x8c9   : > { %v5393_v7 = vpack.c.bf16 %v5371_v13, %v5369_v12 }
 0x8ca   : > { %v5394_v10 = vpack.c.bf16 %v5372_v9, %v5370_v3  ;;  %v5324_v21 = vpop.f32.mrb[244].mxu0 }
 0x8cb   : > { %v5325_v8 = vadd.f32 %v5324_v21, %v9392_v55  ;;  %v5326_v22 = vpop.f32.mrb[245].mxu0 }
 0x8cc   : > { %v5327_v16 = vadd.f32 %v5326_v22, %v9395_v40  ;;  %v5328_v23 = vpop.f32.mrb[246].mxu0  ;;  %5600 = vmatprep.mubr.bf16.mxu1 %v5394_v10 }
 0x8cd   : > { %v5329_v27 = vadd.f32 %v5328_v23, %v9392_v55  ;;  %v5330_v18 = vpop.f32.mrb[247].mxu0  ;;  %5601 = vmatmul.mubr.bf16.gmra.mrb[228].mxu1 %v5393_v7  ;;  %v5373_v26 = vmax.f32 %v5325_v8, 0.0 }
 0x8ce   : > { %v5331_v25 = vadd.f32 %v5330_v18, %v9395_v40  ;;  %v5374_v29 = vmax.f32 %v5327_v16, 0.0 }
 0x8cf   : > { %v5375_v28 = vmax.f32 %v5329_v27, 0.0 }
 0x8d0   : > { %v5376_v30 = vmax.f32 %v5331_v25, 0.0 }
 0x8d1   : > { %v5395_v31 = vpack.c.bf16 %v5375_v28, %v5373_v26 }
 0x8d2   : > { %v5396_v32 = vpack.c.bf16 %v5376_v30, %v5374_v29  ;;  %v5334_v33 = vpop.f32.mrb[248].mxu0 }
 0x8d3   : > { %v5335_v34 = vadd.f32 %v5334_v33, %v9392_v55  ;;  %v5336_v35 = vpop.f32.mrb[249].mxu0 }
 0x8d4   : > { %v5337_v36 = vadd.f32 %v5336_v35, %v9395_v40  ;;  %v5338_v20 = vpop.f32.mrb[250].mxu0  ;;  %5608 = vmatprep.mubr.bf16.mxu1 %v5396_v32 }
 0x8d5   : > { %v5339_v15 = vadd.f32 %v5338_v20, %v9392_v55  ;;  %v5340_v17 = vpop.f32.mrb[251].mxu0  ;;  %5609 = vmatmul.mubr.bf16.gmra.mrb[232].mxu1 %v5395_v31  ;;  %v5377_v14 = vmax.f32 %v5335_v34, 0.0 }
 0x8d6   : > { %v5341_v38 = vadd.f32 %v5340_v17, %v9395_v40  ;;  %v5378_v6 = vmax.f32 %v5337_v36, 0.0 }
 0x8d7   : > { %v5379_v39 = vmax.f32 %v5339_v15, 0.0 }
 0x8d8   : > { %v5380_v41 = vmax.f32 %v5341_v38, 0.0 }
 0x8d9   : > { %v5397_v24 = vpack.c.bf16 %v5379_v39, %v5377_v14 }
 0x8da   : > { %v5398_v43 = vpack.c.bf16 %v5380_v41, %v5378_v6  ;;  %v5344_v44 = vpop.f32.mrb[252].mxu0 }
 0x8db   : > { %v5345_v48 = vadd.f32 %v5344_v44, %v9392_v55  ;;  %v5346_v45 = vpop.f32.mrb[253].mxu0 }
 0x8dc   : > { %v5347_v49 = vadd.f32 %v5346_v45, %v9395_v40  ;;  %v5348_v50 = vpop.f32.mrb[254].mxu0  ;;  %5616 = vmatprep.mubr.bf16.mxu1 %v5398_v43 }
 0x8dd   : > { %v5349_v52 = vadd.f32 %v5348_v50, %v9392_v55  ;;  %v5350_v56 = vpop.f32.mrb[255].mxu0  ;;  %5617 = vmatmul.mubr.bf16.gmra.mrb[236].mxu1 %v5397_v24  ;;  %v5381_v37 = vmax.f32 %v5345_v48, 0.0  ;;  %v9432_v55 = vld [vmem:[%s9518_s8] ss:$0 sm:$0xff] }
 0x8de   : > { %v5351_v53 = vadd.f32 %v5350_v56, %v9395_v40  ;;  %v5382_v57 = vmax.f32 %v5347_v49, 0.0 }
 0x8df   : > { %v5383_v58 = vmax.f32 %v5349_v52, 0.0 }
 0x8e0   : > { %v5384_v59 = vmax.f32 %v5351_v53, 0.0 }
 0x8e1   : > { %v5399_v2 = vpack.c.bf16 %v5383_v58, %v5381_v37 }
 0x8e2   : > { %v5400_v60 = vpack.c.bf16 %v5384_v59, %v5382_v57 }
 0x8e4   : > { %5624 = vmatprep.mubr.bf16.mxu1 %v5400_v60 }
 0x8e5   : > { %5625 = vmatmul.mubr.bf16.gmra.mrb[240].mxu1 %v5399_v2 }
 0x980   : > { %v6846_v61 = vpop.f32.mrb[0].mxu0 }
 0x981   : > { %v6847_v62 = vpop.f32.mrb[1].mxu0 }
 0x982   : > { %v6848_v42 = vadd.f32 %v6847_v62, %v6846_v61  ;;  %v6849_v63 = vpop.f32.mrb[2].mxu0 }
 0x983   : > { %v6850_v0 = vpop.f32.mrb[3].mxu0 }
 0x984   : > { %v6851_v40 = vadd.f32 %v6850_v0, %v6849_v63  ;;  %v5571_v1 = vadd.f32 %v6848_v42, %v9432_v55 }
 0x986   : > { %v5574_v46 = vadd.f32 %v6851_v40, %v9432_v55 }
 0x988   : > { %v6570_v5 = vpack.c.bf16 %v5574_v46, %v5571_v1  ;;  %v6852_v54 = vpop.f32.mrb[4].mxu0 }
 0x989   : > { %v6853_v4 = vpop.f32.mrb[5].mxu0 }
 0x98a   : > { %6630 = vst [vmem:[%s8358_s22 + $0xc0] sm:$0xff] %v6570_v5   ;;  %v6854_v51 = vadd.f32 %v6853_v4, %v6852_v54  ;;  %v6855_v47 = vpop.f32.mrb[6].mxu0 }
 0x98b   : > { %v6856_v11 = vpop.f32.mrb[7].mxu0 }
 0x98c   : > { %v6857_v19 = vadd.f32 %v6856_v11, %v6855_v47  ;;  %v5579_v12 = vadd.f32 %v6854_v51, %v9432_v55 }
 0x98e   : > { %v5582_v13 = vadd.f32 %v6857_v19, %v9432_v55 }
 0x990   : > { %v6575_v3 = vpack.c.bf16 %v5582_v13, %v5579_v12  ;;  %v6858_v9 = vpop.f32.mrb[8].mxu0 }
 0x991   : > { %v6859_v7 = vpop.f32.mrb[9].mxu0 }
 0x992   : > { %6631 = vst [vmem:[%s8358_s22 + $0xc8] sm:$0xff] %v6575_v3   ;;  %v6860_v10 = vadd.f32 %v6859_v7, %v6858_v9  ;;  %v6861_v21 = vpop.f32.mrb[10].mxu0 }
 0x993   : > { %v6862_v8 = vpop.f32.mrb[11].mxu0 }
 0x994   : > { %v6863_v22 = vadd.f32 %v6862_v8, %v6861_v21  ;;  %v5587_v16 = vadd.f32 %v6860_v10, %v9432_v55 }
 0x996   : > { %v5590_v23 = vadd.f32 %v6863_v22, %v9432_v55 }
 0x998   : > { %v6580_v27 = vpack.c.bf16 %v5590_v23, %v5587_v16  ;;  %v6864_v18 = vpop.f32.mrb[224].mxu1 }
 0x999   : > { %v6865_v25 = vpop.f32.mrb[225].mxu1 }
 0x99a   : > { %6632 = vst [vmem:[%s8358_s22 + $0xd0] sm:$0xff] %v6580_v27   ;;  %v6866_v26 = vadd.f32 %v6865_v25, %v6864_v18  ;;  %v6867_v28 = vpop.f32.mrb[226].mxu1 }
 0x99b   : > { %v6868_v29 = vpop.f32.mrb[227].mxu1 }
 0x99c   : > { %v6869_v30 = vadd.f32 %v6868_v29, %v6867_v28  ;;  %v5595_v31 = vadd.f32 %v6866_v26, %v9432_v55 }
 0x99e   : > { %v5598_v32 = vadd.f32 %v6869_v30, %v9432_v55 }
 0x9a0   : > { %v6585_v33 = vpack.c.bf16 %v5598_v32, %v5595_v31  ;;  %v6870_v34 = vpop.f32.mrb[228].mxu1 }
 0x9a1   : > { %v6871_v35 = vpop.f32.mrb[229].mxu1 }
 0x9a2   : > { %6633 = vst [vmem:[%s8358_s22 + $0xd8] sm:$0xff] %v6585_v33   ;;  %v6872_v36 = vadd.f32 %v6871_v35, %v6870_v34  ;;  %v6873_v20 = vpop.f32.mrb[230].mxu1 }
 0x9a3   : > { %v6874_v15 = vpop.f32.mrb[231].mxu1 }
 0x9a4   : > { %v6875_v17 = vadd.f32 %v6874_v15, %v6873_v20  ;;  %v5603_v38 = vadd.f32 %v6872_v36, %v9432_v55 }
 0x9a6   : > { %v5606_v14 = vadd.f32 %v6875_v17, %v9432_v55 }
 0x9a8   : > { %v6590_v39 = vpack.c.bf16 %v5606_v14, %v5603_v38  ;;  %v6876_v6 = vpop.f32.mrb[232].mxu1 }
 0x9a9   : > { %v6877_v41 = vpop.f32.mrb[233].mxu1 }
 0x9aa   : > { %6634 = vst [vmem:[%s8358_s22 + $0xe0] sm:$0xff] %v6590_v39   ;;  %v6878_v24 = vadd.f32 %v6877_v41, %v6876_v6  ;;  %v6879_v43 = vpop.f32.mrb[234].mxu1 }
 0x9ab   : > { %v6880_v44 = vpop.f32.mrb[235].mxu1 }
 0x9ac   : > { %v6881_v48 = vadd.f32 %v6880_v44, %v6879_v43  ;;  %v5611_v45 = vadd.f32 %v6878_v24, %v9432_v55 }
 0x9ae   : > { %v5614_v49 = vadd.f32 %v6881_v48, %v9432_v55 }
 0x9b0   : > { %v6595_v50 = vpack.c.bf16 %v5614_v49, %v5611_v45  ;;  %v6882_v52 = vpop.f32.mrb[236].mxu1 }
 0x9b1   : > { %v6883_v56 = vpop.f32.mrb[237].mxu1 }
 0x9b2   : > { %6635 = vst [vmem:[%s8358_s22 + $0xe8] sm:$0xff] %v6595_v50   ;;  %v6884_v53 = vadd.f32 %v6883_v56, %v6882_v52  ;;  %v6885_v37 = vpop.f32.mrb[238].mxu1 }
 0x9b3   : > { %v6886_v58 = vpop.f32.mrb[239].mxu1 }
 0x9b4   : > { %v6887_v57 = vadd.f32 %v6886_v58, %v6885_v37  ;;  %v5619_v59 = vadd.f32 %v6884_v53, %v9432_v55 }
 0x9b6   : > { %v5622_v2 = vadd.f32 %v6887_v57, %v9432_v55 }
 0x9b8   : > { %v6600_v60 = vpack.c.bf16 %v5622_v2, %v5619_v59  ;;  %v6888_v61 = vpop.f32.mrb[240].mxu1 }
 0x9b9   : > { %v6889_v62 = vpop.f32.mrb[241].mxu1 }
 0x9ba   : > { %6636 = vst [vmem:[%s8358_s22 + $0xf0] sm:$0xff] %v6600_v60   ;;  %v6890_v42 = vadd.f32 %v6889_v62, %v6888_v61  ;;  %v6891_v63 = vpop.f32.mrb[242].mxu1 }
 0x9bb   : > { %v6892_v0 = vpop.f32.mrb[243].mxu1 }
 0x9bc   : > { %v6893_v40 = vadd.f32 %v6892_v0, %v6891_v63  ;;  %v5627_v1 = vadd.f32 %v6890_v42, %v9432_v55 }
 0x9be   : > { %v5630_v46 = vadd.f32 %v6893_v40, %v9432_v55 }
 0x9c0   : > { %v6605_v5 = vpack.c.bf16 %v5630_v46, %v5627_v1 }
 0x9c2   : > { %6637 = vst [vmem:[%s8358_s22 + $0xf8] sm:$0xff] %v6605_v5  }
 0x9c3   : > { %7490 = shalt.err (!%p7487_p3)
}
 0x9c4   : > { %s7491_s16 = scalar_lea.hbm %s9462_s27, 4096  ;;  %s7495_s17 = scalar_lea.hbm %s9519_s9, 8192 }
 0x9c5   : > { %p7492_p4 = scmp.ne.s32.totalorder %s9462_s27, %s7491_s16  ;;  %p7496_p9 = scmp.lt.u32.totalorder %s9462_s27, %s9519_s9 }
 0x9c6   : > { %p7497_p10 = scmp.lt.u32.totalorder %s7495_s17, %s7491_s16  ;;  %p7499_p12 = scmp.lt.u32.totalorder %s7491_s16, %s9462_s27 }
 0x9c7   : > { %p7493_p7 = pnand %p7492_p4, %p7633_p5 }
 0x9c8   : > { %p7498_p11 = por %p7497_p10, %p7496_p9 }
 0x9c9   : > { %p7494_p8 = pneg %p7493_p7 }
 0x9ca   : > { %p7500_p13 = por %p7499_p12, %p7498_p11 }
 0x9cc   : > { %p7501_p0 = pnand %p7500_p13, %p7494_p8 }
 0x9ce   : > { %7504 = shalt.err (!%p7501_p0)
}
 0x9cf   : > { %s7543_s26 = smov 64   ;;  %s7544_s13 = smov 4  }
 0x9d0   : > { %6910 = dma.vmem_to_hbm [thread:$0]  (%p7633_p5), %s9464_s18, 4096, %s9462_s27, %s9469_s28, %s7543_s26, %s7543_s26, %s7544_s13  }
 0x9d1 PF: > { %p6916_p1 = scmp.ge.s32.totalorder %s7539_s12, 2  ;;  %s5743_s29 = sand.u32 1, %s7527_s30  }
 0x9d2   : > { %s5744_s23 = scalar_lea.sflag [#allocation3], %s5743_s29 }
 0x9d3   : > { %p6913_p2 = pnand %p6916_p1, %p7637_p6 }
 0x9d5   : > { %7522 = dma.done.wait (!%p6913_p2), %s5744_s23, 4096  }
 0x9d6   : > { %7524 = vsyncadd (!%p6913_p2), %s5744_s23, 4294963200  ;;  %s9523_s24 = sld [smem:[#allocation5_spill]]  ;;  %p19_p3 = scmp.ge.s32.totalorder %s7620_s15, 4  }
 0x9d7   : > { %s9524_s30 = smov %s7531_s10  ;;  %s9525_s10 = smov %s7535_s11 }
 0x9d8   : > { %s9527_s12 = smov %s7620_s15  ;;  %21 = sbr.rel (!%p19_p3) target bundleno = 3 (0x3), region = 97 }
 0x9dc   : > { %s9526_s11 = smov %s9523_s24 }
 0x9df   :  { %5749 = vsyncpa [#allocation3], 1 }
 0x9e0   :  { %5751 = vsyncpa [#allocation3 + $0x1], 1 }

</bundles_post_ra>
